<compile_context>
chip_gen: v7x
topology: tpu7x:2x2x1
jax: 0.10.0
libtpu: 0.0.40
codegen_flags: <defaults>
</compile_context>

<pallas_src>
import jax
import jax.numpy as jnp
from jax import lax
from jax.experimental import pallas as pl
from jax.experimental.pallas import tpu as pltpu


# ------------------------------- Pallas kernel -------------------------------

def _lenet_kernel(x_ref, w1_ref, b1_ref, w2_ref, b2_ref,
                  fw1_ref, fb1_ref, fw2_ref, fb2_ref, fw3_ref, fb3_ref,
                  out_ref, p1_ref):
    f32 = jnp.float32
    bf16 = jnp.bfloat16
    Bt = x_ref.shape[0]

    # ---- conv1 + bias + ReLU + 2x2 max-pool (fused, MXU) --------------------
    # x_ref[b, parity, h_p*12 + w_p, k] holds the 5x5 im2col patch (k = i*5+j,
    # 25 taps padded to 32) of the conv1 output position inside pooling window
    # (h_p, w_p) with parity (dh, dw).  One matmul per parity; the 2x2 pool is
    # then a pure element-wise max (no sublane shuffles).
    w1 = w1_ref[...]                      # (32, 128) bf16, hoisted
    b1 = b1_ref[...]                      # (1, 128) f32, hoisted
    pooled = None
    for par in range(4):
        lhs = x_ref[:, par, :, :].reshape(Bt * 144, 32)          # bf16, layout-free
        y = jnp.dot(lhs, w1, preferred_element_type=f32)          # (Bt*144, 128)
        y = jnp.maximum(y + b1, 0.0)
        pooled = y if pooled is None else jnp.maximum(pooled, y)
    p1_ref[...] = pooled.astype(bf16).reshape(Bt, 12, 12, 128)    # bf16 p1 scratch

    # ---- conv2 + bias + ReLU (25 shifted bf16 MXU matmuls, f32 accumulate) --
    b2 = b2_ref[...]
    acc2 = jnp.zeros((Bt * 64, 128), dtype=f32)
    for j in range(5):
        # One w-shifted view per column tap; the row-tap slices below are then
        # sublane-aligned so the 2-D collapse for the MXU is layout-free.
        p1j = p1_ref[:, :, j:j + 8, :]                            # (Bt, 12, 8, 128) bf16
        for i in range(5):
            lhs = p1j[:, i:i + 8].reshape(Bt * 64, 128)           # (Bt*64, 128) bf16
            acc2 = acc2 + jnp.dot(lhs, w2_ref[i, j], preferred_element_type=f32)
    c2 = jnp.maximum(acc2 + b2, 0.0).reshape(Bt, 8, 8, 128)       # (Bt, 8, 8, 128) f32

    # ---- 2x2 max-pool + flatten + fc1 (fused, 16 per-position matmuls) ------
    fb1 = fb1_ref[...]
    h = jnp.zeros((Bt, 128), dtype=f32)
    for hp in range(4):
        rmax = jnp.maximum(c2[:, 2 * hp], c2[:, 2 * hp + 1])          # (Bt, 8, 128)
        for wp in range(4):
            v = jnp.maximum(rmax[:, 2 * wp], rmax[:, 2 * wp + 1])     # (Bt, 128)
            h = h + jnp.dot(v.astype(bf16), fw1_ref[hp, wp],
                            preferred_element_type=f32)
    h = jnp.maximum(h + fb1, 0.0)

    # ---- fc2 + ReLU, fc3 (logits padded to 128 lanes; sliced outside) -------
    h = jnp.maximum(jnp.dot(h.astype(bf16), fw2_ref[...],
                            preferred_element_type=f32) + fb2_ref[...], 0.0)
    out_ref[...] = jnp.dot(h.astype(bf16), fw3_ref[...],
                           preferred_element_type=f32) + fb3_ref[...]


# ------------------------------ JAX-side wrappers -----------------------------

def prepare_params(params):
    """One-time re-layout of PyTorch-style parameters (call OUTSIDE the hot path)."""
    f32 = jnp.float32
    bf16 = jnp.bfloat16

    # conv1: (6,1,5,5) -> im2col RHS (25,6) -> pad (32,128) bf16
    w1 = params["conv1_w"].reshape(6, 25).T.astype(f32)                  # (25, 6)
    w1 = jnp.pad(w1, ((0, 7), (0, 122))).astype(bf16)                    # (32, 128)
    b1 = jnp.pad(params["conv1_b"].astype(f32), (0, 122)).reshape(1, 128)

    # conv2: (16,6,5,5) -> (5,5,6,16) -> pad (5,5,128,128) bf16
    w2 = jnp.transpose(params["conv2_w"], (2, 3, 1, 0)).astype(f32)
    w2 = jnp.pad(w2, ((0, 0), (0, 0), (0, 122), (0, 112))).astype(bf16)
    b2 = jnp.pad(params["conv2_b"].astype(f32), (0, 112)).reshape(1, 128)

    # fc1: (120,256); PyTorch flatten order of the 256 inputs is (c,h,w).
    # Reorder to (h,w,c,out) so the kernel's channels-in-lanes map needs no transpose.
    fw1 = params["fc1_w"].reshape(120, 16, 4, 4)                         # (out,c,h,w)
    fw1 = jnp.transpose(fw1, (2, 3, 1, 0)).astype(f32)                   # (h,w,c,out)
    fw1 = jnp.pad(fw1, ((0, 0), (0, 0), (0, 112), (0, 8))).astype(bf16)  # (4,4,128,128)
    fb1 = jnp.pad(params["fc1_b"].astype(f32), (0, 8)).reshape(1, 128)

    fw2 = jnp.pad(params["fc2_w"].T.astype(f32), ((0, 8), (0, 44))).astype(bf16)
    fb2 = jnp.pad(params["fc2_b"].astype(f32), (0, 44)).reshape(1, 128)
    fw3 = jnp.pad(params["fc3_w"].T.astype(f32), ((0, 44), (0, 118))).astype(bf16)
    fb3 = jnp.pad(params["fc3_b"].astype(f32), (0, 118)).reshape(1, 128)
    return dict(w1=w1, b1=b1, w2=w2, b2=b2, fw1=fw1, fb1=fb1,
                fw2=fw2, fb2=fb2, fw3=fw3, fb3=fb3)


def _conv1_pooled_patches(x):
    """x (B,1,28,28) f32 -> conv1 im2col patches split by pool parity: (B,4,144,32) bf16.

    Pure gather / layout prep (no arithmetic) left to XLA so the kernel sees a
    lane-friendly MXU operand instead of a size-1-lane image.
    """
    B = x.shape[0]
    xs = x[:, 0].astype(jnp.float32)                                     # (B,28,28)
    cols = jnp.stack([xs[:, i:i + 24, j:j + 24]
                      for i in range(5) for j in range(5)], axis=-1)     # (B,24,24,25)
    pars = [cols[:, dh::2, dw::2, :] for dh in (0, 1) for dw in (0, 1)]  # 4x (B,12,12,25)
    pat = jnp.stack(pars, axis=1).reshape(B, 4, 144, 25)
    pat = jnp.pad(pat, ((0, 0), (0, 0), (0, 0), (0, 7)))                 # K 25 -> 32
    return pat.astype(jnp.bfloat16)


def lenet_forward(prepped, x, *, b_tile=32):
    """x: (B, 1, 28, 28) NCHW float32 -> logits (B, 10)."""
    B = x.shape[0]
    pat = _conv1_pooled_patches(x)                                       # (B,4,144,32)

    if B <= b_tile:
        bt, Bp = B, B
    else:
        assert b_tile % 8 == 0, "b_tile must be a multiple of 8"
        bt = b_tile
        Bp = ((B + bt - 1) // bt) * bt
        if Bp != B:
            pat = jnp.pad(pat, ((0, Bp - B), (0, 0), (0, 0), (0, 0)))
    grid = (Bp // bt,)

    weights = (prepped["w1"], prepped["b1"], prepped["w2"], prepped["b2"],
               prepped["fw1"], prepped["fb1"], prepped["fw2"], prepped["fb2"],
               prepped["fw3"], prepped["fb3"])

    macs = 576 * 25 * 6 + 64 * 25 * 6 * 16 + 256 * 120 + 120 * 84 + 84 * 10
    weight_bytes = sum(int(w.size) * w.dtype.itemsize for w in weights)
    cost = pl.CostEstimate(
        flops=2 * macs * Bp,
        transcendentals=0,
        bytes_accessed=int(pat.size) * pat.dtype.itemsize + weight_bytes + Bp * 128 * 4,
    )

    weight_specs = [pl.BlockSpec(w.shape, (lambda nd: (lambda i: (0,) * nd))(w.ndim))
                    for w in weights]

    out_pad = pl.pallas_call(
        _lenet_kernel,
        out_shape=jax.ShapeDtypeStruct((Bp, 128), jnp.float32),
        grid=grid,
        in_specs=[pl.BlockSpec((bt, 4, 144, 32), lambda i: (i, 0, 0, 0))] + weight_specs,
        out_specs=pl.BlockSpec((bt, 128), lambda i: (i, 0)),
        scratch_shapes=[pltpu.VMEM((bt, 12, 12, 128), jnp.bfloat16)],    # p1 (pool1 out)
        compiler_params=pltpu.CompilerParams(
            dimension_semantics=("parallel",),          # v7x: shard batch over 2 TCs
            vmem_limit_bytes=40 * 1024 * 1024,
        ),
        cost_estimate=cost,
    )(pat, *weights)
    return out_pad[:B, :10]


# ------------------------------ reference & init ------------------------------

def lenet_reference(params, x):
    """Pure-JAX f32 reference of the PyTorch module (for correctness check)."""
    dn = ("NCHW", "OIHW", "NCHW")
    y = lax.conv_general_dilated(x, params["conv1_w"], (1, 1), "VALID",
                                 dimension_numbers=dn)
    y = jnp.maximum(y + params["conv1_b"][None, :, None, None], 0.0)
    y = lax.reduce_window(y, -jnp.inf, lax.max, (1, 1, 2, 2), (1, 1, 2, 2), "VALID")
    y = lax.conv_general_dilated(y, params["conv2_w"], (1, 1), "VALID",
                                 dimension_numbers=dn)
    y = jnp.maximum(y + params["conv2_b"][None, :, None, None], 0.0)
    y = lax.reduce_window(y, -jnp.inf, lax.max, (1, 1, 2, 2), (1, 1, 2, 2), "VALID")
    y = y.reshape(y.shape[0], -1)
    y = jnp.maximum(y @ params["fc1_w"].T + params["fc1_b"], 0.0)
    y = jnp.maximum(y @ params["fc2_w"].T + params["fc2_b"], 0.0)
    return y @ params["fc3_w"].T + params["fc3_b"]


def init_params(key):
    """Deterministic init mimicking PyTorch default U(-1/sqrt(fan_in), +)."""
    def uniform(k, shape, fan_in):
        bound = 1.0 / (fan_in ** 0.5)
        return jax.random.uniform(k, shape, jnp.float32, -bound, bound)
    ks = jax.random.split(key, 10)
    return {
        "conv1_w": uniform(ks[0], (6, 1, 5, 5), 1 * 5 * 5),
        "conv1_b": uniform(ks[1], (6,), 1 * 5 * 5),
        "conv2_w": uniform(ks[2], (16, 6, 5, 5), 6 * 5 * 5),
        "conv2_b": uniform(ks[3], (16,), 6 * 5 * 5),
        "fc1_w": uniform(ks[4], (120, 256), 256),
        "fc1_b": uniform(ks[5], (120,), 256),
        "fc2_w": uniform(ks[6], (84, 120), 120),
        "fc2_b": uniform(ks[7], (84,), 120),
        "fc3_w": uniform(ks[8], (10, 84), 84),
        "fc3_b": uniform(ks[9], (10,), 84),
    }


if __name__ == "__main__":
    key = jax.random.PRNGKey(0)
    k_params, k_x = jax.random.split(key)
    params = init_params(k_params)
    prepped = prepare_params(params)          # one-time weight re-layout, outside jit

    fwd = jax.jit(lambda p, xx: lenet_forward(p, xx, b_tile=8))

    # LeNet geometry forces 1x28x28 inputs (fc1 expects 16*4*4 = 256 features).
    # Case 1: batch=2, single grid step.
    x = jax.random.normal(k_x, (2, 1, 28, 28), jnp.float32)
    out = fwd(prepped, x)
    jax.block_until_ready(out)
    ref = lenet_reference(params, x)
    assert out.shape == (2, 10) and out.dtype == jnp.float32
    assert bool(jnp.all(jnp.isfinite(out)))
    assert float(jnp.max(jnp.abs(out - ref))) < 5e-2   # bf16 MXU vs f32 reference

    # Case 2: batch=13 with B_TILE=8 -> exercises the batch grid (2 tiles) + padding.
    x2 = jax.random.normal(k_x, (13, 1, 28, 28), jnp.float32)
    out2 = fwd(prepped, x2)
    jax.block_until_ready(out2)
    ref2 = lenet_reference(params, x2)
    assert out2.shape == (13, 10)
    assert bool(jnp.all(jnp.isfinite(out2)))
    assert float(jnp.max(jnp.abs(out2 - ref2))) < 5e-2

    print("KERNEL_OK")
</pallas_src>

<mosaic_0001>
module attributes {stable_mosaic.version = 11 : i64} {
  func.func @_lenet_kernel(%arg0: i32, %arg1: memref<2x4x144x32xbf16, #tpu.memory_space<vmem>>, %arg2: memref<32x128xbf16, #tpu.memory_space<vmem>>, %arg3: memref<1x128xf32, #tpu.memory_space<vmem>>, %arg4: memref<5x5x128x128xbf16, #tpu.memory_space<vmem>>, %arg5: memref<1x128xf32, #tpu.memory_space<vmem>>, %arg6: memref<4x4x128x128xbf16, #tpu.memory_space<vmem>>, %arg7: memref<1x128xf32, #tpu.memory_space<vmem>>, %arg8: memref<128x128xbf16, #tpu.memory_space<vmem>>, %arg9: memref<1x128xf32, #tpu.memory_space<vmem>>, %arg10: memref<128x128xbf16, #tpu.memory_space<vmem>>, %arg11: memref<1x128xf32, #tpu.memory_space<vmem>>, %arg12: memref<2x128xf32, #tpu.memory_space<vmem>>, %arg13: memref<2x12x12x128xbf16, #tpu.memory_space<vmem>>) attributes {dimension_semantics = [#tpu.dimension_semantics<parallel>], iteration_bounds = array<i64: 1>, scalar_prefetch = 0 : i64, scratch_operands = 1 : i64, tpu.core_type = #tpu.core_type<tc>, window_params = [{transform_indices = @transform_0, window_bounds = array<i64: 2, 4, 144, 32>}, {pipeline_mode = #tpu.pipeline_mode<synchronous>, transform_indices = @transform_1, window_bounds = array<i64: 32, 128>}, {pipeline_mode = #tpu.pipeline_mode<synchronous>, transform_indices = @transform_2, window_bounds = array<i64: 1, 128>}, {pipeline_mode = #tpu.pipeline_mode<synchronous>, transform_indices = @transform_3, window_bounds = array<i64: 5, 5, 128, 128>}, {pipeline_mode = #tpu.pipeline_mode<synchronous>, transform_indices = @transform_4, window_bounds = array<i64: 1, 128>}, {pipeline_mode = #tpu.pipeline_mode<synchronous>, transform_indices = @transform_5, window_bounds = array<i64: 4, 4, 128, 128>}, {pipeline_mode = #tpu.pipeline_mode<synchronous>, transform_indices = @transform_6, window_bounds = array<i64: 1, 128>}, {pipeline_mode = #tpu.pipeline_mode<synchronous>, transform_indices = @transform_7, window_bounds = array<i64: 128, 128>}, {pipeline_mode = #tpu.pipeline_mode<synchronous>, transform_indices = @transform_8, window_bounds = array<i64: 1, 128>}, {pipeline_mode = #tpu.pipeline_mode<synchronous>, transform_indices = @transform_9, window_bounds = array<i64: 128, 128>}, {pipeline_mode = #tpu.pipeline_mode<synchronous>, transform_indices = @transform_10, window_bounds = array<i64: 1, 128>}, {transform_indices = @transform_11, window_bounds = array<i64: 2, 128>}]} {
    %c0 = arith.constant 0 : index
    %c0_0 = arith.constant 0 : index
    %0 = vector.load %arg2[%c0, %c0_0] : memref<32x128xbf16, #tpu.memory_space<vmem>>, vector<32x128xbf16>
    %c0_1 = arith.constant 0 : index
    %c0_2 = arith.constant 0 : index
    %1 = vector.load %arg3[%c0_1, %c0_2] : memref<1x128xf32, #tpu.memory_space<vmem>>, vector<1x128xf32>
    %c0_3 = arith.constant 0 : index
    %c0_4 = arith.constant 0 : index
    %c0_5 = arith.constant 0 : index
    %c0_6 = arith.constant 0 : index
    %2 = vector.load %arg1[%c0_3, %c0_4, %c0_5, %c0_6] : memref<2x4x144x32xbf16, #tpu.memory_space<vmem>>, vector<2x1x144x32xbf16>
    %3 = vector.shape_cast %2 : vector<2x1x144x32xbf16> to vector<2x144x32xbf16>
    %4 = vector.shape_cast %3 : vector<2x144x32xbf16> to vector<288x32xbf16>
    %cst = arith.constant dense<0.000000e+00> : vector<288x128xf32>
    %5 = tpu.matmul %4, %0, %cst {dimension_numbers = #tpu.dot_dimension_numbers<[1], [0], [0], [1], [0, 0, 1, 1], [], []>} : vector<288x32xbf16>, vector<32x128xbf16>, vector<288x128xf32> -> vector<288x128xf32>
    %6 = vector.broadcast %1 : vector<1x128xf32> to vector<288x128xf32>
    %7 = arith.addf %5, %6 : vector<288x128xf32>
    %cst_7 = arith.constant 0.000000e+00 : f32
    %8 = vector.broadcast %cst_7 : f32 to vector<288x128xf32>
    %9 = arith.maximumf %7, %8 : vector<288x128xf32>
    %c0_8 = arith.constant 0 : index
    %c1 = arith.constant 1 : index
    %c0_9 = arith.constant 0 : index
    %c0_10 = arith.constant 0 : index
    %10 = vector.load %arg1[%c0_8, %c1, %c0_9, %c0_10] : memref<2x4x144x32xbf16, #tpu.memory_space<vmem>>, vector<2x1x144x32xbf16>
    %11 = vector.shape_cast %10 : vector<2x1x144x32xbf16> to vector<2x144x32xbf16>
    %12 = vector.shape_cast %11 : vector<2x144x32xbf16> to vector<288x32xbf16>
    %cst_11 = arith.constant dense<0.000000e+00> : vector<288x128xf32>
    %13 = tpu.matmul %12, %0, %cst_11 {dimension_numbers = #tpu.dot_dimension_numbers<[1], [0], [0], [1], [0, 0, 1, 1], [], []>} : vector<288x32xbf16>, vector<32x128xbf16>, vector<288x128xf32> -> vector<288x128xf32>
    %14 = vector.broadcast %1 : vector<1x128xf32> to vector<288x128xf32>
    %15 = arith.addf %13, %14 : vector<288x128xf32>
    %cst_12 = arith.constant 0.000000e+00 : f32
    %16 = vector.broadcast %cst_12 : f32 to vector<288x128xf32>
    %17 = arith.maximumf %15, %16 : vector<288x128xf32>
    %18 = arith.maximumf %9, %17 : vector<288x128xf32>
    %c0_13 = arith.constant 0 : index
    %c2 = arith.constant 2 : index
    %c0_14 = arith.constant 0 : index
    %c0_15 = arith.constant 0 : index
    %19 = vector.load %arg1[%c0_13, %c2, %c0_14, %c0_15] : memref<2x4x144x32xbf16, #tpu.memory_space<vmem>>, vector<2x1x144x32xbf16>
    %20 = vector.shape_cast %19 : vector<2x1x144x32xbf16> to vector<2x144x32xbf16>
    %21 = vector.shape_cast %20 : vector<2x144x32xbf16> to vector<288x32xbf16>
    %cst_16 = arith.constant dense<0.000000e+00> : vector<288x128xf32>
    %22 = tpu.matmul %21, %0, %cst_16 {dimension_numbers = #tpu.dot_dimension_numbers<[1], [0], [0], [1], [0, 0, 1, 1], [], []>} : vector<288x32xbf16>, vector<32x128xbf16>, vector<288x128xf32> -> vector<288x128xf32>
    %23 = vector.broadcast %1 : vector<1x128xf32> to vector<288x128xf32>
    %24 = arith.addf %22, %23 : vector<288x128xf32>
    %cst_17 = arith.constant 0.000000e+00 : f32
    %25 = vector.broadcast %cst_17 : f32 to vector<288x128xf32>
    %26 = arith.maximumf %24, %25 : vector<288x128xf32>
    %27 = arith.maximumf %18, %26 : vector<288x128xf32>
    %c0_18 = arith.constant 0 : index
    %c3 = arith.constant 3 : index
    %c0_19 = arith.constant 0 : index
    %c0_20 = arith.constant 0 : index
    %28 = vector.load %arg1[%c0_18, %c3, %c0_19, %c0_20] : memref<2x4x144x32xbf16, #tpu.memory_space<vmem>>, vector<2x1x144x32xbf16>
    %29 = vector.shape_cast %28 : vector<2x1x144x32xbf16> to vector<2x144x32xbf16>
    %30 = vector.shape_cast %29 : vector<2x144x32xbf16> to vector<288x32xbf16>
    %cst_21 = arith.constant dense<0.000000e+00> : vector<288x128xf32>
    %31 = tpu.matmul %30, %0, %cst_21 {dimension_numbers = #tpu.dot_dimension_numbers<[1], [0], [0], [1], [0, 0, 1, 1], [], []>} : vector<288x32xbf16>, vector<32x128xbf16>, vector<288x128xf32> -> vector<288x128xf32>
    %32 = vector.broadcast %1 : vector<1x128xf32> to vector<288x128xf32>
    %33 = arith.addf %31, %32 : vector<288x128xf32>
    %cst_22 = arith.constant 0.000000e+00 : f32
    %34 = vector.broadcast %cst_22 : f32 to vector<288x128xf32>
    %35 = arith.maximumf %33, %34 : vector<288x128xf32>
    %36 = arith.maximumf %27, %35 : vector<288x128xf32>
    %37 = arith.truncf %36 : vector<288x128xf32> to vector<288x128xbf16>
    %38 = vector.shape_cast %37 : vector<288x128xbf16> to vector<2x12x12x128xbf16>
    %c0_23 = arith.constant 0 : index
    %c0_24 = arith.constant 0 : index
    %c0_25 = arith.constant 0 : index
    %c0_26 = arith.constant 0 : index
    %39 = vector.load %arg13[%c0_23, %c0_24, %c0_25, %c0_26] : memref<2x12x12x128xbf16, #tpu.memory_space<vmem>>, vector<2x12x12x128xbf16>
    tpu.vector_store %arg13[%c0_23, %c0_24, %c0_25, %c0_26], %38 {strides = array<i32>} : memref<2x12x12x128xbf16, #tpu.memory_space<vmem>>, vector<2x12x12x128xbf16>,
    %c0_27 = arith.constant 0 : index
    %c0_28 = arith.constant 0 : index
    %40 = vector.load %arg5[%c0_27, %c0_28] : memref<1x128xf32, #tpu.memory_space<vmem>>, vector<1x128xf32>
    %cst_29 = arith.constant 0.000000e+00 : f32
    %41 = vector.broadcast %cst_29 : f32 to vector<128x128xf32>
    %c0_30 = arith.constant 0 : index
    %c0_31 = arith.constant 0 : index
    %c0_32 = arith.constant 0 : index
    %c0_33 = arith.constant 0 : index
    %42 = vector.load %arg13[%c0_30, %c0_31, %c0_32, %c0_33] : memref<2x12x12x128xbf16, #tpu.memory_space<vmem>>, vector<2x12x8x128xbf16>
    %43 = vector.extract_strided_slice %42 {offsets = [0, 0, 0, 0], sizes = [2, 8, 8, 128], strides = [1, 1, 1, 1]} : vector<2x12x8x128xbf16> to vector<2x8x8x128xbf16>
    %44 = vector.shape_cast %43 : vector<2x8x8x128xbf16> to vector<128x128xbf16>
    %c0_34 = arith.constant 0 : index
    %c0_35 = arith.constant 0 : index
    %c0_36 = arith.constant 0 : index
    %c0_37 = arith.constant 0 : index
    %45 = vector.load %arg4[%c0_34, %c0_35, %c0_36, %c0_37] : memref<5x5x128x128xbf16, #tpu.memory_space<vmem>>, vector<1x1x128x128xbf16>
    %46 = vector.shape_cast %45 : vector<1x1x128x128xbf16> to vector<128x128xbf16>
    %cst_38 = arith.constant dense<0.000000e+00> : vector<128x128xf32>
    %47 = tpu.matmul %44, %46, %cst_38 {dimension_numbers = #tpu.dot_dimension_numbers<[1], [0], [0], [1], [0, 0, 1, 1], [], []>} : vector<128x128xbf16>, vector<128x128xbf16>, vector<128x128xf32> -> vector<128x128xf32>
    %48 = arith.addf %41, %47 : vector<128x128xf32>
    %49 = vector.extract_strided_slice %42 {offsets = [0, 1, 0, 0], sizes = [2, 8, 8, 128], strides = [1, 1, 1, 1]} : vector<2x12x8x128xbf16> to vector<2x8x8x128xbf16>
    %50 = vector.shape_cast %49 : vector<2x8x8x128xbf16> to vector<128x128xbf16>
    %c1_39 = arith.constant 1 : index
    %c0_40 = arith.constant 0 : index
    %c0_41 = arith.constant 0 : index
    %c0_42 = arith.constant 0 : index
    %51 = vector.load %arg4[%c1_39, %c0_40, %c0_41, %c0_42] : memref<5x5x128x128xbf16, #tpu.memory_space<vmem>>, vector<1x1x128x128xbf16>
    %52 = vector.shape_cast %51 : vector<1x1x128x128xbf16> to vector<128x128xbf16>
    %cst_43 = arith.constant dense<0.000000e+00> : vector<128x128xf32>
    %53 = tpu.matmul %50, %52, %cst_43 {dimension_numbers = #tpu.dot_dimension_numbers<[1], [0], [0], [1], [0, 0, 1, 1], [], []>} : vector<128x128xbf16>, vector<128x128xbf16>, vector<128x128xf32> -> vector<128x128xf32>
    %54 = arith.addf %48, %53 : vector<128x128xf32>
    %55 = vector.extract_strided_slice %42 {offsets = [0, 2, 0, 0], sizes = [2, 8, 8, 128], strides = [1, 1, 1, 1]} : vector<2x12x8x128xbf16> to vector<2x8x8x128xbf16>
    %56 = vector.shape_cast %55 : vector<2x8x8x128xbf16> to vector<128x128xbf16>
    %c2_44 = arith.constant 2 : index
    %c0_45 = arith.constant 0 : index
    %c0_46 = arith.constant 0 : index
    %c0_47 = arith.constant 0 : index
    %57 = vector.load %arg4[%c2_44, %c0_45, %c0_46, %c0_47] : memref<5x5x128x128xbf16, #tpu.memory_space<vmem>>, vector<1x1x128x128xbf16>
    %58 = vector.shape_cast %57 : vector<1x1x128x128xbf16> to vector<128x128xbf16>
    %cst_48 = arith.constant dense<0.000000e+00> : vector<128x128xf32>
    %59 = tpu.matmul %56, %58, %cst_48 {dimension_numbers = #tpu.dot_dimension_numbers<[1], [0], [0], [1], [0, 0, 1, 1], [], []>} : vector<128x128xbf16>, vector<128x128xbf16>, vector<128x128xf32> -> vector<128x128xf32>
    %60 = arith.addf %54, %59 : vector<128x128xf32>
    %61 = vector.extract_strided_slice %42 {offsets = [0, 3, 0, 0], sizes = [2, 8, 8, 128], strides = [1, 1, 1, 1]} : vector<2x12x8x128xbf16> to vector<2x8x8x128xbf16>
    %62 = vector.shape_cast %61 : vector<2x8x8x128xbf16> to vector<128x128xbf16>
    %c3_49 = arith.constant 3 : index
    %c0_50 = arith.constant 0 : index
    %c0_51 = arith.constant 0 : index
    %c0_52 = arith.constant 0 : index
    %63 = vector.load %arg4[%c3_49, %c0_50, %c0_51, %c0_52] : memref<5x5x128x128xbf16, #tpu.memory_space<vmem>>, vector<1x1x128x128xbf16>
    %64 = vector.shape_cast %63 : vector<1x1x128x128xbf16> to vector<128x128xbf16>
    %cst_53 = arith.constant dense<0.000000e+00> : vector<128x128xf32>
    %65 = tpu.matmul %62, %64, %cst_53 {dimension_numbers = #tpu.dot_dimension_numbers<[1], [0], [0], [1], [0, 0, 1, 1], [], []>} : vector<128x128xbf16>, vector<128x128xbf16>, vector<128x128xf32> -> vector<128x128xf32>
    %66 = arith.addf %60, %65 : vector<128x128xf32>
    %67 = vector.extract_strided_slice %42 {offsets = [0, 4, 0, 0], sizes = [2, 8, 8, 128], strides = [1, 1, 1, 1]} : vector<2x12x8x128xbf16> to vector<2x8x8x128xbf16>
    %68 = vector.shape_cast %67 : vector<2x8x8x128xbf16> to vector<128x128xbf16>
    %c4 = arith.constant 4 : index
    %c0_54 = arith.constant 0 : index
    %c0_55 = arith.constant 0 : index
    %c0_56 = arith.constant 0 : index
    %69 = vector.load %arg4[%c4, %c0_54, %c0_55, %c0_56] : memref<5x5x128x128xbf16, #tpu.memory_space<vmem>>, vector<1x1x128x128xbf16>
    %70 = vector.shape_cast %69 : vector<1x1x128x128xbf16> to vector<128x128xbf16>
    %cst_57 = arith.constant dense<0.000000e+00> : vector<128x128xf32>
    %71 = tpu.matmul %68, %70, %cst_57 {dimension_numbers = #tpu.dot_dimension_numbers<[1], [0], [0], [1], [0, 0, 1, 1], [], []>} : vector<128x128xbf16>, vector<128x128xbf16>, vector<128x128xf32> -> vector<128x128xf32>
    %72 = arith.addf %66, %71 : vector<128x128xf32>
    %c0_58 = arith.constant 0 : index
    %c0_59 = arith.constant 0 : index
    %c1_60 = arith.constant 1 : index
    %c0_61 = arith.constant 0 : index
    %73 = vector.load %arg13[%c0_58, %c0_59, %c1_60, %c0_61] : memref<2x12x12x128xbf16, #tpu.memory_space<vmem>>, vector<2x12x8x128xbf16>
    %74 = vector.extract_strided_slice %73 {offsets = [0, 0, 0, 0], sizes = [2, 8, 8, 128], strides = [1, 1, 1, 1]} : vector<2x12x8x128xbf16> to vector<2x8x8x128xbf16>
    %75 = vector.shape_cast %74 : vector<2x8x8x128xbf16> to vector<128x128xbf16>
    %c0_62 = arith.constant 0 : index
    %c1_63 = arith.constant 1 : index
    %c0_64 = arith.constant 0 : index
    %c0_65 = arith.constant 0 : index
    %76 = vector.load %arg4[%c0_62, %c1_63, %c0_64, %c0_65] : memref<5x5x128x128xbf16, #tpu.memory_space<vmem>>, vector<1x1x128x128xbf16>
    %77 = vector.shape_cast %76 : vector<1x1x128x128xbf16> to vector<128x128xbf16>
    %cst_66 = arith.constant dense<0.000000e+00> : vector<128x128xf32>
    %78 = tpu.matmul %75, %77, %cst_66 {dimension_numbers = #tpu.dot_dimension_numbers<[1], [0], [0], [1], [0, 0, 1, 1], [], []>} : vector<128x128xbf16>, vector<128x128xbf16>, vector<128x128xf32> -> vector<128x128xf32>
    %79 = arith.addf %72, %78 : vector<128x128xf32>
    %80 = vector.extract_strided_slice %73 {offsets = [0, 1, 0, 0], sizes = [2, 8, 8, 128], strides = [1, 1, 1, 1]} : vector<2x12x8x128xbf16> to vector<2x8x8x128xbf16>
    %81 = vector.shape_cast %80 : vector<2x8x8x128xbf16> to vector<128x128xbf16>
    %c1_67 = arith.constant 1 : index
    %c1_68 = arith.constant 1 : index
    %c0_69 = arith.constant 0 : index
    %c0_70 = arith.constant 0 : index
    %82 = vector.load %arg4[%c1_67, %c1_68, %c0_69, %c0_70] : memref<5x5x128x128xbf16, #tpu.memory_space<vmem>>, vector<1x1x128x128xbf16>
    %83 = vector.shape_cast %82 : vector<1x1x128x128xbf16> to vector<128x128xbf16>
    %cst_71 = arith.constant dense<0.000000e+00> : vector<128x128xf32>
    %84 = tpu.matmul %81, %83, %cst_71 {dimension_numbers = #tpu.dot_dimension_numbers<[1], [0], [0], [1], [0, 0, 1, 1], [], []>} : vector<128x128xbf16>, vector<128x128xbf16>, vector<128x128xf32> -> vector<128x128xf32>
    %85 = arith.addf %79, %84 : vector<128x128xf32>
    %86 = vector.extract_strided_slice %73 {offsets = [0, 2, 0, 0], sizes = [2, 8, 8, 128], strides = [1, 1, 1, 1]} : vector<2x12x8x128xbf16> to vector<2x8x8x128xbf16>
    %87 = vector.shape_cast %86 : vector<2x8x8x128xbf16> to vector<128x128xbf16>
    %c2_72 = arith.constant 2 : index
    %c1_73 = arith.constant 1 : index
    %c0_74 = arith.constant 0 : index
    %c0_75 = arith.constant 0 : index
    %88 = vector.load %arg4[%c2_72, %c1_73, %c0_74, %c0_75] : memref<5x5x128x128xbf16, #tpu.memory_space<vmem>>, vector<1x1x128x128xbf16>
    %89 = vector.shape_cast %88 : vector<1x1x128x128xbf16> to vector<128x128xbf16>
    %cst_76 = arith.constant dense<0.000000e+00> : vector<128x128xf32>
    %90 = tpu.matmul %87, %89, %cst_76 {dimension_numbers = #tpu.dot_dimension_numbers<[1], [0], [0], [1], [0, 0, 1, 1], [], []>} : vector<128x128xbf16>, vector<128x128xbf16>, vector<128x128xf32> -> vector<128x128xf32>
    %91 = arith.addf %85, %90 : vector<128x128xf32>
    %92 = vector.extract_strided_slice %73 {offsets = [0, 3, 0, 0], sizes = [2, 8, 8, 128], strides = [1, 1, 1, 1]} : vector<2x12x8x128xbf16> to vector<2x8x8x128xbf16>
    %93 = vector.shape_cast %92 : vector<2x8x8x128xbf16> to vector<128x128xbf16>
    %c3_77 = arith.constant 3 : index
    %c1_78 = arith.constant 1 : index
    %c0_79 = arith.constant 0 : index
    %c0_80 = arith.constant 0 : index
    %94 = vector.load %arg4[%c3_77, %c1_78, %c0_79, %c0_80] : memref<5x5x128x128xbf16, #tpu.memory_space<vmem>>, vector<1x1x128x128xbf16>
    %95 = vector.shape_cast %94 : vector<1x1x128x128xbf16> to vector<128x128xbf16>
    %cst_81 = arith.constant dense<0.000000e+00> : vector<128x128xf32>
    %96 = tpu.matmul %93, %95, %cst_81 {dimension_numbers = #tpu.dot_dimension_numbers<[1], [0], [0], [1], [0, 0, 1, 1], [], []>} : vector<128x128xbf16>, vector<128x128xbf16>, vector<128x128xf32> -> vector<128x128xf32>
    %97 = arith.addf %91, %96 : vector<128x128xf32>
    %98 = vector.extract_strided_slice %73 {offsets = [0, 4, 0, 0], sizes = [2, 8, 8, 128], strides = [1, 1, 1, 1]} : vector<2x12x8x128xbf16> to vector<2x8x8x128xbf16>
    %99 = vector.shape_cast %98 : vector<2x8x8x128xbf16> to vector<128x128xbf16>
    %c4_82 = arith.constant 4 : index
    %c1_83 = arith.constant 1 : index
    %c0_84 = arith.constant 0 : index
    %c0_85 = arith.constant 0 : index
    %100 = vector.load %arg4[%c4_82, %c1_83, %c0_84, %c0_85] : memref<5x5x128x128xbf16, #tpu.memory_space<vmem>>, vector<1x1x128x128xbf16>
    %101 = vector.shape_cast %100 : vector<1x1x128x128xbf16> to vector<128x128xbf16>
    %cst_86 = arith.constant dense<0.000000e+00> : vector<128x128xf32>
    %102 = tpu.matmul %99, %101, %cst_86 {dimension_numbers = #tpu.dot_dimension_numbers<[1], [0], [0], [1], [0, 0, 1, 1], [], []>} : vector<128x128xbf16>, vector<128x128xbf16>, vector<128x128xf32> -> vector<128x128xf32>
    %103 = arith.addf %97, %102 : vector<128x128xf32>
    %c0_87 = arith.constant 0 : index
    %c0_88 = arith.constant 0 : index
    %c2_89 = arith.constant 2 : index
    %c0_90 = arith.constant 0 : index
    %104 = vector.load %arg13[%c0_87, %c0_88, %c2_89, %c0_90] : memref<2x12x12x128xbf16, #tpu.memory_space<vmem>>, vector<2x12x8x128xbf16>
    %105 = vector.extract_strided_slice %104 {offsets = [0, 0, 0, 0], sizes = [2, 8, 8, 128], strides = [1, 1, 1, 1]} : vector<2x12x8x128xbf16> to vector<2x8x8x128xbf16>
    %106 = vector.shape_cast %105 : vector<2x8x8x128xbf16> to vector<128x128xbf16>
    %c0_91 = arith.constant 0 : index
    %c2_92 = arith.constant 2 : index
    %c0_93 = arith.constant 0 : index
    %c0_94 = arith.constant 0 : index
    %107 = vector.load %arg4[%c0_91, %c2_92, %c0_93, %c0_94] : memref<5x5x128x128xbf16, #tpu.memory_space<vmem>>, vector<1x1x128x128xbf16>
    %108 = vector.shape_cast %107 : vector<1x1x128x128xbf16> to vector<128x128xbf16>
    %cst_95 = arith.constant dense<0.000000e+00> : vector<128x128xf32>
    %109 = tpu.matmul %106, %108, %cst_95 {dimension_numbers = #tpu.dot_dimension_numbers<[1], [0], [0], [1], [0, 0, 1, 1], [], []>} : vector<128x128xbf16>, vector<128x128xbf16>, vector<128x128xf32> -> vector<128x128xf32>
    %110 = arith.addf %103, %109 : vector<128x128xf32>
    %111 = vector.extract_strided_slice %104 {offsets = [0, 1, 0, 0], sizes = [2, 8, 8, 128], strides = [1, 1, 1, 1]} : vector<2x12x8x128xbf16> to vector<2x8x8x128xbf16>
    %112 = vector.shape_cast %111 : vector<2x8x8x128xbf16> to vector<128x128xbf16>
    %c1_96 = arith.constant 1 : index
    %c2_97 = arith.constant 2 : index
    %c0_98 = arith.constant 0 : index
    %c0_99 = arith.constant 0 : index
    %113 = vector.load %arg4[%c1_96, %c2_97, %c0_98, %c0_99] : memref<5x5x128x128xbf16, #tpu.memory_space<vmem>>, vector<1x1x128x128xbf16>
    %114 = vector.shape_cast %113 : vector<1x1x128x128xbf16> to vector<128x128xbf16>
    %cst_100 = arith.constant dense<0.000000e+00> : vector<128x128xf32>
    %115 = tpu.matmul %112, %114, %cst_100 {dimension_numbers = #tpu.dot_dimension_numbers<[1], [0], [0], [1], [0, 0, 1, 1], [], []>} : vector<128x128xbf16>, vector<128x128xbf16>, vector<128x128xf32> -> vector<128x128xf32>
    %116 = arith.addf %110, %115 : vector<128x128xf32>
    %117 = vector.extract_strided_slice %104 {offsets = [0, 2, 0, 0], sizes = [2, 8, 8, 128], strides = [1, 1, 1, 1]} : vector<2x12x8x128xbf16> to vector<2x8x8x128xbf16>
    %118 = vector.shape_cast %117 : vector<2x8x8x128xbf16> to vector<128x128xbf16>
    %c2_101 = arith.constant 2 : index
    %c2_102 = arith.constant 2 : index
    %c0_103 = arith.constant 0 : index
    %c0_104 = arith.constant 0 : index
    %119 = vector.load %arg4[%c2_101, %c2_102, %c0_103, %c0_104] : memref<5x5x128x128xbf16, #tpu.memory_space<vmem>>, vector<1x1x128x128xbf16>
    %120 = vector.shape_cast %119 : vector<1x1x128x128xbf16> to vector<128x128xbf16>
    %cst_105 = arith.constant dense<0.000000e+00> : vector<128x128xf32>
    %121 = tpu.matmul %118, %120, %cst_105 {dimension_numbers = #tpu.dot_dimension_numbers<[1], [0], [0], [1], [0, 0, 1, 1], [], []>} : vector<128x128xbf16>, vector<128x128xbf16>, vector<128x128xf32> -> vector<128x128xf32>
    %122 = arith.addf %116, %121 : vector<128x128xf32>
    %123 = vector.extract_strided_slice %104 {offsets = [0, 3, 0, 0], sizes = [2, 8, 8, 128], strides = [1, 1, 1, 1]} : vector<2x12x8x128xbf16> to vector<2x8x8x128xbf16>
    %124 = vector.shape_cast %123 : vector<2x8x8x128xbf16> to vector<128x128xbf16>
    %c3_106 = arith.constant 3 : index
    %c2_107 = arith.constant 2 : index
    %c0_108 = arith.constant 0 : index
    %c0_109 = arith.constant 0 : index
    %125 = vector.load %arg4[%c3_106, %c2_107, %c0_108, %c0_109] : memref<5x5x128x128xbf16, #tpu.memory_space<vmem>>, vector<1x1x128x128xbf16>
    %126 = vector.shape_cast %125 : vector<1x1x128x128xbf16> to vector<128x128xbf16>
    %cst_110 = arith.constant dense<0.000000e+00> : vector<128x128xf32>
    %127 = tpu.matmul %124, %126, %cst_110 {dimension_numbers = #tpu.dot_dimension_numbers<[1], [0], [0], [1], [0, 0, 1, 1], [], []>} : vector<128x128xbf16>, vector<128x128xbf16>, vector<128x128xf32> -> vector<128x128xf32>
    %128 = arith.addf %122, %127 : vector<128x128xf32>
    %129 = vector.extract_strided_slice %104 {offsets = [0, 4, 0, 0], sizes = [2, 8, 8, 128], strides = [1, 1, 1, 1]} : vector<2x12x8x128xbf16> to vector<2x8x8x128xbf16>
    %130 = vector.shape_cast %129 : vector<2x8x8x128xbf16> to vector<128x128xbf16>
    %c4_111 = arith.constant 4 : index
    %c2_112 = arith.constant 2 : index
    %c0_113 = arith.constant 0 : index
    %c0_114 = arith.constant 0 : index
    %131 = vector.load %arg4[%c4_111, %c2_112, %c0_113, %c0_114] : memref<5x5x128x128xbf16, #tpu.memory_space<vmem>>, vector<1x1x128x128xbf16>
    %132 = vector.shape_cast %131 : vector<1x1x128x128xbf16> to vector<128x128xbf16>
    %cst_115 = arith.constant dense<0.000000e+00> : vector<128x128xf32>
    %133 = tpu.matmul %130, %132, %cst_115 {dimension_numbers = #tpu.dot_dimension_numbers<[1], [0], [0], [1], [0, 0, 1, 1], [], []>} : vector<128x128xbf16>, vector<128x128xbf16>, vector<128x128xf32> -> vector<128x128xf32>
    %134 = arith.addf %128, %133 : vector<128x128xf32>
    %c0_116 = arith.constant 0 : index
    %c0_117 = arith.constant 0 : index
    %c3_118 = arith.constant 3 : index
    %c0_119 = arith.constant 0 : index
    %135 = vector.load %arg13[%c0_116, %c0_117, %c3_118, %c0_119] : memref<2x12x12x128xbf16, #tpu.memory_space<vmem>>, vector<2x12x8x128xbf16>
    %136 = vector.extract_strided_slice %135 {offsets = [0, 0, 0, 0], sizes = [2, 8, 8, 128], strides = [1, 1, 1, 1]} : vector<2x12x8x128xbf16> to vector<2x8x8x128xbf16>
    %137 = vector.shape_cast %136 : vector<2x8x8x128xbf16> to vector<128x128xbf16>
    %c0_120 = arith.constant 0 : index
    %c3_121 = arith.constant 3 : index
    %c0_122 = arith.constant 0 : index
    %c0_123 = arith.constant 0 : index
    %138 = vector.load %arg4[%c0_120, %c3_121, %c0_122, %c0_123] : memref<5x5x128x128xbf16, #tpu.memory_space<vmem>>, vector<1x1x128x128xbf16>
    %139 = vector.shape_cast %138 : vector<1x1x128x128xbf16> to vector<128x128xbf16>
    %cst_124 = arith.constant dense<0.000000e+00> : vector<128x128xf32>
    %140 = tpu.matmul %137, %139, %cst_124 {dimension_numbers = #tpu.dot_dimension_numbers<[1], [0], [0], [1], [0, 0, 1, 1], [], []>} : vector<128x128xbf16>, vector<128x128xbf16>, vector<128x128xf32> -> vector<128x128xf32>
    %141 = arith.addf %134, %140 : vector<128x128xf32>
    %142 = vector.extract_strided_slice %135 {offsets = [0, 1, 0, 0], sizes = [2, 8, 8, 128], strides = [1, 1, 1, 1]} : vector<2x12x8x128xbf16> to vector<2x8x8x128xbf16>
    %143 = vector.shape_cast %142 : vector<2x8x8x128xbf16> to vector<128x128xbf16>
    %c1_125 = arith.constant 1 : index
    %c3_126 = arith.constant 3 : index
    %c0_127 = arith.constant 0 : index
    %c0_128 = arith.constant 0 : index
    %144 = vector.load %arg4[%c1_125, %c3_126, %c0_127, %c0_128] : memref<5x5x128x128xbf16, #tpu.memory_space<vmem>>, vector<1x1x128x128xbf16>
    %145 = vector.shape_cast %144 : vector<1x1x128x128xbf16> to vector<128x128xbf16>
    %cst_129 = arith.constant dense<0.000000e+00> : vector<128x128xf32>
    %146 = tpu.matmul %143, %145, %cst_129 {dimension_numbers = #tpu.dot_dimension_numbers<[1], [0], [0], [1], [0, 0, 1, 1], [], []>} : vector<128x128xbf16>, vector<128x128xbf16>, vector<128x128xf32> -> vector<128x128xf32>
    %147 = arith.addf %141, %146 : vector<128x128xf32>
    %148 = vector.extract_strided_slice %135 {offsets = [0, 2, 0, 0], sizes = [2, 8, 8, 128], strides = [1, 1, 1, 1]} : vector<2x12x8x128xbf16> to vector<2x8x8x128xbf16>
    %149 = vector.shape_cast %148 : vector<2x8x8x128xbf16> to vector<128x128xbf16>
    %c2_130 = arith.constant 2 : index
    %c3_131 = arith.constant 3 : index
    %c0_132 = arith.constant 0 : index
    %c0_133 = arith.constant 0 : index
    %150 = vector.load %arg4[%c2_130, %c3_131, %c0_132, %c0_133] : memref<5x5x128x128xbf16, #tpu.memory_space<vmem>>, vector<1x1x128x128xbf16>
    %151 = vector.shape_cast %150 : vector<1x1x128x128xbf16> to vector<128x128xbf16>
    %cst_134 = arith.constant dense<0.000000e+00> : vector<128x128xf32>
    %152 = tpu.matmul %149, %151, %cst_134 {dimension_numbers = #tpu.dot_dimension_numbers<[1], [0], [0], [1], [0, 0, 1, 1], [], []>} : vector<128x128xbf16>, vector<128x128xbf16>, vector<128x128xf32> -> vector<128x128xf32>
    %153 = arith.addf %147, %152 : vector<128x128xf32>
    %154 = vector.extract_strided_slice %135 {offsets = [0, 3, 0, 0], sizes = [2, 8, 8, 128], strides = [1, 1, 1, 1]} : vector<2x12x8x128xbf16> to vector<2x8x8x128xbf16>
    %155 = vector.shape_cast %154 : vector<2x8x8x128xbf16> to vector<128x128xbf16>
    %c3_135 = arith.constant 3 : index
    %c3_136 = arith.constant 3 : index
    %c0_137 = arith.constant 0 : index
    %c0_138 = arith.constant 0 : index
    %156 = vector.load %arg4[%c3_135, %c3_136, %c0_137, %c0_138] : memref<5x5x128x128xbf16, #tpu.memory_space<vmem>>, vector<1x1x128x128xbf16>
    %157 = vector.shape_cast %156 : vector<1x1x128x128xbf16> to vector<128x128xbf16>
    %cst_139 = arith.constant dense<0.000000e+00> : vector<128x128xf32>
    %158 = tpu.matmul %155, %157, %cst_139 {dimension_numbers = #tpu.dot_dimension_numbers<[1], [0], [0], [1], [0, 0, 1, 1], [], []>} : vector<128x128xbf16>, vector<128x128xbf16>, vector<128x128xf32> -> vector<128x128xf32>
    %159 = arith.addf %153, %158 : vector<128x128xf32>
    %160 = vector.extract_strided_slice %135 {offsets = [0, 4, 0, 0], sizes = [2, 8, 8, 128], strides = [1, 1, 1, 1]} : vector<2x12x8x128xbf16> to vector<2x8x8x128xbf16>
    %161 = vector.shape_cast %160 : vector<2x8x8x128xbf16> to vector<128x128xbf16>
    %c4_140 = arith.constant 4 : index
    %c3_141 = arith.constant 3 : index
    %c0_142 = arith.constant 0 : index
    %c0_143 = arith.constant 0 : index
    %162 = vector.load %arg4[%c4_140, %c3_141, %c0_142, %c0_143] : memref<5x5x128x128xbf16, #tpu.memory_space<vmem>>, vector<1x1x128x128xbf16>
    %163 = vector.shape_cast %162 : vector<1x1x128x128xbf16> to vector<128x128xbf16>
    %cst_144 = arith.constant dense<0.000000e+00> : vector<128x128xf32>
    %164 = tpu.matmul %161, %163, %cst_144 {dimension_numbers = #tpu.dot_dimension_numbers<[1], [0], [0], [1], [0, 0, 1, 1], [], []>} : vector<128x128xbf16>, vector<128x128xbf16>, vector<128x128xf32> -> vector<128x128xf32>
    %165 = arith.addf %159, %164 : vector<128x128xf32>
    %c0_145 = arith.constant 0 : index
    %c0_146 = arith.constant 0 : index
    %c4_147 = arith.constant 4 : index
    %c0_148 = arith.constant 0 : index
    %166 = vector.load %arg13[%c0_145, %c0_146, %c4_147, %c0_148] : memref<2x12x12x128xbf16, #tpu.memory_space<vmem>>, vector<2x12x8x128xbf16>
    %167 = vector.extract_strided_slice %166 {offsets = [0, 0, 0, 0], sizes = [2, 8, 8, 128], strides = [1, 1, 1, 1]} : vector<2x12x8x128xbf16> to vector<2x8x8x128xbf16>
    %168 = vector.shape_cast %167 : vector<2x8x8x128xbf16> to vector<128x128xbf16>
    %c0_149 = arith.constant 0 : index
    %c4_150 = arith.constant 4 : index
    %c0_151 = arith.constant 0 : index
    %c0_152 = arith.constant 0 : index
    %169 = vector.load %arg4[%c0_149, %c4_150, %c0_151, %c0_152] : memref<5x5x128x128xbf16, #tpu.memory_space<vmem>>, vector<1x1x128x128xbf16>
    %170 = vector.shape_cast %169 : vector<1x1x128x128xbf16> to vector<128x128xbf16>
    %cst_153 = arith.constant dense<0.000000e+00> : vector<128x128xf32>
    %171 = tpu.matmul %168, %170, %cst_153 {dimension_numbers = #tpu.dot_dimension_numbers<[1], [0], [0], [1], [0, 0, 1, 1], [], []>} : vector<128x128xbf16>, vector<128x128xbf16>, vector<128x128xf32> -> vector<128x128xf32>
    %172 = arith.addf %165, %171 : vector<128x128xf32>
    %173 = vector.extract_strided_slice %166 {offsets = [0, 1, 0, 0], sizes = [2, 8, 8, 128], strides = [1, 1, 1, 1]} : vector<2x12x8x128xbf16> to vector<2x8x8x128xbf16>
    %174 = vector.shape_cast %173 : vector<2x8x8x128xbf16> to vector<128x128xbf16>
    %c1_154 = arith.constant 1 : index
    %c4_155 = arith.constant 4 : index
    %c0_156 = arith.constant 0 : index
    %c0_157 = arith.constant 0 : index
    %175 = vector.load %arg4[%c1_154, %c4_155, %c0_156, %c0_157] : memref<5x5x128x128xbf16, #tpu.memory_space<vmem>>, vector<1x1x128x128xbf16>
    %176 = vector.shape_cast %175 : vector<1x1x128x128xbf16> to vector<128x128xbf16>
    %cst_158 = arith.constant dense<0.000000e+00> : vector<128x128xf32>
    %177 = tpu.matmul %174, %176, %cst_158 {dimension_numbers = #tpu.dot_dimension_numbers<[1], [0], [0], [1], [0, 0, 1, 1], [], []>} : vector<128x128xbf16>, vector<128x128xbf16>, vector<128x128xf32> -> vector<128x128xf32>
    %178 = arith.addf %172, %177 : vector<128x128xf32>
    %179 = vector.extract_strided_slice %166 {offsets = [0, 2, 0, 0], sizes = [2, 8, 8, 128], strides = [1, 1, 1, 1]} : vector<2x12x8x128xbf16> to vector<2x8x8x128xbf16>
    %180 = vector.shape_cast %179 : vector<2x8x8x128xbf16> to vector<128x128xbf16>
    %c2_159 = arith.constant 2 : index
    %c4_160 = arith.constant 4 : index
    %c0_161 = arith.constant 0 : index
    %c0_162 = arith.constant 0 : index
    %181 = vector.load %arg4[%c2_159, %c4_160, %c0_161, %c0_162] : memref<5x5x128x128xbf16, #tpu.memory_space<vmem>>, vector<1x1x128x128xbf16>
    %182 = vector.shape_cast %181 : vector<1x1x128x128xbf16> to vector<128x128xbf16>
    %cst_163 = arith.constant dense<0.000000e+00> : vector<128x128xf32>
    %183 = tpu.matmul %180, %182, %cst_163 {dimension_numbers = #tpu.dot_dimension_numbers<[1], [0], [0], [1], [0, 0, 1, 1], [], []>} : vector<128x128xbf16>, vector<128x128xbf16>, vector<128x128xf32> -> vector<128x128xf32>
    %184 = arith.addf %178, %183 : vector<128x128xf32>
    %185 = vector.extract_strided_slice %166 {offsets = [0, 3, 0, 0], sizes = [2, 8, 8, 128], strides = [1, 1, 1, 1]} : vector<2x12x8x128xbf16> to vector<2x8x8x128xbf16>
    %186 = vector.shape_cast %185 : vector<2x8x8x128xbf16> to vector<128x128xbf16>
    %c3_164 = arith.constant 3 : index
    %c4_165 = arith.constant 4 : index
    %c0_166 = arith.constant 0 : index
    %c0_167 = arith.constant 0 : index
    %187 = vector.load %arg4[%c3_164, %c4_165, %c0_166, %c0_167] : memref<5x5x128x128xbf16, #tpu.memory_space<vmem>>, vector<1x1x128x128xbf16>
    %188 = vector.shape_cast %187 : vector<1x1x128x128xbf16> to vector<128x128xbf16>
    %cst_168 = arith.constant dense<0.000000e+00> : vector<128x128xf32>
    %189 = tpu.matmul %186, %188, %cst_168 {dimension_numbers = #tpu.dot_dimension_numbers<[1], [0], [0], [1], [0, 0, 1, 1], [], []>} : vector<128x128xbf16>, vector<128x128xbf16>, vector<128x128xf32> -> vector<128x128xf32>
    %190 = arith.addf %184, %189 : vector<128x128xf32>
    %191 = vector.extract_strided_slice %166 {offsets = [0, 4, 0, 0], sizes = [2, 8, 8, 128], strides = [1, 1, 1, 1]} : vector<2x12x8x128xbf16> to vector<2x8x8x128xbf16>
    %192 = vector.shape_cast %191 : vector<2x8x8x128xbf16> to vector<128x128xbf16>
    %c4_169 = arith.constant 4 : index
    %c4_170 = arith.constant 4 : index
    %c0_171 = arith.constant 0 : index
    %c0_172 = arith.constant 0 : index
    %193 = vector.load %arg4[%c4_169, %c4_170, %c0_171, %c0_172] : memref<5x5x128x128xbf16, #tpu.memory_space<vmem>>, vector<1x1x128x128xbf16>
    %194 = vector.shape_cast %193 : vector<1x1x128x128xbf16> to vector<128x128xbf16>
    %cst_173 = arith.constant dense<0.000000e+00> : vector<128x128xf32>
    %195 = tpu.matmul %192, %194, %cst_173 {dimension_numbers = #tpu.dot_dimension_numbers<[1], [0], [0], [1], [0, 0, 1, 1], [], []>} : vector<128x128xbf16>, vector<128x128xbf16>, vector<128x128xf32> -> vector<128x128xf32>
    %196 = arith.addf %190, %195 : vector<128x128xf32>
    %197 = vector.broadcast %40 : vector<1x128xf32> to vector<128x128xf32>
    %198 = arith.addf %196, %197 : vector<128x128xf32>
    %cst_174 = arith.constant 0.000000e+00 : f32
    %199 = vector.broadcast %cst_174 : f32 to vector<128x128xf32>
    %200 = arith.maximumf %198, %199 : vector<128x128xf32>
    %201 = vector.shape_cast %200 : vector<128x128xf32> to vector<2x8x8x128xf32>
    %c0_175 = arith.constant 0 : index
    %c0_176 = arith.constant 0 : index
    %202 = vector.load %arg7[%c0_175, %c0_176] : memref<1x128xf32, #tpu.memory_space<vmem>>, vector<1x128xf32>
    %cst_177 = arith.constant 0.000000e+00 : f32
    %203 = vector.broadcast %cst_177 : f32 to vector<2x128xf32>
    %204 = vector.extract_strided_slice %201 {offsets = [0, 0, 0, 0], sizes = [2, 1, 8, 128], strides = [1, 1, 1, 1]} : vector<2x8x8x128xf32> to vector<2x1x8x128xf32>
    %205 = vector.shape_cast %204 : vector<2x1x8x128xf32> to vector<2x8x128xf32>
    %206 = vector.extract_strided_slice %201 {offsets = [0, 1, 0, 0], sizes = [2, 1, 8, 128], strides = [1, 1, 1, 1]} : vector<2x8x8x128xf32> to vector<2x1x8x128xf32>
    %207 = vector.shape_cast %206 : vector<2x1x8x128xf32> to vector<2x8x128xf32>
    %208 = arith.maximumf %205, %207 : vector<2x8x128xf32>
    %209 = vector.extract_strided_slice %208 {offsets = [0, 0, 0], sizes = [2, 1, 128], strides = [1, 1, 1]} : vector<2x8x128xf32> to vector<2x1x128xf32>
    %210 = vector.shape_cast %209 : vector<2x1x128xf32> to vector<2x128xf32>
    %211 = vector.extract_strided_slice %208 {offsets = [0, 1, 0], sizes = [2, 1, 128], strides = [1, 1, 1]} : vector<2x8x128xf32> to vector<2x1x128xf32>
    %212 = vector.shape_cast %211 : vector<2x1x128xf32> to vector<2x128xf32>
    %213 = arith.maximumf %210, %212 : vector<2x128xf32>
    %214 = arith.truncf %213 : vector<2x128xf32> to vector<2x128xbf16>
    %c0_178 = arith.constant 0 : index
    %c0_179 = arith.constant 0 : index
    %c0_180 = arith.constant 0 : index
    %c0_181 = arith.constant 0 : index
    %215 = vector.load %arg6[%c0_178, %c0_179, %c0_180, %c0_181] : memref<4x4x128x128xbf16, #tpu.memory_space<vmem>>, vector<1x1x128x128xbf16>
    %216 = vector.shape_cast %215 : vector<1x1x128x128xbf16> to vector<128x128xbf16>
    %cst_182 = arith.constant dense<0.000000e+00> : vector<2x128xf32>
    %217 = tpu.matmul %214, %216, %cst_182 {dimension_numbers = #tpu.dot_dimension_numbers<[1], [0], [0], [1], [0, 0, 1, 1], [], []>} : vector<2x128xbf16>, vector<128x128xbf16>, vector<2x128xf32> -> vector<2x128xf32>
    %218 = arith.addf %203, %217 : vector<2x128xf32>
    %219 = vector.extract_strided_slice %208 {offsets = [0, 2, 0], sizes = [2, 1, 128], strides = [1, 1, 1]} : vector<2x8x128xf32> to vector<2x1x128xf32>
    %220 = vector.shape_cast %219 : vector<2x1x128xf32> to vector<2x128xf32>
    %221 = vector.extract_strided_slice %208 {offsets = [0, 3, 0], sizes = [2, 1, 128], strides = [1, 1, 1]} : vector<2x8x128xf32> to vector<2x1x128xf32>
    %222 = vector.shape_cast %221 : vector<2x1x128xf32> to vector<2x128xf32>
    %223 = arith.maximumf %220, %222 : vector<2x128xf32>
    %224 = arith.truncf %223 : vector<2x128xf32> to vector<2x128xbf16>
    %c0_183 = arith.constant 0 : index
    %c1_184 = arith.constant 1 : index
    %c0_185 = arith.constant 0 : index
    %c0_186 = arith.constant 0 : index
    %225 = vector.load %arg6[%c0_183, %c1_184, %c0_185, %c0_186] : memref<4x4x128x128xbf16, #tpu.memory_space<vmem>>, vector<1x1x128x128xbf16>
    %226 = vector.shape_cast %225 : vector<1x1x128x128xbf16> to vector<128x128xbf16>
    %cst_187 = arith.constant dense<0.000000e+00> : vector<2x128xf32>
    %227 = tpu.matmul %224, %226, %cst_187 {dimension_numbers = #tpu.dot_dimension_numbers<[1], [0], [0], [1], [0, 0, 1, 1], [], []>} : vector<2x128xbf16>, vector<128x128xbf16>, vector<2x128xf32> -> vector<2x128xf32>
    %228 = arith.addf %218, %227 : vector<2x128xf32>
    %229 = vector.extract_strided_slice %208 {offsets = [0, 4, 0], sizes = [2, 1, 128], strides = [1, 1, 1]} : vector<2x8x128xf32> to vector<2x1x128xf32>
    %230 = vector.shape_cast %229 : vector<2x1x128xf32> to vector<2x128xf32>
    %231 = vector.extract_strided_slice %208 {offsets = [0, 5, 0], sizes = [2, 1, 128], strides = [1, 1, 1]} : vector<2x8x128xf32> to vector<2x1x128xf32>
    %232 = vector.shape_cast %231 : vector<2x1x128xf32> to vector<2x128xf32>
    %233 = arith.maximumf %230, %232 : vector<2x128xf32>
    %234 = arith.truncf %233 : vector<2x128xf32> to vector<2x128xbf16>
    %c0_188 = arith.constant 0 : index
    %c2_189 = arith.constant 2 : index
    %c0_190 = arith.constant 0 : index
    %c0_191 = arith.constant 0 : index
    %235 = vector.load %arg6[%c0_188, %c2_189, %c0_190, %c0_191] : memref<4x4x128x128xbf16, #tpu.memory_space<vmem>>, vector<1x1x128x128xbf16>
    %236 = vector.shape_cast %235 : vector<1x1x128x128xbf16> to vector<128x128xbf16>
    %cst_192 = arith.constant dense<0.000000e+00> : vector<2x128xf32>
    %237 = tpu.matmul %234, %236, %cst_192 {dimension_numbers = #tpu.dot_dimension_numbers<[1], [0], [0], [1], [0, 0, 1, 1], [], []>} : vector<2x128xbf16>, vector<128x128xbf16>, vector<2x128xf32> -> vector<2x128xf32>
    %238 = arith.addf %228, %237 : vector<2x128xf32>
    %239 = vector.extract_strided_slice %208 {offsets = [0, 6, 0], sizes = [2, 1, 128], strides = [1, 1, 1]} : vector<2x8x128xf32> to vector<2x1x128xf32>
    %240 = vector.shape_cast %239 : vector<2x1x128xf32> to vector<2x128xf32>
    %241 = vector.extract_strided_slice %208 {offsets = [0, 7, 0], sizes = [2, 1, 128], strides = [1, 1, 1]} : vector<2x8x128xf32> to vector<2x1x128xf32>
    %242 = vector.shape_cast %241 : vector<2x1x128xf32> to vector<2x128xf32>
    %243 = arith.maximumf %240, %242 : vector<2x128xf32>
    %244 = arith.truncf %243 : vector<2x128xf32> to vector<2x128xbf16>
    %c0_193 = arith.constant 0 : index
    %c3_194 = arith.constant 3 : index
    %c0_195 = arith.constant 0 : index
    %c0_196 = arith.constant 0 : index
    %245 = vector.load %arg6[%c0_193, %c3_194, %c0_195, %c0_196] : memref<4x4x128x128xbf16, #tpu.memory_space<vmem>>, vector<1x1x128x128xbf16>
    %246 = vector.shape_cast %245 : vector<1x1x128x128xbf16> to vector<128x128xbf16>
    %cst_197 = arith.constant dense<0.000000e+00> : vector<2x128xf32>
    %247 = tpu.matmul %244, %246, %cst_197 {dimension_numbers = #tpu.dot_dimension_numbers<[1], [0], [0], [1], [0, 0, 1, 1], [], []>} : vector<2x128xbf16>, vector<128x128xbf16>, vector<2x128xf32> -> vector<2x128xf32>
    %248 = arith.addf %238, %247 : vector<2x128xf32>
    %249 = vector.extract_strided_slice %201 {offsets = [0, 2, 0, 0], sizes = [2, 1, 8, 128], strides = [1, 1, 1, 1]} : vector<2x8x8x128xf32> to vector<2x1x8x128xf32>
    %250 = vector.shape_cast %249 : vector<2x1x8x128xf32> to vector<2x8x128xf32>
    %251 = vector.extract_strided_slice %201 {offsets = [0, 3, 0, 0], sizes = [2, 1, 8, 128], strides = [1, 1, 1, 1]} : vector<2x8x8x128xf32> to vector<2x1x8x128xf32>
    %252 = vector.shape_cast %251 : vector<2x1x8x128xf32> to vector<2x8x128xf32>
    %253 = arith.maximumf %250, %252 : vector<2x8x128xf32>
    %254 = vector.extract_strided_slice %253 {offsets = [0, 0, 0], sizes = [2, 1, 128], strides = [1, 1, 1]} : vector<2x8x128xf32> to vector<2x1x128xf32>
    %255 = vector.shape_cast %254 : vector<2x1x128xf32> to vector<2x128xf32>
    %256 = vector.extract_strided_slice %253 {offsets = [0, 1, 0], sizes = [2, 1, 128], strides = [1, 1, 1]} : vector<2x8x128xf32> to vector<2x1x128xf32>
    %257 = vector.shape_cast %256 : vector<2x1x128xf32> to vector<2x128xf32>
    %258 = arith.maximumf %255, %257 : vector<2x128xf32>
    %259 = arith.truncf %258 : vector<2x128xf32> to vector<2x128xbf16>
    %c1_198 = arith.constant 1 : index
    %c0_199 = arith.constant 0 : index
    %c0_200 = arith.constant 0 : index
    %c0_201 = arith.constant 0 : index
    %260 = vector.load %arg6[%c1_198, %c0_199, %c0_200, %c0_201] : memref<4x4x128x128xbf16, #tpu.memory_space<vmem>>, vector<1x1x128x128xbf16>
    %261 = vector.shape_cast %260 : vector<1x1x128x128xbf16> to vector<128x128xbf16>
    %cst_202 = arith.constant dense<0.000000e+00> : vector<2x128xf32>
    %262 = tpu.matmul %259, %261, %cst_202 {dimension_numbers = #tpu.dot_dimension_numbers<[1], [0], [0], [1], [0, 0, 1, 1], [], []>} : vector<2x128xbf16>, vector<128x128xbf16>, vector<2x128xf32> -> vector<2x128xf32>
    %263 = arith.addf %248, %262 : vector<2x128xf32>
    %264 = vector.extract_strided_slice %253 {offsets = [0, 2, 0], sizes = [2, 1, 128], strides = [1, 1, 1]} : vector<2x8x128xf32> to vector<2x1x128xf32>
    %265 = vector.shape_cast %264 : vector<2x1x128xf32> to vector<2x128xf32>
    %266 = vector.extract_strided_slice %253 {offsets = [0, 3, 0], sizes = [2, 1, 128], strides = [1, 1, 1]} : vector<2x8x128xf32> to vector<2x1x128xf32>
    %267 = vector.shape_cast %266 : vector<2x1x128xf32> to vector<2x128xf32>
    %268 = arith.maximumf %265, %267 : vector<2x128xf32>
    %269 = arith.truncf %268 : vector<2x128xf32> to vector<2x128xbf16>
    %c1_203 = arith.constant 1 : index
    %c1_204 = arith.constant 1 : index
    %c0_205 = arith.constant 0 : index
    %c0_206 = arith.constant 0 : index
    %270 = vector.load %arg6[%c1_203, %c1_204, %c0_205, %c0_206] : memref<4x4x128x128xbf16, #tpu.memory_space<vmem>>, vector<1x1x128x128xbf16>
    %271 = vector.shape_cast %270 : vector<1x1x128x128xbf16> to vector<128x128xbf16>
    %cst_207 = arith.constant dense<0.000000e+00> : vector<2x128xf32>
    %272 = tpu.matmul %269, %271, %cst_207 {dimension_numbers = #tpu.dot_dimension_numbers<[1], [0], [0], [1], [0, 0, 1, 1], [], []>} : vector<2x128xbf16>, vector<128x128xbf16>, vector<2x128xf32> -> vector<2x128xf32>
    %273 = arith.addf %263, %272 : vector<2x128xf32>
    %274 = vector.extract_strided_slice %253 {offsets = [0, 4, 0], sizes = [2, 1, 128], strides = [1, 1, 1]} : vector<2x8x128xf32> to vector<2x1x128xf32>
    %275 = vector.shape_cast %274 : vector<2x1x128xf32> to vector<2x128xf32>
    %276 = vector.extract_strided_slice %253 {offsets = [0, 5, 0], sizes = [2, 1, 128], strides = [1, 1, 1]} : vector<2x8x128xf32> to vector<2x1x128xf32>
    %277 = vector.shape_cast %276 : vector<2x1x128xf32> to vector<2x128xf32>
    %278 = arith.maximumf %275, %277 : vector<2x128xf32>
    %279 = arith.truncf %278 : vector<2x128xf32> to vector<2x128xbf16>
    %c1_208 = arith.constant 1 : index
    %c2_209 = arith.constant 2 : index
    %c0_210 = arith.constant 0 : index
    %c0_211 = arith.constant 0 : index
    %280 = vector.load %arg6[%c1_208, %c2_209, %c0_210, %c0_211] : memref<4x4x128x128xbf16, #tpu.memory_space<vmem>>, vector<1x1x128x128xbf16>
    %281 = vector.shape_cast %280 : vector<1x1x128x128xbf16> to vector<128x128xbf16>
    %cst_212 = arith.constant dense<0.000000e+00> : vector<2x128xf32>
    %282 = tpu.matmul %279, %281, %cst_212 {dimension_numbers = #tpu.dot_dimension_numbers<[1], [0], [0], [1], [0, 0, 1, 1], [], []>} : vector<2x128xbf16>, vector<128x128xbf16>, vector<2x128xf32> -> vector<2x128xf32>
    %283 = arith.addf %273, %282 : vector<2x128xf32>
    %284 = vector.extract_strided_slice %253 {offsets = [0, 6, 0], sizes = [2, 1, 128], strides = [1, 1, 1]} : vector<2x8x128xf32> to vector<2x1x128xf32>
    %285 = vector.shape_cast %284 : vector<2x1x128xf32> to vector<2x128xf32>
    %286 = vector.extract_strided_slice %253 {offsets = [0, 7, 0], sizes = [2, 1, 128], strides = [1, 1, 1]} : vector<2x8x128xf32> to vector<2x1x128xf32>
    %287 = vector.shape_cast %286 : vector<2x1x128xf32> to vector<2x128xf32>
    %288 = arith.maximumf %285, %287 : vector<2x128xf32>
    %289 = arith.truncf %288 : vector<2x128xf32> to vector<2x128xbf16>
    %c1_213 = arith.constant 1 : index
    %c3_214 = arith.constant 3 : index
    %c0_215 = arith.constant 0 : index
    %c0_216 = arith.constant 0 : index
    %290 = vector.load %arg6[%c1_213, %c3_214, %c0_215, %c0_216] : memref<4x4x128x128xbf16, #tpu.memory_space<vmem>>, vector<1x1x128x128xbf16>
    %291 = vector.shape_cast %290 : vector<1x1x128x128xbf16> to vector<128x128xbf16>
    %cst_217 = arith.constant dense<0.000000e+00> : vector<2x128xf32>
    %292 = tpu.matmul %289, %291, %cst_217 {dimension_numbers = #tpu.dot_dimension_numbers<[1], [0], [0], [1], [0, 0, 1, 1], [], []>} : vector<2x128xbf16>, vector<128x128xbf16>, vector<2x128xf32> -> vector<2x128xf32>
    %293 = arith.addf %283, %292 : vector<2x128xf32>
    %294 = vector.extract_strided_slice %201 {offsets = [0, 4, 0, 0], sizes = [2, 1, 8, 128], strides = [1, 1, 1, 1]} : vector<2x8x8x128xf32> to vector<2x1x8x128xf32>
    %295 = vector.shape_cast %294 : vector<2x1x8x128xf32> to vector<2x8x128xf32>
    %296 = vector.extract_strided_slice %201 {offsets = [0, 5, 0, 0], sizes = [2, 1, 8, 128], strides = [1, 1, 1, 1]} : vector<2x8x8x128xf32> to vector<2x1x8x128xf32>
    %297 = vector.shape_cast %296 : vector<2x1x8x128xf32> to vector<2x8x128xf32>
    %298 = arith.maximumf %295, %297 : vector<2x8x128xf32>
    %299 = vector.extract_strided_slice %298 {offsets = [0, 0, 0], sizes = [2, 1, 128], strides = [1, 1, 1]} : vector<2x8x128xf32> to vector<2x1x128xf32>
    %300 = vector.shape_cast %299 : vector<2x1x128xf32> to vector<2x128xf32>
    %301 = vector.extract_strided_slice %298 {offsets = [0, 1, 0], sizes = [2, 1, 128], strides = [1, 1, 1]} : vector<2x8x128xf32> to vector<2x1x128xf32>
    %302 = vector.shape_cast %301 : vector<2x1x128xf32> to vector<2x128xf32>
    %303 = arith.maximumf %300, %302 : vector<2x128xf32>
    %304 = arith.truncf %303 : vector<2x128xf32> to vector<2x128xbf16>
    %c2_218 = arith.constant 2 : index
    %c0_219 = arith.constant 0 : index
    %c0_220 = arith.constant 0 : index
    %c0_221 = arith.constant 0 : index
    %305 = vector.load %arg6[%c2_218, %c0_219, %c0_220, %c0_221] : memref<4x4x128x128xbf16, #tpu.memory_space<vmem>>, vector<1x1x128x128xbf16>
    %306 = vector.shape_cast %305 : vector<1x1x128x128xbf16> to vector<128x128xbf16>
    %cst_222 = arith.constant dense<0.000000e+00> : vector<2x128xf32>
    %307 = tpu.matmul %304, %306, %cst_222 {dimension_numbers = #tpu.dot_dimension_numbers<[1], [0], [0], [1], [0, 0, 1, 1], [], []>} : vector<2x128xbf16>, vector<128x128xbf16>, vector<2x128xf32> -> vector<2x128xf32>
    %308 = arith.addf %293, %307 : vector<2x128xf32>
    %309 = vector.extract_strided_slice %298 {offsets = [0, 2, 0], sizes = [2, 1, 128], strides = [1, 1, 1]} : vector<2x8x128xf32> to vector<2x1x128xf32>
    %310 = vector.shape_cast %309 : vector<2x1x128xf32> to vector<2x128xf32>
    %311 = vector.extract_strided_slice %298 {offsets = [0, 3, 0], sizes = [2, 1, 128], strides = [1, 1, 1]} : vector<2x8x128xf32> to vector<2x1x128xf32>
    %312 = vector.shape_cast %311 : vector<2x1x128xf32> to vector<2x128xf32>
    %313 = arith.maximumf %310, %312 : vector<2x128xf32>
    %314 = arith.truncf %313 : vector<2x128xf32> to vector<2x128xbf16>
    %c2_223 = arith.constant 2 : index
    %c1_224 = arith.constant 1 : index
    %c0_225 = arith.constant 0 : index
    %c0_226 = arith.constant 0 : index
    %315 = vector.load %arg6[%c2_223, %c1_224, %c0_225, %c0_226] : memref<4x4x128x128xbf16, #tpu.memory_space<vmem>>, vector<1x1x128x128xbf16>
    %316 = vector.shape_cast %315 : vector<1x1x128x128xbf16> to vector<128x128xbf16>
    %cst_227 = arith.constant dense<0.000000e+00> : vector<2x128xf32>
    %317 = tpu.matmul %314, %316, %cst_227 {dimension_numbers = #tpu.dot_dimension_numbers<[1], [0], [0], [1], [0, 0, 1, 1], [], []>} : vector<2x128xbf16>, vector<128x128xbf16>, vector<2x128xf32> -> vector<2x128xf32>
    %318 = arith.addf %308, %317 : vector<2x128xf32>
    %319 = vector.extract_strided_slice %298 {offsets = [0, 4, 0], sizes = [2, 1, 128], strides = [1, 1, 1]} : vector<2x8x128xf32> to vector<2x1x128xf32>
    %320 = vector.shape_cast %319 : vector<2x1x128xf32> to vector<2x128xf32>
    %321 = vector.extract_strided_slice %298 {offsets = [0, 5, 0], sizes = [2, 1, 128], strides = [1, 1, 1]} : vector<2x8x128xf32> to vector<2x1x128xf32>
    %322 = vector.shape_cast %321 : vector<2x1x128xf32> to vector<2x128xf32>
    %323 = arith.maximumf %320, %322 : vector<2x128xf32>
    %324 = arith.truncf %323 : vector<2x128xf32> to vector<2x128xbf16>
    %c2_228 = arith.constant 2 : index
    %c2_229 = arith.constant 2 : index
    %c0_230 = arith.constant 0 : index
    %c0_231 = arith.constant 0 : index
    %325 = vector.load %arg6[%c2_228, %c2_229, %c0_230, %c0_231] : memref<4x4x128x128xbf16, #tpu.memory_space<vmem>>, vector<1x1x128x128xbf16>
    %326 = vector.shape_cast %325 : vector<1x1x128x128xbf16> to vector<128x128xbf16>
    %cst_232 = arith.constant dense<0.000000e+00> : vector<2x128xf32>
    %327 = tpu.matmul %324, %326, %cst_232 {dimension_numbers = #tpu.dot_dimension_numbers<[1], [0], [0], [1], [0, 0, 1, 1], [], []>} : vector<2x128xbf16>, vector<128x128xbf16>, vector<2x128xf32> -> vector<2x128xf32>
    %328 = arith.addf %318, %327 : vector<2x128xf32>
    %329 = vector.extract_strided_slice %298 {offsets = [0, 6, 0], sizes = [2, 1, 128], strides = [1, 1, 1]} : vector<2x8x128xf32> to vector<2x1x128xf32>
    %330 = vector.shape_cast %329 : vector<2x1x128xf32> to vector<2x128xf32>
    %331 = vector.extract_strided_slice %298 {offsets = [0, 7, 0], sizes = [2, 1, 128], strides = [1, 1, 1]} : vector<2x8x128xf32> to vector<2x1x128xf32>
    %332 = vector.shape_cast %331 : vector<2x1x128xf32> to vector<2x128xf32>
    %333 = arith.maximumf %330, %332 : vector<2x128xf32>
    %334 = arith.truncf %333 : vector<2x128xf32> to vector<2x128xbf16>
    %c2_233 = arith.constant 2 : index
    %c3_234 = arith.constant 3 : index
    %c0_235 = arith.constant 0 : index
    %c0_236 = arith.constant 0 : index
    %335 = vector.load %arg6[%c2_233, %c3_234, %c0_235, %c0_236] : memref<4x4x128x128xbf16, #tpu.memory_space<vmem>>, vector<1x1x128x128xbf16>
    %336 = vector.shape_cast %335 : vector<1x1x128x128xbf16> to vector<128x128xbf16>
    %cst_237 = arith.constant dense<0.000000e+00> : vector<2x128xf32>
    %337 = tpu.matmul %334, %336, %cst_237 {dimension_numbers = #tpu.dot_dimension_numbers<[1], [0], [0], [1], [0, 0, 1, 1], [], []>} : vector<2x128xbf16>, vector<128x128xbf16>, vector<2x128xf32> -> vector<2x128xf32>
    %338 = arith.addf %328, %337 : vector<2x128xf32>
    %339 = vector.extract_strided_slice %201 {offsets = [0, 6, 0, 0], sizes = [2, 1, 8, 128], strides = [1, 1, 1, 1]} : vector<2x8x8x128xf32> to vector<2x1x8x128xf32>
    %340 = vector.shape_cast %339 : vector<2x1x8x128xf32> to vector<2x8x128xf32>
    %341 = vector.extract_strided_slice %201 {offsets = [0, 7, 0, 0], sizes = [2, 1, 8, 128], strides = [1, 1, 1, 1]} : vector<2x8x8x128xf32> to vector<2x1x8x128xf32>
    %342 = vector.shape_cast %341 : vector<2x1x8x128xf32> to vector<2x8x128xf32>
    %343 = arith.maximumf %340, %342 : vector<2x8x128xf32>
    %344 = vector.extract_strided_slice %343 {offsets = [0, 0, 0], sizes = [2, 1, 128], strides = [1, 1, 1]} : vector<2x8x128xf32> to vector<2x1x128xf32>
    %345 = vector.shape_cast %344 : vector<2x1x128xf32> to vector<2x128xf32>
    %346 = vector.extract_strided_slice %343 {offsets = [0, 1, 0], sizes = [2, 1, 128], strides = [1, 1, 1]} : vector<2x8x128xf32> to vector<2x1x128xf32>
    %347 = vector.shape_cast %346 : vector<2x1x128xf32> to vector<2x128xf32>
    %348 = arith.maximumf %345, %347 : vector<2x128xf32>
    %349 = arith.truncf %348 : vector<2x128xf32> to vector<2x128xbf16>
    %c3_238 = arith.constant 3 : index
    %c0_239 = arith.constant 0 : index
    %c0_240 = arith.constant 0 : index
    %c0_241 = arith.constant 0 : index
    %350 = vector.load %arg6[%c3_238, %c0_239, %c0_240, %c0_241] : memref<4x4x128x128xbf16, #tpu.memory_space<vmem>>, vector<1x1x128x128xbf16>
    %351 = vector.shape_cast %350 : vector<1x1x128x128xbf16> to vector<128x128xbf16>
    %cst_242 = arith.constant dense<0.000000e+00> : vector<2x128xf32>
    %352 = tpu.matmul %349, %351, %cst_242 {dimension_numbers = #tpu.dot_dimension_numbers<[1], [0], [0], [1], [0, 0, 1, 1], [], []>} : vector<2x128xbf16>, vector<128x128xbf16>, vector<2x128xf32> -> vector<2x128xf32>
    %353 = arith.addf %338, %352 : vector<2x128xf32>
    %354 = vector.extract_strided_slice %343 {offsets = [0, 2, 0], sizes = [2, 1, 128], strides = [1, 1, 1]} : vector<2x8x128xf32> to vector<2x1x128xf32>
    %355 = vector.shape_cast %354 : vector<2x1x128xf32> to vector<2x128xf32>
    %356 = vector.extract_strided_slice %343 {offsets = [0, 3, 0], sizes = [2, 1, 128], strides = [1, 1, 1]} : vector<2x8x128xf32> to vector<2x1x128xf32>
    %357 = vector.shape_cast %356 : vector<2x1x128xf32> to vector<2x128xf32>
    %358 = arith.maximumf %355, %357 : vector<2x128xf32>
    %359 = arith.truncf %358 : vector<2x128xf32> to vector<2x128xbf16>
    %c3_243 = arith.constant 3 : index
    %c1_244 = arith.constant 1 : index
    %c0_245 = arith.constant 0 : index
    %c0_246 = arith.constant 0 : index
    %360 = vector.load %arg6[%c3_243, %c1_244, %c0_245, %c0_246] : memref<4x4x128x128xbf16, #tpu.memory_space<vmem>>, vector<1x1x128x128xbf16>
    %361 = vector.shape_cast %360 : vector<1x1x128x128xbf16> to vector<128x128xbf16>
    %cst_247 = arith.constant dense<0.000000e+00> : vector<2x128xf32>
    %362 = tpu.matmul %359, %361, %cst_247 {dimension_numbers = #tpu.dot_dimension_numbers<[1], [0], [0], [1], [0, 0, 1, 1], [], []>} : vector<2x128xbf16>, vector<128x128xbf16>, vector<2x128xf32> -> vector<2x128xf32>
    %363 = arith.addf %353, %362 : vector<2x128xf32>
    %364 = vector.extract_strided_slice %343 {offsets = [0, 4, 0], sizes = [2, 1, 128], strides = [1, 1, 1]} : vector<2x8x128xf32> to vector<2x1x128xf32>
    %365 = vector.shape_cast %364 : vector<2x1x128xf32> to vector<2x128xf32>
    %366 = vector.extract_strided_slice %343 {offsets = [0, 5, 0], sizes = [2, 1, 128], strides = [1, 1, 1]} : vector<2x8x128xf32> to vector<2x1x128xf32>
    %367 = vector.shape_cast %366 : vector<2x1x128xf32> to vector<2x128xf32>
    %368 = arith.maximumf %365, %367 : vector<2x128xf32>
    %369 = arith.truncf %368 : vector<2x128xf32> to vector<2x128xbf16>
    %c3_248 = arith.constant 3 : index
    %c2_249 = arith.constant 2 : index
    %c0_250 = arith.constant 0 : index
    %c0_251 = arith.constant 0 : index
    %370 = vector.load %arg6[%c3_248, %c2_249, %c0_250, %c0_251] : memref<4x4x128x128xbf16, #tpu.memory_space<vmem>>, vector<1x1x128x128xbf16>
    %371 = vector.shape_cast %370 : vector<1x1x128x128xbf16> to vector<128x128xbf16>
    %cst_252 = arith.constant dense<0.000000e+00> : vector<2x128xf32>
    %372 = tpu.matmul %369, %371, %cst_252 {dimension_numbers = #tpu.dot_dimension_numbers<[1], [0], [0], [1], [0, 0, 1, 1], [], []>} : vector<2x128xbf16>, vector<128x128xbf16>, vector<2x128xf32> -> vector<2x128xf32>
    %373 = arith.addf %363, %372 : vector<2x128xf32>
    %374 = vector.extract_strided_slice %343 {offsets = [0, 6, 0], sizes = [2, 1, 128], strides = [1, 1, 1]} : vector<2x8x128xf32> to vector<2x1x128xf32>
    %375 = vector.shape_cast %374 : vector<2x1x128xf32> to vector<2x128xf32>
    %376 = vector.extract_strided_slice %343 {offsets = [0, 7, 0], sizes = [2, 1, 128], strides = [1, 1, 1]} : vector<2x8x128xf32> to vector<2x1x128xf32>
    %377 = vector.shape_cast %376 : vector<2x1x128xf32> to vector<2x128xf32>
    %378 = arith.maximumf %375, %377 : vector<2x128xf32>
    %379 = arith.truncf %378 : vector<2x128xf32> to vector<2x128xbf16>
    %c3_253 = arith.constant 3 : index
    %c3_254 = arith.constant 3 : index
    %c0_255 = arith.constant 0 : index
    %c0_256 = arith.constant 0 : index
    %380 = vector.load %arg6[%c3_253, %c3_254, %c0_255, %c0_256] : memref<4x4x128x128xbf16, #tpu.memory_space<vmem>>, vector<1x1x128x128xbf16>
    %381 = vector.shape_cast %380 : vector<1x1x128x128xbf16> to vector<128x128xbf16>
    %cst_257 = arith.constant dense<0.000000e+00> : vector<2x128xf32>
    %382 = tpu.matmul %379, %381, %cst_257 {dimension_numbers = #tpu.dot_dimension_numbers<[1], [0], [0], [1], [0, 0, 1, 1], [], []>} : vector<2x128xbf16>, vector<128x128xbf16>, vector<2x128xf32> -> vector<2x128xf32>
    %383 = arith.addf %373, %382 : vector<2x128xf32>
    %384 = vector.broadcast %202 : vector<1x128xf32> to vector<2x128xf32>
    %385 = arith.addf %383, %384 : vector<2x128xf32>
    %cst_258 = arith.constant 0.000000e+00 : f32
    %386 = vector.broadcast %cst_258 : f32 to vector<2x128xf32>
    %387 = arith.maximumf %385, %386 : vector<2x128xf32>
    %388 = arith.truncf %387 : vector<2x128xf32> to vector<2x128xbf16>
    %c0_259 = arith.constant 0 : index
    %c0_260 = arith.constant 0 : index
    %389 = vector.load %arg8[%c0_259, %c0_260] : memref<128x128xbf16, #tpu.memory_space<vmem>>, vector<128x128xbf16>
    %cst_261 = arith.constant dense<0.000000e+00> : vector<2x128xf32>
    %390 = tpu.matmul %388, %389, %cst_261 {dimension_numbers = #tpu.dot_dimension_numbers<[1], [0], [0], [1], [0, 0, 1, 1], [], []>} : vector<2x128xbf16>, vector<128x128xbf16>, vector<2x128xf32> -> vector<2x128xf32>
    %c0_262 = arith.constant 0 : index
    %c0_263 = arith.constant 0 : index
    %391 = vector.load %arg9[%c0_262, %c0_263] : memref<1x128xf32, #tpu.memory_space<vmem>>, vector<1x128xf32>
    %392 = vector.broadcast %391 : vector<1x128xf32> to vector<2x128xf32>
    %393 = arith.addf %390, %392 : vector<2x128xf32>
    %cst_264 = arith.constant 0.000000e+00 : f32
    %394 = vector.broadcast %cst_264 : f32 to vector<2x128xf32>
    %395 = arith.maximumf %393, %394 : vector<2x128xf32>
    %396 = arith.truncf %395 : vector<2x128xf32> to vector<2x128xbf16>
    %c0_265 = arith.constant 0 : index
    %c0_266 = arith.constant 0 : index
    %397 = vector.load %arg10[%c0_265, %c0_266] : memref<128x128xbf16, #tpu.memory_space<vmem>>, vector<128x128xbf16>
    %cst_267 = arith.constant dense<0.000000e+00> : vector<2x128xf32>
    %398 = tpu.matmul %396, %397, %cst_267 {dimension_numbers = #tpu.dot_dimension_numbers<[1], [0], [0], [1], [0, 0, 1, 1], [], []>} : vector<2x128xbf16>, vector<128x128xbf16>, vector<2x128xf32> -> vector<2x128xf32>
    %c0_268 = arith.constant 0 : index
    %c0_269 = arith.constant 0 : index
    %399 = vector.load %arg11[%c0_268, %c0_269] : memref<1x128xf32, #tpu.memory_space<vmem>>, vector<1x128xf32>
    %400 = vector.broadcast %399 : vector<1x128xf32> to vector<2x128xf32>
    %401 = arith.addf %398, %400 : vector<2x128xf32>
    %c0_270 = arith.constant 0 : index
    %c0_271 = arith.constant 0 : index
    %402 = vector.load %arg12[%c0_270, %c0_271] : memref<2x128xf32, #tpu.memory_space<vmem>>, vector<2x128xf32>
    tpu.vector_store %arg12[%c0_270, %c0_271], %401 {strides = array<i32>} : memref<2x128xf32, #tpu.memory_space<vmem>>, vector<2x128xf32>,
    return
  }
  func.func @transform_0(%arg0: i32) -> (i32, i32, i32, i32) {
    %c0_i32 = arith.constant 0 : i32
    %c0_i32_0 = arith.constant 0 : i32
    %c0_i32_1 = arith.constant 0 : i32
    %c0_i32_2 = arith.constant 0 : i32
    return %arg0, %c0_i32, %c0_i32_0, %c0_i32_1 : i32, i32, i32, i32
  }
  func.func @transform_1(%arg0: i32) -> (i32, i32) {
    %c0_i32 = arith.constant 0 : i32
    %c0_i32_0 = arith.constant 0 : i32
    %c0_i32_1 = arith.constant 0 : i32
    return %c0_i32, %c0_i32_0 : i32, i32
  }
  func.func @transform_2(%arg0: i32) -> (i32, i32) {
    %c0_i32 = arith.constant 0 : i32
    %c0_i32_0 = arith.constant 0 : i32
    %c0_i32_1 = arith.constant 0 : i32
    return %c0_i32, %c0_i32_0 : i32, i32
  }
  func.func @transform_3(%arg0: i32) -> (i32, i32, i32, i32) {
    %c0_i32 = arith.constant 0 : i32
    %c0_i32_0 = arith.constant 0 : i32
    %c0_i32_1 = arith.constant 0 : i32
    %c0_i32_2 = arith.constant 0 : i32
    %c0_i32_3 = arith.constant 0 : i32
    return %c0_i32, %c0_i32_0, %c0_i32_1, %c0_i32_2 : i32, i32, i32, i32
  }
  func.func @transform_4(%arg0: i32) -> (i32, i32) {
    %c0_i32 = arith.constant 0 : i32
    %c0_i32_0 = arith.constant 0 : i32
    %c0_i32_1 = arith.constant 0 : i32
    return %c0_i32, %c0_i32_0 : i32, i32
  }
  func.func @transform_5(%arg0: i32) -> (i32, i32, i32, i32) {
    %c0_i32 = arith.constant 0 : i32
    %c0_i32_0 = arith.constant 0 : i32
    %c0_i32_1 = arith.constant 0 : i32
    %c0_i32_2 = arith.constant 0 : i32
    %c0_i32_3 = arith.constant 0 : i32
    return %c0_i32, %c0_i32_0, %c0_i32_1, %c0_i32_2 : i32, i32, i32, i32
  }
  func.func @transform_6(%arg0: i32) -> (i32, i32) {
    %c0_i32 = arith.constant 0 : i32
    %c0_i32_0 = arith.constant 0 : i32
    %c0_i32_1 = arith.constant 0 : i32
    return %c0_i32, %c0_i32_0 : i32, i32
  }
  func.func @transform_7(%arg0: i32) -> (i32, i32) {
    %c0_i32 = arith.constant 0 : i32
    %c0_i32_0 = arith.constant 0 : i32
    %c0_i32_1 = arith.constant 0 : i32
    return %c0_i32, %c0_i32_0 : i32, i32
  }
  func.func @transform_8(%arg0: i32) -> (i32, i32) {
    %c0_i32 = arith.constant 0 : i32
    %c0_i32_0 = arith.constant 0 : i32
    %c0_i32_1 = arith.constant 0 : i32
    return %c0_i32, %c0_i32_0 : i32, i32
  }
  func.func @transform_9(%arg0: i32) -> (i32, i32) {
    %c0_i32 = arith.constant 0 : i32
    %c0_i32_0 = arith.constant 0 : i32
    %c0_i32_1 = arith.constant 0 : i32
    return %c0_i32, %c0_i32_0 : i32, i32
  }
  func.func @transform_10(%arg0: i32) -> (i32, i32) {
    %c0_i32 = arith.constant 0 : i32
    %c0_i32_0 = arith.constant 0 : i32
    %c0_i32_1 = arith.constant 0 : i32
    return %c0_i32, %c0_i32_0 : i32, i32
  }
  func.func @transform_11(%arg0: i32) -> (i32, i32) {
    %c0_i32 = arith.constant 0 : i32
    %c0_i32_0 = arith.constant 0 : i32
    return %arg0, %c0_i32 : i32, i32
  }
}

</mosaic_0001>

<bundles_post_ra>
// kernel: _lambda_.1
= control target key start
LH: loop header
LB: loop body
LE: loop exit
PB: predicated region body
PF: predicated region fallthrough
CT: control target
= control target key end

     0   :  { %vm189_vm0 = vcmask 261120   ;;  %s18340_s0 = inlined_call_operand.vmem [shape: bf16[2,4,144,32], index: 0, kind: input, shape index: {}]   ;;  %s18341_s1 = inlined_call_operand.vmem [shape: bf16[32,128], index: 1, kind: input, shape index: {}]   ;;  %s18342_s2 = inlined_call_operand.vmem [shape: f32[1,128], index: 2, kind: input, shape index: {}]   ;;  %s18343_s3 = inlined_call_operand.vmem [shape: bf16[5,5,128,128], index: 3, kind: input, shape index: {}]   ;;  %s18344_s4 = inlined_call_operand.vmem [shape: f32[1,128], index: 4, kind: input, shape index: {}]   ;;  %s18345_s5 = inlined_call_operand.vmem [shape: bf16[4,4,128,128], index: 5, kind: input, shape index: {}]   ;;  %s18346_s6 = inlined_call_operand.vmem [shape: f32[1,128], index: 6, kind: input, shape index: {}]   ;;  %s18347_s7 = inlined_call_operand.vmem [shape: bf16[128,128], index: 7, kind: input, shape index: {}]   ;;  %s18348_s8 = inlined_call_operand.vmem [shape: f32[1,128], index: 8, kind: input, shape index: {}]   ;;  %s18349_s9 = inlined_call_operand.vmem [shape: bf16[128,128], index: 9, kind: input, shape index: {}]   ;;  %s18350_s10 = inlined_call_operand.vmem [shape: f32[1,128], index: 10, kind: input, shape index: {}]   ;;  %s18351_s11 = inlined_call_operand.hbm [shape: f32[2,128], index: 11, kind: output, shape index: {}]  }
   0x1   :  { %v15021_v0 = vld [vmem:[%s18341_s1] sm:$0xff]   ;;  %v15026_v1 = vld [vmem:[%s18341_s1 + $0x8] sm:$0xff]   ;;  %v14469_v4 = vld [vmem:[%s18340_s0 + $0x10] sm:$0xff]  }
   0x2   :  { %12753 = vmatprep.subr.bf16.mxu1 %v15021_v0  ;;  %v14467_v2 = vld [vmem:[%s18340_s0] sm:$0xff]   ;;  %12833 = vmatprep.subr.bf16.mxu0 %v15021_v0  ;;  %v14468_v3 = vld [vmem:[%s18340_s0 + $0x8] sm:$0xff]   ;;  %v14470_v5 = vld [vmem:[%s18340_s0 + $0x18] sm:$0xff]  }
   0x3   :  { %12754 = vmatpush3.bf16.msra.mxu1 %v15021_v0  ;;  %12834 = vmatpush3.bf16.msra.mxu0 %v15021_v0  ;;  %v14471_v6 = vld [vmem:[%s18340_s0 + $0x20] sm:$0xff]   ;;  %v14472_v7 = vld [vmem:[%s18340_s0 + $0x28] sm:$0xff]   ;;  %v14473_v8 = vld [vmem:[%s18340_s0 + $0x30] sm:$0xff]  }
   0x4   :  { %12755 = vmatprep.subr.bf16.mxu1 %v15026_v1  ;;  %12757 = vmatprep.mubr.msk.bf16.mxu1 %vm189_vm0, %v14467_v2  ;;  %v14487_v9 = vld [vmem:[%s18340_s0 + $0x90] sm:$0xff]   ;;  %v14488_v10 = vld [vmem:[%s18340_s0 + $0x98] sm:$0xff]   ;;  %v14491_v11 = vld [vmem:[%s18340_s0 + $0xa0] sm:$0xff]  }
   0x5   :  { %12835 = vmatprep.subr.bf16.mxu0 %v15026_v1  ;;  %12837 = vmatprep.mubr.msk.bf16.mxu0 %vm189_vm0, %v14487_v9  ;;  %v14474_v12 = vld [vmem:[%s18340_s0 + $0x38] sm:$0xff]   ;;  %v14492_v13 = vld [vmem:[%s18340_s0 + $0xa8] sm:$0xff]   ;;  %v14495_v14 = vld [vmem:[%s18340_s0 + $0xb0] sm:$0xff]  }
   0x6   :  { %v14475_v15 = vld [vmem:[%s18340_s0 + $0x40] sm:$0xff]   ;;  %v14496_v17 = vld [vmem:[%s18340_s0 + $0xb8] sm:$0xff]   ;;  %v14477_v19 = vld [vmem:[%s18340_s0 + $0x128] sm:$0xff]  }
   0x7   :  { %12756 = vmatpush3.bf16.msra.mxu1 %v15026_v1  ;;  %12836 = vmatpush3.bf16.msra.mxu0 %v15026_v1  ;;  %v14476_v16 = vld [vmem:[%s18340_s0 + $0x120] sm:$0xff]   ;;  %v14500_v20 = vld [vmem:[%s18340_s0 + $0xc8] sm:$0xff]   ;;  %v14478_v21 = vld [vmem:[%s18340_s0 + $0x130] sm:$0xff]  }
   0x8   :  { %12793 = vmatprep.subr.bf16.mxu1 %v15021_v0  ;;  %v14499_v18 = vld [vmem:[%s18340_s0 + $0xc0] sm:$0xff]   ;;  %v14479_v22 = vld [vmem:[%s18340_s0 + $0x138] sm:$0xff]   ;;  %v14481_v24 = vld [vmem:[%s18340_s0 + $0x148] sm:$0xff]  }
   0x9   :  { %v14480_v23 = vld [vmem:[%s18340_s0 + $0x140] sm:$0xff]   ;;  %v14482_v25 = vld [vmem:[%s18340_s0 + $0x150] sm:$0xff]   ;;  %v14483_v26 = vld [vmem:[%s18340_s0 + $0x158] sm:$0xff]  }
   0xa   :  { %12758 = vmatmul.mubr.msk.bf16.vlgmr.msra.gmra.mrb[0].mxu1 %vm189_vm0, %v14468_v3  ;;  %12838 = vmatmul.mubr.msk.bf16.vlgmr.msra.gmra.mrb[0].mxu0 %vm189_vm0, %v14488_v10  ;;  %v14484_v27 = vld [vmem:[%s18340_s0 + $0x160] sm:$0xff]   ;;  %v14485_v28 = vld [vmem:[%s18340_s0 + $0x48] sm:$0xff]   ;;  %v14486_v29 = vld [vmem:[%s18340_s0 + $0x50] sm:$0xff]  }
   0xb   :  { %12794 = vmatpush3.bf16.msra.mxu1 %v15021_v0  ;;  %12761 = vmatprep.mubr.msk.bf16.mxu1 %vm189_vm0, %v14469_v4  ;;  %v14489_v30 = vld [vmem:[%s18340_s0 + $0x58] sm:$0xff]   ;;  %v14490_v31 = vld [vmem:[%s18340_s0 + $0x60] sm:$0xff]   ;;  %v14493_v32 = vld [vmem:[%s18340_s0 + $0x68] sm:$0xff]  }
   0xc   :  { %12795 = vmatprep.subr.bf16.mxu1 %v15026_v1  ;;  %12841 = vmatprep.mubr.msk.bf16.mxu0 %vm189_vm0, %v14491_v11  ;;  %v14494_v33 = vld [vmem:[%s18340_s0 + $0x70] sm:$0xff]   ;;  %v14497_v34 = vld [vmem:[%s18340_s0 + $0x78] sm:$0xff]   ;;  %v14498_v35 = vld [vmem:[%s18340_s0 + $0x80] sm:$0xff]  }
   0xd   :  { %v14501_v36 = vld [vmem:[%s18340_s0 + $0x88] sm:$0xff]   ;;  %v14503_v38 = vld [vmem:[%s18340_s0 + $0x170] sm:$0xff]   ;;  %v14504_v39 = vld [vmem:[%s18340_s0 + $0x178] sm:$0xff]  }
   0xe   :  { %v14502_v37 = vld [vmem:[%s18340_s0 + $0x168] sm:$0xff]   ;;  %v14505_v40 = vld [vmem:[%s18340_s0 + $0x180] sm:$0xff]   ;;  %v14507_v42 = vld [vmem:[%s18340_s0 + $0x190] sm:$0xff]  }
   0xf   :  { %12796 = vmatpush3.bf16.msra.mxu1 %v15026_v1  ;;  %v14506_v41 = vld [vmem:[%s18340_s0 + $0x188] sm:$0xff]   ;;  %v14508_v43 = vld [vmem:[%s18340_s0 + $0x198] sm:$0xff]   ;;  %v14509_v44 = vld [vmem:[%s18340_s0 + $0x1a0] sm:$0xff]  }
  0x10   :  { %14073 = vmatprep.subr.bf16.mxu1 %v15021_v0  ;;  %v14510_v45 = vld [vmem:[%s18340_s0 + $0x1a8] sm:$0xff]   ;;  %v14511_v46 = vld [vmem:[%s18340_s0 + $0xd0] sm:$0xff]   ;;  %v14513_v48 = vld [vmem:[%s18340_s0 + $0x1b8] sm:$0xff]  }
  0x11   :  { %v14512_v47 = vld [vmem:[%s18340_s0 + $0x1b0] sm:$0xff]   ;;  %v14514_v49 = vld [vmem:[%s18340_s0 + $0x1c0] sm:$0xff]   ;;  %v14515_v50 = vld [vmem:[%s18340_s0 + $0x1c8] sm:$0xff]  }
  0x12   :  { %12762 = vmatmul.mubr.msk.bf16.gmra.mrb[4].mxu1 %vm189_vm0, %v14470_v5  ;;  %12842 = vmatmul.mubr.msk.bf16.gmra.mrb[4].mxu0 %vm189_vm0, %v14492_v13  ;;  %v14901_v51 = vld [vmem:[%s18341_s1 + $0x8] sm:$0xff]   ;;  %v14516_v52 = vld [vmem:[%s18340_s0 + $0x1d0] sm:$0xff]   ;;  %v14517_v53 = vld [vmem:[%s18340_s0 + $0x1d8] sm:$0xff]  }
  0x13   :  { %12765 = vmatprep.mubr.msk.bf16.mxu1 %vm189_vm0, %v14471_v6  ;;  %12845 = vmatprep.mubr.msk.bf16.mxu0 %vm189_vm0, %v14495_v14  ;;  %v14518_v54 = vld [vmem:[%s18340_s0 + $0x1e0] sm:$0xff]   ;;  %v14519_v55 = vld [vmem:[%s18340_s0 + $0x1e8] sm:$0xff]   ;;  %v14520_v56 = vld [vmem:[%s18340_s0 + $0x1f0] sm:$0xff]  }
  0x14   :  { %v14521_v57 = vld [vmem:[%s18340_s0 + $0xd8] sm:$0xff]   ;;  %v14522_v58 = vld [vmem:[%s18340_s0 + $0xe0] sm:$0xff]   ;;  %v14523_v59 = vld [vmem:[%s18340_s0 + $0xe8] sm:$0xff]  }
  0x15   :  { %v14524_v60 = vld [vmem:[%s18340_s0 + $0xf0] sm:$0xff]   ;;  %v14525_v61 = vld [vmem:[%s18340_s0 + $0xf8] sm:$0xff]   ;;  %v14526_v62 = vld [vmem:[%s18340_s0 + $0x100] sm:$0xff]  }
  0x16   :  { %v14527_v63 = vld [vmem:[%s18340_s0 + $0x108] sm:$0xff]   ;;  %v14530_v4 = vld [vmem:[%s18340_s0 + $0x1f8] sm:$0xff]   ;;  %v14531_v6 = vld [vmem:[%s18340_s0 + $0x200] sm:$0xff]  }
  0x17   :  { %v14532_v10 = vld [vmem:[%s18340_s0 + $0x208] sm:$0xff]   ;;  %v14534_v14 = vld [vmem:[%s18340_s0 + $0x218] sm:$0xff]  }
  0x1a   :  { %12766 = vmatmul.mubr.msk.bf16.gmra.mrb[8].mxu1 %vm189_vm0, %v14472_v7  ;;  %12846 = vmatmul.mubr.msk.bf16.gmra.mrb[8].mxu0 %vm189_vm0, %v14496_v17 }
  0x1b   :  { %12769 = vmatprep.mubr.msk.bf16.mxu1 %vm189_vm0, %v14473_v8  ;;  %12849 = vmatprep.mubr.msk.bf16.mxu0 %vm189_vm0, %v14499_v18 }
  0x22   :  { %12770 = vmatmul.mubr.msk.bf16.gmra.mrb[12].mxu1 %vm189_vm0, %v14474_v12  ;;  %12850 = vmatmul.mubr.msk.bf16.gmra.mrb[12].mxu0 %vm189_vm0, %v14500_v20  ;;  %v14533_v12 = vld [vmem:[%s18340_s0 + $0x210] sm:$0xff]  }
  0x23   :  { %12773 = vmatprep.mubr.msk.bf16.mxu1 %vm189_vm0, %v14475_v15 }
  0x2a   :  { %12774 = vmatmul.mubr.msk.bf16.gmra.mrb[16].mxu1 %vm189_vm0, %v14476_v16 }
  0x2b   :  { %12777 = vmatprep.mubr.msk.bf16.mxu1 %vm189_vm0, %v14477_v19 }
  0x32   :  { %12778 = vmatmul.mubr.msk.bf16.gmra.mrb[20].mxu1 %vm189_vm0, %v14478_v21  ;;  %v14535_v21 = vld [vmem:[%s18340_s0 + $0x220] sm:$0xff]  }
  0x33   :  { %12781 = vmatprep.mubr.msk.bf16.mxu1 %vm189_vm0, %v14479_v22 }
  0x3a   :  { %12782 = vmatmul.mubr.msk.bf16.gmra.mrb[24].mxu1 %vm189_vm0, %v14480_v23 }
  0x3b   :  { %12785 = vmatprep.mubr.msk.bf16.mxu1 %vm189_vm0, %v14481_v24  ;;  %v14536_v24 = vld [vmem:[%s18340_s0 + $0x228] sm:$0xff]  }
  0x42   :  { %12786 = vmatmul.mubr.msk.bf16.gmra.mrb[28].mxu1 %vm189_vm0, %v14482_v25 }
  0x43   :  { %12789 = vmatprep.mubr.msk.bf16.mxu1 %vm189_vm0, %v14483_v26 }
  0x4a   :  { %12790 = vmatmul.mubr.msk.bf16.gmra.mrb[32].mxu1 %vm189_vm0, %v14484_v27 }
  0x4b   :  { %12797 = vmatprep.mubr.msk.bf16.mxu1 %vm189_vm0, %v14485_v28 }
  0x52   :  { %12798 = vmatmul.mubr.msk.bf16.vlgmr.msra.gmra.mrb[36].mxu1 %vm189_vm0, %v14486_v29 }
  0x53   :  { %14075 = vmatpush3.bf16.msra.mxu1 %v15021_v0  ;;  %12801 = vmatprep.mubr.msk.bf16.mxu1 %vm189_vm0, %v14489_v30 }
  0x54   :  { %14074 = vmatprep.subr.bf16.mxu1 %v15026_v1 }
  0x57   :  { %14076 = vmatpush3.bf16.msra.mxu1 %v15026_v1 }
  0x58   :  { %12873 = vmatprep.subr.bf16.mxu1 %v15021_v0 }
  0x5a   :  { %12802 = vmatmul.mubr.msk.bf16.gmra.mrb[40].mxu1 %vm189_vm0, %v14490_v31  ;;  %v14537_v31 = vld [vmem:[%s18340_s0 + $0x230] sm:$0xff]  }
  0x5b   :  { %12805 = vmatprep.mubr.msk.bf16.mxu1 %vm189_vm0, %v14493_v32 }
  0x62   :  { %12806 = vmatmul.mubr.msk.bf16.gmra.mrb[44].mxu1 %vm189_vm0, %v14494_v33 }
  0x63   :  { %12809 = vmatprep.mubr.msk.bf16.mxu1 %vm189_vm0, %v14497_v34  ;;  %v14538_v34 = vld [vmem:[%s18340_s0 + $0x238] sm:$0xff]  }
  0x6a   :  { %12810 = vmatmul.mubr.msk.bf16.gmra.mrb[48].mxu1 %vm189_vm0, %v14498_v35 }
  0x6b   :  { %12813 = vmatprep.mubr.msk.bf16.mxu1 %vm189_vm0, %v14501_v36 }
  0x72   :  { %12814 = vmatmul.mubr.msk.bf16.gmra.mrb[52].mxu1 %vm189_vm0, %v14502_v37 }
  0x73   :  { %12817 = vmatprep.mubr.msk.bf16.mxu1 %vm189_vm0, %v14503_v38 }
  0x7a   :  { %12818 = vmatmul.mubr.msk.bf16.gmra.mrb[56].mxu1 %vm189_vm0, %v14504_v39 }
  0x7b   :  { %12821 = vmatprep.mubr.msk.bf16.mxu1 %vm189_vm0, %v14505_v40 }
  0x82   :  { %12822 = vmatmul.mubr.msk.bf16.gmra.mrb[60].mxu1 %vm189_vm0, %v14506_v41 }
  0x83   :  { %12825 = vmatprep.mubr.msk.bf16.mxu1 %vm189_vm0, %v14507_v42 }
  0x8a   :  { %12826 = vmatmul.mubr.msk.bf16.gmra.mrb[64].mxu1 %vm189_vm0, %v14508_v43 }
  0x8b   :  { %12829 = vmatprep.mubr.msk.bf16.mxu1 %vm189_vm0, %v14509_v44 }
  0x92   :  { %12830 = vmatmul.mubr.msk.bf16.gmra.mrb[68].mxu1 %vm189_vm0, %v14510_v45 }
  0x93   :  { %12853 = vmatprep.mubr.msk.bf16.mxu1 %vm189_vm0, %v14511_v46 }
  0x9a   :  { %12854 = vmatmul.mubr.msk.bf16.vlgmr.msra.gmra.mrb[72].mxu1 %vm189_vm0, %v14512_v47 }
  0x9b   :  { %12874 = vmatpush3.bf16.msra.mxu1 %v15021_v0  ;;  %12857 = vmatprep.mubr.msk.bf16.mxu1 %vm189_vm0, %v14513_v48  ;;  %v14528_v0 = vld [vmem:[%s18340_s0 + $0x110] sm:$0xff]  }
  0x9c   :  { %12875 = vmatprep.subr.bf16.mxu1 %v15026_v1  ;;  %v14529_v1 = vld [vmem:[%s18340_s0 + $0x118] sm:$0xff]  }
  0x9f   :  { %12876 = vmatpush3.bf16.msra.mxu1 %v14901_v51 }
  0xa2   :  { %12858 = vmatmul.mubr.msk.bf16.gmra.mrb[76].mxu1 %vm189_vm0, %v14514_v49 }
  0xa3   :  { %12861 = vmatprep.mubr.msk.bf16.mxu1 %vm189_vm0, %v14515_v50 }
  0xaa   :  { %12862 = vmatmul.mubr.msk.bf16.gmra.mrb[80].mxu1 %vm189_vm0, %v14516_v52 }
  0xab   :  { %12865 = vmatprep.mubr.msk.bf16.mxu1 %vm189_vm0, %v14517_v53 }
  0xb2   :  { %12866 = vmatmul.mubr.msk.bf16.gmra.mrb[84].mxu1 %vm189_vm0, %v14518_v54 }
  0xb3   :  { %12869 = vmatprep.mubr.msk.bf16.mxu1 %vm189_vm0, %v14519_v55 }
  0xba   :  { %12870 = vmatmul.mubr.msk.bf16.gmra.mrb[88].mxu1 %vm189_vm0, %v14520_v56 }
  0xbb   :  { %12877 = vmatprep.mubr.msk.bf16.mxu1 %vm189_vm0, %v14521_v57 }
  0xc2   :  { %12878 = vmatmul.mubr.msk.bf16.vlgmr.msra.gmra.mrb[92].mxu1 %vm189_vm0, %v14522_v58  ;;  %v14539_v58 = vld [vmem:[%s18343_s3 + $0x140] sm:$0xff]  }
  0xc3   :  { %12881 = vmatprep.mubr.msk.bf16.mxu1 %vm189_vm0, %v14523_v59  ;;  %12913 = vmatprep.subr.bf16.mxu0 %v14539_v58 }
  0xc4   :  { %12914 = vmatpush3.bf16.msra.mxu0 %v14539_v58  ;;  %v14542_v58 = vld [vmem:[%s18343_s3 + $0x158] sm:$0xff]  }
  0xca   :  { %12882 = vmatmul.mubr.msk.bf16.gmra.mrb[96].mxu1 %vm189_vm0, %v14524_v60  ;;  %v15440_v60 = vld [vmem:[%s18342_s2] ss:$0 sm:$0xff] }
  0xcb   :  { %12885 = vmatprep.mubr.msk.bf16.mxu1 %vm189_vm0, %v14525_v61  ;;  %v14540_v61 = vld [vmem:[%s18343_s3 + $0x148] sm:$0xff]  }
  0xcc   :  { %12915 = vmatprep.subr.bf16.mxu0 %v14540_v61 }
  0xcd   :  { %12916 = vmatpush3.bf16.msra.mxu0 %v14540_v61 }
  0xd2   :  { %12886 = vmatmul.mubr.msk.bf16.gmra.mrb[100].mxu1 %vm189_vm0, %v14526_v62 }
  0xd3   :  { %12889 = vmatprep.mubr.msk.bf16.mxu1 %vm189_vm0, %v14527_v63 }
  0xda   :  { %12890 = vmatmul.mubr.msk.bf16.gmra.mrb[104].mxu1 %vm189_vm0, %v14528_v0 }
  0xdb   :  { %12893 = vmatprep.mubr.msk.bf16.mxu1 %vm189_vm0, %v14529_v1 }
  0xdd   :  { %v15302_v2 = vpop.f32.mrb[0].mxu1  ;;  %v15337_v15 = vpop.f32.mrb[0].mxu0 }
  0xde   :  { %v15304_v3 = vpop.f32.mrb[1].mxu1  ;;  %v15341_v17 = vpop.f32.mrb[1].mxu0  ;;  %v287_v62 = vadd.f32 %v15302_v2, %v15440_v60 }
  0xdf   :  { %v15309_v5 = vpop.f32.mrb[2].mxu1  ;;  %v15345_v19 = vpop.f32.mrb[2].mxu0  ;;  %v279_v63 = vadd.f32 %v15440_v60, %v15304_v3 }
  0xe0   :  { %v15314_v7 = vpop.f32.mrb[3].mxu1  ;;  %v15352_v22 = vpop.f32.mrb[3].mxu0  ;;  %v290_v0 = vadd.f32 %v15309_v5, %v15440_v60  ;;  %v14541_v5 = vld [vmem:[%s18343_s3 + $0x150] sm:$0xff]  }
  0xe1   :  { %12917 = vmatprep.subr.bf16.mxu0 %v14541_v5 }
  0xe2   :  { %12894 = vmatmul.mubr.msk.bf16.gmra.mrb[108].mxu1 %vm189_vm0, %v14530_v4  ;;  %v282_v4 = vadd.f32 %v15440_v60, %v15314_v7  ;;  %v421_v7 = vmax.f32 %v279_v63, 0.0  ;;  %12918 = vmatpush3.bf16.msra.mxu0 %v14541_v5  ;;  %v1114_v63 = vadd.f32 %v15345_v19, %v15440_v60 }
  0xe3   :  { %12897 = vmatprep.mubr.msk.bf16.mxu1 %vm189_vm0, %v14531_v6  ;;  %12919 = vmatprep.subr.bf16.mxu0 %v14542_v58 }
  0xe5   :  { %v15318_v8 = vpop.f32.mrb[4].mxu1  ;;  %v15361_v25 = vpop.f32.mrb[4].mxu0 }
  0xe6   :  { %v15320_v9 = vpop.f32.mrb[5].mxu1  ;;  %v15365_v27 = vpop.f32.mrb[5].mxu0  ;;  %v15457_v6 = vadd.f32 %v15318_v8, %v15440_v60  ;;  %v1111_v8 = vadd.f32 %v15337_v15, %v15440_v60  ;;  %12920 = vmatpush3.bf16.msra.mxu0 %v14542_v58 }
  0xe7   :  { %v15325_v11 = vpop.f32.mrb[6].mxu1  ;;  %v15369_v29 = vpop.f32.mrb[6].mxu0  ;;  %v15463_v2 = vadd.f32 %v15440_v60, %v15320_v9  ;;  %v1103_v9 = vadd.f32 %v15440_v60, %v15341_v17  ;;  %v1106_v17 = vadd.f32 %v15440_v60, %v15352_v22 }
  0xe8   :  { %v15330_v13 = vpop.f32.mrb[7].mxu1  ;;  %v15376_v32 = vpop.f32.mrb[7].mxu0 }
  0xe9   :  { %v298_v22 = vadd.f32 %v15440_v60, %v15330_v13  ;;  %v1127_v13 = vadd.f32 %v15361_v25, %v15440_v60 }
  0xea   :  { %12898 = vmatmul.mubr.msk.bf16.gmra.mrb[112].mxu1 %vm189_vm0, %v14532_v10 }
  0xeb   :  { %12901 = vmatprep.mubr.msk.bf16.mxu1 %vm189_vm0, %v14533_v12  ;;  %v423_v12 = vmax.f32 %v287_v62, 0.0  ;;  %v1247_v62 = vmax.f32 %v1111_v8, 0.0 }
  0xed   :  { %v15339_v16 = vpop.f32.mrb[8].mxu1  ;;  %v15385_v35 = vpop.f32.mrb[8].mxu0 }
  0xee   :  { %v15343_v18 = vpop.f32.mrb[9].mxu1  ;;  %v15389_v37 = vpop.f32.mrb[9].mxu0 }
  0xef   :  { %v15347_v20 = vpop.f32.mrb[10].mxu1  ;;  %v15393_v39 = vpop.f32.mrb[10].mxu0 }
  0xf0   :  { %v15354_v23 = vpop.f32.mrb[11].mxu1  ;;  %v15397_v41 = vpop.f32.mrb[11].mxu0 }
  0xf2   :  { %12902 = vmatmul.mubr.msk.bf16.gmra.mrb[116].mxu1 %vm189_vm0, %v14534_v14 }
  0xf3   :  { %12905 = vmatprep.mubr.msk.bf16.mxu1 %vm189_vm0, %v14535_v21  ;;  %v424_v21 = vmax.f32 %v290_v0, 0.0 }
  0xf5   :  { %v15363_v26 = vpop.f32.mrb[12].mxu1  ;;  %v15402_v43 = vpop.f32.mrb[12].mxu0 }
  0xf6   :  { %v15367_v28 = vpop.f32.mrb[13].mxu1  ;;  %v15406_v45 = vpop.f32.mrb[13].mxu0 }
  0xf7   :  { %v15371_v30 = vpop.f32.mrb[14].mxu1  ;;  %v15410_v47 = vpop.f32.mrb[14].mxu0 }
  0xf8   :  { %v15378_v33 = vpop.f32.mrb[15].mxu1  ;;  %v15414_v49 = vpop.f32.mrb[15].mxu0 }
  0xfa   :  { %12906 = vmatmul.mubr.msk.bf16.gmra.mrb[120].mxu1 %vm189_vm0, %v14536_v24  ;;  %v422_v24 = vmax.f32 %v282_v4, 0.0  ;;  %v1245_v4 = vmax.f32 %v1103_v9, 0.0 }
  0xfb   :  { %12909 = vmatprep.mubr.msk.bf16.mxu1 %vm189_vm0, %v14537_v31  ;;  %v14543_v31 = vld [vmem:[%s18343_s3 + $0x160] sm:$0xff]  }
  0xfc   :  { %12921 = vmatprep.subr.bf16.mxu0 %v14543_v31 }
  0xfd   :  { %v15387_v36 = vpop.f32.mrb[16].mxu1  ;;  %12922 = vmatpush3.bf16.msra.mxu0 %v14543_v31 }
  0xfe   :  { %v15391_v38 = vpop.f32.mrb[17].mxu1 }
  0xff   :  { %v15395_v40 = vpop.f32.mrb[18].mxu1 }
 0x100   :  { %v15399_v42 = vpop.f32.mrb[19].mxu1 }
 0x102   :  { %12910 = vmatmul.mubr.msk.bf16.gmra.mrb[124].mxu1 %vm189_vm0, %v14538_v34 }
 0x105   :  { %v15404_v44 = vpop.f32.mrb[20].mxu1 }
 0x106   :  { %v15408_v46 = vpop.f32.mrb[21].mxu1 }
 0x107   :  { %v15412_v48 = vpop.f32.mrb[22].mxu1 }
 0x108   :  { %v15416_v50 = vpop.f32.mrb[23].mxu1 }
 0x10d   :  { %v15418_v51 = vpop.f32.mrb[24].mxu1 }
 0x10e   :  { %v15420_v52 = vpop.f32.mrb[25].mxu1 }
 0x10f   :  { %v15422_v53 = vpop.f32.mrb[26].mxu1 }
 0x110   :  { %v15424_v54 = vpop.f32.mrb[27].mxu1 }
 0x115   :  { %v15426_v55 = vpop.f32.mrb[28].mxu1 }
 0x116   :  { %v15428_v56 = vpop.f32.mrb[29].mxu1 }
 0x117   :  { %v15430_v57 = vpop.f32.mrb[30].mxu1 }
 0x118   :  { %v15435_v59 = vpop.f32.mrb[31].mxu1 }
 0x119   :  { %18421 = vst [vmem:[#allocation6_spill] sm:$0xff] %v15435_v59 }
 0x11d   :  { %v15451_v1 = vpop.f32.mrb[32].mxu1 }
 0x11e   :  { %18422 = vst [vmem:[#allocation7_spill] sm:$0xff] %v15451_v1  ;;  %v15459_v10 = vpop.f32.mrb[33].mxu1  ;;  %v1246_v1 = vmax.f32 %v1106_v17, 0.0 }
 0x11f   :  { %18423 = vst [vmem:[#allocation8_spill] sm:$0xff] %v15459_v10  ;;  %v15465_v3 = vpop.f32.mrb[34].mxu1  ;;  %v1248_v10 = vmax.f32 %v1114_v63, 0.0 }
 0x120   :  { %18424 = vst [vmem:[#allocation9_spill] sm:$0xff] %v15465_v3  ;;  %v15470_v14 = vpop.f32.mrb[35].mxu1 }
 0x121   :  { %18425 = vst [vmem:[#allocation10_spill] sm:$0xff] %v15470_v14 }
 0x125   :  { %v12799_v61 = vpop.f32.mrb[36].mxu1 }
 0x126   :  { %v681_v15 = vadd.f32 %v12799_v61, %v15440_v60  ;;  %v672_v0 = vpop.f32.mrb[37].mxu1  ;;  %v306_v61 = vadd.f32 %v15325_v11, %v15440_v60  ;;  %v14544_v11 = vld [vmem:[%s18343_s3 + $0x168] sm:$0xff]  }
 0x127   :  { %v673_v5 = vadd.f32 %v15440_v60, %v672_v0  ;;  %v12800_v34 = vpop.f32.mrb[38].mxu1  ;;  %12923 = vmatprep.subr.bf16.mxu0 %v14544_v11 }
 0x128   :  { %v817_v8 = vmax.f32 %v681_v15, 0.0  ;;  %v684_v14 = vadd.f32 %v12800_v34, %v15440_v60  ;;  %v675_v19 = vpop.f32.mrb[39].mxu1  ;;  %v15498_v15 = vadd.f32 %v15339_v16, %v15440_v60  ;;  %v1119_v16 = vadd.f32 %v15440_v60, %v15365_v27  ;;  %12924 = vmatpush3.bf16.msra.mxu0 %v14544_v11 }
 0x129   :  { %v815_v3 = vmax.f32 %v673_v5, 0.0  ;;  %v676_v9 = vadd.f32 %v15440_v60, %v675_v19  ;;  %v1122_v27 = vadd.f32 %v15440_v60, %v15376_v32  ;;  %v314_v32 = vadd.f32 %v15440_v60, %v15354_v23  ;;  %v14549_v23 = vld [vmem:[%s18343_s3 + $0x178] sm:$0xff]  }
 0x12a   :  { %v853_v58 = vmax.f32 %v423_v12, %v817_v8  ;;  %v818_v0 = vmax.f32 %v684_v14, 0.0  ;;  %v428_v12 = vmax.f32 %v306_v61, 0.0  ;;  %v431_v25 = vmax.f32 %v15498_v15, 0.0 }
 0x12b   :  { %v851_v34 = vmax.f32 %v421_v7, %v815_v3  ;;  %v816_v59 = vmax.f32 %v676_v9, 0.0  ;;  %v426_v3 = vmax.f32 %v298_v22, 0.0  ;;  %v1251_v9 = vmax.f32 %v1127_v13, 0.0 }
 0x12c   :  { %v854_v5 = vmax.f32 %v424_v21, %v818_v0  ;;  %v15503_v63 = vmax.f32 %v853_v58, %v1247_v62  ;;  %v1130_v62 = vadd.f32 %v15369_v29, %v15440_v60  ;;  %v14545_v29 = vld [vmem:[%s18343_s3 + $0x170] sm:$0xff]   ;;  %v1249_v15 = vmax.f32 %v1119_v16, 0.0 }
 0x12d   :  { %v852_v14 = vmax.f32 %v422_v24, %v816_v59  ;;  %v15507_v17 = vmax.f32 %v851_v34, %v1245_v4  ;;  %v12803_v31 = vpop.f32.mrb[40].mxu1  ;;  %12925 = vmatprep.subr.bf16.mxu0 %v14545_v29  ;;  %v18427_v13 = vmax.f32 %v15463_v2, 0.0 }
 0x12e   :  { %v15511_v7 = vmax.f32 %v854_v5, %v1248_v10  ;;  %v697_v8 = vadd.f32 %v12803_v31, %v15440_v60  ;;  %v688_v21 = vpop.f32.mrb[41].mxu1  ;;  %v311_v10 = vadd.f32 %v15440_v60, %v15343_v18  ;;  %v18426_v18 = vmax.f32 %v15457_v6, 0.0  ;;  %12926 = vmatpush3.bf16.msra.mxu0 %v14545_v29 }
 0x12f   :  { %v15517_v59 = vmax.f32 %v852_v14, %v1246_v1  ;;  %v689_v24 = vadd.f32 %v15440_v60, %v688_v21  ;;  %v12804_v4 = vpop.f32.mrb[42].mxu1  ;;  %v322_v1 = vadd.f32 %v15347_v20, %v15440_v60  ;;  %v1252_v5 = vmax.f32 %v1130_v62, 0.0  ;;  %12927 = vmatprep.subr.bf16.mxu0 %v14549_v23 }
 0x130   :  { %v821_v19 = vmax.f32 %v697_v8, 0.0  ;;  %v700_v61 = vadd.f32 %v12804_v4, %v15440_v60  ;;  %v691_v22 = vpop.f32.mrb[43].mxu1  ;;  %v1250_v8 = vmax.f32 %v1122_v27, 0.0  ;;  %v1143_v20 = vadd.f32 %v15385_v35, %v15440_v60 }
 0x131   :  { %v819_v58 = vmax.f32 %v689_v24, 0.0  ;;  %v692_v0 = vadd.f32 %v15440_v60, %v691_v22  ;;  %v429_v21 = vmax.f32 %v311_v10, 0.0  ;;  %v432_v6 = vmax.f32 %v322_v1, 0.0 }
 0x132   :  { %v857_v34 = vmax.f32 %v18426_v18, %v821_v19  ;;  %v822_v11 = vmax.f32 %v700_v61, 0.0  ;;  %v1135_v27 = vadd.f32 %v15440_v60, %v15389_v37  ;;  %v430_v19 = vmax.f32 %v314_v32, 0.0  ;;  %12928 = vmatpush3.bf16.msra.mxu0 %v14549_v23 }
 0x133   :  { %v855_v14 = vmax.f32 %v18427_v13, %v819_v58  ;;  %v820_v31 = vmax.f32 %v692_v0, 0.0  ;;  %v1146_v10 = vadd.f32 %v15393_v39, %v15440_v60  ;;  %v1255_v29 = vmax.f32 %v1143_v20, 0.0 }
 0x134   :  { %v858_v16 = vmax.f32 %v428_v12, %v822_v11  ;;  %v15539_v24 = vmax.f32 %v857_v34, %v1251_v9  ;;  %v1138_v1 = vadd.f32 %v15440_v60, %v15397_v41  ;;  %v335_v37 = vadd.f32 %v15363_v26, %v15440_v60 }
 0x135   :  { %v856_v62 = vmax.f32 %v426_v3, %v820_v31  ;;  %v15544_v4 = vmax.f32 %v855_v14, %v1249_v15  ;;  %v12807_v2 = vpop.f32.mrb[44].mxu1  ;;  %v327_v58 = vadd.f32 %v15440_v60, %v15367_v28  ;;  %v338_v32 = vadd.f32 %v15371_v30, %v15440_v60 }
 0x136   :  { %v15548_v61 = vmax.f32 %v858_v16, %v1252_v5  ;;  %v713_v35 = vadd.f32 %v12807_v2, %v15440_v60  ;;  %v704_v12 = vpop.f32.mrb[45].mxu1  ;;  %v1253_v11 = vmax.f32 %v1135_v27, 0.0  ;;  %v330_v41 = vadd.f32 %v15440_v60, %v15378_v33 }
 0x137   :  { %v15553_v9 = vmax.f32 %v856_v62, %v1250_v8  ;;  %v705_v3 = vadd.f32 %v15440_v60, %v704_v12  ;;  %v12808_v22 = vpop.f32.mrb[46].mxu1  ;;  %v1256_v26 = vmax.f32 %v1146_v10, 0.0  ;;  %v1254_v28 = vmax.f32 %v1138_v1, 0.0 }
 0x138   :  { %v825_v0 = vmax.f32 %v713_v35, 0.0  ;;  %v716_v39 = vadd.f32 %v12808_v22, %v15440_v60  ;;  %v707_v15 = vpop.f32.mrb[47].mxu1  ;;  %v1159_v8 = vadd.f32 %v15402_v43, %v15440_v60  ;;  %v435_v20 = vmax.f32 %v335_v37, 0.0 }
 0x139   :  { %v823_v18 = vmax.f32 %v705_v3, 0.0  ;;  %v708_v34 = vadd.f32 %v15440_v60, %v707_v15  ;;  %v433_v16 = vmax.f32 %v327_v58, 0.0  ;;  %v436_v62 = vmax.f32 %v338_v32, 0.0 }
 0x13a   :  { %v861_v5 = vmax.f32 %v431_v25, %v825_v0  ;;  %v826_v13 = vmax.f32 %v716_v39, 0.0  ;;  %v1151_v33 = vadd.f32 %v15440_v60, %v15406_v45  ;;  %v434_v25 = vmax.f32 %v330_v41, 0.0 }
 0x13b   :  { %v859_v14 = vmax.f32 %v429_v21, %v823_v18  ;;  %v824_v31 = vmax.f32 %v708_v34, 0.0  ;;  %v1162_v43 = vadd.f32 %v15410_v47, %v15440_v60  ;;  %v1259_v22 = vmax.f32 %v1159_v8, 0.0 }
 0x13c   :  { %v862_v23 = vmax.f32 %v432_v6, %v826_v13  ;;  %v15570_v30 = vmax.f32 %v861_v5, %v1255_v29  ;;  %v1154_v29 = vadd.f32 %v15440_v60, %v15414_v49  ;;  %v1257_v39 = vmax.f32 %v1151_v33, 0.0 }
 0x13d   :  { %v860_v2 = vmax.f32 %v430_v19, %v824_v31  ;;  %v15572_v27 = vmax.f32 %v859_v14, %v1253_v11  ;;  %v12811_v35 = vpop.f32.mrb[48].mxu1  ;;  %v1260_v47 = vmax.f32 %v1162_v43, 0.0  ;;  %v351_v18 = vadd.f32 %v15387_v36, %v15440_v60 }
 0x13e   :  { %v15576_v21 = vmax.f32 %v862_v23, %v1256_v26  ;;  %v729_v12 = vadd.f32 %v12811_v35, %v15440_v60  ;;  %v720_v10 = vpop.f32.mrb[49].mxu1  ;;  %v1258_v41 = vmax.f32 %v1154_v29, 0.0  ;;  %v343_v49 = vadd.f32 %v15440_v60, %v15391_v38 }
 0x13f   :  { %v15581_v6 = vmax.f32 %v860_v2, %v1254_v28  ;;  %v721_v3 = vadd.f32 %v15440_v60, %v720_v10  ;;  %v12812_v19 = vpop.f32.mrb[50].mxu1  ;;  %v354_v28 = vadd.f32 %v15395_v40, %v15440_v60  ;;  %v346_v23 = vadd.f32 %v15440_v60, %v15399_v42 }
 0x140   :  { %v829_v1 = vmax.f32 %v729_v12, 0.0  ;;  %v732_v45 = vadd.f32 %v12812_v19, %v15440_v60  ;;  %v723_v37 = vpop.f32.mrb[51].mxu1  ;;  %v437_v12 = vmax.f32 %v343_v49, 0.0  ;;  %v367_v42 = vadd.f32 %v15404_v44, %v15440_v60 }
 0x141   :  { %v827_v58 = vmax.f32 %v721_v3, 0.0  ;;  %v724_v0 = vadd.f32 %v15440_v60, %v723_v37  ;;  %v440_v43 = vmax.f32 %v354_v28, 0.0  ;;  %v359_v37 = vadd.f32 %v15440_v60, %v15408_v46 }
 0x142   :  { %v865_v15 = vmax.f32 %v435_v20, %v829_v1  ;;  %v830_v32 = vmax.f32 %v732_v45, 0.0  ;;  %v362_v44 = vadd.f32 %v15440_v60, %v15416_v50 }
 0x143   :  { %v863_v34 = vmax.f32 %v433_v16, %v827_v58  ;;  %v828_v11 = vmax.f32 %v724_v0, 0.0  ;;  %v439_v16 = vmax.f32 %v351_v18, 0.0 }
 0x144   :  { %v866_v5 = vmax.f32 %v436_v62, %v830_v32  ;;  %v15590_v13 = vmax.f32 %v865_v15, %v1259_v22  ;;  %v438_v22 = vmax.f32 %v346_v23, 0.0 }
 0x145   :  { %v864_v26 = vmax.f32 %v434_v25, %v828_v11  ;;  %v15594_v14 = vmax.f32 %v863_v34, %v1257_v39  ;;  %v12815_v31 = vpop.f32.mrb[52].mxu1  ;;  %v370_v39 = vadd.f32 %v15412_v48, %v15440_v60 }
 0x146   :  { %v15598_v8 = vmax.f32 %v866_v5, %v1260_v47  ;;  %v745_v36 = vadd.f32 %v12815_v31, %v15440_v60  ;;  %v736_v20 = vpop.f32.mrb[53].mxu1  ;;  %v443_v47 = vmax.f32 %v367_v42, 0.0  ;;  %v441_v5 = vmax.f32 %v359_v37, 0.0 }
 0x147   :  { %v15603_v62 = vmax.f32 %v864_v26, %v1258_v41  ;;  %v737_v38 = vadd.f32 %v15440_v60, %v736_v20  ;;  %v12816_v2 = vpop.f32.mrb[54].mxu1  ;;  %v444_v31 = vmax.f32 %v370_v39, 0.0  ;;  %v383_v20 = vadd.f32 %v15418_v51, %v15440_v60 }
 0x148   :  { %v833_v35 = vmax.f32 %v745_v36, 0.0  ;;  %v748_v33 = vadd.f32 %v12816_v2, %v15440_v60  ;;  %v739_v25 = vpop.f32.mrb[55].mxu1  ;;  %v442_v36 = vmax.f32 %v362_v44, 0.0 }
 0x149   :  { %v831_v40 = vmax.f32 %v737_v38, 0.0  ;;  %v740_v10 = vadd.f32 %v15440_v60, %v739_v25  ;;  %v375_v38 = vadd.f32 %v15440_v60, %v15420_v52  ;;  %v386_v25 = vadd.f32 %v15422_v53, %v15440_v60 }
 0x14a   :  { %v15608_v3 = vmax.f32 %v439_v16, %v833_v35  ;;  %v834_v19 = vmax.f32 %v748_v33, 0.0  ;;  %v15643_v33 = vld [vmem:[%s18343_s3] sm:$0xff]  }
 0x14b   :  { %v15612_v29 = vmax.f32 %v437_v12, %v831_v40  ;;  %v832_v1 = vmax.f32 %v740_v10, 0.0  ;;  %v447_v40 = vmax.f32 %v383_v20, 0.0  ;;  %v378_v10 = vadd.f32 %v15440_v60, %v15424_v54  ;;  %12945 = vmatprep.subr.bf16.mxu0 %v15643_v33 }
 0x14c   :  { %v15614_v45 = vmax.f32 %v440_v43, %v834_v19 }
 0x14d   :  { %v15618_v58 = vmax.f32 %v438_v22, %v832_v1  ;;  %v12819_v0 = vpop.f32.mrb[56].mxu1  ;;  %v445_v1 = vmax.f32 %v375_v38, 0.0 }
 0x14e   :  { %v761_v15 = vadd.f32 %v12819_v0, %v15440_v60  ;;  %v752_v32 = vpop.f32.mrb[57].mxu1  ;;  %v448_v0 = vmax.f32 %v386_v25, 0.0 }
 0x14f   :  { %v753_v18 = vadd.f32 %v15440_v60, %v752_v32  ;;  %v12820_v34 = vpop.f32.mrb[58].mxu1 }
 0x150   :  { %v837_v11 = vmax.f32 %v761_v15, 0.0  ;;  %v764_v41 = vadd.f32 %v12820_v34, %v15440_v60  ;;  %v755_v46 = vpop.f32.mrb[59].mxu1 }
 0x151   :  { %v835_v49 = vmax.f32 %v753_v18, 0.0  ;;  %v756_v26 = vadd.f32 %v15440_v60, %v755_v46 }
 0x152   :  { %v15628_v48 = vmax.f32 %v443_v47, %v837_v11  ;;  %v838_v28 = vmax.f32 %v764_v41, 0.0 }
 0x153   :  { %v15632_v50 = vmax.f32 %v441_v5, %v835_v49  ;;  %v836_v16 = vmax.f32 %v756_v26, 0.0 }
 0x154   :  { %v15634_v23 = vmax.f32 %v444_v31, %v838_v28 }
 0x155   :  { %v15638_v2 = vmax.f32 %v442_v36, %v836_v16  ;;  %v12823_v35 = vpop.f32.mrb[60].mxu1 }
 0x156   :  { %v777_v51 = vadd.f32 %v12823_v35, %v15440_v60  ;;  %v768_v12 = vpop.f32.mrb[61].mxu1 }
 0x157   :  { %v769_v52 = vadd.f32 %v15440_v60, %v768_v12  ;;  %v12824_v43 = vpop.f32.mrb[62].mxu1 }
 0x158   :  { %v841_v19 = vmax.f32 %v777_v51, 0.0  ;;  %v780_v22 = vadd.f32 %v12824_v43, %v15440_v60  ;;  %v771_v42 = vpop.f32.mrb[63].mxu1 }
 0x159   :  { %v839_v37 = vmax.f32 %v769_v52, 0.0  ;;  %v772_v53 = vadd.f32 %v15440_v60, %v771_v42 }
 0x15a   :  { %v15654_v39 = vmax.f32 %v447_v40, %v841_v19  ;;  %v842_v15 = vmax.f32 %v780_v22, 0.0 }
 0x15b   :  { %16 = vsyncpa [#allocation4], 0  ;;  %v446_v32 = vmax.f32 %v378_v10, 0.0  ;;  %v15656_v54 = vmax.f32 %v445_v1, %v839_v37  ;;  %v840_v47 = vmax.f32 %v772_v53, 0.0  ;;  %v399_v44 = vadd.f32 %v15426_v55, %v15440_v60  ;;  %v18428_v26 = vld [vmem:[#allocation6_spill] sm:$0xff]  ;;  %v18429_v43 = vld [vmem:[#allocation7_spill] sm:$0xff] }
 0x15c   :  { %v15660_v18 = vmax.f32 %v448_v0, %v842_v15  ;;  %v391_v34 = vadd.f32 %v15440_v60, %v15428_v56  ;;  %v402_v46 = vadd.f32 %v15430_v57, %v15440_v60  ;;  %v394_v31 = vadd.f32 %v15440_v60, %v18428_v26  ;;  %v18430_v42 = vld [vmem:[#allocation8_spill] sm:$0xff]  ;;  %v18431_v0 = vld [vmem:[#allocation9_spill] sm:$0xff] }
 0x15d   :  { %v15664_v11 = vmax.f32 %v446_v32, %v840_v47  ;;  %v12827_v41 = vpop.f32.mrb[64].mxu1  ;;  %v451_v36 = vmax.f32 %v399_v44, 0.0  ;;  %v415_v19 = vadd.f32 %v18429_v43, %v15440_v60  ;;  %v407_v1 = vadd.f32 %v15440_v60, %v18430_v42  ;;  %v18432_v44 = vld [vmem:[#allocation10_spill] sm:$0xff] }
 0x15e   :  { %v793_v5 = vadd.f32 %v12827_v41, %v15440_v60  ;;  %v784_v49 = vpop.f32.mrb[65].mxu1  ;;  %v449_v38 = vmax.f32 %v391_v34, 0.0  ;;  %v452_v51 = vmax.f32 %v402_v46, 0.0  ;;  %v450_v40 = vmax.f32 %v394_v31, 0.0 }
 0x15f   :  { %v785_v28 = vadd.f32 %v15440_v60, %v784_v49  ;;  %v12828_v55 = vpop.f32.mrb[66].mxu1  ;;  %v418_v15 = vadd.f32 %v18431_v0, %v15440_v60  ;;  %v410_v34 = vadd.f32 %v15440_v60, %v18432_v44  ;;  %vm3567_vm1 = vsmask.f32 3328 }
 0x160   :  { %v845_v20 = vmax.f32 %v793_v5, 0.0  ;;  %v796_v16 = vadd.f32 %v12828_v55, %v15440_v60  ;;  %v787_v56 = vpop.f32.mrb[67].mxu1  ;;  %v455_v5 = vmax.f32 %v415_v19, 0.0  ;;  %vm3568_vm2 = vsmask.f32 7440 }
 0x161   :  { %v843_v35 = vmax.f32 %v785_v28, 0.0  ;;  %v788_v25 = vadd.f32 %v15440_v60, %v787_v56  ;;  %v453_v28 = vmax.f32 %v407_v1, 0.0  ;;  %vm16053_vm3 = vmor %vm3567_vm1, %vm3568_vm2  ;;  %vm4920_vm4 = vcmask 1042432  }
 0x162   :  { %v15674_v57 = vmax.f32 %v451_v36, %v845_v20  ;;  %v846_v12 = vmax.f32 %v796_v16, 0.0  ;;  %v456_v20 = vmax.f32 %v418_v15, 0.0  ;;  %vm4921_vm5 = vcmask 1046532  }
 0x163   :  { %v15676_v10 = vmax.f32 %v449_v38, %v843_v35  ;;  %v844_v52 = vmax.f32 %v788_v25, 0.0  ;;  %v454_v38 = vmax.f32 %v410_v34, 0.0  ;;  %vm16189_vm6 = vmor %vm4920_vm4, %vm4921_vm5  ;;  %vm6017_vm7 = vsmask.f32 2304 }
 0x164   :  { %v15680_v22 = vmax.f32 %v452_v51, %v846_v12  ;;  %vm6018_vm8 = vsmask.f32 6416  ;;  %vm7466_vm10 = vcmask 1041408   ;;  %vm7467_vm11 = vcmask 1045508  }
 0x165   :  { %v15684_v37 = vmax.f32 %v450_v40, %v844_v52  ;;  %v12831_v53 = vpop.f32.mrb[68].mxu1  ;;  %vm16408_vm9 = vmor %vm6017_vm7, %vm6018_vm8  ;;  %vm14956_vm13 = vmmov 0   ;;  %vm8629_vm14 = vcmask 1041409  }
 0x166   :  { %v809_v32 = vadd.f32 %v12831_v53, %v15440_v60  ;;  %v800_v47 = vpop.f32.mrb[69].mxu1  ;;  %vm16789_vm12 = vmor %vm7466_vm10, %vm7467_vm11 }
 0x167   :  { %v801_v41 = vadd.f32 %v15440_v60, %v800_v47  ;;  %v12832_v46 = vpop.f32.mrb[70].mxu1 }
 0x168   :  { %v849_v49 = vmax.f32 %v809_v32, 0.0  ;;  %v812_v26 = vadd.f32 %v12832_v46, %v15440_v60  ;;  %v803_v31 = vpop.f32.mrb[71].mxu1 }
 0x169   :  { %v847_v55 = vmax.f32 %v801_v41, 0.0  ;;  %v804_v36 = vadd.f32 %v15440_v60, %v803_v31 }
 0x16a   :  { %v15694_v16 = vmax.f32 %v455_v5, %v849_v49  ;;  %v850_v56 = vmax.f32 %v812_v26, 0.0 }
 0x16b   :  { %v15696_v35 = vmax.f32 %v453_v28, %v847_v55  ;;  %v848_v25 = vmax.f32 %v804_v36, 0.0 }
 0x16c   :  { %v15698_v51 = vmax.f32 %v456_v20, %v850_v56 }
 0x16d   :  { %v15700_v12 = vmax.f32 %v454_v38, %v848_v25  ;;  %v12855_v40 = vpop.f32.mrb[72].mxu1 }
 0x16e   :  { %v1175_v52 = vadd.f32 %v12855_v40, %v15440_v60  ;;  %v1166_v43 = vpop.f32.mrb[73].mxu1 }
 0x16f   :  { %v1167_v19 = vadd.f32 %v15440_v60, %v1166_v43  ;;  %v12856_v42 = vpop.f32.mrb[74].mxu1 }
 0x170   :  { %v1263_v1 = vmax.f32 %v1175_v52, 0.0  ;;  %v1178_v53 = vadd.f32 %v12856_v42, %v15440_v60  ;;  %v1169_v0 = vpop.f32.mrb[75].mxu1 }
 0x171   :  { %v1261_v15 = vmax.f32 %v1167_v19, 0.0  ;;  %v1170_v32 = vadd.f32 %v15440_v60, %v1169_v0 }
 0x172   :  { %v15707_v47 = vmax.f32 %v15608_v3, %v1263_v1  ;;  %v1264_v44 = vmax.f32 %v1178_v53, 0.0 }
 0x173   :  { %v15710_v34 = vmax.f32 %v15612_v29, %v1261_v15  ;;  %v1262_v41 = vmax.f32 %v1170_v32, 0.0 }
 0x174   :  { %v15713_v46 = vmax.f32 %v15614_v45, %v1264_v44 }
 0x175   :  { %v15716_v5 = vmax.f32 %v15618_v58, %v1262_v41  ;;  %v12859_v49 = vpop.f32.mrb[76].mxu1 }
 0x176   :  { %v1191_v26 = vadd.f32 %v12859_v49, %v15440_v60  ;;  %v1182_v31 = vpop.f32.mrb[77].mxu1 }
 0x177   :  { %v1183_v28 = vadd.f32 %v15440_v60, %v1182_v31  ;;  %v12860_v55 = vpop.f32.mrb[78].mxu1 }
 0x178   :  { %v1267_v3 = vmax.f32 %v1191_v26, 0.0  ;;  %v1194_v36 = vadd.f32 %v12860_v55, %v15440_v60  ;;  %v1185_v20 = vpop.f32.mrb[79].mxu1 }
 0x179   :  { %v1265_v29 = vmax.f32 %v1183_v28, 0.0  ;;  %v1186_v56 = vadd.f32 %v15440_v60, %v1185_v20 }
 0x17a   :  { %v15723_v45 = vmax.f32 %v15628_v48, %v1267_v3  ;;  %v1268_v38 = vmax.f32 %v1194_v36, 0.0 }
 0x17b   :  { %v15726_v58 = vmax.f32 %v15632_v50, %v1265_v29  ;;  %v1266_v25 = vmax.f32 %v1186_v56, 0.0 }
 0x17c   :  { %v15729_v40 = vmax.f32 %v15634_v23, %v1268_v38 }
 0x17d   :  { %v15732_v52 = vmax.f32 %v15638_v2, %v1266_v25  ;;  %v12863_v43 = vpop.f32.mrb[80].mxu1 }
 0x17e   :  { %v1207_v19 = vadd.f32 %v12863_v43, %v15440_v60  ;;  %v1198_v42 = vpop.f32.mrb[81].mxu1 }
 0x17f   :  { %v1199_v1 = vadd.f32 %v15440_v60, %v1198_v42  ;;  %v12864_v53 = vpop.f32.mrb[82].mxu1 }
 0x180   :  { %v1271_v48 = vmax.f32 %v1207_v19, 0.0  ;;  %v1210_v0 = vadd.f32 %v12864_v53, %v15440_v60  ;;  %v1201_v15 = vpop.f32.mrb[83].mxu1 }
 0x181   :  { %v1269_v50 = vmax.f32 %v1199_v1, 0.0  ;;  %v1202_v32 = vadd.f32 %v15440_v60, %v1201_v15 }
 0x182   :  { %v15739_v23 = vmax.f32 %v15654_v39, %v1271_v48  ;;  %v1272_v44 = vmax.f32 %v1210_v0, 0.0 }
 0x183   :  { %v15742_v2 = vmax.f32 %v15656_v54, %v1269_v50  ;;  %v1270_v41 = vmax.f32 %v1202_v32, 0.0 }
 0x184   :  { %v15745_v49 = vmax.f32 %v15660_v18, %v1272_v44 }
 0x185   :  { %v15748_v26 = vmax.f32 %v15664_v11, %v1270_v41  ;;  %v12867_v31 = vpop.f32.mrb[84].mxu1 }
 0x186   :  { %v1223_v28 = vadd.f32 %v12867_v31, %v15440_v60  ;;  %v1214_v55 = vpop.f32.mrb[85].mxu1 }
 0x187   :  { %v1215_v3 = vadd.f32 %v15440_v60, %v1214_v55  ;;  %v12868_v36 = vpop.f32.mrb[86].mxu1 }
 0x188   :  { %v1275_v39 = vmax.f32 %v1223_v28, 0.0  ;;  %v1226_v20 = vadd.f32 %v12868_v36, %v15440_v60  ;;  %v1217_v29 = vpop.f32.mrb[87].mxu1  ;;  %v14954_v28 = vmov 1983009808  }
 0x189   :  { %v1273_v54 = vmax.f32 %v1215_v3, 0.0  ;;  %v1218_v56 = vadd.f32 %v15440_v60, %v1217_v29  ;;  %v1785_v55 = vunpack.c.l.s4 %v14954_v28  ;;  %v1787_v3 = vlaneseq }
 0x18a   :  { %v15755_v18 = vmax.f32 %v15674_v57, %v1275_v39  ;;  %v1276_v38 = vmax.f32 %v1226_v20, 0.0 }
 0x18b   :  { %v15758_v11 = vmax.f32 %v15676_v10, %v1273_v54  ;;  %v1274_v25 = vmax.f32 %v1218_v56, 0.0  ;;  %v1786_v56 = vunpack.c.0.s8 %v1785_v55 }
 0x18c   :  { %v15761_v43 = vmax.f32 %v15680_v22, %v1276_v38  ;;  %v1788_v38 = vshrl.u32 %v1787_v3, 7 }
 0x18d   :  { %v15764_v19 = vmax.f32 %v15684_v37, %v1274_v25  ;;  %v12871_v42 = vpop.f32.mrb[88].mxu1 }
 0x18e   :  { %v1239_v1 = vadd.f32 %v12871_v42, %v15440_v60  ;;  %v1230_v53 = vpop.f32.mrb[89].mxu1 }
 0x18f   :  { %v1231_v48 = vadd.f32 %v15440_v60, %v1230_v53  ;;  %v12872_v0 = vpop.f32.mrb[90].mxu1 }
 0x190   :  { %v1279_v57 = vmax.f32 %v1239_v1, 0.0  ;;  %v1242_v15 = vadd.f32 %v12872_v0, %v15440_v60  ;;  %v1233_v50 = vpop.f32.mrb[91].mxu1 }
 0x191   :  { %v1277_v10 = vmax.f32 %v1231_v48, 0.0  ;;  %v1234_v32 = vadd.f32 %v15440_v60, %v1233_v50  ;;  %v15785_v60 = vld [vmem:[%s18342_s2] ss:$0 sm:$0xff] }
 0x192   :  { %v15771_v22 = vmax.f32 %v15694_v16, %v1279_v57  ;;  %v1280_v44 = vmax.f32 %v1242_v15, 0.0  ;;  %v15794_v15 = vsub.s32 %v1786_v56, %v1788_v38 }
 0x193   :  { %v15774_v37 = vmax.f32 %v15696_v35, %v1277_v10  ;;  %v1278_v41 = vmax.f32 %v1234_v32, 0.0 }
 0x194   :  { %v15777_v31 = vmax.f32 %v15698_v51, %v1280_v44 }
 0x195   :  { %v15780_v36 = vmax.f32 %v15700_v12, %v1278_v41  ;;  %v12879_v39 = vpop.f32.mrb[92].mxu1 }
 0x196   :  { %v1541_v16 = vadd.f32 %v15785_v60, %v12879_v39  ;;  %v1532_v35 = vpop.f32.mrb[93].mxu1 }
 0x197   :  { %v1533_v20 = vadd.f32 %v15785_v60, %v1532_v35  ;;  %v12880_v29 = vpop.f32.mrb[94].mxu1 }
 0x198   :  { %v1677_v51 = vmax.f32 %v1541_v16, 0.0  ;;  %v1544_v54 = vadd.f32 %v15785_v60, %v12880_v29  ;;  %v1535_v25 = vpop.f32.mrb[95].mxu1 }
 0x199   :  { %v1675_v12 = vmax.f32 %v1533_v20, 0.0  ;;  %v1536_v42 = vadd.f32 %v15785_v60, %v1535_v25 }
 0x19a   :  { %v1713_v1 = vmax.f32 %v15503_v63, %v1677_v51  ;;  %v1678_v53 = vmax.f32 %v1544_v54, 0.0 }
 0x19b   :  { %v1711_v48 = vmax.f32 %v15507_v17, %v1675_v12  ;;  %v1676_v0 = vmax.f32 %v1536_v42, 0.0 }
 0x19c   :  { %v1714_v57 = vmax.f32 %v15511_v7, %v1678_v53 }
 0x19d   :  { %v1712_v50 = vmax.f32 %v15517_v59, %v1676_v0  ;;  %v12883_v10 = vpop.f32.mrb[96].mxu1 }
 0x19e   :  { %v1748_v32 = vpack.c.bf16 %v1714_v57, %v1713_v1  ;;  %v10916_v44 = vpack.c.bf16 %v1714_v57, %v1714_v57  ;;  %v1557_v41 = vadd.f32 %v15785_v60, %v12883_v10  ;;  %v1548_v28 = vpop.f32.mrb[97].mxu1 }
 0x19f   :  { %v1747_v55 = vpack.c.bf16 %v1712_v50, %v1711_v48  ;;  %v10915_v3 = vpack.c.bf16 %v1712_v50, %v1712_v50  ;;  %v1549_v63 = vadd.f32 %v15785_v60, %v1548_v28  ;;  %v12884_v39 = vpop.f32.mrb[98].mxu1 }
 0x1a0   :  { %v1807_v17 = vrot.slane %v1748_v32, %v15794_v15  ;;  %v1814_v16 = vrot.slane %v10916_v44, %v15794_v15  ;;  %v1681_v7 = vmax.f32 %v1557_v41, 0.0  ;;  %v1560_v35 = vadd.f32 %v15785_v60, %v12884_v39  ;;  %v1551_v20 = vpop.f32.mrb[99].mxu1 }
 0x1a1   :  { %v1790_v59 = vrot.slane %v1747_v55, %v15794_v15  ;;  %v1797_v29 = vrot.slane %v10915_v3, %v15794_v15  ;;  %v1679_v51 = vmax.f32 %v1549_v63, 0.0  ;;  %v1552_v54 = vadd.f32 %v15785_v60, %v1551_v20 }
 0x1a2   :  { %v1815_v56 = vcombine.high %v1807_v17, %v1807_v17  ;;  %v1816_v38 = vcombine.high %v1814_v16, %v1814_v16  ;;  %v1717_v25 = vmax.f32 %v15539_v24, %v1681_v7  ;;  %v1682_v12 = vmax.f32 %v1560_v35, 0.0 }
 0x1a3   :  { %v1798_v42 = vcombine.high %v1790_v59, %v1790_v59  ;;  %v1799_v1 = vcombine.high %v1797_v29, %v1797_v29  ;;  %10934 = vst.sshfl [vmem:[#allocation2 + $0x4] sm:$0x3 pattern:$0x76325410] %v1797_v29  ;;  %v1715_v53 = vmax.f32 %v15544_v4, %v1679_v51  ;;  %v1680_v48 = vmax.f32 %v1552_v54, 0.0 }
 0x1a4   :  { %v2119_v0 = vcombine.low %v1814_v16, %v1816_v38  ;;  %10936 = vst.sshfl [vmem:[#allocation2 + $0xc] sm:$0x3 pattern:$0x76325410] %v1815_v56  ;;  %v1718_v57 = vmax.f32 %v15548_v61, %v1682_v12 }
 0x1a5   :  { %v2089_v50 = vcombine.low %v1790_v59, %v1798_v42  ;;  %v2104_v10 = vcombine.low %v1799_v1, %v1807_v17  ;;  %v1716_v32 = vmax.f32 %v15553_v9, %v1680_v48  ;;  %v12887_v44 = vpop.f32.mrb[100].mxu1 }
 0x1a6   :  { %10937 = vst.sshfl [vmem:[#allocation2 + $0x10] sm:$0x33 pattern:$0x76325410] %v2119_v0  ;;  %v1750_v41 = vpack.c.bf16 %v1718_v57, %v1717_v25  ;;  %v10918_v28 = vpack.c.bf16 %v1718_v57, %v1718_v57  ;;  %v1573_v24 = vadd.f32 %v15785_v60, %v12887_v44  ;;  %v1564_v55 = vpop.f32.mrb[101].mxu1 }
 0x1a7   :  { %10933 = vst.sshfl [vmem:[#allocation2] sm:$0x33 pattern:$0x76325410] %v2089_v50  ;;  %v1749_v3 = vpack.c.bf16 %v1716_v32, %v1715_v53  ;;  %v10917_v4 = vpack.c.bf16 %v1716_v32, %v1716_v32  ;;  %v1565_v63 = vadd.f32 %v15785_v60, %v1564_v55  ;;  %v12888_v39 = vpop.f32.mrb[102].mxu1 }
 0x1a8   :  { %10935 = vst.sshfl [vmem:[#allocation2 + $0x8] sm:$0x33 pattern:$0x76325410] %v2104_v10  ;;  %v1841_v61 = vrot.slane %v1750_v41, %v15794_v15  ;;  %v1848_v17 = vrot.slane %v10918_v28, %v15794_v15  ;;  %v1685_v16 = vmax.f32 %v1573_v24, 0.0  ;;  %v1576_v9 = vadd.f32 %v15785_v60, %v12888_v39  ;;  %v1567_v7 = vpop.f32.mrb[103].mxu1 }
 0x1a9   :  { %v1824_v35 = vrot.slane %v1749_v3, %v15794_v15  ;;  %v1831_v20 = vrot.slane %v10917_v4, %v15794_v15  ;;  %v1683_v59 = vmax.f32 %v1565_v63, 0.0  ;;  %v1568_v29 = vadd.f32 %v15785_v60, %v1567_v7 }
 0x1aa   :  { %v1849_v51 = vcombine.high %v1841_v61, %v1841_v61  ;;  %10942 = vst.sshfl [vmem:[#allocation2 + $0x24] sm:$0x3 pattern:$0x76325410] %v1848_v17  ;;  %v1721_v54 = vmax.f32 %v15570_v30, %v1685_v16  ;;  %v1686_v56 = vmax.f32 %v1576_v9, 0.0  ;;  %v1850_v10 = vcombine.high %v1848_v17, %v1848_v17 }
 0x1ab   :  { %v1832_v38 = vcombine.high %v1824_v35, %v1824_v35  ;;  %v1833_v25 = vcombine.high %v1831_v20, %v1831_v20  ;;  %10938 = vst.sshfl [vmem:[#allocation2 + $0x14] sm:$0x3 pattern:$0x76325410] %v1824_v35  ;;  %v1719_v12 = vmax.f32 %v15572_v27, %v1683_v59  ;;  %v1684_v42 = vmax.f32 %v1568_v29, 0.0 }
 0x1ac   :  { %v2149_v1 = vcombine.low %v1841_v61, %v1849_v51  ;;  %v1722_v53 = vmax.f32 %v15576_v21, %v1686_v56 }
 0x1ad   :  { %v2134_v48 = vcombine.low %v1832_v38, %v1831_v20  ;;  %10940 = vst.sshfl [vmem:[#allocation2 + $0x1c] sm:$0x3 pattern:$0x76325410] %v1833_v25  ;;  %v1720_v0 = vmax.f32 %v15581_v6, %v1684_v42  ;;  %v12891_v57 = vpop.f32.mrb[104].mxu1 }
 0x1ae   :  { %v15821_v50 = vld [vmem:[#allocation2 + $0x10] sm:$0xf]  ;;  %10941 = vst.sshfl [vmem:[#allocation2 + $0x20] sm:$0x33 pattern:$0x76325410] %v2149_v1  ;;  %v1752_v30 = vpack.c.bf16 %v1722_v53, %v1721_v54  ;;  %v10920_v32 = vpack.c.bf16 %v1722_v53, %v1722_v53  ;;  %v1589_v44 = vadd.f32 %v15785_v60, %v12891_v57 }
 0x1af   :  { %v1580_v41 = vpop.f32.mrb[105].mxu1  ;;  %v15824_v28 = vld [vmem:[#allocation2 + $0x8] sm:$0xf]  ;;  %v1751_v27 = vpack.c.bf16 %v1720_v0, %v1719_v12  ;;  %v10919_v24 = vpack.c.bf16 %v1720_v0, %v1720_v0 }
 0x1b0   :  { %10939 = vst.sshfl [vmem:[#allocation2 + $0x18] sm:$0x33 pattern:$0x76325410] %v2134_v48  ;;  %v1581_v21 = vadd.f32 %v15785_v60, %v1580_v41  ;;  %v12892_v55 = vpop.f32.mrb[106].mxu1  ;;  %v10997_v6 = vcombine.low %v15824_v28, %v15821_v50  ;;  %v1875_v3 = vrot.slane %v1752_v30, %v15794_v15  ;;  %v1882_v4 = vrot.slane %v10920_v32, %v15794_v15  ;;  %v14553_v41 = vld [vmem:[%s18343_s3 + $0x8] sm:$0xff]  }
 0x1b1   :  { %v1689_v63 = vmax.f32 %v1589_v44, 0.0  ;;  %v1592_v39 = vadd.f32 %v15785_v60, %v12892_v55  ;;  %v1583_v61 = vpop.f32.mrb[107].mxu1  ;;  %v1858_v17 = vrot.slane %v1751_v27, %v15794_v15  ;;  %v1865_v16 = vrot.slane %v10919_v24, %v15794_v15 }
 0x1b2   :  { %v1687_v9 = vmax.f32 %v1581_v21, 0.0  ;;  %v1584_v7 = vadd.f32 %v15785_v60, %v1583_v61  ;;  %12929 = vmatprep.mubr.bf16.mxu0 %v10997_v6  ;;  %v1883_v35 = vcombine.high %v1875_v3, %v1875_v3  ;;  %v1884_v20 = vcombine.high %v1882_v4, %v1882_v4  ;;  %10946 = vst.sshfl [vmem:[#allocation2 + $0x34] sm:$0x3 pattern:$0x76325410] %v1875_v3 }
 0x1b3   :  { %v1725_v59 = vmax.f32 %v15590_v13, %v1689_v63  ;;  %v1690_v29 = vmax.f32 %v1592_v39, 0.0  ;;  %v1866_v51 = vcombine.high %v1858_v17, %v1858_v17  ;;  %v1867_v54 = vcombine.high %v1865_v16, %v1865_v16 }
 0x1b4   :  { %v2164_v56 = vcombine.low %v1850_v10, %v1858_v17  ;;  %v1723_v38 = vmax.f32 %v15594_v14, %v1687_v9  ;;  %v2194_v25 = vcombine.low %v1883_v35, %v1882_v4  ;;  %10948 = vst.sshfl [vmem:[#allocation2 + $0x3c] sm:$0x3 pattern:$0x76325410] %v1884_v20  ;;  %v1688_v42 = vmax.f32 %v1584_v7, 0.0 }
 0x1b5   :  { %v1726_v12 = vmax.f32 %v15598_v8, %v1690_v29  ;;  %v2179_v1 = vcombine.low %v1865_v16, %v1867_v54  ;;  %10944 = vst.sshfl [vmem:[#allocation2 + $0x2c] sm:$0x3 pattern:$0x76325410] %v1866_v51  ;;  %v15838_v53 = vld [vmem:[#allocation2 + $0x20] sm:$0xf] }
 0x1b6   :  { %10943 = vst.sshfl [vmem:[#allocation2 + $0x28] sm:$0x33 pattern:$0x76325410] %v2164_v56  ;;  %v12895_v48 = vpop.f32.mrb[108].mxu1  ;;  %v1724_v57 = vmax.f32 %v15603_v62, %v1688_v42 }
 0x1b7   :  { %10947 = vst.sshfl [vmem:[#allocation2 + $0x38] sm:$0x33 pattern:$0x76325410] %v2194_v25  ;;  %v1754_v0 = vpack.c.bf16 %v1726_v12, %v1725_v59  ;;  %v10922_v13 = vpack.c.bf16 %v1726_v12, %v1726_v12  ;;  %v15841_v30 = vld [vmem:[#allocation2 + $0x18] sm:$0xf]  ;;  %v1605_v14 = vadd.f32 %v15785_v60, %v12895_v48 }
 0x1b8   :  { %v1596_v10 = vpop.f32.mrb[109].mxu1  ;;  %10945 = vst.sshfl [vmem:[#allocation2 + $0x30] sm:$0x33 pattern:$0x76325410] %v2179_v1  ;;  %v15846_v8 = vcombine.low %v15841_v30, %v15838_v53  ;;  %v1753_v24 = vpack.c.bf16 %v1724_v57, %v1723_v38  ;;  %v10921_v21 = vpack.c.bf16 %v1724_v57, %v1724_v57  ;;  %v14555_v59 = vld [vmem:[%s18343_s3 + $0x10] sm:$0xff]  }
 0x1b9   :  { %v1597_v32 = vadd.f32 %v15785_v60, %v1596_v10  ;;  %v12896_v44 = vpop.f32.mrb[110].mxu1  ;;  %v1909_v27 = vrot.slane %v1754_v0, %v15794_v15  ;;  %v1916_v62 = vrot.slane %v10922_v13, %v15794_v15  ;;  %v1693_v6 = vmax.f32 %v1605_v14, 0.0 }
 0x1ba   :  { %v1599_v55 = vpop.f32.mrb[111].mxu1  ;;  %v1608_v4 = vadd.f32 %v15785_v60, %v12896_v44  ;;  %12930 = vmatmul.mubr.bf16.vlgmr.msra.gmra.mrb[16].mxu0 %v15846_v8  ;;  %v1892_v17 = vrot.slane %v1753_v24, %v15794_v15  ;;  %v1899_v16 = vrot.slane %v10921_v21, %v15794_v15 }
 0x1bb   :  { %v1691_v3 = vmax.f32 %v1597_v32, 0.0  ;;  %v1600_v63 = vadd.f32 %v15785_v60, %v1599_v55  ;;  %v1917_v39 = vcombine.high %v1909_v27, %v1909_v27  ;;  %v1918_v61 = vcombine.high %v1916_v62, %v1916_v62  ;;  %12946 = vmatpush3.bf16.msra.mxu0 %v15643_v33 }
 0x1bc   :  { %v1729_v9 = vmax.f32 %v15707_v47, %v1693_v6  ;;  %v1694_v35 = vmax.f32 %v1608_v4, 0.0  ;;  %12947 = vmatprep.subr.bf16.mxu0 %v14553_v41  ;;  %v1900_v51 = vcombine.high %v1892_v17, %v1892_v17  ;;  %v1901_v54 = vcombine.high %v1899_v16, %v1899_v16  ;;  %10950 = vst.sshfl [vmem:[#allocation2 + $0x44] sm:$0x3 pattern:$0x76325410] %v1899_v16 }
 0x1bd   :  { %v1727_v7 = vmax.f32 %v15710_v34, %v1691_v3  ;;  %v1692_v20 = vmax.f32 %v1600_v63, 0.0  ;;  %v2239_v29 = vcombine.low %v1916_v62, %v1918_v61  ;;  %10952 = vst.sshfl [vmem:[#allocation2 + $0x4c] sm:$0x3 pattern:$0x76325410] %v1917_v39  ;;  %v12899_v38 = vpop.f32.mrb[112].mxu1 }
 0x1be   :  { %v1730_v56 = vmax.f32 %v15713_v46, %v1694_v35  ;;  %v2209_v47 = vcombine.low %v1892_v17, %v1900_v51  ;;  %v2224_v34 = vcombine.low %v1901_v54, %v1909_v27  ;;  %v1621_v25 = vadd.f32 %v15785_v60, %v12899_v38  ;;  %v1612_v12 = vpop.f32.mrb[113].mxu1  ;;  %v15870_v14 = vld [vmem:[#allocation2 + $0x28] sm:$0xf]  ;;  %v14556_v46 = vld [vmem:[%s18343_s3 + $0x18] sm:$0xff]   ;;  %v14558_v17 = vld [vmem:[%s18343_s3 + $0x20] sm:$0xff]  }
 0x1bf   :  { %v1728_v33 = vmax.f32 %v15716_v5, %v1692_v20  ;;  %10953 = vst.sshfl [vmem:[#allocation2 + $0x50] sm:$0x33 pattern:$0x76325410] %v2239_v29  ;;  %v15868_v42 = vld [vmem:[#allocation2 + $0x30] sm:$0xf]  ;;  %12948 = vmatpush3.bf16.msra.mxu0 %v14553_v41  ;;  %v1613_v10 = vadd.f32 %v15785_v60, %v1612_v12 }
 0x1c0   :  { %v1756_v1 = vpack.c.bf16 %v1730_v56, %v1729_v9  ;;  %v10924_v48 = vpack.c.bf16 %v1730_v56, %v1730_v56  ;;  %v12900_v57 = vpop.f32.mrb[114].mxu1  ;;  %12949 = vmatprep.subr.bf16.mxu0 %v14555_v59  ;;  %10949 = vst.sshfl [vmem:[#allocation2 + $0x40] sm:$0x33 pattern:$0x76325410] %v2209_v47  ;;  %v1697_v5 = vmax.f32 %v1621_v25, 0.0  ;;  %v15879_v41 = vcombine.low %v15870_v14, %v15868_v42 }
 0x1c1   :  { %v1755_v0 = vpack.c.bf16 %v1728_v33, %v1727_v7  ;;  %v10923_v13 = vpack.c.bf16 %v1728_v33, %v1728_v33  ;;  %10951 = vst.sshfl [vmem:[#allocation2 + $0x48] sm:$0x33 pattern:$0x76325410] %v2224_v34  ;;  %v1624_v32 = vadd.f32 %v15785_v60, %v12900_v57  ;;  %v1615_v44 = vpop.f32.mrb[115].mxu1  ;;  %v1695_v6 = vmax.f32 %v1613_v10, 0.0 }
 0x1c2   :  { %v1943_v27 = vrot.slane %v1756_v1, %v15794_v15  ;;  %v1950_v62 = vrot.slane %v10924_v48, %v15794_v15  ;;  %v1733_v55 = vmax.f32 %v15723_v45, %v1697_v5  ;;  %v1616_v4 = vadd.f32 %v15785_v60, %v1615_v44  ;;  %12933 = vmatprep.mubr.bf16.mxu0 %v15879_v41 }
 0x1c3   :  { %v1926_v24 = vrot.slane %v1755_v0, %v15794_v15  ;;  %v1933_v21 = vrot.slane %v10923_v13, %v15794_v15  ;;  %v1698_v3 = vmax.f32 %v1624_v32, 0.0  ;;  %12950 = vmatpush3.bf16.msra.mxu0 %v14555_v59  ;;  %v1731_v16 = vmax.f32 %v15726_v58, %v1695_v6 }
 0x1c4   :  { %v1951_v63 = vcombine.high %v1943_v27, %v1943_v27  ;;  %10958 = vst.sshfl [vmem:[#allocation2 + $0x64] sm:$0x3 pattern:$0x76325410] %v1950_v62  ;;  %12951 = vmatprep.subr.bf16.mxu0 %v14556_v46  ;;  %v1696_v9 = vmax.f32 %v1616_v4, 0.0  ;;  %v1952_v33 = vcombine.high %v1950_v62, %v1950_v62 }
 0x1c5   :  { %v1934_v39 = vcombine.high %v1926_v24, %v1926_v24  ;;  %v1935_v61 = vcombine.high %v1933_v21, %v1933_v21  ;;  %10954 = vst.sshfl [vmem:[#allocation2 + $0x54] sm:$0x3 pattern:$0x76325410] %v1926_v24  ;;  %v1734_v45 = vmax.f32 %v15729_v40, %v1698_v3  ;;  %v12903_v20 = vpop.f32.mrb[116].mxu1  ;;  %v14560_v40 = vld [vmem:[%s18343_s3 + $0x28] sm:$0xff]  }
 0x1c6   :  { %v2269_v7 = vcombine.low %v1943_v27, %v1951_v63  ;;  %v1732_v51 = vmax.f32 %v15732_v52, %v1696_v9  ;;  %v1637_v54 = vadd.f32 %v15785_v60, %v12903_v20  ;;  %v1628_v56 = vpop.f32.mrb[117].mxu1  ;;  %v15909_v4 = vld [vmem:[#allocation2 + $0x38] sm:$0xf]  ;;  %v14562_v63 = vld [vmem:[%s18343_s3 + $0x30] sm:$0xff]  }
 0x1c7   :  { %v2254_v35 = vcombine.low %v1934_v39, %v1933_v21  ;;  %10956 = vst.sshfl [vmem:[#allocation2 + $0x5c] sm:$0x3 pattern:$0x76325410] %v1935_v61  ;;  %v1758_v59 = vpack.c.bf16 %v1734_v45, %v1733_v55  ;;  %v10926_v29 = vpack.c.bf16 %v1734_v45, %v1734_v45  ;;  %12952 = vmatpush3.bf16.msra.mxu0 %v14556_v46  ;;  %v12904_v38 = vpop.f32.mrb[118].mxu1 }
 0x1c8   :  { %10957 = vst.sshfl [vmem:[#allocation2 + $0x60] sm:$0x33 pattern:$0x76325410] %v2269_v7  ;;  %v1629_v58 = vadd.f32 %v15785_v60, %v1628_v56  ;;  %12953 = vmatprep.subr.bf16.mxu0 %v14558_v17  ;;  %v1757_v52 = vpack.c.bf16 %v1732_v51, %v1731_v16  ;;  %v10925_v25 = vpack.c.bf16 %v1732_v51, %v1732_v51  ;;  %v1631_v12 = vpop.f32.mrb[119].mxu1  ;;  %v1701_v1 = vmax.f32 %v1637_v54, 0.0 }
 0x1c9   :  { %10955 = vst.sshfl [vmem:[#allocation2 + $0x58] sm:$0x33 pattern:$0x76325410] %v2254_v35  ;;  %v1977_v47 = vrot.slane %v1758_v59, %v15794_v15  ;;  %v1984_v34 = vrot.slane %v10926_v29, %v15794_v15  ;;  %v1640_v0 = vadd.f32 %v15785_v60, %v12904_v38  ;;  %v1632_v13 = vadd.f32 %v15785_v60, %v1631_v12  ;;  %v15905_v32 = vld [vmem:[#allocation2 + $0x40] sm:$0xf] }
 0x1ca   :  { %v1699_v48 = vmax.f32 %v1629_v58, 0.0  ;;  %v1960_v5 = vrot.slane %v1757_v52, %v15794_v15  ;;  %v1967_v10 = vrot.slane %v10925_v25, %v15794_v15  ;;  %v1737_v44 = vmax.f32 %v15739_v23, %v1701_v1 }
 0x1cb   :  { %v1985_v57 = vcombine.high %v1977_v47, %v1977_v47  ;;  %v1986_v46 = vcombine.high %v1984_v34, %v1984_v34  ;;  %10962 = vst.sshfl [vmem:[#allocation2 + $0x74] sm:$0x3 pattern:$0x76325410] %v1977_v47  ;;  %12954 = vmatpush3.bf16.msra.mxu0 %v14558_v17  ;;  %v1702_v62 = vmax.f32 %v1640_v0, 0.0  ;;  %v1700_v24 = vmax.f32 %v1632_v13, 0.0 }
 0x1cc   :  { %v1735_v27 = vmax.f32 %v15742_v2, %v1699_v48  ;;  %12955 = vmatprep.subr.bf16.mxu0 %v14560_v40  ;;  %v1968_v55 = vcombine.high %v1960_v5, %v1960_v5  ;;  %v1969_v6 = vcombine.high %v1967_v10, %v1967_v10  ;;  %v2284_v3 = vcombine.low %v1952_v33, %v1960_v5  ;;  %v15936_v0 = vld [vmem:[%s18343_s3 + $0x280] sm:$0xff]  }
 0x1cd   :  { %v2314_v21 = vcombine.low %v1985_v57, %v1984_v34  ;;  %10964 = vst.sshfl [vmem:[#allocation2 + $0x7c] sm:$0x3 pattern:$0x76325410] %v1986_v46  ;;  %v1738_v39 = vmax.f32 %v15745_v49, %v1702_v62  ;;  %v1736_v23 = vmax.f32 %v15748_v26, %v1700_v24  ;;  %v15918_v2 = vcombine.low %v15909_v4, %v15905_v32  ;;  %v12907_v61 = vpop.f32.mrb[120].mxu1  ;;  %v14563_v26 = vld [vmem:[%s18343_s3 + $0x38] sm:$0xff]  }
 0x1ce   :  { %v2299_v17 = vcombine.low %v1967_v10, %v1969_v6  ;;  %10959 = vst.sshfl [vmem:[#allocation2 + $0x68] sm:$0x33 pattern:$0x76325410] %v2284_v3  ;;  %v1653_v16 = vadd.f32 %v15785_v60, %v12907_v61  ;;  %v1644_v45 = vpop.f32.mrb[121].mxu1 }
 0x1cf   :  { %10963 = vst.sshfl [vmem:[#allocation2 + $0x78] sm:$0x33 pattern:$0x76325410] %v2314_v21  ;;  %12956 = vmatpush3.bf16.msra.mxu0 %v14560_v40  ;;  %v1760_v9 = vpack.c.bf16 %v1738_v39, %v1737_v44  ;;  %v10928_v7 = vpack.c.bf16 %v1738_v39, %v1738_v39  ;;  %v1759_v35 = vpack.c.bf16 %v1736_v23, %v1735_v27  ;;  %v12908_v49 = vpop.f32.mrb[122].mxu1 }
 0x1d0   :  { %10960 = vst.sshfl [vmem:[#allocation2 + $0x6c] sm:$0x3 pattern:$0x76325410] %v1968_v55  ;;  %v10927_v20 = vpack.c.bf16 %v1736_v23, %v1736_v23  ;;  %12934 = vmatmul.mubr.bf16.gmra.mrb[20].mxu0 %v15918_v2  ;;  %v1705_v59 = vmax.f32 %v1653_v16, 0.0  ;;  %v1645_v29 = vadd.f32 %v15785_v60, %v1644_v45  ;;  %v1656_v51 = vadd.f32 %v15785_v60, %v12908_v49  ;;  %v1647_v54 = vpop.f32.mrb[123].mxu1 }
 0x1d1   :  { %10961 = vst.sshfl [vmem:[#allocation2 + $0x70] sm:$0x33 pattern:$0x76325410] %v2299_v17  ;;  %12957 = vmatprep.subr.bf16.mxu0 %v14562_v63  ;;  %v2011_v56 = vrot.slane %v1760_v9, %v15794_v15  ;;  %v2018_v33 = vrot.slane %v10928_v7, %v15794_v15  ;;  %v1994_v58 = vrot.slane %v1759_v35, %v15794_v15 }
 0x1d2   :  { %v2001_v38 = vrot.slane %v10927_v20, %v15794_v15  ;;  %v1741_v40 = vmax.f32 %v15755_v18, %v1705_v59  ;;  %v1703_v47 = vmax.f32 %v1645_v29, 0.0  ;;  %v1706_v34 = vmax.f32 %v1656_v51, 0.0 }
 0x1d3   :  { %v1648_v52 = vadd.f32 %v15785_v60, %v1647_v54  ;;  %12958 = vmatpush3.bf16.msra.mxu0 %v14562_v63  ;;  %v2019_v25 = vcombine.high %v2011_v56, %v2011_v56  ;;  %v2020_v12 = vcombine.high %v2018_v33, %v2018_v33  ;;  %v2002_v1 = vcombine.high %v1994_v58, %v1994_v58 }
 0x1d4   :  { %v2003_v48 = vcombine.high %v2001_v38, %v2001_v38  ;;  %10966 = vst.sshfl [vmem:[#allocation2 + $0x84] sm:$0x3 pattern:$0x76325410] %v2001_v38  ;;  %12959 = vmatprep.subr.bf16.mxu0 %v14563_v26  ;;  %v1739_v13 = vmax.f32 %v15758_v11, %v1703_v47  ;;  %v1742_v18 = vmax.f32 %v15761_v43, %v1706_v34 }
 0x1d5   :  { %v1704_v57 = vmax.f32 %v1648_v52, 0.0  ;;  %v2359_v46 = vcombine.low %v2018_v33, %v2020_v12  ;;  %10968 = vst.sshfl [vmem:[#allocation2 + $0x8c] sm:$0x3 pattern:$0x76325410] %v2019_v25  ;;  %v2329_v5 = vcombine.low %v1994_v58, %v2002_v1  ;;  %v12911_v44 = vpop.f32.mrb[124].mxu1 }
 0x1d6   :  { %v2344_v10 = vcombine.low %v2003_v48, %v2011_v56  ;;  %v1762_v27 = vpack.c.bf16 %v1742_v18, %v1741_v40  ;;  %v10930_v62 = vpack.c.bf16 %v1742_v18, %v1742_v18  ;;  %v1669_v21 = vadd.f32 %v15785_v60, %v12911_v44  ;;  %v1660_v55 = vpop.f32.mrb[125].mxu1  ;;  %v15954_v29 = vld [vmem:[#allocation2 + $0x68] sm:$0xf]  ;;  %v2561_v12 = vld [vmem:[#allocation2 + $0x78] sm:$0xf] }
 0x1d7   :  { %v1740_v24 = vmax.f32 %v15764_v19, %v1704_v57  ;;  %12960 = vmatpush3.bf16.msra.mxu0 %v14563_v26  ;;  %10969 = vst.sshfl [vmem:[#allocation2 + $0x90] sm:$0x33 pattern:$0x76325410] %v2359_v46  ;;  %v1661_v11 = vadd.f32 %v15785_v60, %v1660_v55  ;;  %v12912_v43 = vpop.f32.mrb[126].mxu1 }
 0x1d8   :  { %10965 = vst.sshfl [vmem:[#allocation2 + $0x80] sm:$0x33 pattern:$0x76325410] %v2329_v5  ;;  %12977 = vmatprep.subr.bf16.mxu0 %v15936_v0  ;;  %v2045_v6 = vrot.slane %v1762_v27, %v15794_v15  ;;  %v2052_v3 = vrot.slane %v10930_v62, %v15794_v15  ;;  %v1663_v23 = vpop.f32.mrb[127].mxu1  ;;  %v1709_v19 = vmax.f32 %v1669_v21, 0.0  ;;  %v1672_v17 = vadd.f32 %v15785_v60, %v12912_v43 }
 0x1d9   :  { %10967 = vst.sshfl [vmem:[#allocation2 + $0x88] sm:$0x33 pattern:$0x76325410] %v2344_v10  ;;  %v1761_v63 = vpack.c.bf16 %v1740_v24, %v1739_v13  ;;  %v10929_v39 = vpack.c.bf16 %v1740_v24, %v1740_v24  ;;  %v1707_v61 = vmax.f32 %v1661_v11, 0.0  ;;  %v1664_v16 = vadd.f32 %v15785_v60, %v1663_v23 }
 0x1da   :  { %v15948_v45 = vld [vmem:[#allocation2 + $0x70] sm:$0xf]  ;;  %v2053_v9 = vcombine.high %v2045_v6, %v2045_v6  ;;  %10974 = vst.sshfl [vmem:[#allocation2 + $0xa4] sm:$0x3 pattern:$0x76325410] %v2052_v3  ;;  %v1745_v20 = vmax.f32 %v15771_v22, %v1709_v19  ;;  %v2054_v57 = vcombine.high %v2052_v3, %v2052_v3 }
 0x1db   :  { %v2028_v7 = vrot.slane %v1761_v63, %v15794_v15  ;;  %v2035_v35 = vrot.slane %v10929_v39, %v15794_v15  ;;  %v1743_v49 = vmax.f32 %v15774_v37, %v1707_v61  ;;  %v1710_v26 = vmax.f32 %v1672_v17, 0.0  ;;  %v2546_v55 = vld [vmem:[#allocation2] sm:$0xf]  ;;  %v14565_v3 = vld [vmem:[%s18343_s3 + $0x288] sm:$0xff]  }
 0x1dc   :  { %v1708_v59 = vmax.f32 %v1664_v16, 0.0  ;;  %v2389_v51 = vcombine.low %v2045_v6, %v2053_v9  ;;  %v11001_v60 = vcombine.low %v15954_v29, %v15948_v45  ;;  %v11013_v43 = vcombine.low %v2546_v55, %v15824_v28  ;;  %v14570_v39 = vld [vmem:[%s18343_s3 + $0x2a0] sm:$0xff]   ;;  %v14572_v16 = vld [vmem:[%s18343_s3 + $0x2a8] sm:$0xff]   ;;  %v3525_v9 = vld [vmem:[#allocation2 + $0x18] sm:$0xf] }
 0x1dd   :  { %v2036_v54 = vcombine.high %v2028_v7, %v2028_v7  ;;  %v2037_v56 = vcombine.high %v2035_v35, %v2035_v35  ;;  %10970 = vst.sshfl [vmem:[#allocation2 + $0x94] sm:$0x3 pattern:$0x76325410] %v2028_v7  ;;  %v1746_v33 = vmax.f32 %v15777_v31, %v1710_v26  ;;  %v15991_v6 = vcombine.low %v15821_v50, %v15841_v30  ;;  %v14566_v50 = vld [vmem:[%s18343_s3 + $0x290] sm:$0xff]  }
 0x1de   :  { %v1744_v58 = vmax.f32 %v15780_v36, %v1708_v59  ;;  %10973 = vst.sshfl [vmem:[#allocation2 + $0xa0] sm:$0x33 pattern:$0x76325410] %v2389_v51  ;;  %12937 = vmatprep.mubr.bf16.mxu0 %v11001_v60  ;;  %v15964_v40 = vld [vmem:[#allocation2 + $0x90] sm:$0xf]  ;;  %v15998_v63 = vcombine.low %v15838_v53, %v15870_v14  ;;  %v16008_v28 = vcombine.low %v15868_v42, %v15909_v4 }
 0x1df   :  { %v2374_v38 = vcombine.low %v2036_v54, %v2035_v35  ;;  %10972 = vst.sshfl [vmem:[#allocation2 + $0x9c] sm:$0x3 pattern:$0x76325410] %v2037_v56  ;;  %v15960_v22 = vld [vmem:[#allocation2 + $0x80] sm:$0xf]  ;;  %v1764_v47 = vpack.c.bf16 %v1746_v33, %v1745_v20  ;;  %v10932_v34 = vpack.c.bf16 %v1746_v33, %v1746_v33  ;;  %v16019_v17 = vcombine.low %v15948_v45, %v2561_v12 }
 0x1e0   :  { %v15962_v37 = vld [vmem:[#allocation2 + $0x88] sm:$0xf]  ;;  %v1763_v52 = vpack.c.bf16 %v1744_v58, %v1743_v49  ;;  %v10931_v25 = vpack.c.bf16 %v1744_v58, %v1744_v58  ;;  %v15967_v31 = vcombine.low %v2561_v12, %v15960_v22  ;;  %v2558_v30 = vld [vmem:[#allocation2 + $0x60] sm:$0xf]  ;;  %v14568_v53 = vld [vmem:[%s18343_s3 + $0x298] sm:$0xff]   ;;  %v3616_v56 = vshll.u32 %v3525_v9, 16 }
 0x1e1   :  { %10971 = vst.sshfl [vmem:[#allocation2 + $0x98] sm:$0x33 pattern:$0x76325410] %v2374_v38  ;;  %v15971_v36 = vcombine.low %v15962_v37, %v15964_v40  ;;  %v2079_v1 = vrot.slane %v1764_v47, %v15794_v15  ;;  %v2086_v48 = vrot.slane %v10932_v34, %v15794_v15  ;;  %v11017_v14 = vcombine.low %v2558_v30, %v15954_v29  ;;  %v3521_v42 = vld [vmem:[#allocation2 + $0x8] sm:$0xf] }
 0x1e2   :  { %v2062_v13 = vrot.slane %v1763_v52, %v15794_v15  ;;  %v2069_v18 = vrot.slane %v10931_v25, %v15794_v15  ;;  %12938 = vmatmul.mubr.bf16.gmra.mrb[24].mxu0 %v15967_v31  ;;  %v3585_v19 = vshrl.u32 %v3521_v42, 16  ;;  %v3588_v61 = vshll.u32 %v3521_v42, 16  ;;  %v3520_v35 = vld [vmem:[#allocation2 + $0x4] sm:$0x1]  ;;  %v3523_v49 = vld [vmem:[#allocation2 + $0x10] sm:$0xf] }
 0x1e3   :  { %v2087_v46 = vcombine.high %v2079_v1, %v2079_v1  ;;  %v2088_v5 = vcombine.high %v2086_v48, %v2086_v48  ;;  %10978 = vst.sshfl [vmem:[#allocation2 + $0xb4] sm:$0x3 pattern:$0x76325410] %v2079_v1  ;;  %12941 = vmatprep.mubr.bf16.mxu0 %v15971_v36  ;;  %v16026_v7 = vcombine.low %v15960_v22, %v15962_v37  ;;  %v3613_v29 = vshrl.u32 %v3525_v9, 16  ;;  %v14574_v54 = vld [vmem:[%s18343_s3 + $0x2b0] sm:$0xff]  }
 0x1e4   :  { %v2070_v10 = vcombine.high %v2062_v13, %v2062_v13  ;;  %v2071_v44 = vcombine.high %v2069_v18, %v2069_v18  ;;  %v2404_v27 = vcombine.low %v2054_v57, %v2062_v13  ;;  %v3587_v26 = vrot.slane %v3585_v19, 4  ;;  %v3529_v51 = vld [vmem:[#allocation2 + $0x28] sm:$0xf]  ;;  %v3527_v58 = vld [vmem:[#allocation2 + $0x20] sm:$0xf]  ;;  %v14575_v1 = vld [vmem:[%s18343_s3 + $0x2b8] sm:$0xff]  }
 0x1e5   :  { %v2434_v62 = vcombine.low %v2087_v46, %v2086_v48  ;;  %10980 = vst.sshfl [vmem:[#allocation2 + $0xbc] sm:$0x3 pattern:$0x76325410] %v2088_v5  ;;  %v15979_v21 = vld [vmem:[#allocation2 + $0xa0] sm:$0xf] }
 0x1e6   :  { %v2419_v24 = vcombine.low %v2069_v18, %v2071_v44  ;;  %10976 = vst.sshfl [vmem:[#allocation2 + $0xac] sm:$0x3 pattern:$0x76325410] %v2070_v10  ;;  %v3590_v59 = vrot.slane %v3588_v61, 5  ;;  %v3599_v60 = vshrl.u32 %v3523_v49, 16 }
 0x1e7   :  { %10975 = vst.sshfl [vmem:[#allocation2 + $0xa8] sm:$0x33 pattern:$0x76325410] %v2404_v27  ;;  %v3602_v33 = vshll.u32 %v3523_v49, 16  ;;  %v3580_v22 = vshll.u32 %v3520_v35, 16 }
 0x1e8   :  { %10979 = vst.sshfl [vmem:[#allocation2 + $0xb8] sm:$0x33 pattern:$0x76325410] %v2434_v62  ;;  %v15981_v15 = vld [vmem:[#allocation2 + $0x98] sm:$0xf]  ;;  %v3591_v52 = vor.u32 %v3590_v59, %v3587_v26 }
 0x1e9   :  { %10977 = vst.sshfl [vmem:[#allocation2 + $0xb0] sm:$0x33 pattern:$0x76325410] %v2419_v24  ;;  %v15985_v11 = vcombine.low %v15981_v15, %v15979_v21  ;;  %v3522_v38 = vld [vmem:[#allocation2 + $0xc] sm:$0x1]  ;;  %v16035_v12 = vcombine.low %v15964_v40, %v15981_v15 }
 0x1ea   :  { %v3641_v37 = vshrl.u32 %v3529_v51, 16  ;;  %v3644_v47 = vshll.u32 %v3529_v51, 16  ;;  %v3615_v25 = vrot.slane %v3613_v29, 4  ;;  %v3618_v48 = vrot.slane %v3616_v56, 5  ;;  %v16040_v46 = vld [vmem:[#allocation2 + $0x14] sm:$0x1] }
 0x1eb   :  { %12942 = vmatmul.mubr.bf16.gmra.mrb[28].mxu0 %v15985_v11  ;;  %v3627_v13 = vshrl.u32 %v3527_v58, 16  ;;  %v3630_v18 = vshll.u32 %v3527_v58, 16  ;;  %v3594_v57 = vshll.u32 %v3522_v38, 16  ;;  %v3601_v5 = vrot.slane %v3599_v60, 4  ;;  %v3531_v62 = vld [vmem:[#allocation2 + $0x30] sm:$0xf] }
 0x1ec   :  { %12961 = vmatprep.mubr.bf16.mxu0 %v11013_v43  ;;  %v3604_v10 = vrot.slane %v3602_v33, 5  ;;  %v16043_v44 = vrot.slane %v3580_v22, 5  ;;  %v3643_v27 = vrot.slane %v3641_v37, 4  ;;  %v3646_v40 = vrot.slane %v3644_v47, 5  ;;  %v16046_v15 = vld [vmem:[#allocation2 + $0x1c] sm:$0x1] }
 0x1ed   :  { %v3592_v55 = vrot.slane %v3591_v52, 4  ;;  %v3533_v43 = vld [vmem:[#allocation2 + $0x38] sm:$0xf]  ;;  %v3608_v30 = vshll.u32 %v16040_v46, 16  ;;  %v16058_v42 = vld [vmem:[#allocation2 + $0x2c] sm:$0x1] }
 0x1ee   :  { %v3622_v19 = vshll.u32 %v16046_v15, 16  ;;  %v16061_v61 = vld [vmem:[#allocation2 + $0x24] sm:$0x1]  ;;  %v3669_v9 = vshrl.u32 %v3533_v43, 16  ;;  %v3672_v35 = vshll.u32 %v3533_v43, 16  ;;  %v14577_v59 = vld [vmem:[%s18343_s3 + $0x3c8] sm:$0xff]  }
 0x1ef   :  { %v16072_v26 = vld [vmem:[#allocation2 + $0x34] sm:$0x1]  ;;  %v16077_v29 = vld [vmem:[#allocation2 + $0x48] sm:$0xf]  ;;  %v3610_v51 = vrot.slane %v3608_v30, 5  ;;  %v3650_v60 = vshll.u32 %v16058_v42, 16 }
 0x1f0   :  { %v16080_v33 = vld [vmem:[#allocation2 + $0x58] sm:$0xf]  ;;  %v3636_v38 = vshll.u32 %v16061_v61, 16  ;;  %v3624_v47 = vrot.slane %v3622_v19, 5  ;;  %v3671_v52 = vrot.slane %v3669_v9, 4 }
 0x1f3   :  { %12962 = vmatmul.mubr.bf16.vlgmr.msra.gmra.mrb[16].mxu0 %v15991_v6 }
 0x1f4   :  { %12965 = vmatprep.mubr.bf16.mxu0 %v15998_v63  ;;  %12978 = vmatpush3.bf16.msra.mxu0 %v15936_v0  ;;  %v3519_v0 = vld [vmem:[#allocation2] sm:$0xf] }
 0x1f5   :  { %12979 = vmatprep.subr.bf16.mxu0 %v14565_v3  ;;  %v3571_v4 = vshrl.u32 %v3519_v0, 16  ;;  %v3574_v23 = vshll.u32 %v3519_v0, 16  ;;  %v3596_v0 = vrot.slane %v3594_v57, 5  ;;  %v3543_v57 = vld [vmem:[#allocation2 + $0x60] sm:$0xf] }
 0x1f7   :  { %v3573_v20 = vrot.slane %v3571_v4, 4  ;;  %v3576_v45 = vrot.slane %v3574_v23, 5  ;;  %v3655_v4 = vshrl.u32 %v3531_v62, 16  ;;  %v3658_v23 = vshll.u32 %v3531_v62, 16  ;;  %v16103_v62 = vld [vmem:[#allocation2 + $0xa8] sm:$0xf] }
 0x1f8   :  { %12980 = vmatpush3.bf16.msra.mxu0 %v14565_v3  ;;  %v14576_v3 = vld [vmem:[%s18343_s3 + $0x3c0] sm:$0xff]  }
 0x1f9   :  { %12981 = vmatprep.subr.bf16.mxu0 %v14566_v50  ;;  %v3577_v34 = vor.u32 %v3576_v45, %v3573_v20  ;;  %v16063_v20 = vld [vmem:[#allocation2 + $0x50] sm:$0xf]  ;;  %v16070_v45 = vsel %vm16053_vm3, %v3592_v55, %v3596_v0  ;;  %v3657_v22 = vrot.slane %v3655_v4, 4  ;;  %v3660_v37 = vrot.slane %v3658_v23, 5 }
 0x1fa   :  { %18436 = vst [vmem:[#allocation7_spill] sm:$0xff] %v16070_v45  ;;  %v3683_v4 = vshrl.u32 %v3543_v57, 16 }
 0x1fb   :  { %12966 = vmatmul.mubr.bf16.gmra.mrb[20].mxu0 %v16008_v28  ;;  %v3578_v24 = vrot.slane %v3577_v34, 4  ;;  %v3661_v30 = vor.u32 %v3660_v37, %v3657_v22  ;;  %v16181_v37 = vld [vmem:[#allocation2 + $0x30] sm:$0xe] }
 0x1fc   :  { %12969 = vmatprep.mubr.bf16.mxu0 %v11017_v14  ;;  %12982 = vmatpush3.bf16.msra.mxu0 %v14566_v50  ;;  %v18433_v50 = vmov 0  ;;  %v3632_v14 = vrot.slane %v3630_v18, 5  ;;  %v3664_v18 = vshll.u32 %v16072_v26, 16 }
 0x1fd   :  { %12983 = vmatprep.subr.bf16.mxu0 %v14568_v53  ;;  %v18434_v50 = vsel %vm16053_vm3, 4294967295, %v18433_v50  ;;  %v3583_v49 = vsel %vm16053_vm3, %v3578_v24, %v16043_v44  ;;  %v16105_v24 = vld [vmem:[#allocation2 + $0xb0] sm:$0xf] }
 0x1fe   :  { %18435 = vst [vmem:[#allocation6_spill] sm:$0xff] %v18434_v50  ;;  %v16108_v55 = vcombine.low %v3583_v49, %v16070_v45  ;;  %v16127_v19 = vrot.slane %v3664_v18, 5  ;;  %v14579_v49 = vld [vmem:[%s18343_s3 + $0x3d8] sm:$0xff]   ;;  %v16232_v45 = vld [vmem:[#allocation2 + $0x84] sm:$0x1] }
 0x1ff   :  { %18462 = vst [vmem:[#allocation31_spill] sm:$0xff] %v16232_v45 }
 0x200   :  { %12984 = vmatpush3.bf16.msra.mxu0 %v14568_v53  ;;  %v3619_v53 = vor.u32 %v3618_v48, %v3615_v25  ;;  %v3674_v25 = vrot.slane %v3672_v35, 5  ;;  %18438 = vst [vmem:[#allocation9_spill] sm:$0xff] %v16108_v55  ;;  %18443 = vst [vmem:[#allocation14_spill] sm:$0xff] %v16127_v19  ;;  %v16129_v35 = vld [vmem:[#allocation2 + $0x10] sm:$0xe] }
 0x201   :  { %12985 = vmatprep.subr.bf16.mxu0 %v14570_v39  ;;  %v16209_v48 = vld [vmem:[#allocation2 + $0x7c] sm:$0x1] }
 0x202   :  { %18460 = vst [vmem:[#allocation29_spill] sm:$0xff] %v16209_v48  ;;  %v4969_v50 = vrot.slane %v16209_v48, 5  ;;  %v16271_v19 = vld [vmem:[#allocation2 + $0x9c] sm:$0x1]  ;;  %v16284_v48 = vld [vmem:[#allocation2 + $0x98] sm:$0xe] }
 0x203   :  { %12970 = vmatmul.mubr.bf16.gmra.mrb[24].mxu0 %v16019_v17  ;;  %18467 = vst [vmem:[#allocation36_spill] sm:$0xff] %v16271_v19 }
 0x204   :  { %12973 = vmatprep.mubr.bf16.mxu0 %v16026_v7  ;;  %12986 = vmatpush3.bf16.msra.mxu0 %v14570_v39  ;;  %v3605_v39 = vor.u32 %v3604_v10, %v3601_v5  ;;  %v14578_v5 = vld [vmem:[%s18343_s3 + $0x3d0] sm:$0xff]   ;;  %v16205_v10 = vld [vmem:[#allocation2 + $0x6c] sm:$0x1] }
 0x205   :  { %12987 = vmatprep.subr.bf16.mxu0 %v14572_v16  ;;  %18458 = vst [vmem:[#allocation27_spill] sm:$0xff] %v16205_v10 }
 0x206   :  { %v3606_v58 = vrot.slane %v3605_v39, 4  ;;  %v16121_v39 = vld [vmem:[#allocation2 + $0x64] sm:$0x1] }
 0x207   :  { %18441 = vst [vmem:[#allocation12_spill] sm:$0xff] %v16121_v39 }
 0x208   :  { %12988 = vmatpush3.bf16.msra.mxu0 %v14572_v16  ;;  %v3647_v16 = vor.u32 %v3646_v40, %v3643_v27  ;;  %v3652_v27 = vrot.slane %v3650_v60, 5  ;;  %v3545_v40 = vld [vmem:[#allocation2 + $0x68] sm:$0xf]  ;;  %v16112_v43 = vsel %vm16053_vm3, %v3606_v58, %v3610_v51  ;;  %v16136_v51 = vcombine.low %v15979_v21, %v16103_v62  ;;  %v16144_v60 = vld [vmem:[#allocation2 + $0x18] sm:$0xe] }
 0x209   :  { %12989 = vmatprep.subr.bf16.mxu0 %v14574_v54  ;;  %18439 = vst [vmem:[#allocation10_spill] sm:$0xff] %v16112_v43  ;;  %v3700_v9 = vshll.u32 %v3545_v40, 16  ;;  %v16146_v58 = vld [vmem:[#allocation2 + $0x20] sm:$0xe]  ;;  %v16154_v21 = vrot.slane %v3661_v30, 4  ;;  %v11251_v30 = vrot.slane %v16129_v35, 9 }
 0x20a   :  { %v3648_v34 = vrot.slane %v3647_v16, 4  ;;  %v3697_v16 = vshrl.u32 %v3545_v40, 16 }
 0x20b   :  { %12974 = vmatmul.mubr.bf16.gmra.mrb[28].mxu0 %v16035_v12  ;;  %18446 = vst [vmem:[#allocation17_spill] sm:$0xff] %v16154_v21  ;;  %v14583_v21 = vld [vmem:[%s18343_s3 + $0x3f0] sm:$0xff]  }
 0x20c   :  { %12990 = vmatpush3.bf16.msra.mxu0 %v14574_v54  ;;  %12993 = vmatprep.mubr.bf16.mxu0 %v15991_v6  ;;  %v3629_v6 = vrot.slane %v3627_v13, 4  ;;  %v3620_v54 = vrot.slane %v3619_v53, 4  ;;  %v16091_v13 = vld [vmem:[#allocation2 + $0x3c] sm:$0x1]  ;;  %v16114_v53 = vld [vmem:[#allocation2 + $0xb8] sm:$0xf] }
 0x20d   :  { %12991 = vmatprep.subr.bf16.mxu0 %v14575_v1  ;;  %v3678_v0 = vshll.u32 %v16091_v13, 16  ;;  %v16175_v40 = vrot.slane %v3697_v16, 4  ;;  %v16194_v16 = vld [vmem:[#allocation2 + $0x38] sm:$0xe] }
 0x20e   :  { %v3633_v56 = vor.u32 %v3632_v14, %v3629_v6  ;;  %v16118_v6 = vsel %vm16053_vm3, %v3648_v34, %v3652_v27  ;;  %v3675_v14 = vor.u32 %v3674_v25, %v3671_v52  ;;  %v16159_v34 = vld [vmem:[#allocation2 + $0x28] sm:$0xe]  ;;  %v14580_v52 = vld [vmem:[%s18343_s3 + $0x3e0] sm:$0xff]   ;;  %v4933_v27 = vrot.slane %v16040_v46, 5 }
 0x20f   :  { %18440 = vst [vmem:[#allocation11_spill] sm:$0xff] %v16118_v6  ;;  %v16167_v18 = vrot.slane %v3678_v0, 5  ;;  %18452 = vst [vmem:[#allocation23_spill] sm:$0xff] %v16175_v40  ;;  %v4941_v46 = vrot.slane %v16061_v61, 5  ;;  %v14581_v61 = vld [vmem:[%s18343_s3 + $0x3e8] sm:$0xff]  }
 0x210   :  { %12992 = vmatpush3.bf16.msra.mxu0 %v14575_v1  ;;  %v16087_v1 = vcombine.low %v15905_v32, %v16077_v29  ;;  %v16101_v32 = vsel %vm16053_vm3, %v3620_v54, %v3624_v47  ;;  %v3634_v44 = vrot.slane %v3633_v56, 4  ;;  %v3686_v56 = vshll.u32 %v3543_v57, 16  ;;  %v16157_v47 = vld [vmem:[#allocation2 + $0x70] sm:$0xf] }
 0x211   :  { %13009 = vmatprep.subr.bf16.mxu0 %v14576_v3  ;;  %18437 = vst [vmem:[#allocation8_spill] sm:$0xff] %v16101_v32  ;;  %v16125_v23 = vcombine.low %v16112_v43, %v16101_v32  ;;  %18447 = vst [vmem:[#allocation18_spill] sm:$0xff] %v16157_v47  ;;  %v16165_v25 = vrot.slane %v3675_v14, 4  ;;  %v16169_v57 = vrot.slane %v3683_v4, 4  ;;  %v11252_v14 = vrot.slane %v16144_v60, 9 }
 0x212   :  { %18449 = vst [vmem:[#allocation20_spill] sm:$0xff] %v16167_v18  ;;  %v16183_v0 = vrot.slane %v3686_v56, 5  ;;  %v16199_v56 = vsel %vm16189_vm6, %v11251_v30, %v4933_v27  ;;  %v11253_v4 = vrot.slane %v16146_v58, 9  ;;  %v4945_v27 = vrot.slane %v16058_v42, 5  ;;  %v16229_v42 = vld [vmem:[#allocation2 + $0x70] sm:$0xe] }
 0x213   :  { %12994 = vmatmul.mubr.bf16.vlgmr.msra.gmra.mrb[16].mxu0 %v15998_v63  ;;  %18442 = vst [vmem:[#allocation13_spill] sm:$0xff] %v16125_v23  ;;  %18448 = vst [vmem:[#allocation19_spill] sm:$0xff] %v16165_v25  ;;  %v11255_v30 = vrot.slane %v16181_v37, 9  ;;  %v16249_v18 = vld [vmem:[#allocation2 + $0x80] sm:$0xe] }
 0x214   :  { %12997 = vmatprep.mubr.bf16.mxu0 %v16008_v28  ;;  %13010 = vmatpush3.bf16.msra.mxu0 %v14576_v3  ;;  %v3638_v3 = vrot.slane %v3636_v38, 5  ;;  %18450 = vst [vmem:[#allocation21_spill] sm:$0xff] %v16169_v57  ;;  %18454 = vst [vmem:[#allocation25_spill] sm:$0xff] %v16183_v0  ;;  %v16203_v38 = vld [vmem:[#allocation2 + $0x60] sm:$0xe] }
 0x215   :  { %13011 = vmatprep.subr.bf16.mxu0 %v14577_v59  ;;  %18457 = vst [vmem:[#allocation26_spill] sm:$0xff] %v16199_v56  ;;  %v11257_v25 = vrot.slane %v16203_v38, 9 }
 0x216   :  { %v16142_v54 = vsel %vm16053_vm3, %v3634_v44, %v3638_v3  ;;  %v16171_v44 = vld [vmem:[#allocation2 + $0x78] sm:$0xf]  ;;  %v16177_v3 = vrot.slane %v3700_v9, 5  ;;  %v11254_v9 = vrot.slane %v16159_v34, 9 }
 0x217   :  { %18444 = vst [vmem:[#allocation15_spill] sm:$0xff] %v16142_v54  ;;  %v16152_v22 = vcombine.low %v16142_v54, %v16118_v6  ;;  %18451 = vst [vmem:[#allocation22_spill] sm:$0xff] %v16171_v44  ;;  %v16227_v54 = vld [vmem:[#allocation2 + $0x68] sm:$0xe] }
 0x218   :  { %13012 = vmatpush3.bf16.msra.mxu0 %v14577_v59  ;;  %18453 = vst [vmem:[#allocation24_spill] sm:$0xff] %v16177_v3  ;;  %v16207_v59 = vld [vmem:[#allocation2 + $0x74] sm:$0x1]  ;;  %v4946_v6 = vsel %vm16189_vm6, %v11254_v9, %v4945_v27  ;;  %v16251_v9 = vld [vmem:[#allocation2 + $0x88] sm:$0xe]  ;;  %v11258_v27 = vrot.slane %v16227_v54, 9 }
 0x219   :  { %13013 = vmatprep.subr.bf16.mxu0 %v14578_v5  ;;  %18445 = vst [vmem:[#allocation16_spill] sm:$0xff] %v16152_v22  ;;  %18459 = vst [vmem:[#allocation28_spill] sm:$0xff] %v16207_v59  ;;  %v11262_v40 = vrot.slane %v16251_v9, 9  ;;  %v16315_v3 = vld [vmem:[#allocation2 + $0x48] sm:$0xe] }
 0x21a   :  { %v11331_v55 = vrot.slane %v16315_v3, 9 }
 0x21b   :  { %12998 = vmatmul.mubr.bf16.gmra.mrb[20].mxu0 %v16087_v1 }
 0x21c   :  { %13001 = vmatprep.mubr.bf16.mxu0 %v16019_v17  ;;  %13014 = vmatpush3.bf16.msra.mxu0 %v14578_v5  ;;  %v4937_v5 = vrot.slane %v16046_v15, 5  ;;  %v14646_v17 = vld [vmem:[%s18343_s3 + $0x1c8] sm:$0xff]  }
 0x21d   :  { %13015 = vmatprep.subr.bf16.mxu0 %v14579_v49 }
 0x21e   :  { %v4938_v15 = vsel %vm16189_vm6, %v11252_v14, %v4937_v5  ;;  %v4942_v14 = vsel %vm16189_vm6, %v11253_v4, %v4941_v46  ;;  %v4949_v5 = vrot.slane %v16072_v26, 5  ;;  %v16241_v4 = vld [vmem:[#allocation2 + $0x8c] sm:$0x1] }
 0x21f   :  { %v16222_v32 = vcombine.low %v16199_v56, %v4938_v15  ;;  %v16236_v43 = vcombine.low %v4938_v15, %v4942_v14  ;;  %v11256_v56 = vrot.slane %v16194_v16, 9  ;;  %18464 = vst [vmem:[#allocation33_spill] sm:$0xff] %v16241_v4  ;;  %v16243_v26 = vcombine.low %v4942_v14, %v4946_v6 }
 0x220   :  { %13016 = vmatpush3.bf16.msra.mxu0 %v14579_v49  ;;  %v4950_v46 = vsel %vm16189_vm6, %v11255_v30, %v4949_v5  ;;  %v4953_v49 = vrot.slane %v16091_v13, 5  ;;  %v4957_v15 = vrot.slane %v16121_v39, 5  ;;  %v4961_v14 = vrot.slane %v16205_v10, 5  ;;  %v16261_v13 = vld [vmem:[#allocation2 + $0x94] sm:$0x1] }
 0x221   :  { %18461 = vst [vmem:[#allocation30_spill] sm:$0xff] %v16222_v32  ;;  %13017 = vmatprep.subr.bf16.mxu0 %v14580_v52  ;;  %18463 = vst [vmem:[#allocation32_spill] sm:$0xff] %v16236_v43  ;;  %v16239_v32 = vld [vmem:[#allocation2 + $0x78] sm:$0xe]  ;;  %v11259_v43 = vrot.slane %v16229_v42, 9  ;;  %v4965_v5 = vrot.slane %v16207_v59, 5  ;;  %v16320_v10 = vcombine.low %v4946_v6, %v4950_v46 }
 0x222   :  { %18465 = vst [vmem:[#allocation34_spill] sm:$0xff] %v16243_v26  ;;  %v16258_v26 = vld [vmem:[#allocation2 + $0x90] sm:$0xe]  ;;  %18466 = vst [vmem:[#allocation35_spill] sm:$0xff] %v16261_v13  ;;  %v4954_v30 = vsel %vm16189_vm6, %v11256_v56, %v4953_v49  ;;  %v11260_v39 = vrot.slane %v16239_v32, 9  ;;  %v16281_v56 = vsel %vm16189_vm6, %v11258_v27, %v4961_v14  ;;  %v11261_v49 = vrot.slane %v16249_v18, 9 }
 0x223   :  { %13002 = vmatmul.mubr.bf16.gmra.mrb[24].mxu0 %v16026_v7  ;;  %v16273_v22 = vcombine.low %v4950_v46, %v4954_v30  ;;  %18470 = vst [vmem:[#allocation39_spill] sm:$0xff] %v16281_v56  ;;  %v16286_v59 = vld [vmem:[#allocation2 + $0x80] sm:$0xf]  ;;  %v16299_v14 = vld [vmem:[#allocation2 + $0x44] sm:$0x1]  ;;  %v4977_v23 = vrot.slane %v16241_v4, 5 }
 0x224   :  { %13005 = vmatprep.mubr.bf16.mxu0 %v16035_v12  ;;  %13018 = vmatpush3.bf16.msra.mxu0 %v14580_v52  ;;  %v16277_v52 = vsel %vm16189_vm6, %v11257_v25, %v4957_v15  ;;  %18471 = vst [vmem:[#allocation40_spill] sm:$0xff] %v16286_v59  ;;  %v4970_v25 = vsel %vm16189_vm6, %v11260_v39, %v4969_v50  ;;  %v4973_v15 = vrot.slane %v16232_v45, 5  ;;  %v16297_v27 = vld [vmem:[#allocation2 + $0x40] sm:$0xe]  ;;  %18473 = vst [vmem:[#allocation42_spill] sm:$0xff] %v16299_v14  ;;  %v14584_v50 = vld [vmem:[%s18343_s3 + $0x3f8] sm:$0xff]  }
 0x225   :  { %13019 = vmatprep.subr.bf16.mxu0 %v14581_v61  ;;  %18468 = vst [vmem:[#allocation37_spill] sm:$0xff] %v16273_v22  ;;  %18469 = vst [vmem:[#allocation38_spill] sm:$0xff] %v16277_v52  ;;  %v16292_v22 = vsel %vm16189_vm6, %v11259_v43, %v4965_v5  ;;  %v11263_v52 = vrot.slane %v16258_v26, 9  ;;  %v3538_v43 = vld [vmem:[#allocation2 + $0x4c] sm:$0x1]  ;;  %v4981_v5 = vrot.slane %v16261_v13, 5  ;;  %v4978_v47 = vsel %vm16189_vm6, %v11262_v40, %v4977_v23 }
 0x226   :  { %18472 = vst [vmem:[#allocation41_spill] sm:$0xff] %v16292_v22  ;;  %v16302_v44 = vcombine.low %v16292_v22, %v4970_v25  ;;  %v4974_v39 = vsel %vm16189_vm6, %v11261_v49, %v4973_v15  ;;  %v11264_v45 = vrot.slane %v16284_v48, 9  ;;  %18475 = vst [vmem:[#allocation44_spill] sm:$0xff] %v16320_v10  ;;  %v11297_v0 = vrot.slane %v16297_v27, 9  ;;  %v16323_v49 = vld [vmem:[#allocation2 + $0xa0] sm:$0xe] }
 0x227   :  { %v3562_v15 = vld [vmem:[#allocation2 + $0xac] sm:$0x1]  ;;  %v16325_v13 = vcombine.low %v4974_v39, %v4978_v47  ;;  %v5203_v4 = vrot.slane %v16299_v14, 5  ;;  %v4885_v59 = vld [vmem:[#allocation2 + $0xa8] sm:$0xe]  ;;  %v16337_v46 = vcombine.low %v4970_v25, %v4974_v39  ;;  %v11298_v14 = vrot.slane %v16323_v49, 9 }
 0x228   :  { %18474 = vst [vmem:[#allocation43_spill] sm:$0xff] %v16302_v44  ;;  %13020 = vmatpush3.bf16.msra.mxu0 %v14581_v61  ;;  %v4985_v44 = vrot.slane %v16271_v19, 5  ;;  %v3560_v61 = vld [vmem:[#allocation2 + $0xa4] sm:$0x1]  ;;  %v4982_v19 = vsel %vm16189_vm6, %v11263_v52, %v4981_v5  ;;  %v3540_v6 = vld [vmem:[#allocation2 + $0x54] sm:$0x1] }
 0x229   :  { %13021 = vmatprep.subr.bf16.mxu0 %v14583_v21  ;;  %18476 = vst [vmem:[#allocation45_spill] sm:$0xff] %v16325_v13  ;;  %18478 = vst [vmem:[#allocation47_spill] sm:$0xff] %v16337_v46  ;;  %v16339_v10 = vcombine.low %v4978_v47, %v4982_v19  ;;  %v4874_v13 = vld [vmem:[#allocation2 + $0x50] sm:$0xe]  ;;  %v5204_v5 = vsel %vm16189_vm6, %v11297_v0, %v5203_v4  ;;  %v11332_v25 = vrot.slane %v4885_v59, 9  ;;  %v5607_v40 = vrot.slane %v3540_v6, 5 }
 0x22a   :  { %v4986_v57 = vsel %vm16189_vm6, %v11264_v45, %v4985_v44  ;;  %v4886_v52 = vld [vmem:[#allocation2 + $0xb0] sm:$0xe]  ;;  %v3564_v45 = vld [vmem:[#allocation2 + $0xb4] sm:$0x1]  ;;  %v3542_v44 = vld [vmem:[#allocation2 + $0x5c] sm:$0x1]  ;;  %v16349_v47 = vcombine.low %v4954_v30, %v5204_v5 }
 0x22b   :  { %13006 = vmatmul.mubr.bf16.gmra.mrb[28].mxu0 %v16136_v51  ;;  %v16333_v23 = vcombine.low %v4982_v19, %v4986_v57  ;;  %18479 = vst [vmem:[#allocation48_spill] sm:$0xff] %v16339_v10  ;;  %v14585_v19 = vld [vmem:[%s18343_s3 + $0x500] sm:$0xff]   ;;  %v4875_v39 = vld [vmem:[#allocation2 + $0x58] sm:$0xe]  ;;  %v11359_v4 = vrot.slane %v4874_v13, 9 }
 0x22c   :  { %13022 = vmatpush3.bf16.msra.mxu0 %v14583_v21  ;;  %13025 = vmatprep.mubr.bf16.mxu0 %v15846_v8  ;;  %v5411_v21 = vrot.slane %v3538_v43, 5  ;;  %v5415_v8 = vrot.slane %v3562_v15, 5  ;;  %v4887_v10 = vld [vmem:[#allocation2 + $0xb8] sm:$0xe]  ;;  %v3566_v46 = vld [vmem:[#allocation2 + $0xbc] sm:$0x1] }
 0x22d   :  { %18477 = vst [vmem:[#allocation46_spill] sm:$0xff] %v16333_v23  ;;  %v5207_v23 = vrot.slane %v3560_v61, 5  ;;  %13023 = vmatprep.subr.bf16.mxu0 %v14584_v50  ;;  %v11360_v61 = vrot.slane %v4886_v52, 9  ;;  %v4864_v22 = vld [vmem:[#allocation2] sm:$0xe]  ;;  %v5611_v43 = vrot.slane %v3564_v45, 5 }
 0x22e   :  { %v16357_v30 = vsel %vm16189_vm6, %v11331_v55, %v5411_v21  ;;  %v16361_v59 = vsel %vm16189_vm6, %v11332_v25, %v5415_v8  ;;  %v11387_v15 = vrot.slane %v4875_v39, 9  ;;  %v5993_v6 = vld [vmem:[#allocation2 + $0x4] sm:$0x3]  ;;  %v14586_v55 = vld [vmem:[%s18343_s3 + $0x508] sm:$0xff]   ;;  %v5803_v45 = vrot.slane %v3542_v44, 5 }
 0x22f   :  { %v5208_v0 = vsel %vm16189_vm6, %v11298_v14, %v5207_v23  ;;  %18480 = vst [vmem:[#allocation49_spill] sm:$0xff] %v16361_v59  ;;  %v16364_v14 = vcombine.low %v5204_v5, %v16357_v30  ;;  %v4865_v23 = vld [vmem:[#allocation2 + $0x8] sm:$0xe]  ;;  %v16380_v52 = vsel %vm16189_vm6, %v11360_v61, %v5611_v43  ;;  %v11388_v5 = vrot.slane %v4887_v10, 9  ;;  %v5994_v39 = vld [vmem:[#allocation2 + $0xc] sm:$0x3] }
 0x230   :  { %v16353_v56 = vcombine.low %v4986_v57, %v5208_v0  ;;  %13024 = vmatpush3.bf16.msra.mxu0 %v14584_v50  ;;  %v16367_v13 = vcombine.low %v5208_v0, %v16361_v59  ;;  %v16371_v57 = vsel %vm16189_vm6, %v11359_v4, %v5607_v40  ;;  %18481 = vst [vmem:[#allocation50_spill] sm:$0xff] %v16380_v52  ;;  %v5807_v21 = vrot.slane %v3566_v46, 5  ;;  %v14588_v61 = vld [vmem:[%s18343_s3 + $0x510] sm:$0xff]   ;;  %v14589_v59 = vld [vmem:[%s18343_s3 + $0x518] sm:$0xff]  }
 0x231   :  { %13041 = vmatprep.subr.bf16.mxu0 %v14585_v19  ;;  %v6021_v25 = vshrl.u32 %v4864_v22, 16  ;;  %v16387_v8 = vsel %vm16189_vm6, %v11387_v15, %v5803_v45  ;;  %v6024_v0 = vshll.u32 %v4864_v22, 16  ;;  %v6030_v4 = vshrl.u32 %v5993_v6, 16  ;;  %v5995_v15 = vld [vmem:[#allocation2 + $0x14] sm:$0x3] }
 0x232   :  { %18482 = vst [vmem:[#allocation51_spill] sm:$0xff] %v16387_v8  ;;  %v6033_v50 = vshll.u32 %v5993_v6, 16  ;;  %v16394_v46 = vsel %vm16189_vm6, %v11388_v5, %v5807_v21  ;;  %v6042_v45 = vshll.u32 %v4865_v23, 16  ;;  %v6048_v10 = vshrl.u32 %v5994_v39, 16 }
 0x233   :  { %13026 = vmatmul.mubr.bf16.vlgmr.msra.gmra.mrb[16].mxu0 %v15879_v41  ;;  %18483 = vst [vmem:[#allocation52_spill] sm:$0xff] %v16394_v46  ;;  %v6023_v44 = vrot.slane %v6021_v25, 5  ;;  %v6039_v41 = vshrl.u32 %v4865_v23, 16  ;;  %v6026_v43 = vrot.slane %v6024_v0, 6  ;;  %v6051_v40 = vshll.u32 %v5994_v39, 16 }
 0x234   :  { %13029 = vmatprep.mubr.bf16.mxu0 %v15918_v2  ;;  %13042 = vmatpush3.bf16.msra.mxu0 %v14585_v19  ;;  %v6032_v2 = vrot.slane %v6030_v4, 5  ;;  %v6035_v19 = vrot.slane %v6033_v50, 6  ;;  %v6057_v25 = vshrl.u32 %v16129_v35, 16  ;;  %v6060_v8 = vshll.u32 %v16129_v35, 16 }
 0x235   :  { %13043 = vmatprep.subr.bf16.mxu0 %v14586_v55  ;;  %v6041_v6 = vrot.slane %v6039_v41, 5  ;;  %v6027_v5 = vor.u32 %v6026_v43, %v6023_v44  ;;  %v18484_v50 = vmov 0  ;;  %v6044_v23 = vrot.slane %v6042_v45, 6  ;;  %v5996_v41 = vld [vmem:[#allocation2 + $0x1c] sm:$0x3] }
 0x236   :  { %v6036_v21 = vor.u32 %v6035_v19, %v6032_v2  ;;  %v18485_v50 = vsel %vm16408_vm9, 4294967295, %v18484_v50  ;;  %v6050_v0 = vrot.slane %v6048_v10, 5  ;;  %v6053_v39 = vrot.slane %v6051_v40, 6 }
 0x237   :  { %18486 = vst [vmem:[#allocation53_spill] sm:$0xff] %v18485_v50  ;;  %v6066_v4 = vshrl.u32 %v5995_v15, 16  ;;  %v6028_v44 = vrot.slane %v6027_v5, 4  ;;  %v6059_v43 = vrot.slane %v6057_v25, 5  ;;  %v6062_v35 = vrot.slane %v6060_v8, 6 }
 0x238   :  { %13044 = vmatpush3.bf16.msra.mxu0 %v14586_v55  ;;  %v6069_v55 = vshll.u32 %v5995_v15, 16  ;;  %v6045_v2 = vor.u32 %v6044_v23, %v6041_v6  ;;  %v6054_v19 = vor.u32 %v6053_v39, %v6050_v0  ;;  %v6075_v46 = vshrl.u32 %v16144_v60, 16  ;;  %v5997_v0 = vld [vmem:[#allocation2 + $0x24] sm:$0x3] }
 0x239   :  { %13045 = vmatprep.subr.bf16.mxu0 %v14588_v61  ;;  %v6068_v22 = vrot.slane %v6066_v4, 5  ;;  %v18487_v52 = vcombine.low %v16077_v29, %v16063_v20  ;;  %v16418_v10 = vsel %vm16408_vm9, %v6028_v44, %v6036_v21  ;;  %v6063_v40 = vor.u32 %v6062_v35, %v6059_v43  ;;  %v14590_v29 = vld [vmem:[%s18343_s3 + $0x520] sm:$0xff]  }
 0x23a   :  { %v6071_v45 = vrot.slane %v6069_v55, 6  ;;  %v6078_v5 = vshll.u32 %v16144_v60, 16  ;;  %v6046_v8 = vrot.slane %v6045_v2, 4  ;;  %v6077_v15 = vrot.slane %v6075_v46, 5  ;;  %v5998_v46 = vld [vmem:[#allocation2 + $0x2c] sm:$0x3] }
 0x23b   :  { %13030 = vmatmul.mubr.bf16.gmra.mrb[20].mxu0 %v18487_v52  ;;  %v6084_v6 = vshrl.u32 %v5996_v41, 16  ;;  %v6087_v25 = vshll.u32 %v5996_v41, 16  ;;  %v6064_v52 = vrot.slane %v6063_v40, 4  ;;  %v6093_v39 = vshrl.u32 %v16146_v58, 16  ;;  %v14591_v40 = vld [vmem:[%s18343_s3 + $0x528] sm:$0xff]  }
 0x23c   :  { %13033 = vmatprep.mubr.bf16.mxu0 %v15967_v31  ;;  %13046 = vmatpush3.bf16.msra.mxu0 %v14588_v61  ;;  %v6072_v23 = vor.u32 %v6071_v45, %v6068_v22  ;;  %v6080_v21 = vrot.slane %v6078_v5, 6  ;;  %v16428_v60 = vsel %vm16408_vm9, %v6046_v8, %v6054_v19  ;;  %v6096_v4 = vshll.u32 %v16146_v58, 16 }
 0x23d   :  { %13047 = vmatprep.subr.bf16.mxu0 %v14589_v59  ;;  %v6086_v31 = vrot.slane %v6084_v6, 5  ;;  %v6089_v61 = vrot.slane %v6087_v25, 6  ;;  %v6095_v43 = vrot.slane %v6093_v39, 5  ;;  %v6102_v2 = vshrl.u32 %v5997_v0, 16 }
 0x23e   :  { %v16435_v41 = vsel %vm16408_vm9, %v6064_v52, %v6072_v23  ;;  %v6081_v22 = vor.u32 %v6080_v21, %v6077_v15  ;;  %v6098_v55 = vrot.slane %v6096_v4, 6  ;;  %v6105_v19 = vshll.u32 %v5997_v0, 16 }
 0x23f   :  { %18488 = vst [vmem:[#allocation54_spill] sm:$0xff] %v16435_v41  ;;  %v6090_v35 = vor.u32 %v6089_v61, %v6086_v31  ;;  %v6111_v45 = vshrl.u32 %v16159_v34, 16  ;;  %v6114_v5 = vshll.u32 %v16159_v34, 16  ;;  %v6120_v8 = vshrl.u32 %v5998_v46, 16 }
 0x240   :  { %13048 = vmatpush3.bf16.msra.mxu0 %v14589_v59  ;;  %v6082_v58 = vrot.slane %v6081_v22, 4  ;;  %v6099_v6 = vor.u32 %v6098_v55, %v6095_v43  ;;  %v6104_v25 = vrot.slane %v6102_v2, 5  ;;  %v6107_v15 = vrot.slane %v6105_v19, 6  ;;  %v5999_v59 = vld [vmem:[#allocation2 + $0x34] sm:$0x3] }
 0x241   :  { %13049 = vmatprep.subr.bf16.mxu0 %v14590_v29  ;;  %v6123_v52 = vshll.u32 %v5998_v46, 16  ;;  %v6113_v21 = vrot.slane %v6111_v45, 5  ;;  %v6116_v0 = vrot.slane %v6114_v5, 6  ;;  %v6122_v39 = vrot.slane %v6120_v8, 5  ;;  %v16456_v55 = vld [vmem:[#allocation2 + $0x3c] sm:$0x3] }
 0x242   :  { %v6091_v23 = vsel %vm16408_vm9, %v6082_v58, %v6090_v35  ;;  %v6100_v34 = vrot.slane %v6099_v6, 4  ;;  %v6108_v61 = vor.u32 %v6107_v15, %v6104_v25  ;;  %v6129_v22 = vshrl.u32 %v16181_v37, 16 }
 0x243   :  { %13034 = vmatmul.mubr.bf16.gmra.mrb[24].mxu0 %v15971_v36  ;;  %v16447_v31 = vcombine.low %v16435_v41, %v6091_v23  ;;  %v6125_v4 = vrot.slane %v6123_v52, 6  ;;  %v14593_v36 = vld [vmem:[%s18343_s3 + $0x530] sm:$0xff]   ;;  %v6117_v46 = vor.u32 %v6116_v0, %v6113_v21  ;;  %v6132_v43 = vshll.u32 %v16181_v37, 16  ;;  %v14594_v52 = vld [vmem:[%s18343_s3 + $0x538] sm:$0xff]   ;;  %v18508_v41 = vld [vmem:[#allocation18_spill] sm:$0xff] }
 0x244   :  { %13037 = vmatprep.mubr.bf16.mxu0 %v15985_v11  ;;  %13050 = vmatpush3.bf16.msra.mxu0 %v14590_v29  ;;  %v6138_v35 = vshrl.u32 %v5999_v59, 16  ;;  %v6109_v11 = vsel %vm16408_vm9, %v6100_v34, %v6108_v61  ;;  %v6141_v2 = vshll.u32 %v5999_v59, 16  ;;  %v6147_v19 = vshrl.u32 %v16194_v16, 16 }
 0x245   :  { %13051 = vmatprep.subr.bf16.mxu0 %v14591_v40  ;;  %v6126_v29 = vor.u32 %v6125_v4, %v6122_v39  ;;  %v6118_v58 = vrot.slane %v6117_v46, 4  ;;  %v16459_v45 = vcombine.low %v6091_v23, %v6109_v11  ;;  %v6131_v5 = vrot.slane %v6129_v22, 5 }
 0x246   :  { %v6134_v8 = vrot.slane %v6132_v43, 6  ;;  %v6140_v6 = vrot.slane %v6138_v35, 5  ;;  %v6143_v25 = vrot.slane %v6141_v2, 6  ;;  %v6149_v15 = vrot.slane %v6147_v19, 5  ;;  %v16482_v2 = vld [vmem:[#allocation2 + $0x6c] sm:$0x3] }
 0x247   :  { %18489 = vst [vmem:[#allocation55_spill] sm:$0xff] %v16459_v45  ;;  %v6150_v37 = vshll.u32 %v16194_v16, 16  ;;  %v16467_v59 = vsel %vm16408_vm9, %v6118_v58, %v6126_v29  ;;  %v6156_v23 = vshrl.u32 %v16456_v55, 16  ;;  %v6159_v0 = vshll.u32 %v16456_v55, 16 }
 0x248   :  { %13052 = vmatpush3.bf16.msra.mxu0 %v14591_v40  ;;  %v6135_v21 = vor.u32 %v6134_v8, %v6131_v5  ;;  %v16471_v40 = vld [vmem:[#allocation2 + $0x64] sm:$0x3]  ;;  %v16474_v39 = vcombine.low %v6109_v11, %v16467_v59  ;;  %v6144_v16 = vor.u32 %v6143_v25, %v6140_v6  ;;  %v6165_v61 = vshrl.u32 %v16203_v38, 16 }
 0x249   :  { %13053 = vmatprep.subr.bf16.mxu0 %v14593_v36  ;;  %v6152_v34 = vrot.slane %v6150_v37, 6  ;;  %v18490_v4 = vcombine.low %v16103_v62, %v16105_v24  ;;  %v6158_v22 = vrot.slane %v6156_v23, 5  ;;  %v6161_v43 = vrot.slane %v6159_v0, 6  ;;  %v14595_v62 = vld [vmem:[%s18343_s3 + $0x40] sm:$0xff]  }
 0x24a   :  { %v6136_v46 = vrot.slane %v6135_v21, 4  ;;  %v6168_v35 = vshll.u32 %v16203_v38, 16  ;;  %v6167_v11 = vrot.slane %v6165_v61, 5  ;;  %v6174_v19 = vshrl.u32 %v16471_v40, 16 }
 0x24b   :  { %13038 = vmatmul.mubr.bf16.gmra.mrb[28].mxu0 %v18490_v4  ;;  %v6153_v29 = vor.u32 %v6152_v34, %v6149_v15  ;;  %v6177_v58 = vshll.u32 %v16471_v40, 16  ;;  %v6162_v38 = vor.u32 %v6161_v43, %v6158_v22  ;;  %v6186_v15 = vshll.u32 %v16227_v54, 16  ;;  %v16497_v34 = vld [vmem:[#allocation2 + $0x74] sm:$0x3] }
 0x24c   :  { %13054 = vmatpush3.bf16.msra.mxu0 %v14593_v36  ;;  %13057 = vmatprep.mubr.bf16.mxu0 %v15998_v63  ;;  %v16491_v5 = vsel %vm16408_vm9, %v6136_v46, %v6144_v16  ;;  %v6170_v36 = vrot.slane %v6168_v35, 6  ;;  %v6183_v63 = vshrl.u32 %v16227_v54, 16  ;;  %v6176_v6 = vrot.slane %v6174_v19, 5  ;;  %v14596_v54 = vld [vmem:[%s18343_s3 + $0x48] sm:$0xff]  }
 0x24d   :  { %13055 = vmatprep.subr.bf16.mxu0 %v14594_v52  ;;  %v6154_v8 = vrot.slane %v6153_v29, 4  ;;  %v6179_v25 = vrot.slane %v6177_v58, 6  ;;  %v6192_v23 = vshrl.u32 %v16482_v2, 16  ;;  %v6195_v0 = vshll.u32 %v16482_v2, 16 }
 0x24e   :  { %v6171_v37 = vor.u32 %v6170_v36, %v6167_v11  ;;  %v6185_v21 = vrot.slane %v6183_v63, 5  ;;  %v6188_v4 = vrot.slane %v6186_v15, 6  ;;  %v6201_v46 = vshrl.u32 %v16229_v42, 16  ;;  %v16511_v11 = vld [vmem:[#allocation2 + $0x7c] sm:$0x3] }
 0x24f   :  { %v16501_v16 = vsel %vm16408_vm9, %v6154_v8, %v6162_v38  ;;  %v6180_v61 = vor.u32 %v6179_v25, %v6176_v6  ;;  %v6194_v35 = vrot.slane %v6192_v23, 5  ;;  %v6204_v58 = vshll.u32 %v16229_v42, 16 }
 0x250   :  { %13056 = vmatpush3.bf16.msra.mxu0 %v14594_v52  ;;  %v16509_v22 = vcombine.low %v16491_v5, %v16501_v16  ;;  %v6172_v43 = vrot.slane %v6171_v37, 4  ;;  %v6197_v52 = vrot.slane %v6195_v0, 6  ;;  %v6189_v29 = vor.u32 %v6188_v4, %v6185_v21 }
 0x251   :  { %13073 = vmatprep.subr.bf16.mxu0 %v14595_v62  ;;  %v6203_v19 = vrot.slane %v6201_v46, 5  ;;  %v6210_v38 = vshrl.u32 %v16497_v34, 16  ;;  %v6213_v8 = vshll.u32 %v16497_v34, 16  ;;  %v6219_v6 = vshrl.u32 %v16239_v32, 16  ;;  %v16533_v46 = vld [vmem:[#allocation2 + $0x84] sm:$0x3] }
 0x252   :  { %v16518_v36 = vsel %vm16408_vm9, %v6172_v43, %v6180_v61  ;;  %v6198_v63 = vor.u32 %v6197_v52, %v6194_v35  ;;  %v6190_v25 = vrot.slane %v6189_v29, 4  ;;  %v6206_v15 = vrot.slane %v6204_v58, 6 }
 0x253   :  { %13058 = vmatmul.mubr.bf16.vlgmr.msra.gmra.mrb[16].mxu0 %v16008_v28  ;;  %18491 = vst [vmem:[#allocation56_spill] sm:$0xff] %v16518_v36  ;;  %v6212_v37 = vrot.slane %v6210_v38, 5  ;;  %v6222_v42 = vshll.u32 %v16239_v32, 16  ;;  %v14598_v28 = vld [vmem:[%s18343_s3 + $0x50] sm:$0xff]   ;;  %v6215_v21 = vrot.slane %v6213_v8, 6  ;;  %v6221_v23 = vrot.slane %v6219_v6, 5 }
 0x254   :  { %13061 = vmatprep.mubr.bf16.mxu0 %v16087_v1  ;;  %13074 = vmatpush3.bf16.msra.mxu0 %v14595_v62  ;;  %v6228_v0 = vshrl.u32 %v16511_v11, 16  ;;  %v6231_v61 = vshll.u32 %v16511_v11, 16  ;;  %v16531_v1 = vsel %vm16408_vm9, %v6190_v25, %v6198_v63  ;;  %v6207_v62 = vor.u32 %v6206_v15, %v6203_v19  ;;  %v16538_v8 = vld [vmem:[#allocation2 + $0x8c] sm:$0x3]  ;;  %v14599_v19 = vld [vmem:[%s18343_s3 + $0x58] sm:$0xff]  }
 0x255   :  { %13075 = vmatprep.subr.bf16.mxu0 %v14596_v54  ;;  %18492 = vst [vmem:[#allocation57_spill] sm:$0xff] %v16531_v1  ;;  %v6224_v4 = vrot.slane %v6222_v42, 6  ;;  %v6237_v32 = vshrl.u32 %v16249_v18, 16  ;;  %v6216_v35 = vor.u32 %v6215_v21, %v6212_v37  ;;  %v6240_v63 = vshll.u32 %v16249_v18, 16  ;;  %v7428_v36 = vld [vmem:[#allocation2 + $0x90] sm:$0xc] }
 0x256   :  { %v6230_v52 = vrot.slane %v6228_v0, 5  ;;  %v6233_v29 = vrot.slane %v6231_v61, 6  ;;  %v6208_v58 = vrot.slane %v6207_v62, 4  ;;  %v6246_v15 = vshrl.u32 %v16533_v46, 16 }
 0x257   :  { %v6225_v38 = vor.u32 %v6224_v4, %v6221_v23  ;;  %v6239_v6 = vrot.slane %v6237_v32, 5  ;;  %v6249_v37 = vshll.u32 %v16533_v46, 16  ;;  %v6255_v42 = vshrl.u32 %v16251_v9, 16 }
 0x258   :  { %13076 = vmatpush3.bf16.msra.mxu0 %v14596_v54  ;;  %v6234_v25 = vor.u32 %v6233_v29, %v6230_v52  ;;  %v16549_v54 = vsel %vm16408_vm9, %v6208_v58, %v6216_v35  ;;  %v6242_v23 = vrot.slane %v6240_v63, 6  ;;  %v6258_v18 = vshll.u32 %v16251_v9, 16  ;;  %v16562_v58 = vld [vmem:[#allocation2 + $0x94] sm:$0x3] }
 0x259   :  { %13077 = vmatprep.subr.bf16.mxu0 %v14598_v28  ;;  %18493 = vst [vmem:[#allocation58_spill] sm:$0xff] %v16549_v54  ;;  %v6226_v21 = vrot.slane %v6225_v38, 4  ;;  %v18494_v0 = vcombine.low %v16063_v20, %v16080_v33  ;;  %v6248_v61 = vrot.slane %v6246_v15, 5  ;;  %v6251_v62 = vrot.slane %v6249_v37, 6  ;;  %v14600_v20 = vld [vmem:[%s18343_s3 + $0x60] sm:$0xff]  }
 0x25a   :  { %v6257_v4 = vrot.slane %v6255_v42, 5  ;;  %v6264_v32 = vshrl.u32 %v16538_v8, 16  ;;  %v6243_v52 = vor.u32 %v6242_v23, %v6239_v6  ;;  %v6260_v29 = vrot.slane %v6258_v18, 6  ;;  %v16573_v37 = vld [vmem:[#allocation2 + $0x9c] sm:$0x3] }
 0x25b   :  { %13062 = vmatmul.mubr.bf16.gmra.mrb[20].mxu0 %v18494_v0  ;;  %v16559_v35 = vsel %vm16408_vm9, %v6226_v21, %v6234_v25  ;;  %v6267_v9 = vshll.u32 %v16538_v8, 16  ;;  %v6273_v38 = vshrl.u32 %v16258_v26, 16  ;;  %v6276_v15 = vshll.u32 %v16258_v26, 16  ;;  %v14601_v26 = vld [vmem:[%s18343_s3 + $0x68] sm:$0xff]  }
 0x25c   :  { %13065 = vmatprep.mubr.bf16.mxu0 %v16026_v7  ;;  %13078 = vmatpush3.bf16.msra.mxu0 %v14598_v28  ;;  %v16569_v33 = vcombine.low %v16549_v54, %v16559_v35  ;;  %v6252_v7 = vor.u32 %v6251_v62, %v6248_v61  ;;  %v6266_v28 = vrot.slane %v6264_v32, 5  ;;  %v6244_v63 = vrot.slane %v6243_v52, 4 }
 0x25d   :  { %13079 = vmatprep.subr.bf16.mxu0 %v14599_v19  ;;  %v6261_v6 = vor.u32 %v6260_v29, %v6257_v4  ;;  %v6269_v25 = vrot.slane %v6267_v9, 6  ;;  %v6275_v42 = vrot.slane %v6273_v38, 5  ;;  %v6282_v21 = vshrl.u32 %v16562_v58, 16 }
 0x25e   :  { %18495 = vst [vmem:[#allocation59_spill] sm:$0xff] %v16569_v33  ;;  %v6285_v23 = vshll.u32 %v16562_v58, 16  ;;  %v6291_v18 = vshrl.u32 %v16284_v48, 16  ;;  %v6253_v0 = vsel %vm16408_vm9, %v6244_v63, %v6252_v7  ;;  %v6278_v32 = vrot.slane %v6276_v15, 6  ;;  %v7427_v33 = vld [vmem:[#allocation2 + $0x88] sm:$0xc] }
 0x25f   :  { %v6262_v61 = vrot.slane %v6261_v6, 4  ;;  %v6270_v62 = vor.u32 %v6269_v25, %v6266_v28  ;;  %v6284_v4 = vrot.slane %v6282_v21, 5  ;;  %v6294_v9 = vshll.u32 %v16284_v48, 16  ;;  %v16588_v28 = vld [vmem:[#allocation2 + $0x44] sm:$0x3] }
 0x260   :  { %13080 = vmatpush3.bf16.msra.mxu0 %v14599_v19  ;;  %v6287_v52 = vrot.slane %v6285_v23, 6  ;;  %v6293_v29 = vrot.slane %v6291_v18, 5  ;;  %v6279_v19 = vor.u32 %v6278_v32, %v6275_v42  ;;  %v6300_v43 = vshrl.u32 %v16573_v37, 16 }
 0x261   :  { %13081 = vmatprep.subr.bf16.mxu0 %v14600_v20  ;;  %v6271_v38 = vsel %vm16408_vm9, %v6262_v61, %v6270_v62  ;;  %v6303_v7 = vshll.u32 %v16573_v37, 16  ;;  %v6296_v25 = vrot.slane %v6294_v9, 6  ;;  %v16598_v23 = vcombine.low %v16467_v59, %v16491_v5  ;;  %v16611_v5 = vld [vmem:[#allocation2 + $0xa4] sm:$0x3] }
 0x262   :  { %v16591_v63 = vcombine.low %v6253_v0, %v6271_v38  ;;  %v6288_v6 = vor.u32 %v6287_v52, %v6284_v4  ;;  %v6280_v48 = vrot.slane %v6279_v19, 4  ;;  %v6302_v42 = vrot.slane %v6300_v43, 5 }
 0x263   :  { %13066 = vmatmul.mubr.bf16.gmra.mrb[24].mxu0 %v16035_v12  ;;  %v6305_v21 = vrot.slane %v6303_v7, 6  ;;  %18497 = vst [vmem:[#allocation61_spill] sm:$0xff] %v16598_v23  ;;  %v14603_v12 = vld [vmem:[%s18343_s3 + $0x70] sm:$0xff]   ;;  %v6297_v18 = vor.u32 %v6296_v25, %v6293_v29  ;;  %v6519_v61 = vshrl.u32 %v16297_v27, 16  ;;  %v6522_v62 = vshll.u32 %v16297_v27, 16  ;;  %v14604_v25 = vld [vmem:[%s18343_s3 + $0x78] sm:$0xff]  }
 0x264   :  { %18496 = vst [vmem:[#allocation60_spill] sm:$0xff] %v16591_v63  ;;  %13069 = vmatprep.mubr.bf16.mxu0 %v16136_v51  ;;  %13082 = vmatpush3.bf16.msra.mxu0 %v14600_v20  ;;  %v6528_v51 = vshrl.u32 %v16588_v28, 16  ;;  %v6289_v43 = vsel %vm16408_vm9, %v6280_v48, %v6288_v6  ;;  %v6531_v32 = vshll.u32 %v16588_v28, 16  ;;  %v16614_v27 = vcombine.low %v16559_v35, %v6253_v0  ;;  %v18507_v23 = vld [vmem:[#allocation27_spill] sm:$0xff] }
 0x265   :  { %13083 = vmatprep.subr.bf16.mxu0 %v14601_v26  ;;  %v6306_v20 = vor.u32 %v6305_v21, %v6302_v42  ;;  %v6298_v4 = vrot.slane %v6297_v18, 4  ;;  %v6521_v52 = vrot.slane %v6519_v61, 5  ;;  %v6524_v29 = vrot.slane %v6522_v62, 6  ;;  %v16626_v18 = vld [vmem:[#allocation2 + $0x4c] sm:$0x3] }
 0x266   :  { %v6530_v9 = vrot.slane %v6528_v51, 5  ;;  %v6533_v19 = vrot.slane %v6531_v32, 6  ;;  %18498 = vst [vmem:[#allocation62_spill] sm:$0xff] %v16614_v27  ;;  %v16616_v7 = vcombine.low %v6271_v38, %v6289_v43  ;;  %v6537_v6 = vshrl.u32 %v16323_v49, 16  ;;  %v3553_v51 = vld [vmem:[#allocation2 + $0x88] sm:$0xf] }
 0x267   :  { %v6307_v48 = vsel %vm16408_vm9, %v6298_v4, %v6306_v20  ;;  %v6525_v42 = vor.u32 %v6524_v29, %v6521_v52  ;;  %v6540_v21 = vshll.u32 %v16323_v49, 16  ;;  %v6549_v61 = vshll.u32 %v16611_v5, 16  ;;  %v18502_v52 = vld [vmem:[#allocation9_spill] sm:$0xff] }
 0x268   :  { %13084 = vmatpush3.bf16.msra.mxu0 %v14601_v26  ;;  %18499 = vst [vmem:[#allocation63_spill] sm:$0xff] %v16616_v7  ;;  %v6546_v26 = vshrl.u32 %v16611_v5, 16  ;;  %v16628_v35 = vcombine.low %v6289_v43, %v6307_v48  ;;  %v6534_v0 = vor.u32 %v6533_v19, %v6530_v9  ;;  %v6539_v38 = vrot.slane %v6537_v6, 5  ;;  %v18505_v7 = vld [vmem:[#allocation21_spill] sm:$0xff] }
 0x269   :  { %13085 = vmatprep.subr.bf16.mxu0 %v14603_v12  ;;  %v18501_v62 = vcombine.low %v16105_v24, %v16114_v53  ;;  %v6526_v32 = vrot.slane %v6525_v42, 4  ;;  %v6542_v20 = vrot.slane %v6540_v21, 6  ;;  %v6751_v49 = vshrl.u32 %v16315_v3, 16  ;;  %v14605_v24 = vld [vmem:[%s18343_s3 + $0x180] sm:$0xff]   ;;  %v18503_v53 = vld [vmem:[#allocation40_spill] sm:$0xff] }
 0x26a   :  { %18500 = vst [vmem:[#allocation64_spill] sm:$0xff] %v16628_v35  ;;  %v6548_v4 = vrot.slane %v6546_v26, 5  ;;  %v6551_v29 = vrot.slane %v6549_v61, 6  ;;  %v6754_v43 = vshll.u32 %v16315_v3, 16  ;;  %v6760_v9 = vshrl.u32 %v16626_v18, 16  ;;  %v18506_v27 = vld [vmem:[#allocation25_spill] sm:$0xff] }
 0x26b   :  { %13070 = vmatmul.mubr.bf16.gmra.mrb[28].mxu0 %v18501_v62  ;;  %v6763_v19 = vshll.u32 %v16626_v18, 16  ;;  %v3742_v6 = vshll.u32 %v18503_v53, 16  ;;  %v6535_v42 = vsel %vm16408_vm9, %v6526_v32, %v6534_v0  ;;  %v6753_v21 = vrot.slane %v6751_v49, 5 }
 0x26c   :  { %13086 = vmatpush3.bf16.msra.mxu0 %v14603_v12  ;;  %13089 = vmatprep.mubr.bf16.mxu0 %v18502_v52  ;;  %v6543_v12 = vor.u32 %v6542_v20, %v6539_v38  ;;  %v3753_v26 = vshrl.u32 %v3553_v51, 16  ;;  %v16646_v61 = vcombine.low %v16501_v16, %v6535_v42  ;;  %v6756_v3 = vrot.slane %v6754_v43, 6  ;;  %v14606_v16 = vld [vmem:[%s18343_s3 + $0x188] sm:$0xff]   ;;  %v18510_v20 = vld [vmem:[#allocation24_spill] sm:$0xff] }
 0x26d   :  { %13087 = vmatprep.subr.bf16.mxu0 %v14604_v25  ;;  %v6762_v62 = vrot.slane %v6760_v9, 5  ;;  %v3756_v52 = vshll.u32 %v3553_v51, 16  ;;  %v6552_v15 = vor.u32 %v6551_v29, %v6548_v4  ;;  %v6765_v44 = vrot.slane %v6763_v19, 6  ;;  %v18511_v51 = vld [vmem:[#allocation23_spill] sm:$0xff]  ;;  %v18514_v43 = vld [vmem:[#allocation22_spill] sm:$0xff] }
 0x26e   :  { %18504 = vst [vmem:[#allocation9_spill] sm:$0xff] %v16646_v61  ;;  %v6544_v59 = vrot.slane %v6543_v12, 4  ;;  %v3689_v54 = vor.u32 %v18506_v27, %v18505_v7  ;;  %v3706_v45 = vshll.u32 %v18507_v23, 16  ;;  %v18509_v0 = vshrl.u32 %v18508_v41, 16  ;;  %v3557_v12 = vld [vmem:[#allocation2 + $0x98] sm:$0xf] }
 0x26f   :  { %v6757_v32 = vor.u32 %v6756_v3, %v6753_v21  ;;  %v18512_v49 = vor.u32 %v18510_v20, %v18511_v51  ;;  %v18515_v27 = vshrl.u32 %v18514_v43, 16  ;;  %v18517_v9 = vshll.u32 %v18514_v43, 16  ;;  %v18519_v20 = vld [vmem:[#allocation13_spill] sm:$0xff]  ;;  %v18521_v61 = vld [vmem:[#allocation16_spill] sm:$0xff] }
 0x270   :  { %13088 = vmatpush3.bf16.msra.mxu0 %v14604_v25  ;;  %v3713_v38 = vrot.slane %v18509_v0, 4  ;;  %v18513_v25 = vshll.u32 %v18508_v41, 16  ;;  %v16665_v23 = vsel %vm16408_vm9, %v6544_v59, %v6552_v15  ;;  %v6766_v0 = vor.u32 %v6765_v44, %v6762_v62  ;;  %v18522_v15 = vld [vmem:[#allocation14_spill] sm:$0xff]  ;;  %v18523_v59 = vld [vmem:[#allocation17_spill] sm:$0xff]  ;;  %v3555_v44 = vld [vmem:[#allocation2 + $0x90] sm:$0xf] }
 0x271   :  { %13105 = vmatprep.subr.bf16.mxu0 %v14605_v24  ;;  %v3704_v4 = vrot.slane %v18512_v49, 4  ;;  %v3727_v7 = vrot.slane %v18515_v27, 4  ;;  %18516 = vst [vmem:[#allocation40_spill] sm:$0xff] %v16665_v23  ;;  %v3730_v19 = vrot.slane %v18517_v9, 5  ;;  %v16670_v21 = vcombine.low %v6307_v48, %v16665_v23  ;;  %v14645_v43 = vld [vmem:[%s18343_s3 + $0x1c0] sm:$0xff]  }
 0x272   :  { %v3716_v29 = vrot.slane %v18513_v25, 5  ;;  %v6758_v3 = vrot.slane %v6757_v32, 4  ;;  %v18520_v41 = vshrl.u32 %v18503_v53, 16  ;;  %v3744_v49 = vrot.slane %v3742_v6, 5  ;;  %v18526_v53 = vld [vmem:[#allocation20_spill] sm:$0xff]  ;;  %v18527_v6 = vld [vmem:[#allocation19_spill] sm:$0xff] }
 0x273   :  { %18518 = vst [vmem:[#allocation21_spill] sm:$0xff] %v16670_v21  ;;  %13090 = vmatmul.mubr.bf16.vlgmr.msra.gmra.mrb[16].mxu0 %v18519_v20  ;;  %v3755_v25 = vrot.slane %v3753_v26, 4  ;;  %v3758_v27 = vrot.slane %v3756_v52, 5  ;;  %v16680_v9 = vsel %vm16053_vm3, %v18523_v59, %v18522_v15  ;;  %v3690_v48 = vrot.slane %v3689_v54, 4  ;;  %v18529_v54 = vld [vmem:[#allocation12_spill] sm:$0xff] }
 0x274   :  { %v3741_v51 = vrot.slane %v18520_v41, 4  ;;  %13093 = vmatprep.mubr.bf16.mxu0 %v18521_v61  ;;  %13106 = vmatpush3.bf16.msra.mxu0 %v14605_v24  ;;  %v3708_v32 = vrot.slane %v3706_v45, 5  ;;  %v16684_v62 = vsel %vm16408_vm9, %v6758_v3, %v6766_v0  ;;  %v16690_v26 = vsel %vm16053_vm3, %v18527_v6, %v18526_v53  ;;  %v14607_v24 = vld [vmem:[%s18343_s3 + $0x190] sm:$0xff]  }
 0x275   :  { %18525 = vst [vmem:[#allocation25_spill] sm:$0xff] %v16684_v62  ;;  %13107 = vmatprep.subr.bf16.mxu0 %v14606_v16  ;;  %v3781_v52 = vshrl.u32 %v3557_v12, 16  ;;  %v3784_v41 = vshll.u32 %v3557_v12, 16  ;;  %v16696_v45 = vcombine.low %v6535_v42, %v16684_v62  ;;  %v18530_v15 = vshll.u32 %v18529_v54, 16  ;;  %v18531_v54 = vld [vmem:[#allocation28_spill] sm:$0xff]  ;;  %v18532_v62 = vld [vmem:[#allocation29_spill] sm:$0xff] }
 0x276   :  { %v16702_v0 = vsel %vm16053_vm3, %v3704_v4, %v3708_v32  ;;  %v3717_v59 = vor.u32 %v3716_v29, %v3713_v38  ;;  %v3731_v23 = vor.u32 %v3730_v19, %v3727_v7  ;;  %v3745_v53 = vor.u32 %v3744_v49, %v3741_v51  ;;  %v3535_v4 = vld [vmem:[#allocation2 + $0x40] sm:$0xf]  ;;  %v14608_v38 = vld [vmem:[%s18343_s3 + $0x198] sm:$0xff]   ;;  %v18533_v29 = vld [vmem:[#allocation31_spill] sm:$0xff] }
 0x277   :  { %18528 = vst [vmem:[#allocation27_spill] sm:$0xff] %v16696_v45  ;;  %v3694_v3 = vrot.slane %v18530_v15, 5  ;;  %v3759_v6 = vor.u32 %v3758_v27, %v3755_v25  ;;  %v3767_v50 = vshrl.u32 %v3555_v44, 16  ;;  %v3770_v21 = vshll.u32 %v3555_v44, 16 }
 0x278   :  { %13108 = vmatpush3.bf16.msra.mxu0 %v14606_v16  ;;  %v16706_v12 = vcombine.low %v16680_v9, %v16690_v26  ;;  %v3720_v15 = vshll.u32 %v18531_v54, 16  ;;  %v3734_v45 = vshll.u32 %v18532_v62, 16  ;;  %v3748_v7 = vshll.u32 %v18533_v29, 16  ;;  %v18534_v16 = vld [vmem:[#allocation33_spill] sm:$0xff] }
 0x279   :  { %v3695_v42 = vsel %vm16053_vm3, %v3690_v48, %v3694_v3  ;;  %13109 = vmatprep.subr.bf16.mxu0 %v14607_v24  ;;  %v3762_v19 = vshll.u32 %v18534_v16, 16  ;;  %v3783_v51 = vrot.slane %v3781_v52, 4  ;;  %v3786_v49 = vrot.slane %v3784_v41, 5  ;;  %v14609_v52 = vld [vmem:[%s18343_s3 + $0x1a0] sm:$0xff]  }
 0x27a   :  { %v11127_v25 = vcombine.low %v3695_v42, %v16702_v0  ;;  %v3718_v27 = vrot.slane %v3717_v59, 4  ;;  %v3732_v48 = vrot.slane %v3731_v23, 4  ;;  %v3746_v32 = vrot.slane %v3745_v53, 4 }
 0x27b   :  { %13094 = vmatmul.mubr.bf16.gmra.mrb[20].mxu0 %v16706_v12  ;;  %v3760_v44 = vrot.slane %v3759_v6, 4  ;;  %v3769_v62 = vrot.slane %v3767_v50, 4  ;;  %v3772_v3 = vrot.slane %v3770_v21, 5  ;;  %v3722_v54 = vrot.slane %v3720_v15, 5  ;;  %v18535_v21 = vld [vmem:[#allocation35_spill] sm:$0xff]  ;;  %v18536_v15 = vld [vmem:[#allocation36_spill] sm:$0xff] }
 0x27c   :  { %13097 = vmatprep.mubr.bf16.mxu0 %v11127_v25  ;;  %13110 = vmatpush3.bf16.msra.mxu0 %v14607_v24  ;;  %v3736_v35 = vrot.slane %v3734_v45, 5  ;;  %v4005_v63 = vshrl.u32 %v3535_v4, 16  ;;  %v4008_v29 = vshll.u32 %v3535_v4, 16  ;;  %v3750_v41 = vrot.slane %v3748_v7, 5 }
 0x27d   :  { %13111 = vmatprep.subr.bf16.mxu0 %v14608_v38  ;;  %v3764_v59 = vrot.slane %v3762_v19, 5  ;;  %v3787_v23 = vor.u32 %v3786_v49, %v3783_v51  ;;  %v16724_v53 = vsel %vm16053_vm3, %v3718_v27, %v3722_v54  ;;  %v3776_v24 = vshll.u32 %v18535_v21, 16  ;;  %v14610_v19 = vld [vmem:[%s18343_s3 + $0x1a8] sm:$0xff]  }
 0x27e   :  { %v16728_v50 = vsel %vm16053_vm3, %v3732_v48, %v3736_v35  ;;  %v16733_v45 = vsel %vm16053_vm3, %v3746_v32, %v3750_v41  ;;  %v3773_v42 = vor.u32 %v3772_v3, %v3769_v62  ;;  %v3790_v4 = vshll.u32 %v18536_v15, 16  ;;  %v18537_v27 = vld [vmem:[#allocation42_spill] sm:$0xff]  ;;  %v14611_v3 = vld [vmem:[%s18343_s3 + $0x1b0] sm:$0xff]  }
 0x27f   :  { %v16737_v6 = vsel %vm16053_vm3, %v3760_v44, %v3764_v59  ;;  %v4007_v7 = vrot.slane %v4005_v63, 4  ;;  %v4010_v16 = vrot.slane %v4008_v29, 5  ;;  %v16742_v35 = vcombine.low %v16724_v53, %v16728_v50  ;;  %v16754_v44 = vld [vmem:[#allocation2 + $0xa0] sm:$0xf]  ;;  %v18539_v29 = vld [vmem:[#allocation7_spill] sm:$0xff] }
 0x280   :  { %13112 = vmatpush3.bf16.msra.mxu0 %v14608_v38  ;;  %v3788_v51 = vrot.slane %v3787_v23, 4  ;;  %v16749_v49 = vcombine.low %v16733_v45, %v16737_v6  ;;  %v3774_v25 = vrot.slane %v3773_v42, 4  ;;  %v3778_v38 = vrot.slane %v3776_v24, 5  ;;  %v18538_v54 = vld [vmem:[#allocation10_spill] sm:$0xff]  ;;  %v7417_v59 = vld [vmem:[#allocation2 + $0x38] sm:$0xc] }
 0x281   :  { %13113 = vmatprep.subr.bf16.mxu0 %v14609_v52  ;;  %v3792_v63 = vrot.slane %v3790_v4, 5  ;;  %v4014_v48 = vshll.u32 %v18537_v27, 16  ;;  %v4011_v32 = vor.u32 %v4010_v16, %v4007_v7  ;;  %v11155_v41 = vcombine.low %v18539_v29, %v18538_v54  ;;  %v7422_v23 = vld [vmem:[#allocation2 + $0x60] sm:$0xc]  ;;  %v18540_v21 = vld [vmem:[#allocation15_spill] sm:$0xff]  ;;  %v18541_v24 = vld [vmem:[#allocation8_spill] sm:$0xff] }
 0x282   :  { %v18542_v42 = vld [vmem:[#allocation11_spill] sm:$0xff]  ;;  %v7424_v7 = vld [vmem:[#allocation2 + $0x70] sm:$0xc]  ;;  %v16775_v16 = vsel %vm16053_vm3, %v3774_v25, %v3778_v38  ;;  %v7425_v54 = vld [vmem:[#allocation2 + $0x78] sm:$0xc]  ;;  %v7503_v25 = vrot.slane %v16471_v40, 6 }
 0x283   :  { %13098 = vmatmul.mubr.bf16.gmra.mrb[24].mxu0 %v16742_v35  ;;  %v16758_v62 = vsel %vm16053_vm3, %v3788_v51, %v3792_v63  ;;  %v16771_v15 = vcombine.low %v18542_v42, %v16680_v9  ;;  %v7423_v4 = vld [vmem:[#allocation2 + $0x68] sm:$0xc]  ;;  %v4016_v51 = vrot.slane %v4014_v48, 5  ;;  %v14612_v9 = vld [vmem:[%s18343_s3 + $0x1b8] sm:$0xff]   ;;  %v7426_v38 = vld [vmem:[#allocation2 + $0x80] sm:$0xc] }
 0x284   :  { %13101 = vmatprep.mubr.bf16.mxu0 %v16749_v49  ;;  %13114 = vmatpush3.bf16.msra.mxu0 %v14609_v52  ;;  %v16767_v52 = vcombine.low %v18541_v24, %v18540_v21  ;;  %v16781_v29 = vcombine.low %v16775_v16, %v16758_v62  ;;  %v4012_v21 = vrot.slane %v4011_v32, 4  ;;  %v11565_v24 = vrot.slane %v7422_v23, 10  ;;  %v14729_v48 = vld [vmem:[%s18343_s3 + $0x260] sm:$0xff]  }
 0x285   :  { %13115 = vmatprep.subr.bf16.mxu0 %v14610_v19  ;;  %v11566_v42 = vrot.slane %v7423_v4, 10  ;;  %v7507_v27 = vrot.slane %v16482_v2, 6  ;;  %v11567_v63 = vrot.slane %v7424_v7, 10  ;;  %v7499_v1 = vrot.slane %v16456_v55, 6  ;;  %v7429_v55 = vld [vmem:[#allocation2 + $0x98] sm:$0xc] }
 0x286   :  { %v16797_v32 = vsel %vm16789_vm12, %v11565_v24, %v7503_v25  ;;  %v7511_v40 = vrot.slane %v16497_v34, 6  ;;  %v11568_v23 = vrot.slane %v7425_v54, 10  ;;  %v7515_v2 = vrot.slane %v16511_v11, 6  ;;  %v14613_v11 = vld [vmem:[%s18343_s3 + $0x2c0] sm:$0xff]   ;;  %v7420_v24 = vld [vmem:[#allocation2 + $0x50] sm:$0xc] }
 0x287   :  { %v11569_v4 = vrot.slane %v7426_v38, 10  ;;  %v7519_v7 = vrot.slane %v16533_v46, 6  ;;  %v11570_v54 = vrot.slane %v7427_v33, 10  ;;  %v7523_v25 = vrot.slane %v16538_v8, 6  ;;  %v7418_v38 = vld [vmem:[#allocation2 + $0x40] sm:$0xc] }
 0x288   :  { %13116 = vmatpush3.bf16.msra.mxu0 %v14610_v19  ;;  %v11564_v19 = vrot.slane %v7417_v59, 10  ;;  %v16803_v59 = vsel %vm16789_vm12, %v11566_v42, %v7507_v27  ;;  %v16811_v34 = vsel %vm16789_vm12, %v11567_v63, %v7511_v40  ;;  %v7516_v46 = vsel %vm16789_vm12, %v11568_v23, %v7515_v2  ;;  %v7430_v40 = vld [vmem:[#allocation2 + $0xa0] sm:$0xc]  ;;  %v16832_v2 = vld [vmem:[#allocation2 + $0xac] sm:$0x3] }
 0x289   :  { %13117 = vmatprep.subr.bf16.mxu0 %v14611_v3  ;;  %18545 = vst [vmem:[#allocation18_spill] sm:$0xff] %v16811_v34  ;;  %v7527_v27 = vrot.slane %v16562_v58, 6  ;;  %v16823_v63 = vcombine.low %v16811_v34, %v7516_v46  ;;  %v7524_v8 = vsel %vm16789_vm12, %v11570_v54, %v7523_v25  ;;  %v11572_v33 = vrot.slane %v7429_v55, 10  ;;  %v7419_v55 = vld [vmem:[#allocation2 + $0x48] sm:$0xc] }
 0x28a   :  { %v7531_v42 = vrot.slane %v16573_v37, 6  ;;  %v16830_v23 = vsel %vm16053_vm3, %v4012_v21, %v4016_v51  ;;  %v16836_v58 = vsel %vm16789_vm12, %v11564_v19, %v7499_v1  ;;  %v11605_v54 = vrot.slane %v7418_v38, 10  ;;  %v7431_v25 = vld [vmem:[#allocation2 + $0xa8] sm:$0xc]  ;;  %v6004_v19 = vld [vmem:[#allocation2 + $0x5c] sm:$0x3] }
 0x28b   :  { %13102 = vmatmul.mubr.bf16.gmra.mrb[28].mxu0 %v16781_v29  ;;  %18546 = vst [vmem:[#allocation24_spill] sm:$0xff] %v16823_v63  ;;  %v7749_v51 = vrot.slane %v16588_v28, 6  ;;  %v14614_v1 = vld [vmem:[%s18343_s3 + $0x2c8] sm:$0xff]   ;;  %v11606_v38 = vrot.slane %v7430_v40, 10  ;;  %v6015_v28 = vld [vmem:[#allocation2 + $0xb4] sm:$0x3] }
 0x28c   :  { %13118 = vmatpush3.bf16.msra.mxu0 %v14611_v3  ;;  %13121 = vmatprep.mubr.bf16.mxu0 %v11155_v41  ;;  %v7520_v3 = vsel %vm16789_vm12, %v11569_v4, %v7519_v7  ;;  %v11571_v41 = vrot.slane %v7428_v36, 10  ;;  %v6003_v36 = vld [vmem:[#allocation2 + $0x54] sm:$0x3]  ;;  %v7532_v37 = vsel %vm16789_vm12, %v11572_v33, %v7531_v42  ;;  %v7432_v33 = vld [vmem:[#allocation2 + $0xb0] sm:$0xc]  ;;  %v7753_v21 = vrot.slane %v16611_v5, 6 }
 0x28d   :  { %13119 = vmatprep.subr.bf16.mxu0 %v14612_v9  ;;  %v16838_v4 = vcombine.low %v7520_v3, %v7524_v8  ;;  %v7750_v42 = vsel %vm16789_vm12, %v11605_v54, %v7749_v51  ;;  %v11639_v34 = vrot.slane %v7419_v55, 10  ;;  %v7421_v40 = vld [vmem:[#allocation2 + $0x58] sm:$0xc]  ;;  %v8153_v55 = vrot.slane %v6003_v36, 6 }
 0x28e   :  { %v7528_v7 = vsel %vm16789_vm12, %v11571_v41, %v7527_v27  ;;  %v16862_v63 = vcombine.low %v16836_v58, %v7750_v42  ;;  %v7754_v5 = vsel %vm16789_vm12, %v11606_v38, %v7753_v21  ;;  %v11668_v54 = vrot.slane %v7432_v33, 10  ;;  %v7433_v51 = vld [vmem:[#allocation2 + $0xb8] sm:$0xc] }
 0x28f   :  { %18547 = vst [vmem:[#allocation23_spill] sm:$0xff] %v16838_v4  ;;  %v16850_v41 = vcombine.low %v7528_v7, %v7532_v37  ;;  %v16854_v27 = vcombine.low %v7524_v8, %v7528_v7  ;;  %v7957_v4 = vrot.slane %v16626_v18, 6  ;;  %v11667_v8 = vrot.slane %v7420_v24, 10  ;;  %v6016_v7 = vld [vmem:[#allocation2 + $0xbc] sm:$0x3]  ;;  %v14615_v24 = vld [vmem:[%s18343_s3 + $0x2d0] sm:$0xff]  }
 0x290   :  { %13120 = vmatpush3.bf16.msra.mxu0 %v14612_v9  ;;  %v16852_v9 = vcombine.low %v7516_v46, %v7520_v3  ;;  %v11640_v46 = vrot.slane %v7431_v25, 10  ;;  %v7961_v3 = vrot.slane %v16832_v2, 6  ;;  %v16875_v25 = vcombine.low %v7532_v37, %v7754_v5 }
 0x291   :  { %13137 = vmatprep.subr.bf16.mxu0 %v14613_v11  ;;  %v16870_v18 = vsel %vm16789_vm12, %v11639_v34, %v7957_v4  ;;  %v8157_v38 = vrot.slane %v6015_v28, 6  ;;  %v16889_v36 = vsel %vm16789_vm12, %v11667_v8, %v8153_v55  ;;  %v11695_v4 = vrot.slane %v7421_v40, 10  ;;  %v14616_v8 = vld [vmem:[%s18343_s3 + $0x2d8] sm:$0xff]  }
 0x292   :  { %v16882_v21 = vsel %vm16789_vm12, %v11640_v46, %v7961_v3  ;;  %v8349_v33 = vrot.slane %v6004_v19, 6  ;;  %v11685_v37 = vcombine.low %v16870_v18, %v16889_v36  ;;  %v8353_v46 = vrot.slane %v6016_v7, 6 }
 0x293   :  { %13122 = vmatmul.mubr.bf16.vlgmr.msra.gmra.mrb[16].mxu0 %v16767_v52  ;;  %v16885_v34 = vcombine.low %v7754_v5, %v16882_v21  ;;  %v16905_v19 = vcombine.low %v16690_v26, %v16830_v23  ;;  %v11159_v7 = vcombine.low %v16702_v0, %v16724_v53  ;;  %v18549_v5 = vshrl.u32 %v16754_v44, 16  ;;  %v14903_v0 = vld [vmem:[#allocation2 + $0xa4] sm:$0x1] }
 0x294   :  { %13125 = vmatprep.mubr.bf16.mxu0 %v16771_v15  ;;  %13138 = vmatpush3.bf16.msra.mxu0 %v14613_v11  ;;  %v16878_v11 = vcombine.low %v7750_v42, %v16870_v18  ;;  %v16895_v42 = vsel %vm16789_vm12, %v11668_v54, %v8157_v38  ;;  %v16901_v3 = vsel %vm16789_vm12, %v11695_v4, %v8349_v33  ;;  %v18550_v26 = vshll.u32 %v16754_v44, 16  ;;  %v14618_v4 = vld [vmem:[%s18343_s3 + $0x2e8] sm:$0xff]   ;;  %v14756_v18 = vld [vmem:[%s18343_s3 + $0x638] sm:$0xff]  }
 0x295   :  { %13139 = vmatprep.subr.bf16.mxu0 %v14614_v1  ;;  %v11686_v28 = vcombine.low %v16882_v21, %v16895_v42  ;;  %v11713_v40 = vcombine.low %v16889_v36, %v16901_v3  ;;  %v4021_v55 = vrot.slane %v18549_v5, 4  ;;  %v4028_v53 = vshll.u32 %v14903_v0, 16  ;;  %v14622_v0 = vld [vmem:[%s18343_s3 + $0x408] sm:$0xff]   ;;  %v14764_v21 = vld [vmem:[%s18345_s5 + $0x78] sm:$0xff]  }
 0x296   :  { %18548 = vst [vmem:[#allocation22_spill] sm:$0xff] %v16878_v11  ;;  %v11696_v11 = vrot.slane %v7433_v51, 10  ;;  %v4024_v54 = vrot.slane %v18550_v26, 5  ;;  %v16930_v44 = vcombine.low %v16728_v50, %v16733_v45  ;;  %v14619_v50 = vld [vmem:[%s18343_s3 + $0x2f0] sm:$0xff]  }
 0x298   :  { %13140 = vmatpush3.bf16.msra.mxu0 %v14614_v1  ;;  %v16914_v1 = vsel %vm16789_vm12, %v11696_v11, %v8353_v46  ;;  %v14617_v11 = vld [vmem:[%s18343_s3 + $0x2e0] sm:$0xff]   ;;  %v4025_v38 = vor.u32 %v4024_v54, %v4021_v55  ;;  %v3537_v46 = vld [vmem:[#allocation2 + $0x48] sm:$0xf] }
 0x299   :  { %13141 = vmatprep.subr.bf16.mxu0 %v14615_v24  ;;  %v11714_v51 = vcombine.low %v16895_v42, %v16914_v1  ;;  %v4232_v5 = vshll.u32 %v3537_v46, 16  ;;  %v14621_v54 = vld [vmem:[%s18343_s3 + $0x400] sm:$0xff]  }
 0x29a   :  { %v4026_v33 = vrot.slane %v4025_v38, 4 }
 0x29b   :  { %13126 = vmatmul.mubr.bf16.gmra.mrb[20].mxu0 %v16905_v19  ;;  %v4234_v26 = vrot.slane %v4232_v5, 5  ;;  %v14624_v5 = vld [vmem:[%s18343_s3 + $0x418] sm:$0xff]  }
 0x29c   :  { %13129 = vmatprep.mubr.bf16.mxu0 %v11159_v7  ;;  %13142 = vmatpush3.bf16.msra.mxu0 %v14615_v24  ;;  %v16937_v24 = vcombine.low %v16737_v6, %v16775_v16  ;;  %v4229_v7 = vshrl.u32 %v3537_v46, 16  ;;  %v14620_v16 = vld [vmem:[%s18343_s3 + $0x2f8] sm:$0xff]  }
 0x29d   :  { %13143 = vmatprep.subr.bf16.mxu0 %v14616_v8 }
 0x29e   :  { %v4231_v55 = vrot.slane %v4229_v7, 4 }
 0x2a0   :  { %13144 = vmatpush3.bf16.msra.mxu0 %v14616_v8  ;;  %v4030_v8 = vrot.slane %v4028_v53, 5 }
 0x2a1   :  { %13145 = vmatprep.subr.bf16.mxu0 %v14617_v11 }
 0x2a2   :  { %v4031_v45 = vsel %vm16053_vm3, %v4026_v33, %v4030_v8  ;;  %v14623_v33 = vld [vmem:[%s18343_s3 + $0x410] sm:$0xff]  }
 0x2a3   :  { %13130 = vmatmul.mubr.bf16.gmra.mrb[24].mxu0 %v16930_v44  ;;  %v16947_v6 = vcombine.low %v16758_v62, %v4031_v45  ;;  %v14904_v62 = vld [vmem:[#allocation2 + $0x4c] sm:$0x1] }
 0x2a4   :  { %13133 = vmatprep.mubr.bf16.mxu0 %v16937_v24  ;;  %13146 = vmatpush3.bf16.msra.mxu0 %v14617_v11  ;;  %v4235_v11 = vor.u32 %v4234_v26, %v4231_v55  ;;  %v4238_v38 = vshll.u32 %v14904_v62, 16  ;;  %v14625_v26 = vld [vmem:[%s18343_s3 + $0x420] sm:$0xff]   ;;  %v14626_v62 = vld [vmem:[%s18343_s3 + $0x428] sm:$0xff]  }
 0x2a5   :  { %13147 = vmatprep.subr.bf16.mxu0 %v14618_v4 }
 0x2a6   :  { %v4236_v53 = vrot.slane %v4235_v11, 4 }
 0x2a8   :  { %13148 = vmatpush3.bf16.msra.mxu0 %v14618_v4  ;;  %v3561_v4 = vld [vmem:[#allocation2 + $0xa8] sm:$0xf] }
 0x2a9   :  { %13149 = vmatprep.subr.bf16.mxu0 %v14619_v50  ;;  %v4243_v8 = vshrl.u32 %v3561_v4, 16 }
 0x2ab   :  { %13134 = vmatmul.mubr.bf16.gmra.mrb[28].mxu0 %v16947_v6 }
 0x2ac   :  { %13150 = vmatpush3.bf16.msra.mxu0 %v14619_v50  ;;  %13153 = vmatprep.mubr.bf16.mxu0 %v18519_v20  ;;  %v4240_v20 = vrot.slane %v4238_v38, 5  ;;  %v4246_v50 = vshll.u32 %v3561_v4, 16 }
 0x2ad   :  { %13151 = vmatprep.subr.bf16.mxu0 %v14620_v16 }
 0x2ae   :  { %v16967_v46 = vsel %vm16053_vm3, %v4236_v53, %v4240_v20  ;;  %v4248_v55 = vrot.slane %v4246_v50, 5  ;;  %v14627_v53 = vld [vmem:[%s18343_s3 + $0x430] sm:$0xff]   ;;  %v14628_v50 = vld [vmem:[%s18343_s3 + $0x438] sm:$0xff]  }
 0x2af   :  { %v16971_v7 = vcombine.low %v16830_v23, %v16967_v46  ;;  %v14905_v23 = vld [vmem:[#allocation2 + $0xac] sm:$0x1] }
 0x2b0   :  { %13152 = vmatpush3.bf16.msra.mxu0 %v14620_v16  ;;  %v4245_v16 = vrot.slane %v4243_v8, 4  ;;  %v4252_v11 = vshll.u32 %v14905_v23, 16  ;;  %v14630_v23 = vld [vmem:[%s18343_s3 + $0x548] sm:$0xff]  }
 0x2b1   :  { %13169 = vmatprep.subr.bf16.mxu0 %v14621_v54 }
 0x2b3   :  { %13154 = vmatmul.mubr.bf16.vlgmr.msra.gmra.mrb[16].mxu0 %v18521_v61 }
 0x2b4   :  { %13157 = vmatprep.mubr.bf16.mxu0 %v16706_v12  ;;  %13170 = vmatpush3.bf16.msra.mxu0 %v14621_v54  ;;  %v4249_v54 = vor.u32 %v4248_v55, %v4245_v16  ;;  %v14629_v55 = vld [vmem:[%s18343_s3 + $0x540] sm:$0xff]  }
 0x2b5   :  { %13171 = vmatprep.subr.bf16.mxu0 %v14622_v0 }
 0x2b6   :  { %v4250_v38 = vrot.slane %v4249_v54, 4 }
 0x2b8   :  { %13172 = vmatpush3.bf16.msra.mxu0 %v14622_v0  ;;  %v3539_v0 = vld [vmem:[#allocation2 + $0x50] sm:$0xf] }
 0x2b9   :  { %13173 = vmatprep.subr.bf16.mxu0 %v14623_v33  ;;  %v4441_v20 = vshrl.u32 %v3539_v0, 16 }
 0x2bb   :  { %13158 = vmatmul.mubr.bf16.gmra.mrb[20].mxu0 %v16971_v7 }
 0x2bc   :  { %13161 = vmatprep.mubr.bf16.mxu0 %v16742_v35  ;;  %13174 = vmatpush3.bf16.msra.mxu0 %v14623_v33  ;;  %v4254_v35 = vrot.slane %v4252_v11, 5  ;;  %v4444_v33 = vshll.u32 %v3539_v0, 16 }
 0x2bd   :  { %13175 = vmatprep.subr.bf16.mxu0 %v14624_v5 }
 0x2be   :  { %v16991_v4 = vsel %vm16053_vm3, %v4250_v38, %v4254_v35  ;;  %v4446_v16 = vrot.slane %v4444_v33, 5  ;;  %v3563_v38 = vld [vmem:[#allocation2 + $0xb0] sm:$0xf] }
 0x2bf   :  { %v16994_v8 = vcombine.low %v4031_v45, %v16991_v4  ;;  %v14906_v45 = vld [vmem:[#allocation2 + $0x54] sm:$0x1]  ;;  %v4455_v35 = vshrl.u32 %v3563_v38, 16 }
 0x2c0   :  { %13176 = vmatpush3.bf16.msra.mxu0 %v14624_v5  ;;  %v4443_v5 = vrot.slane %v4441_v20, 4  ;;  %v4450_v54 = vshll.u32 %v14906_v45, 16  ;;  %v3541_v45 = vld [vmem:[#allocation2 + $0x58] sm:$0xf] }
 0x2c1   :  { %13177 = vmatprep.subr.bf16.mxu0 %v14625_v26 }
 0x2c3   :  { %13162 = vmatmul.mubr.bf16.gmra.mrb[24].mxu0 %v16749_v49 }
 0x2c4   :  { %13165 = vmatprep.mubr.bf16.mxu0 %v16781_v29  ;;  %13178 = vmatpush3.bf16.msra.mxu0 %v14625_v26  ;;  %v4447_v26 = vor.u32 %v4446_v16, %v4443_v5  ;;  %v14907_v16 = vld [vmem:[#allocation2 + $0xb4] sm:$0x1] }
 0x2c5   :  { %13179 = vmatprep.subr.bf16.mxu0 %v14626_v62 }
 0x2c6   :  { %v4448_v11 = vrot.slane %v4447_v26, 4 }
 0x2c8   :  { %13180 = vmatpush3.bf16.msra.mxu0 %v14626_v62  ;;  %v4452_v62 = vrot.slane %v4450_v54, 5  ;;  %v14635_v54 = vld [vmem:[%s18343_s3 + $0x570] sm:$0xff]  }
 0x2c9   :  { %13181 = vmatprep.subr.bf16.mxu0 %v14627_v53 }
 0x2ca   :  { %v4453_v0 = vsel %vm16053_vm3, %v4448_v11, %v4452_v62  ;;  %v4653_v11 = vshrl.u32 %v3541_v45, 16  ;;  %v4656_v62 = vshll.u32 %v3541_v45, 16  ;;  %v14641_v45 = vld [vmem:[%s18343_s3 + $0xa0] sm:$0xff]  }
 0x2cb   :  { %13166 = vmatmul.mubr.bf16.gmra.mrb[28].mxu0 %v16994_v8  ;;  %v11213_v20 = vcombine.low %v16967_v46, %v4453_v0  ;;  %v4464_v46 = vshll.u32 %v14907_v16, 16 }
 0x2cc   :  { %13182 = vmatpush3.bf16.msra.mxu0 %v14627_v53  ;;  %13185 = vmatprep.mubr.bf16.mxu0 %v16767_v52  ;;  %v14631_v52 = vld [vmem:[%s18343_s3 + $0x550] sm:$0xff]   ;;  %v4458_v53 = vshll.u32 %v3563_v38, 16  ;;  %v4655_v38 = vrot.slane %v4653_v11, 4  ;;  %v14642_v11 = vld [vmem:[%s18343_s3 + $0xa8] sm:$0xff]  }
 0x2cd   :  { %13183 = vmatprep.subr.bf16.mxu0 %v14628_v50 }
 0x2ce   :  { %v4460_v33 = vrot.slane %v4458_v53, 5 }
 0x2d0   :  { %13184 = vmatpush3.bf16.msra.mxu0 %v14628_v50  ;;  %v14633_v50 = vld [vmem:[%s18343_s3 + $0x560] sm:$0xff]  }
 0x2d1   :  { %13201 = vmatprep.subr.bf16.mxu0 %v14629_v55 }
 0x2d3   :  { %13186 = vmatmul.mubr.bf16.vlgmr.msra.gmra.mrb[16].mxu0 %v16771_v15  ;;  %v14632_v15 = vld [vmem:[%s18343_s3 + $0x558] sm:$0xff]  }
 0x2d4   :  { %13189 = vmatprep.mubr.bf16.mxu0 %v16905_v19  ;;  %13202 = vmatpush3.bf16.msra.mxu0 %v14629_v55  ;;  %v4457_v19 = vrot.slane %v4455_v35, 4  ;;  %v14634_v55 = vld [vmem:[%s18343_s3 + $0x568] sm:$0xff]   ;;  %v14637_v35 = vld [vmem:[%s18343_s3 + $0x80] sm:$0xff]  }
 0x2d5   :  { %13203 = vmatprep.subr.bf16.mxu0 %v14630_v23 }
 0x2d6   :  { %v4461_v5 = vor.u32 %v4460_v33, %v4457_v19  ;;  %v3565_v33 = vld [vmem:[#allocation2 + $0xb8] sm:$0xf] }
 0x2d7   :  { %v4667_v16 = vshrl.u32 %v3565_v33, 16 }
 0x2d8   :  { %13204 = vmatpush3.bf16.msra.mxu0 %v14630_v23  ;;  %v4462_v26 = vrot.slane %v4461_v5, 4 }
 0x2d9   :  { %13205 = vmatprep.subr.bf16.mxu0 %v14631_v52 }
 0x2db   :  { %13190 = vmatmul.mubr.bf16.gmra.mrb[20].mxu0 %v11213_v20  ;;  %v14908_v20 = vld [vmem:[#allocation2 + $0x5c] sm:$0x1] }
 0x2dc   :  { %13193 = vmatprep.mubr.bf16.mxu0 %v16930_v44  ;;  %13206 = vmatpush3.bf16.msra.mxu0 %v14631_v52  ;;  %v4466_v44 = vrot.slane %v4464_v46, 5  ;;  %v4658_v52 = vrot.slane %v4656_v62, 5  ;;  %v4670_v46 = vshll.u32 %v3565_v33, 16 }
 0x2dd   :  { %13207 = vmatprep.subr.bf16.mxu0 %v14632_v15 }
 0x2de   :  { %v17032_v23 = vsel %vm16053_vm3, %v4462_v26, %v4466_v44  ;;  %v4659_v53 = vor.u32 %v4658_v52, %v4655_v38  ;;  %v4672_v26 = vrot.slane %v4670_v46, 5  ;;  %v14648_v46 = vld [vmem:[%s18343_s3 + $0x1d8] sm:$0xff]  }
 0x2e0   :  { %13208 = vmatpush3.bf16.msra.mxu0 %v14632_v15  ;;  %v14638_v15 = vld [vmem:[%s18343_s3 + $0x88] sm:$0xff]   ;;  %v4660_v19 = vrot.slane %v4659_v53, 4  ;;  %v14912_v53 = vld [vmem:[#allocation2 + $0x4] sm:$0x1] }
 0x2e1   :  { %13209 = vmatprep.subr.bf16.mxu0 %v14633_v50 }
 0x2e3   :  { %13194 = vmatmul.mubr.bf16.gmra.mrb[24].mxu0 %v16937_v24  ;;  %v11214_v24 = vcombine.low %v16991_v4, %v17032_v23  ;;  %v4662_v4 = vshll.u32 %v14908_v20, 16  ;;  %v4925_v20 = vrot.slane %v14912_v53, 5  ;;  %v18562_v53 = vld [vmem:[#allocation44_spill] sm:$0xff] }
 0x2e4   :  { %13197 = vmatprep.mubr.bf16.mxu0 %v16947_v6  ;;  %13210 = vmatpush3.bf16.msra.mxu0 %v14633_v50  ;;  %v14636_v6 = vld [vmem:[%s18343_s3 + $0x578] sm:$0xff]   ;;  %v14639_v50 = vld [vmem:[%s18343_s3 + $0x90] sm:$0xff]  }
 0x2e5   :  { %13211 = vmatprep.subr.bf16.mxu0 %v14634_v55 }
 0x2e8   :  { %13212 = vmatpush3.bf16.msra.mxu0 %v14634_v55 }
 0x2e9   :  { %13213 = vmatprep.subr.bf16.mxu0 %v14635_v54 }
 0x2eb   :  { %13198 = vmatmul.mubr.bf16.gmra.mrb[28].mxu0 %v11214_v24  ;;  %v14910_v24 = vld [vmem:[#allocation2] sm:$0xe] }
 0x2ec   :  { %13214 = vmatpush3.bf16.msra.mxu0 %v14635_v54  ;;  %13217 = vmatprep.mubr.bf16.mxu0 %v18521_v61  ;;  %v4664_v61 = vrot.slane %v4662_v4, 5  ;;  %v14909_v54 = vld [vmem:[#allocation2 + $0xbc] sm:$0x1]  ;;  %v14913_v4 = vld [vmem:[#allocation2 + $0xc] sm:$0x1] }
 0x2ed   :  { %13215 = vmatprep.subr.bf16.mxu0 %v14636_v6 }
 0x2ee   :  { %v4665_v5 = vsel %vm16053_vm3, %v4660_v19, %v4664_v61  ;;  %v14644_v61 = vld [vmem:[%s18343_s3 + $0xb8] sm:$0xff]  }
 0x2ef   :  { %v11239_v55 = vcombine.low %v4453_v0, %v4665_v5  ;;  %v4676_v0 = vshll.u32 %v14909_v54, 16  ;;  %v18552_v5 = vld [vmem:[#allocation34_spill] sm:$0xff]  ;;  %v18557_v54 = vld [vmem:[#allocation43_spill] sm:$0xff] }
 0x2f0   :  { %13216 = vmatpush3.bf16.msra.mxu0 %v14636_v6  ;;  %v14911_v6 = vld [vmem:[#allocation2 + $0x8] sm:$0xe] }
 0x2f1   :  { %13233 = vmatprep.subr.bf16.mxu0 %v14637_v35  ;;  %v11250_v38 = vrot.slane %v14911_v6, 9  ;;  %v4678_v52 = vrot.slane %v4676_v0, 5  ;;  %v18558_v0 = vld [vmem:[#allocation45_spill] sm:$0xff]  ;;  %v18560_v6 = vld [vmem:[#allocation46_spill] sm:$0xff] }
 0x2f3   :  { %13218 = vmatmul.mubr.bf16.vlgmr.msra.gmra.mrb[16].mxu0 %v16706_v12  ;;  %v14640_v12 = vld [vmem:[%s18343_s3 + $0x98] sm:$0xff]  }
 0x2f4   :  { %13221 = vmatprep.mubr.bf16.mxu0 %v16971_v7  ;;  %13234 = vmatpush3.bf16.msra.mxu0 %v14637_v35  ;;  %v4669_v7 = vrot.slane %v4667_v16, 4  ;;  %v14643_v35 = vld [vmem:[%s18343_s3 + $0xb0] sm:$0xff]  }
 0x2f5   :  { %13235 = vmatprep.subr.bf16.mxu0 %v14638_v15  ;;  %v14647_v16 = vld [vmem:[%s18343_s3 + $0x1d0] sm:$0xff]  }
 0x2f6   :  { %v4673_v44 = vor.u32 %v4672_v26, %v4669_v7  ;;  %v18555_v7 = vld [vmem:[#allocation39_spill] sm:$0xff] }
 0x2f8   :  { %13236 = vmatpush3.bf16.msra.mxu0 %v14638_v15  ;;  %v4674_v62 = vrot.slane %v4673_v44, 4  ;;  %v4929_v15 = vrot.slane %v14913_v4, 5  ;;  %v14650_v44 = vld [vmem:[%s18343_s3 + $0x1e8] sm:$0xff]   ;;  %v14656_v4 = vld [vmem:[%s18343_s3 + $0x318] sm:$0xff]  }
 0x2f9   :  { %13237 = vmatprep.subr.bf16.mxu0 %v14639_v50 }
 0x2fb   :  { %13222 = vmatmul.mubr.bf16.gmra.mrb[20].mxu0 %v11239_v55  ;;  %v18553_v55 = vld [vmem:[#allocation37_spill] sm:$0xff] }
 0x2fc   :  { %13225 = vmatprep.mubr.bf16.mxu0 %v16749_v49  ;;  %13238 = vmatpush3.bf16.msra.mxu0 %v14639_v50  ;;  %v11249_v49 = vrot.slane %v14910_v24, 9  ;;  %v18559_v24 = vld [vmem:[#allocation26_spill] sm:$0xff] }
 0x2fd   :  { %13239 = vmatprep.subr.bf16.mxu0 %v14640_v12 }
 0x2fe   :  { %v4926_v19 = vsel %vm16189_vm6, %v11249_v49, %v4925_v20  ;;  %v14655_v20 = vld [vmem:[%s18343_s3 + $0x310] sm:$0xff]  }
 0x300   :  { %13240 = vmatpush3.bf16.msra.mxu0 %v14640_v12  ;;  %v18554_v12 = vld [vmem:[#allocation38_spill] sm:$0xff] }
 0x301   :  { %13241 = vmatprep.subr.bf16.mxu0 %v14641_v45  ;;  %v18556_v26 = vcombine.low %v18554_v12, %v18555_v7  ;;  %v14665_v12 = vld [vmem:[%s18343_s3 + $0x460] sm:$0xff]  }
 0x303   :  { %13226 = vmatmul.mubr.bf16.gmra.mrb[24].mxu0 %v16781_v29  ;;  %v4679_v29 = vsel %vm16053_vm3, %v4674_v62, %v4678_v52  ;;  %v14652_v62 = vld [vmem:[%s18343_s3 + $0x1f8] sm:$0xff]   ;;  %v14654_v52 = vld [vmem:[%s18343_s3 + $0x308] sm:$0xff]  }
 0x304   :  { %13229 = vmatprep.mubr.bf16.mxu0 %v16994_v8  ;;  %13242 = vmatpush3.bf16.msra.mxu0 %v14641_v45  ;;  %v4930_v8 = vsel %vm16189_vm6, %v11250_v38, %v4929_v15  ;;  %v11240_v33 = vcombine.low %v17032_v23, %v4679_v29  ;;  %v18551_v23 = vld [vmem:[#allocation30_spill] sm:$0xff]  ;;  %v18563_v15 = vld [vmem:[#allocation41_spill] sm:$0xff] }
 0x305   :  { %13243 = vmatprep.subr.bf16.mxu0 %v14642_v11  ;;  %v11281_v50 = vcombine.low %v4926_v19, %v4930_v8  ;;  %v14649_v45 = vld [vmem:[%s18343_s3 + $0x1e0] sm:$0xff]   ;;  %v11315_v49 = vcombine.low %v4930_v8, %v18559_v24  ;;  %v18564_v29 = vcombine.low %v18555_v7, %v18563_v15  ;;  %v14658_v8 = vld [vmem:[%s18343_s3 + $0x328] sm:$0xff]   ;;  %v18567_v24 = vcombine.low %v16357_v30, %v16371_v57  ;;  %v14675_v30 = vld [vmem:[%s18343_s3 + $0x5b0] sm:$0xff]  }
 0x306   :  { %v14653_v38 = vld [vmem:[%s18343_s3 + $0x300] sm:$0xff]   ;;  %v14666_v7 = vld [vmem:[%s18343_s3 + $0x468] sm:$0xff]  }
 0x307   :  { %v14657_v19 = vld [vmem:[%s18343_s3 + $0x320] sm:$0xff]   ;;  %v18571_v15 = vld [vmem:[#allocation51_spill] sm:$0xff] }
 0x308   :  { %13244 = vmatpush3.bf16.msra.mxu0 %v14642_v11  ;;  %v14651_v11 = vld [vmem:[%s18343_s3 + $0x1f0] sm:$0xff]  }
 0x309   :  { %13245 = vmatprep.subr.bf16.mxu0 %v14643_v35 }
 0x30b   :  { %13230 = vmatmul.mubr.bf16.gmra.mrb[28].mxu0 %v11240_v33  ;;  %v18565_v33 = vld [vmem:[#allocation47_spill] sm:$0xff] }
 0x30c   :  { %13246 = vmatpush3.bf16.msra.mxu0 %v14643_v35  ;;  %13249 = vmatprep.mubr.bf16.mxu0 %v11281_v50  ;;  %v18561_v35 = vld [vmem:[#allocation32_spill] sm:$0xff] }
 0x30d   :  { %13247 = vmatprep.subr.bf16.mxu0 %v14644_v61  ;;  %v14659_v50 = vld [vmem:[%s18343_s3 + $0x330] sm:$0xff]  }
 0x310   :  { %13248 = vmatpush3.bf16.msra.mxu0 %v14644_v61  ;;  %v18566_v61 = vld [vmem:[#allocation48_spill] sm:$0xff] }
 0x311   :  { %13265 = vmatprep.subr.bf16.mxu0 %v14645_v43 }
 0x313   :  { %13250 = vmatmul.mubr.bf16.vlgmr.msra.gmra.mrb[16].mxu0 %v18551_v23 }
 0x314   :  { %13253 = vmatprep.mubr.bf16.mxu0 %v18552_v5  ;;  %13266 = vmatpush3.bf16.msra.mxu0 %v14645_v43  ;;  %v14660_v43 = vld [vmem:[%s18343_s3 + $0x338] sm:$0xff]  }
 0x315   :  { %13267 = vmatprep.subr.bf16.mxu0 %v14646_v17 }
 0x318   :  { %13268 = vmatpush3.bf16.msra.mxu0 %v14646_v17  ;;  %v14661_v17 = vld [vmem:[%s18343_s3 + $0x440] sm:$0xff]  }
 0x319   :  { %13269 = vmatprep.subr.bf16.mxu0 %v14647_v16 }
 0x31b   :  { %13254 = vmatmul.mubr.bf16.gmra.mrb[20].mxu0 %v18553_v55 }
 0x31c   :  { %13257 = vmatprep.mubr.bf16.mxu0 %v18556_v26  ;;  %13270 = vmatpush3.bf16.msra.mxu0 %v14647_v16  ;;  %v14662_v16 = vld [vmem:[%s18343_s3 + $0x448] sm:$0xff]   ;;  %v14667_v26 = vld [vmem:[%s18343_s3 + $0x470] sm:$0xff]  }
 0x31d   :  { %13271 = vmatprep.subr.bf16.mxu0 %v14648_v46 }
 0x320   :  { %13272 = vmatpush3.bf16.msra.mxu0 %v14648_v46  ;;  %v14664_v46 = vld [vmem:[%s18343_s3 + $0x458] sm:$0xff]  }
 0x321   :  { %13273 = vmatprep.subr.bf16.mxu0 %v14649_v45 }
 0x323   :  { %13258 = vmatmul.mubr.bf16.gmra.mrb[24].mxu0 %v18557_v54 }
 0x324   :  { %13261 = vmatprep.mubr.bf16.mxu0 %v18558_v0  ;;  %13274 = vmatpush3.bf16.msra.mxu0 %v14649_v45  ;;  %v14668_v45 = vld [vmem:[%s18343_s3 + $0x478] sm:$0xff]  }
 0x325   :  { %13275 = vmatprep.subr.bf16.mxu0 %v14650_v44 }
 0x328   :  { %13276 = vmatpush3.bf16.msra.mxu0 %v14650_v44  ;;  %v14669_v44 = vld [vmem:[%s18343_s3 + $0x580] sm:$0xff]  }
 0x329   :  { %13277 = vmatprep.subr.bf16.mxu0 %v14651_v11 }
 0x32b   :  { %13262 = vmatmul.mubr.bf16.gmra.mrb[28].mxu0 %v18560_v6 }
 0x32c   :  { %13278 = vmatpush3.bf16.msra.mxu0 %v14651_v11  ;;  %13281 = vmatprep.mubr.bf16.mxu0 %v11315_v49  ;;  %v14671_v11 = vld [vmem:[%s18343_s3 + $0x590] sm:$0xff]   ;;  %v14674_v49 = vld [vmem:[%s18343_s3 + $0x5a8] sm:$0xff]  }
 0x32d   :  { %13279 = vmatprep.subr.bf16.mxu0 %v14652_v62 }
 0x330   :  { %13280 = vmatpush3.bf16.msra.mxu0 %v14652_v62  ;;  %v14672_v62 = vld [vmem:[%s18343_s3 + $0x598] sm:$0xff]  }
 0x331   :  { %13297 = vmatprep.subr.bf16.mxu0 %v14653_v38 }
 0x333   :  { %13282 = vmatmul.mubr.bf16.vlgmr.msra.gmra.mrb[16].mxu0 %v18561_v35 }
 0x334   :  { %13285 = vmatprep.mubr.bf16.mxu0 %v18562_v53  ;;  %13298 = vmatpush3.bf16.msra.mxu0 %v14653_v38  ;;  %v14676_v38 = vld [vmem:[%s18343_s3 + $0x5b8] sm:$0xff]  }
 0x335   :  { %13299 = vmatprep.subr.bf16.mxu0 %v14654_v52 }
 0x338   :  { %13300 = vmatpush3.bf16.msra.mxu0 %v14654_v52  ;;  %v18568_v52 = vld [vmem:[#allocation49_spill] sm:$0xff] }
 0x339   :  { %13301 = vmatprep.subr.bf16.mxu0 %v14655_v20 }
 0x33b   :  { %13286 = vmatmul.mubr.bf16.gmra.mrb[20].mxu0 %v16349_v47 }
 0x33c   :  { %13289 = vmatprep.mubr.bf16.mxu0 %v18564_v29  ;;  %13302 = vmatpush3.bf16.msra.mxu0 %v14655_v20  ;;  %v14678_v20 = vld [vmem:[%s18343_s3 + $0xc8] sm:$0xff]   ;;  %v18572_v29 = vcombine.low %v16371_v57, %v18571_v15  ;;  %v14683_v57 = vld [vmem:[%s18343_s3 + $0xf0] sm:$0xff]   ;;  %v18591_v15 = vld [vmem:[#allocation21_spill] sm:$0xff] }
 0x33d   :  { %13303 = vmatprep.subr.bf16.mxu0 %v14656_v4 }
 0x340   :  { %13304 = vmatpush3.bf16.msra.mxu0 %v14656_v4  ;;  %v14680_v4 = vld [vmem:[%s18343_s3 + $0xd8] sm:$0xff]  }
 0x341   :  { %13305 = vmatprep.subr.bf16.mxu0 %v14657_v19 }
 0x343   :  { %13290 = vmatmul.mubr.bf16.gmra.mrb[24].mxu0 %v18565_v33 }
 0x344   :  { %13293 = vmatprep.mubr.bf16.mxu0 %v18566_v61  ;;  %13306 = vmatpush3.bf16.msra.mxu0 %v14657_v19  ;;  %v18573_v19 = vld [vmem:[#allocation52_spill] sm:$0xff] }
 0x345   :  { %13307 = vmatprep.subr.bf16.mxu0 %v14658_v8 }
 0x348   :  { %13308 = vmatpush3.bf16.msra.mxu0 %v14658_v8 }
 0x349   :  { %13309 = vmatprep.subr.bf16.mxu0 %v14659_v50 }
 0x34b   :  { %13294 = vmatmul.mubr.bf16.gmra.mrb[28].mxu0 %v16353_v56 }
 0x34c   :  { %13310 = vmatpush3.bf16.msra.mxu0 %v14659_v50  ;;  %13313 = vmatprep.mubr.bf16.mxu0 %v18551_v23  ;;  %v14663_v23 = vld [vmem:[%s18343_s3 + $0x450] sm:$0xff]  }
 0x34d   :  { %13311 = vmatprep.subr.bf16.mxu0 %v14660_v43  ;;  %v18576_v50 = vld [vmem:[#allocation56_spill] sm:$0xff] }
 0x350   :  { %13312 = vmatpush3.bf16.msra.mxu0 %v14660_v43  ;;  %v18577_v43 = vld [vmem:[#allocation57_spill] sm:$0xff] }
 0x351   :  { %13329 = vmatprep.subr.bf16.mxu0 %v14661_v17 }
 0x353   :  { %13314 = vmatmul.mubr.bf16.vlgmr.msra.gmra.mrb[16].mxu0 %v18552_v5 }
 0x354   :  { %13317 = vmatprep.mubr.bf16.mxu0 %v18553_v55  ;;  %13330 = vmatpush3.bf16.msra.mxu0 %v14661_v17  ;;  %v18578_v17 = vcombine.low %v18576_v50, %v18577_v43 }
 0x355   :  { %13331 = vmatprep.subr.bf16.mxu0 %v14662_v16 }
 0x358   :  { %13332 = vmatpush3.bf16.msra.mxu0 %v14662_v16  ;;  %v14689_v16 = vld [vmem:[%s18343_s3 + $0x220] sm:$0xff]  }
 0x359   :  { %13333 = vmatprep.subr.bf16.mxu0 %v14663_v23 }
 0x35b   :  { %13318 = vmatmul.mubr.bf16.gmra.mrb[20].mxu0 %v16364_v14 }
 0x35c   :  { %13321 = vmatprep.mubr.bf16.mxu0 %v18557_v54  ;;  %13334 = vmatpush3.bf16.msra.mxu0 %v14663_v23  ;;  %v14670_v54 = vld [vmem:[%s18343_s3 + $0x588] sm:$0xff]  }
 0x35d   :  { %13335 = vmatprep.subr.bf16.mxu0 %v14664_v46  ;;  %v14690_v23 = vld [vmem:[%s18343_s3 + $0x228] sm:$0xff]  }
 0x360   :  { %13336 = vmatpush3.bf16.msra.mxu0 %v14664_v46  ;;  %v18579_v46 = vld [vmem:[#allocation59_spill] sm:$0xff] }
 0x361   :  { %13337 = vmatprep.subr.bf16.mxu0 %v14665_v12 }
 0x363   :  { %13322 = vmatmul.mubr.bf16.gmra.mrb[24].mxu0 %v18558_v0 }
 0x364   :  { %13325 = vmatprep.mubr.bf16.mxu0 %v18560_v6  ;;  %13338 = vmatpush3.bf16.msra.mxu0 %v14665_v12  ;;  %v18580_v12 = vld [vmem:[#allocation60_spill] sm:$0xff] }
 0x365   :  { %13339 = vmatprep.subr.bf16.mxu0 %v14666_v7 }
 0x368   :  { %13340 = vmatpush3.bf16.msra.mxu0 %v14666_v7  ;;  %v14691_v7 = vld [vmem:[%s18343_s3 + $0x230] sm:$0xff]  }
 0x369   :  { %13341 = vmatprep.subr.bf16.mxu0 %v14667_v26 }
 0x36b   :  { %13326 = vmatmul.mubr.bf16.gmra.mrb[28].mxu0 %v16367_v13 }
 0x36c   :  { %13342 = vmatpush3.bf16.msra.mxu0 %v14667_v26  ;;  %13345 = vmatprep.mubr.bf16.mxu0 %v18561_v35  ;;  %v18569_v35 = vld [vmem:[#allocation50_spill] sm:$0xff]  ;;  %v14692_v26 = vld [vmem:[%s18343_s3 + $0x238] sm:$0xff]  }
 0x36d   :  { %13343 = vmatprep.subr.bf16.mxu0 %v14668_v45  ;;  %v18574_v8 = vcombine.low %v18569_v35, %v18573_v19  ;;  %v14704_v19 = vld [vmem:[%s18343_s3 + $0x498] sm:$0xff]  }
 0x370   :  { %13344 = vmatpush3.bf16.msra.mxu0 %v14668_v45  ;;  %v18581_v45 = vld [vmem:[#allocation64_spill] sm:$0xff] }
 0x371   :  { %13361 = vmatprep.subr.bf16.mxu0 %v14669_v44 }
 0x373   :  { %13346 = vmatmul.mubr.bf16.vlgmr.msra.gmra.mrb[16].mxu0 %v18562_v53  ;;  %v18570_v53 = vcombine.low %v18568_v52, %v18569_v35  ;;  %v14697_v35 = vld [vmem:[%s18343_s3 + $0x360] sm:$0xff]  }
 0x374   :  { %13349 = vmatprep.mubr.bf16.mxu0 %v16349_v47  ;;  %13362 = vmatpush3.bf16.msra.mxu0 %v14669_v44  ;;  %v14673_v47 = vld [vmem:[%s18343_s3 + $0x5a0] sm:$0xff]  }
 0x375   :  { %13363 = vmatprep.subr.bf16.mxu0 %v14670_v54  ;;  %v18582_v44 = vld [vmem:[#allocation54_spill] sm:$0xff] }
 0x378   :  { %13364 = vmatpush3.bf16.msra.mxu0 %v14670_v54  ;;  %v18583_v54 = vcombine.low %v16428_v60, %v18582_v44  ;;  %v14915_v44 = vld [vmem:[#allocation2 + $0x50] sm:$0xe] }
 0x379   :  { %13365 = vmatprep.subr.bf16.mxu0 %v14671_v11 }
 0x37b   :  { %13350 = vmatmul.mubr.bf16.gmra.mrb[20].mxu0 %v18567_v24  ;;  %v18584_v24 = vld [vmem:[#allocation55_spill] sm:$0xff] }
 0x37c   :  { %13353 = vmatprep.mubr.bf16.mxu0 %v18565_v33  ;;  %13366 = vmatpush3.bf16.msra.mxu0 %v14671_v11  ;;  %v14686_v33 = vld [vmem:[%s18343_s3 + $0x208] sm:$0xff]   ;;  %v14693_v11 = vld [vmem:[%s18343_s3 + $0x340] sm:$0xff]  }
 0x37d   :  { %13367 = vmatprep.subr.bf16.mxu0 %v14672_v62 }
 0x380   :  { %13368 = vmatpush3.bf16.msra.mxu0 %v14672_v62  ;;  %v14694_v62 = vld [vmem:[%s18343_s3 + $0x348] sm:$0xff]  }
 0x381   :  { %13369 = vmatprep.subr.bf16.mxu0 %v14673_v47 }
 0x383   :  { %13354 = vmatmul.mubr.bf16.gmra.mrb[24].mxu0 %v18566_v61  ;;  %v14688_v61 = vld [vmem:[%s18343_s3 + $0x218] sm:$0xff]  }
 0x384   :  { %13357 = vmatprep.mubr.bf16.mxu0 %v16353_v56  ;;  %13370 = vmatpush3.bf16.msra.mxu0 %v14673_v47  ;;  %v14677_v56 = vld [vmem:[%s18343_s3 + $0xc0] sm:$0xff]  }
 0x385   :  { %13371 = vmatprep.subr.bf16.mxu0 %v14674_v49  ;;  %v18585_v47 = vld [vmem:[#allocation61_spill] sm:$0xff] }
 0x388   :  { %13372 = vmatpush3.bf16.msra.mxu0 %v14674_v49  ;;  %v14696_v49 = vld [vmem:[%s18343_s3 + $0x358] sm:$0xff]  }
 0x389   :  { %13373 = vmatprep.subr.bf16.mxu0 %v14675_v30 }
 0x38b   :  { %13358 = vmatmul.mubr.bf16.gmra.mrb[28].mxu0 %v18570_v53  ;;  %v14698_v53 = vld [vmem:[%s18343_s3 + $0x368] sm:$0xff]  }
 0x38c   :  { %13374 = vmatpush3.bf16.msra.mxu0 %v14675_v30  ;;  %13377 = vmatprep.mubr.bf16.mxu0 %v18552_v5  ;;  %v14679_v5 = vld [vmem:[%s18343_s3 + $0xd0] sm:$0xff]   ;;  %v18586_v30 = vld [vmem:[#allocation9_spill] sm:$0xff] }
 0x38d   :  { %13375 = vmatprep.subr.bf16.mxu0 %v14676_v38 }
 0x390   :  { %13376 = vmatpush3.bf16.msra.mxu0 %v14676_v38  ;;  %v18587_v38 = vld [vmem:[#allocation58_spill] sm:$0xff] }
 0x391   :  { %13393 = vmatprep.subr.bf16.mxu0 %v14677_v56  ;;  %v18588_v52 = vcombine.low %v18577_v43, %v18587_v38  ;;  %v14916_v38 = vld [vmem:[#allocation2 + $0x54] sm:$0x3] }
 0x393   :  { %13378 = vmatmul.mubr.bf16.vlgmr.msra.gmra.mrb[16].mxu0 %v18553_v55  ;;  %v14682_v55 = vld [vmem:[%s18343_s3 + $0xe8] sm:$0xff]  }
 0x394   :  { %13381 = vmatprep.mubr.bf16.mxu0 %v16364_v14  ;;  %13394 = vmatpush3.bf16.msra.mxu0 %v14677_v56  ;;  %v14681_v14 = vld [vmem:[%s18343_s3 + $0xe0] sm:$0xff]  }
 0x395   :  { %13395 = vmatprep.subr.bf16.mxu0 %v14678_v20  ;;  %v18589_v56 = vld [vmem:[#allocation62_spill] sm:$0xff] }
 0x398   :  { %13396 = vmatpush3.bf16.msra.mxu0 %v14678_v20  ;;  %v18590_v20 = vld [vmem:[#allocation63_spill] sm:$0xff] }
 0x399   :  { %13397 = vmatprep.subr.bf16.mxu0 %v14679_v5 }
 0x39b   :  { %13382 = vmatmul.mubr.bf16.gmra.mrb[20].mxu0 %v18572_v29  ;;  %v14701_v29 = vld [vmem:[%s18343_s3 + $0x480] sm:$0xff]  }
 0x39c   :  { %13385 = vmatprep.mubr.bf16.mxu0 %v18558_v0  ;;  %13398 = vmatpush3.bf16.msra.mxu0 %v14679_v5  ;;  %v14684_v0 = vld [vmem:[%s18343_s3 + $0xf8] sm:$0xff]   ;;  %v14699_v5 = vld [vmem:[%s18343_s3 + $0x370] sm:$0xff]  }
 0x39d   :  { %13399 = vmatprep.subr.bf16.mxu0 %v14680_v4 }
 0x3a0   :  { %13400 = vmatpush3.bf16.msra.mxu0 %v14680_v4  ;;  %v14700_v4 = vld [vmem:[%s18343_s3 + $0x378] sm:$0xff]  }
 0x3a1   :  { %13401 = vmatprep.subr.bf16.mxu0 %v14681_v14 }
 0x3a3   :  { %13386 = vmatmul.mubr.bf16.gmra.mrb[24].mxu0 %v18560_v6  ;;  %v14685_v6 = vld [vmem:[%s18343_s3 + $0x200] sm:$0xff]  }
 0x3a4   :  { %13389 = vmatprep.mubr.bf16.mxu0 %v16367_v13  ;;  %13402 = vmatpush3.bf16.msra.mxu0 %v14681_v14  ;;  %v18575_v13 = vcombine.low %v16418_v10, %v16428_v60  ;;  %v14687_v10 = vld [vmem:[%s18343_s3 + $0x210] sm:$0xff]   ;;  %v14702_v14 = vld [vmem:[%s18343_s3 + $0x488] sm:$0xff]  }
 0x3a5   :  { %13403 = vmatprep.subr.bf16.mxu0 %v14682_v55  ;;  %v14695_v60 = vld [vmem:[%s18343_s3 + $0x350] sm:$0xff]  }
 0x3a8   :  { %13404 = vmatpush3.bf16.msra.mxu0 %v14682_v55  ;;  %v14914_v55 = vld [vmem:[#allocation2 + $0xa8] sm:$0xe] }
 0x3a9   :  { %13405 = vmatprep.subr.bf16.mxu0 %v14683_v57 }
 0x3ab   :  { %13390 = vmatmul.mubr.bf16.gmra.mrb[28].mxu0 %v18574_v8 }
 0x3ac   :  { %13406 = vmatpush3.bf16.msra.mxu0 %v14683_v57  ;;  %13409 = vmatprep.mubr.bf16.mxu0 %v18575_v13  ;;  %v6769_v57 = vshrl.u32 %v14914_v55, 16 }
 0x3ad   :  { %13407 = vmatprep.subr.bf16.mxu0 %v14684_v0 }
 0x3ae   :  { %v6771_v8 = vrot.slane %v6769_v57, 5 }
 0x3b0   :  { %13408 = vmatpush3.bf16.msra.mxu0 %v14684_v0  ;;  %v6772_v0 = vshll.u32 %v14914_v55, 16  ;;  %v14710_v55 = vld [vmem:[%s18343_s3 + $0x5c8] sm:$0xff]  }
 0x3b1   :  { %13425 = vmatprep.subr.bf16.mxu0 %v14685_v6 }
 0x3b2   :  { %v6774_v13 = vrot.slane %v6772_v0, 6  ;;  %v14711_v0 = vld [vmem:[%s18343_s3 + $0x5d0] sm:$0xff]  }
 0x3b3   :  { %13410 = vmatmul.mubr.bf16.vlgmr.msra.gmra.mrb[16].mxu0 %v16447_v31 }
 0x3b4   :  { %13413 = vmatprep.mubr.bf16.mxu0 %v16474_v39  ;;  %13426 = vmatpush3.bf16.msra.mxu0 %v14685_v6  ;;  %v18592_v6 = vld [vmem:[#allocation27_spill] sm:$0xff]  ;;  %v6775_v50 = vor.u32 %v6774_v13, %v6771_v8 }
 0x3b5   :  { %13427 = vmatprep.subr.bf16.mxu0 %v14686_v33  ;;  %v14917_v8 = vld [vmem:[#allocation2 + $0xb0] sm:$0xe] }
 0x3b6   :  { %v6989_v13 = vshrl.u32 %v14917_v8, 16 }
 0x3b8   :  { %13428 = vmatpush3.bf16.msra.mxu0 %v14686_v33  ;;  %v6778_v33 = vshrl.u32 %v16832_v2, 16 }
 0x3b9   :  { %13429 = vmatprep.subr.bf16.mxu0 %v14687_v10 }
 0x3ba   :  { %v6780_v43 = vrot.slane %v6778_v33, 5  ;;  %v6992_v33 = vshll.u32 %v14917_v8, 16  ;;  %v14719_v8 = vld [vmem:[%s18343_s3 + $0x110] sm:$0xff]  }
 0x3bb   :  { %13414 = vmatmul.mubr.bf16.gmra.mrb[20].mxu0 %v16509_v22 }
 0x3bc   :  { %13417 = vmatprep.mubr.bf16.mxu0 %v18578_v17  ;;  %13430 = vmatpush3.bf16.msra.mxu0 %v14687_v10  ;;  %v6781_v10 = vshll.u32 %v16832_v2, 16 }
 0x3bd   :  { %13431 = vmatprep.subr.bf16.mxu0 %v14688_v61 }
 0x3be   :  { %v6783_v17 = vrot.slane %v6781_v10, 6  ;;  %v18595_v10 = vld [vmem:[#allocation25_spill] sm:$0xff] }
 0x3c0   :  { %13432 = vmatpush3.bf16.msra.mxu0 %v14688_v61  ;;  %v14705_v61 = vld [vmem:[%s18343_s3 + $0x4a0] sm:$0xff]   ;;  %v6784_v2 = vor.u32 %v6783_v17, %v6780_v43  ;;  %v14918_v43 = vld [vmem:[#allocation2 + $0xb4] sm:$0x3] }
 0x3c1   :  { %13433 = vmatprep.subr.bf16.mxu0 %v14689_v16  ;;  %v6998_v17 = vshrl.u32 %v14918_v43, 16 }
 0x3c3   :  { %13418 = vmatmul.mubr.bf16.gmra.mrb[24].mxu0 %v18579_v46 }
 0x3c4   :  { %13421 = vmatprep.mubr.bf16.mxu0 %v18580_v12  ;;  %13434 = vmatpush3.bf16.msra.mxu0 %v14689_v16  ;;  %v14706_v16 = vld [vmem:[%s18343_s3 + $0x4a8] sm:$0xff]  }
 0x3c5   :  { %13435 = vmatprep.subr.bf16.mxu0 %v14690_v23 }
 0x3c8   :  { %13436 = vmatpush3.bf16.msra.mxu0 %v14690_v23  ;;  %v6776_v23 = vrot.slane %v6775_v50, 4  ;;  %v6994_v50 = vrot.slane %v6992_v33, 6  ;;  %v14921_v33 = vld [vmem:[#allocation2 + $0xb8] sm:$0xe] }
 0x3c9   :  { %13437 = vmatprep.subr.bf16.mxu0 %v14691_v7 }
 0x3cb   :  { %13422 = vmatmul.mubr.bf16.gmra.mrb[28].mxu0 %v18581_v45 }
 0x3cc   :  { %13438 = vmatpush3.bf16.msra.mxu0 %v14691_v7  ;;  %13441 = vmatprep.mubr.bf16.mxu0 %v18583_v54  ;;  %v6971_v54 = vshrl.u32 %v14915_v44, 16 }
 0x3cd   :  { %13439 = vmatprep.subr.bf16.mxu0 %v14692_v26 }
 0x3d0   :  { %13440 = vmatpush3.bf16.msra.mxu0 %v14692_v26  ;;  %v17353_v26 = vsel %vm16408_vm9, %v6776_v23, %v6784_v2  ;;  %v14713_v23 = vld [vmem:[%s18343_s3 + $0x5e0] sm:$0xff]  }
 0x3d1   :  { %13457 = vmatprep.subr.bf16.mxu0 %v14693_v11 }
 0x3d3   :  { %13442 = vmatmul.mubr.bf16.vlgmr.msra.gmra.mrb[16].mxu0 %v18584_v24 }
 0x3d4   :  { %13445 = vmatprep.mubr.bf16.mxu0 %v18585_v47  ;;  %13458 = vmatpush3.bf16.msra.mxu0 %v14693_v11  ;;  %v6974_v11 = vshll.u32 %v14915_v44, 16 }
 0x3d5   :  { %13459 = vmatprep.subr.bf16.mxu0 %v14694_v62 }
 0x3d8   :  { %13460 = vmatpush3.bf16.msra.mxu0 %v14694_v62  ;;  %v18594_v62 = vld [vmem:[#allocation40_spill] sm:$0xff] }
 0x3d9   :  { %13461 = vmatprep.subr.bf16.mxu0 %v14695_v60 }
 0x3db   :  { %13446 = vmatmul.mubr.bf16.gmra.mrb[20].mxu0 %v18586_v30 }
 0x3dc   :  { %13449 = vmatprep.mubr.bf16.mxu0 %v18588_v52  ;;  %13462 = vmatpush3.bf16.msra.mxu0 %v14695_v60  ;;  %v17357_v60 = vcombine.low %v18594_v62, %v17353_v26  ;;  %v6980_v52 = vshrl.u32 %v14916_v38, 16  ;;  %v14715_v62 = vld [vmem:[%s18343_s3 + $0x5f0] sm:$0xff]  }
 0x3dd   :  { %13463 = vmatprep.subr.bf16.mxu0 %v14696_v49 }
 0x3e0   :  { %13464 = vmatpush3.bf16.msra.mxu0 %v14696_v49  ;;  %v14708_v49 = vld [vmem:[%s18343_s3 + $0x4b8] sm:$0xff]  }
 0x3e1   :  { %13465 = vmatprep.subr.bf16.mxu0 %v14697_v35 }
 0x3e3   :  { %13450 = vmatmul.mubr.bf16.gmra.mrb[24].mxu0 %v18589_v56 }
 0x3e4   :  { %13453 = vmatprep.mubr.bf16.mxu0 %v18590_v20  ;;  %13466 = vmatpush3.bf16.msra.mxu0 %v14697_v35  ;;  %v6983_v35 = vshll.u32 %v14916_v38, 16  ;;  %v14919_v38 = vld [vmem:[#allocation2 + $0x58] sm:$0xe] }
 0x3e5   :  { %13467 = vmatprep.subr.bf16.mxu0 %v14698_v53 }
 0x3e8   :  { %13468 = vmatpush3.bf16.msra.mxu0 %v14698_v53  ;;  %v6973_v53 = vrot.slane %v6971_v54, 5  ;;  %v14714_v54 = vld [vmem:[%s18343_s3 + $0x5e8] sm:$0xff]  }
 0x3e9   :  { %13469 = vmatprep.subr.bf16.mxu0 %v14699_v5 }
 0x3eb   :  { %13454 = vmatmul.mubr.bf16.gmra.mrb[28].mxu0 %v18591_v15 }
 0x3ec   :  { %13470 = vmatpush3.bf16.msra.mxu0 %v14699_v5  ;;  %13473 = vmatprep.mubr.bf16.mxu0 %v16447_v31  ;;  %v14703_v31 = vld [vmem:[%s18343_s3 + $0x490] sm:$0xff]   ;;  %v6976_v5 = vrot.slane %v6974_v11, 6 }
 0x3ed   :  { %13471 = vmatprep.subr.bf16.mxu0 %v14700_v4 }
 0x3f0   :  { %13472 = vmatpush3.bf16.msra.mxu0 %v14700_v4  ;;  %v14709_v4 = vld [vmem:[%s18343_s3 + $0x5c0] sm:$0xff]  }
 0x3f1   :  { %13489 = vmatprep.subr.bf16.mxu0 %v14701_v29 }
 0x3f3   :  { %13474 = vmatmul.mubr.bf16.vlgmr.msra.gmra.mrb[16].mxu0 %v16474_v39 }
 0x3f4   :  { %13477 = vmatprep.mubr.bf16.mxu0 %v16509_v22  ;;  %13490 = vmatpush3.bf16.msra.mxu0 %v14701_v29  ;;  %v6982_v29 = vrot.slane %v6980_v52, 5  ;;  %v7191_v52 = vshrl.u32 %v14919_v38, 16 }
 0x3f5   :  { %13491 = vmatprep.subr.bf16.mxu0 %v14702_v14 }
 0x3f8   :  { %13492 = vmatpush3.bf16.msra.mxu0 %v14702_v14  ;;  %v6985_v14 = vrot.slane %v6983_v35, 6  ;;  %v7194_v35 = vshll.u32 %v14919_v38, 16  ;;  %v14723_v38 = vld [vmem:[%s18343_s3 + $0x130] sm:$0xff]  }
 0x3f9   :  { %13493 = vmatprep.subr.bf16.mxu0 %v14703_v31 }
 0x3fa   :  { %v6986_v57 = vor.u32 %v6985_v14, %v6982_v29 }
 0x3fb   :  { %13478 = vmatmul.mubr.bf16.gmra.mrb[20].mxu0 %v18592_v6 }
 0x3fc   :  { %13481 = vmatprep.mubr.bf16.mxu0 %v18579_v46  ;;  %13494 = vmatpush3.bf16.msra.mxu0 %v14703_v31  ;;  %v14707_v46 = vld [vmem:[%s18343_s3 + $0x4b0] sm:$0xff]   ;;  %v6977_v31 = vor.u32 %v6976_v5, %v6973_v53  ;;  %v7193_v53 = vrot.slane %v7191_v52, 5  ;;  %v7196_v5 = vrot.slane %v7194_v35, 6  ;;  %v14923_v52 = vld [vmem:[#allocation2 + $0x4] sm:$0x3] }
 0x3fd   :  { %13495 = vmatprep.subr.bf16.mxu0 %v14704_v19  ;;  %v7471_v35 = vrot.slane %v14923_v52, 6  ;;  %v18598_v52 = vld [vmem:[#allocation23_spill] sm:$0xff] }
 0x400   :  { %13496 = vmatpush3.bf16.msra.mxu0 %v14704_v19 }
 0x401   :  { %13497 = vmatprep.subr.bf16.mxu0 %v14705_v61 }
 0x403   :  { %13482 = vmatmul.mubr.bf16.gmra.mrb[24].mxu0 %v18580_v12 }
 0x404   :  { %13485 = vmatprep.mubr.bf16.mxu0 %v18581_v45  ;;  %13498 = vmatpush3.bf16.msra.mxu0 %v14705_v61  ;;  %v6991_v61 = vrot.slane %v6989_v13, 5 }
 0x405   :  { %13499 = vmatprep.subr.bf16.mxu0 %v14706_v16 }
 0x406   :  { %v6995_v2 = vor.u32 %v6994_v50, %v6991_v61  ;;  %v14922_v50 = vld [vmem:[#allocation2 + $0xbc] sm:$0x3] }
 0x408   :  { %13500 = vmatpush3.bf16.msra.mxu0 %v14706_v16  ;;  %v7001_v16 = vshll.u32 %v14918_v43, 16  ;;  %v6996_v11 = vrot.slane %v6995_v2, 4  ;;  %v7218_v43 = vshrl.u32 %v14922_v50, 16 }
 0x409   :  { %13501 = vmatprep.subr.bf16.mxu0 %v14707_v46 }
 0x40a   :  { %v7003_v44 = vrot.slane %v7001_v16, 6  ;;  %v14721_v16 = vld [vmem:[%s18343_s3 + $0x120] sm:$0xff]  }
 0x40b   :  { %13486 = vmatmul.mubr.bf16.gmra.mrb[28].mxu0 %v17357_v60 }
 0x40c   :  { %13502 = vmatpush3.bf16.msra.mxu0 %v14707_v46  ;;  %13505 = vmatprep.mubr.bf16.mxu0 %v18584_v24  ;;  %v6978_v24 = vrot.slane %v6977_v31, 4  ;;  %v7000_v46 = vrot.slane %v6998_v17, 5  ;;  %v14717_v31 = vld [vmem:[%s18343_s3 + $0x100] sm:$0xff]   ;;  %v7221_v17 = vshll.u32 %v14922_v50, 16  ;;  %v7416_v50 = vld [vmem:[#allocation2 + $0x30] sm:$0xc] }
 0x40d   :  { %13503 = vmatprep.subr.bf16.mxu0 %v14708_v49 }
 0x40e   :  { %v17377_v19 = vsel %vm16408_vm9, %v6978_v24, %v6986_v57  ;;  %v14718_v24 = vld [vmem:[%s18343_s3 + $0x108] sm:$0xff]   ;;  %v7223_v2 = vrot.slane %v7221_v17, 6 }
 0x410   :  { %13504 = vmatpush3.bf16.msra.mxu0 %v14708_v49 }
 0x411   :  { %13521 = vmatprep.subr.bf16.mxu0 %v14709_v4 }
 0x413   :  { %13506 = vmatmul.mubr.bf16.vlgmr.msra.gmra.mrb[16].mxu0 %v18585_v47  ;;  %v11521_v47 = vcombine.low %v18595_v10, %v17377_v19  ;;  %v7209_v10 = vshrl.u32 %v14921_v33, 16 }
 0x414   :  { %13509 = vmatprep.mubr.bf16.mxu0 %v18586_v30  ;;  %13522 = vmatpush3.bf16.msra.mxu0 %v14709_v4  ;;  %v14712_v30 = vld [vmem:[%s18343_s3 + $0x5d8] sm:$0xff]  }
 0x415   :  { %13523 = vmatprep.subr.bf16.mxu0 %v14710_v55  ;;  %v14920_v4 = vld [vmem:[#allocation2 + $0x5c] sm:$0x3] }
 0x416   :  { %v7200_v29 = vshrl.u32 %v14920_v4, 16  ;;  %v7203_v14 = vshll.u32 %v14920_v4, 16  ;;  %v7415_v4 = vld [vmem:[#allocation2 + $0x28] sm:$0xc] }
 0x418   :  { %13524 = vmatpush3.bf16.msra.mxu0 %v14710_v55  ;;  %v7202_v55 = vrot.slane %v7200_v29, 5  ;;  %v7205_v57 = vrot.slane %v7203_v14, 6  ;;  %v14724_v14 = vld [vmem:[%s18343_s3 + $0x138] sm:$0xff]  }
 0x419   :  { %13525 = vmatprep.subr.bf16.mxu0 %v14711_v0 }
 0x41b   :  { %13510 = vmatmul.mubr.bf16.gmra.mrb[20].mxu0 %v11521_v47  ;;  %v7212_v47 = vshll.u32 %v14921_v33, 16  ;;  %v14725_v33 = vld [vmem:[%s18343_s3 + $0x240] sm:$0xff]  }
 0x41c   :  { %13513 = vmatprep.mubr.bf16.mxu0 %v18589_v56  ;;  %13526 = vmatpush3.bf16.msra.mxu0 %v14711_v0  ;;  %v7004_v56 = vor.u32 %v7003_v44, %v7000_v46  ;;  %v7410_v46 = vld [vmem:[#allocation2] sm:$0xc]  ;;  %v7411_v44 = vld [vmem:[#allocation2 + $0x8] sm:$0xc] }
 0x41d   :  { %13527 = vmatprep.subr.bf16.mxu0 %v14712_v30  ;;  %v7214_v61 = vrot.slane %v7212_v47, 6 }
 0x41e   :  { %v17398_v49 = vsel %vm16408_vm9, %v6996_v11, %v7004_v56  ;;  %v11557_v11 = vrot.slane %v7410_v46, 10  ;;  %v11558_v56 = vrot.slane %v7411_v44, 10  ;;  %v14929_v46 = vld [vmem:[#allocation2 + $0x34] sm:$0x3] }
 0x41f   :  { %v7495_v44 = vrot.slane %v14929_v46, 6 }
 0x420   :  { %13528 = vmatpush3.bf16.msra.mxu0 %v14712_v30 }
 0x421   :  { %13529 = vmatprep.subr.bf16.mxu0 %v14713_v23 }
 0x423   :  { %13514 = vmatmul.mubr.bf16.gmra.mrb[24].mxu0 %v18590_v20  ;;  %v11522_v20 = vcombine.low %v17353_v26, %v17398_v49  ;;  %v7197_v26 = vor.u32 %v7196_v5, %v7193_v53  ;;  %v7413_v5 = vld [vmem:[#allocation2 + $0x18] sm:$0xc] }
 0x424   :  { %13517 = vmatprep.mubr.bf16.mxu0 %v18591_v15  ;;  %13530 = vmatpush3.bf16.msra.mxu0 %v14713_v23  ;;  %v14716_v15 = vld [vmem:[%s18343_s3 + $0x5f8] sm:$0xff]   ;;  %v7220_v23 = vrot.slane %v7218_v43, 5 }
 0x425   :  { %13531 = vmatprep.subr.bf16.mxu0 %v14714_v54  ;;  %v7198_v0 = vrot.slane %v7197_v26, 4  ;;  %v7414_v26 = vld [vmem:[#allocation2 + $0x20] sm:$0xc] }
 0x428   :  { %13532 = vmatpush3.bf16.msra.mxu0 %v14714_v54 }
 0x429   :  { %13533 = vmatprep.subr.bf16.mxu0 %v14715_v62 }
 0x42b   :  { %13518 = vmatmul.mubr.bf16.gmra.mrb[28].mxu0 %v11522_v20  ;;  %v14924_v20 = vld [vmem:[#allocation2 + $0xc] sm:$0x3] }
 0x42c   :  { %13534 = vmatpush3.bf16.msra.mxu0 %v14715_v62  ;;  %13537 = vmatprep.mubr.bf16.mxu0 %v16474_v39  ;;  %v7206_v39 = vor.u32 %v7205_v57, %v7202_v55  ;;  %v7224_v62 = vor.u32 %v7223_v2, %v7220_v23  ;;  %v7412_v55 = vld [vmem:[#allocation2 + $0x10] sm:$0xc]  ;;  %v11562_v57 = vrot.slane %v7415_v4, 10  ;;  %v11563_v2 = vrot.slane %v7416_v50, 10  ;;  %v14734_v4 = vld [vmem:[%s18343_s3 + $0x388] sm:$0xff]  }
 0x42d   :  { %13535 = vmatprep.subr.bf16.mxu0 %v14716_v15  ;;  %v11559_v47 = vrot.slane %v7412_v55, 10  ;;  %v18599_v55 = vld [vmem:[#allocation18_spill] sm:$0xff] }
 0x42e   :  { %v7207_v13 = vsel %vm16408_vm9, %v7198_v0, %v7206_v39  ;;  %v14926_v39 = vld [vmem:[#allocation2 + $0x14] sm:$0x3]  ;;  %v14750_v50 = vld [vmem:[%s18343_s3 + $0x608] sm:$0xff]  }
 0x42f   :  { %v11547_v30 = vcombine.low %v17377_v19, %v7207_v13  ;;  %v14927_v13 = vld [vmem:[#allocation2 + $0x1c] sm:$0x3] }
 0x430   :  { %13536 = vmatpush3.bf16.msra.mxu0 %v14716_v15  ;;  %v7475_v15 = vrot.slane %v14924_v20, 6 }
 0x431   :  { %13553 = vmatprep.subr.bf16.mxu0 %v14717_v31 }
 0x433   :  { %13538 = vmatmul.mubr.bf16.vlgmr.msra.gmra.mrb[16].mxu0 %v16509_v22  ;;  %v14720_v22 = vld [vmem:[%s18343_s3 + $0x118] sm:$0xff]  }
 0x434   :  { %13541 = vmatprep.mubr.bf16.mxu0 %v18592_v6  ;;  %13554 = vmatpush3.bf16.msra.mxu0 %v14717_v31  ;;  %v7211_v6 = vrot.slane %v7209_v10, 5  ;;  %v11560_v31 = vrot.slane %v7413_v5, 10  ;;  %v11561_v10 = vrot.slane %v7414_v26, 10  ;;  %v14736_v26 = vld [vmem:[%s18343_s3 + $0x398] sm:$0xff]  }
 0x435   :  { %13555 = vmatprep.subr.bf16.mxu0 %v14718_v24 }
 0x436   :  { %v7215_v19 = vor.u32 %v7214_v61, %v7211_v6 }
 0x438   :  { %13556 = vmatpush3.bf16.msra.mxu0 %v14718_v24  ;;  %v7216_v54 = vrot.slane %v7215_v19, 4  ;;  %v14925_v24 = vld [vmem:[#allocation2 + $0x2c] sm:$0x3] }
 0x439   :  { %13557 = vmatprep.subr.bf16.mxu0 %v14719_v8  ;;  %v7491_v0 = vrot.slane %v14925_v24, 6  ;;  %v14726_v19 = vld [vmem:[%s18343_s3 + $0x248] sm:$0xff]   ;;  %v14737_v24 = vld [vmem:[%s18343_s3 + $0x3a0] sm:$0xff]  }
 0x43a   :  { %v7225_v53 = vsel %vm16408_vm9, %v7216_v54, %v7224_v62  ;;  %v7496_v54 = vsel %vm16789_vm12, %v11563_v2, %v7495_v44  ;;  %v18596_v62 = vcombine.low %v16797_v32, %v16803_v59  ;;  %v14731_v32 = vld [vmem:[%s18343_s3 + $0x270] sm:$0xff]  }
 0x43b   :  { %13542 = vmatmul.mubr.bf16.gmra.mrb[20].mxu0 %v11547_v30  ;;  %v11548_v29 = vcombine.low %v17398_v49, %v7225_v53  ;;  %v7483_v49 = vrot.slane %v14927_v13, 6  ;;  %v7492_v61 = vsel %vm16789_vm12, %v11562_v57, %v7491_v0  ;;  %v14733_v53 = vld [vmem:[%s18343_s3 + $0x380] sm:$0xff]   ;;  %v18600_v57 = vcombine.low %v16803_v59, %v18599_v55  ;;  %v14738_v0 = vld [vmem:[%s18343_s3 + $0x3a8] sm:$0xff]   ;;  %v14739_v59 = vld [vmem:[%s18343_s3 + $0x3b0] sm:$0xff]  }
 0x43c   :  { %13545 = vmatprep.mubr.bf16.mxu0 %v18580_v12  ;;  %13558 = vmatpush3.bf16.msra.mxu0 %v14719_v8  ;;  %v14722_v12 = vld [vmem:[%s18343_s3 + $0x128] sm:$0xff]   ;;  %v7479_v8 = vrot.slane %v14926_v39, 6  ;;  %v14740_v39 = vld [vmem:[%s18343_s3 + $0x3b8] sm:$0xff]  }
 0x43d   :  { %13559 = vmatprep.subr.bf16.mxu0 %v14720_v22  ;;  %v7484_v30 = vsel %vm16789_vm12, %v11560_v31, %v7483_v49  ;;  %v14760_v31 = vld [vmem:[%s18345_s5 + $0x58] sm:$0xff]   ;;  %v14742_v13 = vld [vmem:[%s18343_s3 + $0x4c8] sm:$0xff]   ;;  %v14743_v49 = vld [vmem:[%s18343_s3 + $0x4d0] sm:$0xff]  }
 0x43e   :  { %v7480_v43 = vsel %vm16789_vm12, %v11559_v47, %v7479_v8  ;;  %v14741_v8 = vld [vmem:[%s18343_s3 + $0x4c0] sm:$0xff]  }
 0x43f   :  { %v17457_v17 = vcombine.low %v7480_v43, %v7484_v30  ;;  %v14745_v47 = vld [vmem:[%s18343_s3 + $0x4e0] sm:$0xff]  }
 0x440   :  { %13560 = vmatpush3.bf16.msra.mxu0 %v14720_v22  ;;  %v14928_v22 = vld [vmem:[#allocation2 + $0x24] sm:$0x3] }
 0x441   :  { %13561 = vmatprep.subr.bf16.mxu0 %v14721_v16  ;;  %v7487_v6 = vrot.slane %v14928_v22, 6  ;;  %v14747_v22 = vld [vmem:[%s18343_s3 + $0x4f0] sm:$0xff]  }
 0x443   :  { %13546 = vmatmul.mubr.bf16.gmra.mrb[24].mxu0 %v18581_v45  ;;  %v7472_v45 = vsel %vm16789_vm12, %v11557_v11, %v7471_v35  ;;  %v17474_v11 = vcombine.low %v7496_v54, %v16836_v58  ;;  %v14730_v58 = vld [vmem:[%s18343_s3 + $0x268] sm:$0xff]   ;;  %v14732_v35 = vld [vmem:[%s18343_s3 + $0x278] sm:$0xff]  }
 0x444   :  { %13549 = vmatprep.mubr.bf16.mxu0 %v17357_v60  ;;  %13562 = vmatpush3.bf16.msra.mxu0 %v14721_v16  ;;  %v17441_v60 = vsel %vm16789_vm12, %v11558_v56, %v7475_v15  ;;  %v7488_v16 = vsel %vm16789_vm12, %v11561_v10, %v7487_v6  ;;  %v14728_v56 = vld [vmem:[%s18343_s3 + $0x258] sm:$0xff]   ;;  %v14757_v15 = vld [vmem:[%s18345_s5 + $0x40] sm:$0xff]  }
 0x445   :  { %13563 = vmatprep.subr.bf16.mxu0 %v14722_v12  ;;  %v11589_v7 = vcombine.low %v7472_v45, %v17441_v60  ;;  %v17464_v23 = vcombine.low %v7488_v16, %v7492_v61  ;;  %v11623_v20 = vcombine.low %v17441_v60, %v7480_v43  ;;  %v14955_v45 = vmov 0.0   ;;  %v14758_v60 = vld [vmem:[%s18345_s5 + $0x48] sm:$0xff]   ;;  %v14748_v6 = vld [vmem:[%s18343_s3 + $0x4f8] sm:$0xff]   ;;  %v14751_v43 = vld [vmem:[%s18343_s3 + $0x610] sm:$0xff]  }
 0x446   :  { %13713 = vmatprep.subr.bf16.mxu1 %v14955_v45  ;;  %v17510_v5 = vcombine.low %v7484_v30, %v7488_v16  ;;  %v18601_v10 = vld [vmem:[#allocation22_spill] sm:$0xff]  ;;  %13729 = vmatprep.mubr.msk.bf16.mxu1 %vm14956_vm13, %v14955_v45 }
 0x447   :  { %13714 = vmatpush3.bf16.msra.mxu1 %v14757_v15  ;;  %v14746_v30 = vld [vmem:[%s18343_s3 + $0x4e8] sm:$0xff]  }
 0x448   :  { %13564 = vmatpush3.bf16.msra.mxu0 %v14722_v12  ;;  %v14727_v12 = vld [vmem:[%s18343_s3 + $0x250] sm:$0xff]   ;;  %13715 = vmatprep.subr.bf16.mxu1 %v14955_v45  ;;  %v14754_v16 = vld [vmem:[%s18343_s3 + $0x628] sm:$0xff]  }
 0x449   :  { %13565 = vmatprep.subr.bf16.mxu0 %v14723_v38 }
 0x44b   :  { %13550 = vmatmul.mubr.bf16.gmra.mrb[28].mxu0 %v11548_v29  ;;  %v17515_v29 = vcombine.low %v7492_v61, %v7496_v54  ;;  %13716 = vmatpush3.bf16.msra.mxu1 %v14758_v60  ;;  %v14749_v61 = vld [vmem:[%s18343_s3 + $0x600] sm:$0xff]  }
 0x44c   :  { %13566 = vmatpush3.bf16.msra.mxu0 %v14723_v38  ;;  %13569 = vmatprep.mubr.bf16.mxu0 %v11589_v7  ;;  %v18597_v38 = vld [vmem:[#allocation24_spill] sm:$0xff] }
 0x44d   :  { %13567 = vmatprep.subr.bf16.mxu0 %v14724_v14  ;;  %13717 = vmatprep.subr.bf16.mxu1 %v14955_v45  ;;  %v14735_v7 = vld [vmem:[%s18343_s3 + $0x390] sm:$0xff]  }
 0x450   :  { %13568 = vmatpush3.bf16.msra.mxu0 %v14724_v14  ;;  %v14759_v14 = vld [vmem:[%s18345_s5 + $0x50] sm:$0xff]  }
 0x451   :  { %13585 = vmatprep.subr.bf16.mxu0 %v14725_v33  ;;  %13718 = vmatpush3.bf16.msra.mxu1 %v14759_v14 }
 0x452   :  { %13719 = vmatprep.subr.bf16.mxu1 %v14955_v45 }
 0x453   :  { %13570 = vmatmul.mubr.bf16.vlgmr.msra.gmra.mrb[16].mxu0 %v17457_v17 }
 0x454   :  { %13573 = vmatprep.mubr.bf16.mxu0 %v17464_v23  ;;  %13586 = vmatpush3.bf16.msra.mxu0 %v14725_v33  ;;  %v14744_v33 = vld [vmem:[%s18343_s3 + $0x4d8] sm:$0xff]  }
 0x455   :  { %13587 = vmatprep.subr.bf16.mxu0 %v14726_v19  ;;  %13720 = vmatpush3.bf16.msra.mxu1 %v14760_v31 }
 0x456   :  { %13721 = vmatprep.subr.bf16.mxu1 %v14955_v45 }
 0x458   :  { %13588 = vmatpush3.bf16.msra.mxu0 %v14726_v19 }
 0x459   :  { %13589 = vmatprep.subr.bf16.mxu0 %v14727_v12 }
 0x45b   :  { %13574 = vmatmul.mubr.bf16.gmra.mrb[20].mxu0 %v17474_v11 }
 0x45c   :  { %13577 = vmatprep.mubr.bf16.mxu0 %v18596_v62  ;;  %13590 = vmatpush3.bf16.msra.mxu0 %v14727_v12 }
 0x45d   :  { %13591 = vmatprep.subr.bf16.mxu0 %v14728_v56 }
 0x460   :  { %13592 = vmatpush3.bf16.msra.mxu0 %v14728_v56 }
 0x461   :  { %13593 = vmatprep.subr.bf16.mxu0 %v14729_v48 }
 0x463   :  { %13578 = vmatmul.mubr.bf16.gmra.mrb[24].mxu0 %v18597_v38 }
 0x464   :  { %13581 = vmatprep.mubr.bf16.mxu0 %v18598_v52  ;;  %13594 = vmatpush3.bf16.msra.mxu0 %v14729_v48 }
 0x465   :  { %13595 = vmatprep.subr.bf16.mxu0 %v14730_v58 }
 0x468   :  { %13596 = vmatpush3.bf16.msra.mxu0 %v14730_v58 }
 0x469   :  { %13597 = vmatprep.subr.bf16.mxu0 %v14731_v32 }
 0x46b   :  { %13582 = vmatmul.mubr.bf16.gmra.mrb[28].mxu0 %v16850_v41 }
 0x46c   :  { %13598 = vmatpush3.bf16.msra.mxu0 %v14731_v32  ;;  %13601 = vmatprep.mubr.bf16.mxu0 %v11623_v20 }
 0x46d   :  { %13599 = vmatprep.subr.bf16.mxu0 %v14732_v35 }
 0x470   :  { %13600 = vmatpush3.bf16.msra.mxu0 %v14732_v35 }
 0x471   :  { %13617 = vmatprep.subr.bf16.mxu0 %v14733_v53 }
 0x473   :  { %13602 = vmatmul.mubr.bf16.vlgmr.msra.gmra.mrb[16].mxu0 %v17510_v5 }
 0x474   :  { %13605 = vmatprep.mubr.bf16.mxu0 %v17515_v29  ;;  %13618 = vmatpush3.bf16.msra.mxu0 %v14733_v53 }
 0x475   :  { %13619 = vmatprep.subr.bf16.mxu0 %v14734_v4 }
 0x478   :  { %13620 = vmatpush3.bf16.msra.mxu0 %v14734_v4 }
 0x479   :  { %13621 = vmatprep.subr.bf16.mxu0 %v14735_v7 }
 0x47b   :  { %13606 = vmatmul.mubr.bf16.gmra.mrb[20].mxu0 %v16862_v63 }
 0x47c   :  { %13609 = vmatprep.mubr.bf16.mxu0 %v18600_v57  ;;  %13622 = vmatpush3.bf16.msra.mxu0 %v14735_v7 }
 0x47d   :  { %13623 = vmatprep.subr.bf16.mxu0 %v14736_v26 }
 0x480   :  { %13624 = vmatpush3.bf16.msra.mxu0 %v14736_v26 }
 0x481   :  { %13625 = vmatprep.subr.bf16.mxu0 %v14737_v24 }
 0x483   :  { %13610 = vmatmul.mubr.bf16.gmra.mrb[24].mxu0 %v16852_v9 }
 0x484   :  { %13613 = vmatprep.mubr.bf16.mxu0 %v16854_v27  ;;  %13626 = vmatpush3.bf16.msra.mxu0 %v14737_v24 }
 0x485   :  { %13627 = vmatprep.subr.bf16.mxu0 %v14738_v0 }
 0x488   :  { %13628 = vmatpush3.bf16.msra.mxu0 %v14738_v0 }
 0x489   :  { %13629 = vmatprep.subr.bf16.mxu0 %v14739_v59 }
 0x48b   :  { %13614 = vmatmul.mubr.bf16.gmra.mrb[28].mxu0 %v16875_v25 }
 0x48c   :  { %13630 = vmatpush3.bf16.msra.mxu0 %v14739_v59  ;;  %13633 = vmatprep.mubr.bf16.mxu0 %v17457_v17  ;;  %v14752_v17 = vld [vmem:[%s18343_s3 + $0x618] sm:$0xff]  }
 0x48d   :  { %13631 = vmatprep.subr.bf16.mxu0 %v14740_v39 }
 0x490   :  { %13632 = vmatpush3.bf16.msra.mxu0 %v14740_v39 }
 0x491   :  { %13649 = vmatprep.subr.bf16.mxu0 %v14741_v8 }
 0x493   :  { %13634 = vmatmul.mubr.bf16.vlgmr.msra.gmra.mrb[16].mxu0 %v17464_v23 }
 0x494   :  { %13637 = vmatprep.mubr.bf16.mxu0 %v17474_v11  ;;  %13650 = vmatpush3.bf16.msra.mxu0 %v14741_v8 }
 0x495   :  { %13651 = vmatprep.subr.bf16.mxu0 %v14742_v13 }
 0x498   :  { %13652 = vmatpush3.bf16.msra.mxu0 %v14742_v13 }
 0x499   :  { %13653 = vmatprep.subr.bf16.mxu0 %v14743_v49 }
 0x49b   :  { %13638 = vmatmul.mubr.bf16.gmra.mrb[20].mxu0 %v18601_v10 }
 0x49c   :  { %13641 = vmatprep.mubr.bf16.mxu0 %v18597_v38  ;;  %13654 = vmatpush3.bf16.msra.mxu0 %v14743_v49 }
 0x49d   :  { %13655 = vmatprep.subr.bf16.mxu0 %v14744_v33 }
 0x4a0   :  { %13656 = vmatpush3.bf16.msra.mxu0 %v14744_v33 }
 0x4a1   :  { %13657 = vmatprep.subr.bf16.mxu0 %v14745_v47 }
 0x4a3   :  { %13642 = vmatmul.mubr.bf16.gmra.mrb[24].mxu0 %v18598_v52 }
 0x4a4   :  { %13645 = vmatprep.mubr.bf16.mxu0 %v16850_v41  ;;  %13658 = vmatpush3.bf16.msra.mxu0 %v14745_v47 }
 0x4a5   :  { %13659 = vmatprep.subr.bf16.mxu0 %v14746_v30 }
 0x4a8   :  { %13660 = vmatpush3.bf16.msra.mxu0 %v14746_v30 }
 0x4a9   :  { %13661 = vmatprep.subr.bf16.mxu0 %v14747_v22 }
 0x4ab   :  { %13646 = vmatmul.mubr.bf16.gmra.mrb[28].mxu0 %v16885_v34 }
 0x4ac   :  { %13662 = vmatpush3.bf16.msra.mxu0 %v14747_v22  ;;  %13665 = vmatprep.mubr.bf16.mxu0 %v17510_v5 }
 0x4ad   :  { %13663 = vmatprep.subr.bf16.mxu0 %v14748_v6 }
 0x4b0   :  { %13664 = vmatpush3.bf16.msra.mxu0 %v14748_v6 }
 0x4b1   :  { %13681 = vmatprep.subr.bf16.mxu0 %v14749_v61 }
 0x4b3   :  { %13666 = vmatmul.mubr.bf16.vlgmr.msra.gmra.mrb[16].mxu0 %v17515_v29 }
 0x4b4   :  { %13669 = vmatprep.mubr.bf16.mxu0 %v16862_v63  ;;  %13682 = vmatpush3.bf16.msra.mxu0 %v14749_v61  ;;  %v14753_v63 = vld [vmem:[%s18343_s3 + $0x620] sm:$0xff]  }
 0x4b5   :  { %13683 = vmatprep.subr.bf16.mxu0 %v14750_v50 }
 0x4b8   :  { %13684 = vmatpush3.bf16.msra.mxu0 %v14750_v50 }
 0x4b9   :  { %13685 = vmatprep.subr.bf16.mxu0 %v14751_v43 }
 0x4bb   :  { %13670 = vmatmul.mubr.bf16.gmra.mrb[20].mxu0 %v11685_v37 }
 0x4bc   :  { %13673 = vmatprep.mubr.bf16.mxu0 %v16852_v9  ;;  %13686 = vmatpush3.bf16.msra.mxu0 %v14751_v43  ;;  %v14755_v9 = vld [vmem:[%s18343_s3 + $0x630] sm:$0xff]  }
 0x4bd   :  { %13687 = vmatprep.subr.bf16.mxu0 %v14752_v17 }
 0x4c0   :  { %13688 = vmatpush3.bf16.msra.mxu0 %v14752_v17 }
 0x4c1   :  { %13689 = vmatprep.subr.bf16.mxu0 %v14753_v63 }
 0x4c3   :  { %13674 = vmatmul.mubr.bf16.gmra.mrb[24].mxu0 %v16854_v27  ;;  %v14761_v27 = vld [vmem:[%s18345_s5 + $0x60] sm:$0xff]  }
 0x4c4   :  { %13677 = vmatprep.mubr.bf16.mxu0 %v16875_v25  ;;  %13690 = vmatpush3.bf16.msra.mxu0 %v14753_v63  ;;  %v14762_v25 = vld [vmem:[%s18345_s5 + $0x68] sm:$0xff]  }
 0x4c5   :  { %13691 = vmatprep.subr.bf16.mxu0 %v14754_v16  ;;  %13722 = vmatpush3.bf16.msra.mxu1 %v14761_v27 }
 0x4c6   :  { %13723 = vmatprep.subr.bf16.mxu1 %v14955_v45 }
 0x4c8   :  { %13692 = vmatpush3.bf16.msra.mxu0 %v14754_v16 }
 0x4c9   :  { %13693 = vmatprep.subr.bf16.mxu0 %v14755_v9  ;;  %13724 = vmatpush3.bf16.msra.mxu1 %v14762_v25 }
 0x4ca   :  { %13725 = vmatprep.subr.bf16.mxu1 %v14955_v45 }
 0x4cb   :  { %13678 = vmatmul.mubr.bf16.gmra.mrb[28].mxu0 %v11686_v28 }
 0x4cc   :  { %13694 = vmatpush3.bf16.msra.mxu0 %v14755_v9  ;;  %13697 = vmatprep.mubr.bf16.mxu0 %v17464_v23 }
 0x4cd   :  { %13695 = vmatprep.subr.bf16.mxu0 %v14756_v18 }
 0x4d0   :  { %13696 = vmatpush3.bf16.msra.mxu0 %v14756_v18 }
 0x4d3   :  { %13698 = vmatmul.mubr.bf16.vlgmr.msra.gmra.mrb[16].mxu0 %v17474_v11 }
 0x4d4   :  { %13701 = vmatprep.mubr.bf16.mxu0 %v18601_v10 }
 0x4db   :  { %13702 = vmatmul.mubr.bf16.gmra.mrb[20].mxu0 %v11713_v40 }
 0x4dc   :  { %13705 = vmatprep.mubr.bf16.mxu0 %v18598_v52 }
 0x4e3   :  { %13706 = vmatmul.mubr.bf16.gmra.mrb[24].mxu0 %v16850_v41  ;;  %v14763_v41 = vld [vmem:[%s18345_s5 + $0x70] sm:$0xff]  }
 0x4e4   :  { %13709 = vmatprep.mubr.bf16.mxu0 %v16885_v34  ;;  %13726 = vmatpush3.bf16.msra.mxu1 %v14763_v41  ;;  %v11723_v34 = vld [vmem:[%s18344_s4] ss:$0 sm:$0xff] }
 0x4e5   :  { %13727 = vmatprep.subr.bf16.mxu1 %v14955_v45 }
 0x4e8   :  { %13728 = vmatpush3.bf16.msra.mxu1 %v14764_v21 }
 0x4e9   :  { %13733 = vmatprep.subr.bf16.mxu1 %v14955_v45 }
 0x4eb   :  { %13710 = vmatmul.mubr.bf16.gmra.mrb[28].mxu0 %v11714_v51 }
 0x5a6   :  { %v13699_v36 = vpop.f32.mrb[16].mxu0 }
 0x5a7   :  { %v8547_v37 = vadd.f32 %v13699_v36, %v11723_v34  ;;  %v8460_v42 = vpop.f32.mrb[17].mxu0 }
 0x5a8   :  { %v8545_v28 = vadd.f32 %v11723_v34, %v8460_v42  ;;  %v13700_v3 = vpop.f32.mrb[18].mxu0 }
 0x5a9   :  { %v8548_v40 = vadd.f32 %v13700_v3, %v11723_v34  ;;  %v8463_v1 = vpop.f32.mrb[19].mxu0  ;;  %v8563_v19 = vmax.f32 %v8547_v37, 0.0 }
 0x5aa   :  { %v8546_v51 = vadd.f32 %v11723_v34, %v8463_v1  ;;  %v8561_v2 = vmax.f32 %v8545_v28, 0.0 }
 0x5ab   :  { %v8564_v23 = vmax.f32 %v8548_v40, 0.0 }
 0x5ac   :  { %v8562_v46 = vmax.f32 %v8546_v51, 0.0 }
 0x5ad   :  { %v17654_v44 = vmax.f32 %v8563_v19, %v8564_v23  ;;  %v14765_v19 = vld [vmem:[%s18345_s5] sm:$0xff]  }
 0x5ae   :  { %v8578_v12 = vmax.f32 %v8561_v2, %v8562_v46  ;;  %v13703_v54 = vpop.f32.mrb[20].mxu0 }
 0x5af   :  { %v8551_v11 = vadd.f32 %v13703_v54, %v11723_v34  ;;  %v8476_v56 = vpop.f32.mrb[21].mxu0 }
 0x5b0   :  { %v8549_v62 = vadd.f32 %v11723_v34, %v8476_v56  ;;  %v13704_v48 = vpop.f32.mrb[22].mxu0  ;;  %v8582_v4 = vrot.slane %v8578_v12, 1  ;;  %v14767_v56 = vld [vmem:[%s18345_s5 + $0x10] sm:$0xff]  }
 0x5b1   :  { %v8552_v58 = vadd.f32 %v13704_v48, %v11723_v34  ;;  %v8479_v38 = vpop.f32.mrb[23].mxu0  ;;  %v8567_v32 = vmax.f32 %v8551_v11, 0.0  ;;  %v14766_v11 = vld [vmem:[%s18345_s5 + $0x8] sm:$0xff]   ;;  %v14769_v48 = vld [vmem:[%s18345_s5 + $0x20] sm:$0xff]  }
 0x5b2   :  { %v8550_v52 = vadd.f32 %v11723_v34, %v8479_v38  ;;  %v8565_v20 = vmax.f32 %v8549_v62, 0.0  ;;  %v8586_v24 = vmax.f32 %v8578_v12, %v8582_v4  ;;  %v14768_v62 = vld [vmem:[%s18345_s5 + $0x18] sm:$0xff]   ;;  %v14771_v38 = vld [vmem:[%s18345_s5 + $0x30] sm:$0xff]   ;;  %v14777_v4 = vld [vmem:[%s18345_s5 + $0xa0] sm:$0xff]  }
 0x5b3   :  { %v8568_v35 = vmax.f32 %v8552_v58, 0.0  ;;  %v14770_v58 = vld [vmem:[%s18345_s5 + $0x28] sm:$0xff]  }
 0x5b4   :  { %v8566_v15 = vmax.f32 %v8550_v52, 0.0  ;;  %v8588_v10 = vpack.c.bf16 %v8586_v24, %v8586_v24  ;;  %v14772_v52 = vld [vmem:[%s18345_s5 + $0x38] sm:$0xff]  }
 0x5b5   :  { %v17656_v53 = vmax.f32 %v8567_v32, %v8568_v35  ;;  %v14773_v32 = vld [vmem:[%s18345_s5 + $0x80] sm:$0xff]  }
 0x5b6   :  { %v17658_v60 = vmax.f32 %v8565_v20, %v8566_v15  ;;  %v13707_v5 = vpop.f32.mrb[24].mxu0  ;;  %v8625_v16 = vunpack.c.l.b16 %v8588_v10  ;;  %v14774_v20 = vld [vmem:[%s18345_s5 + $0x88] sm:$0xff]   ;;  %v14775_v15 = vld [vmem:[%s18345_s5 + $0x90] sm:$0xff]  }
 0x5b7   :  { %v8555_v29 = vadd.f32 %v13707_v5, %v11723_v34  ;;  %v8492_v14 = vpop.f32.mrb[25].mxu0  ;;  %v14776_v5 = vld [vmem:[%s18345_s5 + $0x98] sm:$0xff]   ;;  %v9957_v24 = vrot.slane %v17656_v53, 1 }
 0x5b8   :  { %v8553_v7 = vadd.f32 %v11723_v34, %v8492_v14  ;;  %v13708_v31 = vpop.f32.mrb[26].mxu0  ;;  %v8627_v42 = vrot.slane %v8625_v16, 2  ;;  %v8830_v40 = vrot.slane %v8625_v16, 4  ;;  %v8941_v46 = vrot.slane %v8625_v16, 6  ;;  %v14779_v14 = vld [vmem:[%s18345_s5 + $0xb0] sm:$0xff]  }
 0x5b9   :  { %v8556_v26 = vadd.f32 %v13708_v31, %v11723_v34  ;;  %v8495_v55 = vpop.f32.mrb[27].mxu0  ;;  %v8571_v0 = vmax.f32 %v8555_v29, 0.0  ;;  %v14778_v29 = vld [vmem:[%s18345_s5 + $0xa8] sm:$0xff]   ;;  %v14781_v31 = vld [vmem:[%s18345_s5 + $0xc0] sm:$0xff]  }
 0x5ba   :  { %v8554_v57 = vadd.f32 %v11723_v34, %v8495_v55  ;;  %v8569_v39 = vmax.f32 %v8553_v7, 0.0  ;;  %v14780_v7 = vld [vmem:[%s18345_s5 + $0xb8] sm:$0xff]   ;;  %v14782_v55 = vld [vmem:[%s18345_s5 + $0xc8] sm:$0xff]  }
 0x5bb   :  { %v8572_v59 = vmax.f32 %v8556_v26, 0.0 }
 0x5bc   :  { %v8570_v8 = vmax.f32 %v8554_v57, 0.0  ;;  %v14783_v57 = vld [vmem:[%s18345_s5 + $0xd0] sm:$0xff]  }
 0x5bd   :  { %v17660_v13 = vmax.f32 %v8571_v0, %v8572_v59  ;;  %v9498_v0 = vrot.slane %v17658_v60, 1 }
 0x5be   :  { %v8579_v49 = vmax.f32 %v8569_v39, %v8570_v8  ;;  %v13711_v33 = vpop.f32.mrb[28].mxu0  ;;  %v14784_v39 = vld [vmem:[%s18345_s5 + $0xd8] sm:$0xff]  }
 0x5bf   :  { %v8559_v47 = vadd.f32 %v13711_v33, %v11723_v34  ;;  %v8508_v30 = vpop.f32.mrb[29].mxu0  ;;  %v9502_v33 = vmax.f32 %v17658_v60, %v9498_v0  ;;  %v14798_v0 = vld [vmem:[%s18345_s5 + $0x148] sm:$0xff]  }
 0x5c0   :  { %v8583_v22 = vrot.slane %v8579_v49, 1  ;;  %v8557_v6 = vadd.f32 %v11723_v34, %v8508_v30  ;;  %v13712_v61 = vpop.f32.mrb[30].mxu0 }
 0x5c1   :  { %v8560_v50 = vadd.f32 %v13712_v61, %v11723_v34  ;;  %v8511_v43 = vpop.f32.mrb[31].mxu0  ;;  %v8575_v9 = vmax.f32 %v8559_v47, 0.0  ;;  %v14785_v47 = vld [vmem:[%s18345_s5 + $0xe0] sm:$0xff]  }
 0x5c2   :  { %v8587_v17 = vmax.f32 %v8579_v49, %v8583_v22  ;;  %v8558_v63 = vadd.f32 %v11723_v34, %v8511_v43  ;;  %v8573_v25 = vmax.f32 %v8557_v6, 0.0  ;;  %v9961_v49 = vmax.f32 %v17656_v53, %v9957_v24  ;;  %v14786_v53 = vld [vmem:[%s18345_s5 + $0xe8] sm:$0xff]  }
 0x5c3   :  { %v8576_v18 = vmax.f32 %v8560_v50, 0.0  ;;  %v9504_v6 = vpack.c.bf16 %v9502_v33, %v9502_v33  ;;  %v14803_v33 = vld [vmem:[%s18345_s5 + $0x170] sm:$0xff]  }
 0x5c4   :  { %v8589_v27 = vpack.c.bf16 %v8587_v17, %v8587_v17  ;;  %v8574_v41 = vmax.f32 %v8558_v63, 0.0  ;;  %v9963_v22 = vpack.c.bf16 %v9961_v49, %v9961_v49  ;;  %v14787_v63 = vld [vmem:[%s18345_s5 + $0xf0] sm:$0xff]   ;;  %v14802_v49 = vld [vmem:[%s18345_s5 + $0x168] sm:$0xff]  }
 0x5c5   :  { %v17662_v21 = vmax.f32 %v8575_v9, %v8576_v18  ;;  %v9525_v43 = vunpack.c.l.b16 %v9504_v6  ;;  %v14805_v6 = vld [vmem:[%s18345_s5 + $0x180] sm:$0xff]  }
 0x5c6   :  { %v8626_v36 = vunpack.c.l.b16 %v8589_v27  ;;  %v17664_v37 = vmax.f32 %v8573_v25, %v8574_v41  ;;  %v9984_v50 = vunpack.c.l.b16 %v9963_v22 }
 0x5c7   :  { %v9958_v59 = vrot.slane %v17662_v21, 1  ;;  %v9637_v27 = vrot.slane %v9525_v43, 2  ;;  %v9748_v25 = vrot.slane %v9525_v43, 4  ;;  %v9859_v41 = vrot.slane %v9525_v43, 6 }
 0x5c8   :  { %v8628_v28 = vrot.slane %v8626_v36, 1  ;;  %v8721_v3 = vrot.slane %v8626_v36, 7  ;;  %v8831_v1 = vrot.slane %v8626_v36, 3  ;;  %v8942_v51 = vrot.slane %v8626_v36, 5  ;;  %v14788_v36 = vld [vmem:[%s18345_s5 + $0xf8] sm:$0xff]  }
 0x5c9   :  { %v9499_v8 = vrot.slane %v17664_v37, 1  ;;  %v9962_v10 = vmax.f32 %v17662_v21, %v9958_v59  ;;  %v10096_v9 = vrot.slane %v9984_v50, 2  ;;  %v10207_v18 = vrot.slane %v9984_v50, 4  ;;  %v14799_v59 = vld [vmem:[%s18345_s5 + $0x150] sm:$0xff]  }
 0x5ca   :  { %v8630_v34 = vsel %vm8629_vm14, %v8628_v28, %v8627_v42  ;;  %v8722_v23 = vsel %vm8629_vm14, %v8721_v3, %v8625_v16  ;;  %v8832_v2 = vsel %vm8629_vm14, %v8831_v1, %v8830_v40  ;;  %v17673_v54 = vsel %vm8629_vm14, %v8942_v51, %v8941_v46 }
 0x5cb   :  { %v8631_v12 = vpack.c.b16 %v8630_v34, %v8630_v34  ;;  %v8723_v35 = vpack.c.b16 %v8722_v23, %v8722_v23  ;;  %v8833_v26 = vpack.c.b16 %v8832_v2, %v8832_v2  ;;  %v9503_v30 = vmax.f32 %v17664_v37, %v9499_v8  ;;  %v14801_v8 = vld [vmem:[%s18345_s5 + $0x160] sm:$0xff]  }
 0x5cc   :  { %v9964_v61 = vpack.c.bf16 %v9962_v10, %v9962_v10  ;;  %v10318_v21 = vrot.slane %v9984_v50, 6 }
 0x5cd   :  { %13730 = vmatmul.mubr.bf16.vlgmr.msra.gmra.mrb[128].mxu1 %v8631_v12  ;;  %v9505_v60 = vpack.c.bf16 %v9503_v30, %v9503_v30 }
 0x5ce   :  { %13734 = vmatpush3.bf16.msra.mxu1 %v14765_v19  ;;  %13749 = vmatprep.mubr.msk.bf16.mxu1 %vm14956_vm13, %v14955_v45  ;;  %v9985_v17 = vunpack.c.l.b16 %v9964_v61 }
 0x5cf   :  { %13735 = vmatprep.subr.bf16.mxu1 %v14955_v45  ;;  %v9526_v16 = vunpack.c.l.b16 %v9505_v60  ;;  %v14807_v60 = vld [vmem:[%s18345_s5 + $0x190] sm:$0xff]  }
 0x5d0   :  { %v9986_v37 = vrot.slane %v9985_v17, 7  ;;  %v10097_v42 = vrot.slane %v9985_v17, 1  ;;  %v10208_v28 = vrot.slane %v9985_v17, 3  ;;  %v10319_v3 = vrot.slane %v9985_v17, 5  ;;  %v14810_v17 = vld [vmem:[%s18345_s5 + $0x1a8] sm:$0xff]  }
 0x5d1   :  { %v9527_v40 = vrot.slane %v9526_v16, 7  ;;  %v9638_v1 = vrot.slane %v9526_v16, 1  ;;  %v9749_v51 = vrot.slane %v9526_v16, 3  ;;  %v9860_v34 = vrot.slane %v9526_v16, 5 }
 0x5d2   :  { %13736 = vmatpush3.bf16.msra.mxu1 %v14766_v11  ;;  %v17782_v19 = vsel %vm8629_vm14, %v9986_v37, %v9984_v50  ;;  %v17785_v23 = vsel %vm8629_vm14, %v10097_v42, %v10096_v9  ;;  %v17788_v2 = vsel %vm8629_vm14, %v10208_v28, %v10207_v18  ;;  %v17791_v46 = vsel %vm8629_vm14, %v10319_v3, %v10318_v21  ;;  %v14808_v50 = vld [vmem:[%s18345_s5 + $0x198] sm:$0xff]   ;;  %v14814_v21 = vld [vmem:[%s18345_s5 + $0x1c8] sm:$0xff]   ;;  %v14817_v42 = vld [vmem:[%s18345_s5 + $0x1e0] sm:$0xff]  }
 0x5d3   :  { %13737 = vmatprep.subr.bf16.mxu1 %v14955_v45  ;;  %v17794_v12 = vsel %vm8629_vm14, %v9527_v40, %v9525_v43  ;;  %v17797_v11 = vsel %vm8629_vm14, %v9638_v1, %v9637_v27  ;;  %v14809_v43 = vld [vmem:[%s18345_s5 + $0x1a0] sm:$0xff]   ;;  %v14812_v9 = vld [vmem:[%s18345_s5 + $0x1b8] sm:$0xff]   ;;  %v14818_v28 = vld [vmem:[%s18345_s5 + $0x1e8] sm:$0xff]  }
 0x5d4   :  { %v14816_v37 = vld [vmem:[%s18345_s5 + $0x1d8] sm:$0xff]  }
 0x5d6   :  { %13738 = vmatpush3.bf16.msra.mxu1 %v14767_v56  ;;  %v17800_v56 = vsel %vm8629_vm14, %v9749_v51, %v9748_v25  ;;  %v14813_v25 = vld [vmem:[%s18345_s5 + $0x1c0] sm:$0xff]   ;;  %v14819_v51 = vld [vmem:[%s18345_s5 + $0x1f0] sm:$0xff]  }
 0x5d7   :  { %13739 = vmatprep.subr.bf16.mxu1 %v14955_v45 }
 0x5da   :  { %13740 = vmatpush3.bf16.msra.mxu1 %v14768_v62  ;;  %v17803_v62 = vsel %vm8629_vm14, %v9860_v34, %v9859_v41 }
 0x5db   :  { %13741 = vmatprep.subr.bf16.mxu1 %v14955_v45 }
 0x5de   :  { %13742 = vmatpush3.bf16.msra.mxu1 %v14769_v48  ;;  %v14789_v48 = vld [vmem:[%s18345_s5 + $0x100] sm:$0xff]  }
 0x5df   :  { %13743 = vmatprep.subr.bf16.mxu1 %v14955_v45 }
 0x5e2   :  { %13744 = vmatpush3.bf16.msra.mxu1 %v14770_v58  ;;  %v8944_v58 = vpack.c.b16 %v17673_v54, %v17673_v54  ;;  %v9040_v54 = vrot.slane %v17660_v13, 1 }
 0x5e3   :  { %13745 = vmatprep.subr.bf16.mxu1 %v14955_v45 }
 0x5e6   :  { %13746 = vmatpush3.bf16.msra.mxu1 %v14771_v38  ;;  %v14790_v38 = vld [vmem:[%s18345_s5 + $0x108] sm:$0xff]  }
 0x5e7   :  { %13747 = vmatprep.subr.bf16.mxu1 %v14955_v45 }
 0x5ea   :  { %13748 = vmatpush3.bf16.msra.mxu1 %v14772_v52  ;;  %v14791_v52 = vld [vmem:[%s18345_s5 + $0x110] sm:$0xff]  }
 0x5eb   :  { %13753 = vmatprep.subr.bf16.mxu1 %v14955_v45 }
 0x5ed   :  { %13750 = vmatmul.mubr.bf16.vlgmr.msra.gmra.mrb[132].mxu1 %v8723_v35  ;;  %v9044_v35 = vmax.f32 %v17660_v13, %v9040_v54  ;;  %v14821_v54 = vld [vmem:[%s18345_s5 + $0x200] sm:$0xff]  }
 0x5ee   :  { %13754 = vmatpush3.bf16.msra.mxu1 %v14773_v32  ;;  %13769 = vmatprep.mubr.msk.bf16.mxu1 %vm14956_vm13, %v14955_v45  ;;  %v14792_v32 = vld [vmem:[%s18345_s5 + $0x118] sm:$0xff]  }
 0x5ef   :  { %13755 = vmatprep.subr.bf16.mxu1 %v14955_v45 }
 0x5f2   :  { %13756 = vmatpush3.bf16.msra.mxu1 %v14774_v20  ;;  %v9039_v20 = vrot.slane %v17654_v44, 1 }
 0x5f3   :  { %13757 = vmatprep.subr.bf16.mxu1 %v14955_v45 }
 0x5f6   :  { %13758 = vmatpush3.bf16.msra.mxu1 %v14775_v15  ;;  %v14793_v15 = vld [vmem:[%s18345_s5 + $0x120] sm:$0xff]  }
 0x5f7   :  { %13759 = vmatprep.subr.bf16.mxu1 %v14955_v45 }
 0x5fa   :  { %13760 = vmatpush3.bf16.msra.mxu1 %v14776_v5  ;;  %v9046_v5 = vpack.c.bf16 %v9044_v35, %v9044_v35  ;;  %v14822_v35 = vld [vmem:[%s18345_s5 + $0x208] sm:$0xff]  }
 0x5fb   :  { %13761 = vmatprep.subr.bf16.mxu1 %v14955_v45 }
 0x5fc   :  { %v17837_v13 = vunpack.c.l.b16 %v9046_v5  ;;  %v14825_v5 = vld [vmem:[%s18345_s5 + $0x220] sm:$0xff]  }
 0x5fe   :  { %13762 = vmatpush3.bf16.msra.mxu1 %v14777_v4  ;;  %v9043_v4 = vmax.f32 %v17654_v44, %v9039_v20  ;;  %v9179_v10 = vrot.slane %v17837_v13, 1  ;;  %v9290_v16 = vrot.slane %v17837_v13, 3  ;;  %v14823_v20 = vld [vmem:[%s18345_s5 + $0x210] sm:$0xff]  }
 0x5ff   :  { %13763 = vmatprep.subr.bf16.mxu1 %v14955_v45 }
 0x602   :  { %13764 = vmatpush3.bf16.msra.mxu1 %v14778_v29  ;;  %v14794_v29 = vld [vmem:[%s18345_s5 + $0x128] sm:$0xff]  }
 0x603   :  { %13765 = vmatprep.subr.bf16.mxu1 %v14955_v45 }
 0x606   :  { %13766 = vmatpush3.bf16.msra.mxu1 %v14779_v14  ;;  %v9045_v14 = vpack.c.bf16 %v9043_v4, %v9043_v4  ;;  %v14826_v4 = vld [vmem:[%s18345_s5 + $0x228] sm:$0xff]  }
 0x607   :  { %13767 = vmatprep.subr.bf16.mxu1 %v14955_v45 }
 0x608   :  { %v17844_v44 = vunpack.c.l.b16 %v9045_v14 }
 0x60a   :  { %13768 = vmatpush3.bf16.msra.mxu1 %v14780_v7  ;;  %v14795_v7 = vld [vmem:[%s18345_s5 + $0x130] sm:$0xff]   ;;  %v9178_v30 = vrot.slane %v17844_v44, 2  ;;  %v9289_v18 = vrot.slane %v17844_v44, 4 }
 0x60b   :  { %13773 = vmatprep.subr.bf16.mxu1 %v14955_v45 }
 0x60c   :  { %v9180_v22 = vsel %vm8629_vm14, %v9179_v10, %v9178_v30  ;;  %v9291_v27 = vsel %vm8629_vm14, %v9290_v16, %v9289_v18  ;;  %v14843_v18 = vld [vmem:[%s18345_s5 + $0x2b0] sm:$0xff]  }
 0x60d   :  { %13770 = vmatmul.mubr.bf16.vlgmr.msra.gmra.mrb[136].mxu1 %v8833_v26  ;;  %v14796_v26 = vld [vmem:[%s18345_s5 + $0x138] sm:$0xff]   ;;  %v9181_v61 = vpack.c.b16 %v9180_v22, %v9180_v22  ;;  %v9292_v41 = vpack.c.b16 %v9291_v27, %v9291_v27 }
 0x60e   :  { %13774 = vmatpush3.bf16.msra.mxu1 %v14781_v31  ;;  %13789 = vmatprep.mubr.msk.bf16.mxu1 %vm14956_vm13, %v14955_v45  ;;  %v9068_v31 = vrot.slane %v17837_v13, 7  ;;  %v14836_v22 = vld [vmem:[%s18345_s5 + $0x278] sm:$0xff]  }
 0x60f   :  { %13775 = vmatprep.subr.bf16.mxu1 %v14955_v45 }
 0x612   :  { %13776 = vmatpush3.bf16.msra.mxu1 %v14782_v55  ;;  %v9069_v55 = vsel %vm8629_vm14, %v9068_v31, %v17844_v44  ;;  %v14827_v31 = vld [vmem:[%s18345_s5 + $0x230] sm:$0xff]  }
 0x613   :  { %13777 = vmatprep.subr.bf16.mxu1 %v14955_v45  ;;  %v9070_v24 = vpack.c.b16 %v9069_v55, %v9069_v55  ;;  %v14829_v55 = vld [vmem:[%s18345_s5 + $0x240] sm:$0xff]  }
 0x616   :  { %13778 = vmatpush3.bf16.msra.mxu1 %v14783_v57  ;;  %v14797_v57 = vld [vmem:[%s18345_s5 + $0x140] sm:$0xff]  }
 0x617   :  { %13779 = vmatprep.subr.bf16.mxu1 %v14955_v45 }
 0x61a   :  { %13780 = vmatpush3.bf16.msra.mxu1 %v14784_v39  ;;  %v14800_v39 = vld [vmem:[%s18345_s5 + $0x158] sm:$0xff]  }
 0x61b   :  { %13781 = vmatprep.subr.bf16.mxu1 %v14955_v45 }
 0x61e   :  { %13782 = vmatpush3.bf16.msra.mxu1 %v14785_v47  ;;  %v14804_v47 = vld [vmem:[%s18345_s5 + $0x178] sm:$0xff]  }
 0x61f   :  { %13783 = vmatprep.subr.bf16.mxu1 %v14955_v45 }
 0x622   :  { %13784 = vmatpush3.bf16.msra.mxu1 %v14786_v53  ;;  %v14806_v53 = vld [vmem:[%s18345_s5 + $0x188] sm:$0xff]  }
 0x623   :  { %13785 = vmatprep.subr.bf16.mxu1 %v14955_v45 }
 0x626   :  { %13786 = vmatpush3.bf16.msra.mxu1 %v14787_v63  ;;  %v14811_v63 = vld [vmem:[%s18345_s5 + $0x1b0] sm:$0xff]  }
 0x627   :  { %13787 = vmatprep.subr.bf16.mxu1 %v14955_v45 }
 0x62a   :  { %13788 = vmatpush3.bf16.msra.mxu1 %v14788_v36  ;;  %v14815_v36 = vld [vmem:[%s18345_s5 + $0x1d0] sm:$0xff]  }
 0x62b   :  { %13793 = vmatprep.subr.bf16.mxu1 %v14955_v45 }
 0x62d   :  { %13790 = vmatmul.mubr.bf16.vlgmr.msra.gmra.mrb[140].mxu1 %v8944_v58  ;;  %v14820_v58 = vld [vmem:[%s18345_s5 + $0x1f8] sm:$0xff]  }
 0x62e   :  { %13794 = vmatpush3.bf16.msra.mxu1 %v14789_v48  ;;  %13809 = vmatprep.mubr.msk.bf16.mxu1 %vm14956_vm13, %v14955_v45  ;;  %v9401_v48 = vrot.slane %v17837_v13, 5 }
 0x62f   :  { %13795 = vmatprep.subr.bf16.mxu1 %v14955_v45 }
 0x632   :  { %13796 = vmatpush3.bf16.msra.mxu1 %v14790_v38  ;;  %v9400_v38 = vrot.slane %v17844_v44, 6 }
 0x633   :  { %13797 = vmatprep.subr.bf16.mxu1 %v14955_v45 }
 0x636   :  { %13798 = vmatpush3.bf16.msra.mxu1 %v14791_v52  ;;  %v9402_v52 = vsel %vm8629_vm14, %v9401_v48, %v9400_v38  ;;  %v14853_v38 = vld [vmem:[%s18345_s5 + $0x300] sm:$0xff]  }
 0x637   :  { %13799 = vmatprep.subr.bf16.mxu1 %v14955_v45 }
 0x63a   :  { %13800 = vmatpush3.bf16.msra.mxu1 %v14792_v32  ;;  %v9403_v32 = vpack.c.b16 %v9402_v52, %v9402_v52  ;;  %v9862_v52 = vpack.c.b16 %v17803_v62, %v17803_v62  ;;  %v14856_v62 = vld [vmem:[%s18345_s5 + $0x318] sm:$0xff]  }
 0x63b   :  { %13801 = vmatprep.subr.bf16.mxu1 %v14955_v45 }
 0x63e   :  { %13802 = vmatpush3.bf16.msra.mxu1 %v14793_v15  ;;  %v14824_v15 = vld [vmem:[%s18345_s5 + $0x218] sm:$0xff]  }
 0x63f   :  { %13803 = vmatprep.subr.bf16.mxu1 %v14955_v45 }
 0x642   :  { %13804 = vmatpush3.bf16.msra.mxu1 %v14794_v29 }
 0x643   :  { %13805 = vmatprep.subr.bf16.mxu1 %v14955_v45 }
 0x646   :  { %13806 = vmatpush3.bf16.msra.mxu1 %v14795_v7 }
 0x647   :  { %13807 = vmatprep.subr.bf16.mxu1 %v14955_v45 }
 0x64a   :  { %13808 = vmatpush3.bf16.msra.mxu1 %v14796_v26  ;;  %v14828_v26 = vld [vmem:[%s18345_s5 + $0x238] sm:$0xff]  }
 0x64b   :  { %13813 = vmatprep.subr.bf16.mxu1 %v14955_v45 }
 0x64d   :  { %13810 = vmatmul.mubr.bf16.vlgmr.msra.gmra.mrb[144].mxu1 %v9070_v24  ;;  %v14830_v24 = vld [vmem:[%s18345_s5 + $0x248] sm:$0xff]  }
 0x64e   :  { %13814 = vmatpush3.bf16.msra.mxu1 %v14797_v57  ;;  %13829 = vmatprep.mubr.msk.bf16.mxu1 %vm14956_vm13, %v14955_v45  ;;  %v9529_v57 = vpack.c.b16 %v17794_v12, %v17794_v12  ;;  %v14832_v12 = vld [vmem:[%s18345_s5 + $0x258] sm:$0xff]  }
 0x64f   :  { %13815 = vmatprep.subr.bf16.mxu1 %v14955_v45 }
 0x652   :  { %13816 = vmatpush3.bf16.msra.mxu1 %v14798_v0  ;;  %v14831_v0 = vld [vmem:[%s18345_s5 + $0x250] sm:$0xff]  }
 0x653   :  { %13817 = vmatprep.subr.bf16.mxu1 %v14955_v45 }
 0x656   :  { %13818 = vmatpush3.bf16.msra.mxu1 %v14799_v59  ;;  %v14833_v59 = vld [vmem:[%s18345_s5 + $0x260] sm:$0xff]  }
 0x657   :  { %13819 = vmatprep.subr.bf16.mxu1 %v14955_v45 }
 0x65a   :  { %13820 = vmatpush3.bf16.msra.mxu1 %v14800_v39  ;;  %v14834_v39 = vld [vmem:[%s18345_s5 + $0x268] sm:$0xff]  }
 0x65b   :  { %13821 = vmatprep.subr.bf16.mxu1 %v14955_v45 }
 0x65e   :  { %13822 = vmatpush3.bf16.msra.mxu1 %v14801_v8 }
 0x65f   :  { %13823 = vmatprep.subr.bf16.mxu1 %v14955_v45 }
 0x662   :  { %13824 = vmatpush3.bf16.msra.mxu1 %v14802_v49 }
 0x663   :  { %13825 = vmatprep.subr.bf16.mxu1 %v14955_v45 }
 0x666   :  { %13826 = vmatpush3.bf16.msra.mxu1 %v14803_v33 }
 0x667   :  { %13827 = vmatprep.subr.bf16.mxu1 %v14955_v45 }
 0x66a   :  { %13828 = vmatpush3.bf16.msra.mxu1 %v14804_v47  ;;  %v14835_v47 = vld [vmem:[%s18345_s5 + $0x270] sm:$0xff]  }
 0x66b   :  { %13833 = vmatprep.subr.bf16.mxu1 %v14955_v45 }
 0x66d   :  { %13830 = vmatmul.mubr.bf16.vlgmr.msra.gmra.mrb[148].mxu1 %v9181_v61  ;;  %v9640_v61 = vpack.c.b16 %v17797_v11, %v17797_v11  ;;  %v14840_v11 = vld [vmem:[%s18345_s5 + $0x298] sm:$0xff]  }
 0x66e   :  { %13834 = vmatpush3.bf16.msra.mxu1 %v14805_v6  ;;  %13849 = vmatprep.mubr.msk.bf16.mxu1 %vm14956_vm13, %v14955_v45  ;;  %v14837_v6 = vld [vmem:[%s18345_s5 + $0x280] sm:$0xff]  }
 0x66f   :  { %13835 = vmatprep.subr.bf16.mxu1 %v14955_v45 }
 0x672   :  { %13836 = vmatpush3.bf16.msra.mxu1 %v14806_v53  ;;  %v14838_v53 = vld [vmem:[%s18345_s5 + $0x288] sm:$0xff]  }
 0x673   :  { %13837 = vmatprep.subr.bf16.mxu1 %v14955_v45 }
 0x676   :  { %13838 = vmatpush3.bf16.msra.mxu1 %v14807_v60  ;;  %v14839_v60 = vld [vmem:[%s18345_s5 + $0x290] sm:$0xff]  }
 0x677   :  { %13839 = vmatprep.subr.bf16.mxu1 %v14955_v45 }
 0x67a   :  { %13840 = vmatpush3.bf16.msra.mxu1 %v14808_v50  ;;  %v14841_v50 = vld [vmem:[%s18345_s5 + $0x2a0] sm:$0xff]  }
 0x67b   :  { %13841 = vmatprep.subr.bf16.mxu1 %v14955_v45 }
 0x67e   :  { %13842 = vmatpush3.bf16.msra.mxu1 %v14809_v43  ;;  %v14842_v43 = vld [vmem:[%s18345_s5 + $0x2a8] sm:$0xff]  }
 0x67f   :  { %13843 = vmatprep.subr.bf16.mxu1 %v14955_v45 }
 0x682   :  { %13844 = vmatpush3.bf16.msra.mxu1 %v14810_v17 }
 0x683   :  { %13845 = vmatprep.subr.bf16.mxu1 %v14955_v45 }
 0x686   :  { %13846 = vmatpush3.bf16.msra.mxu1 %v14811_v63 }
 0x687   :  { %13847 = vmatprep.subr.bf16.mxu1 %v14955_v45 }
 0x68a   :  { %13848 = vmatpush3.bf16.msra.mxu1 %v14812_v9 }
 0x68b   :  { %13853 = vmatprep.subr.bf16.mxu1 %v14955_v45 }
 0x68d   :  { %13850 = vmatmul.mubr.bf16.vlgmr.msra.gmra.mrb[152].mxu1 %v9292_v41  ;;  %v14845_v41 = vld [vmem:[%s18345_s5 + $0x2c0] sm:$0xff]  }
 0x68e   :  { %13854 = vmatpush3.bf16.msra.mxu1 %v14813_v25  ;;  %13869 = vmatprep.mubr.msk.bf16.mxu1 %vm14956_vm13, %v14955_v45  ;;  %v14844_v25 = vld [vmem:[%s18345_s5 + $0x2b8] sm:$0xff]  }
 0x68f   :  { %13855 = vmatprep.subr.bf16.mxu1 %v14955_v45 }
 0x692   :  { %13856 = vmatpush3.bf16.msra.mxu1 %v14814_v21  ;;  %v9751_v21 = vpack.c.b16 %v17800_v56, %v17800_v56  ;;  %v14848_v56 = vld [vmem:[%s18345_s5 + $0x2d8] sm:$0xff]  }
 0x693   :  { %13857 = vmatprep.subr.bf16.mxu1 %v14955_v45 }
 0x696   :  { %13858 = vmatpush3.bf16.msra.mxu1 %v14815_v36  ;;  %v14846_v36 = vld [vmem:[%s18345_s5 + $0x2c8] sm:$0xff]  }
 0x697   :  { %13859 = vmatprep.subr.bf16.mxu1 %v14955_v45 }
 0x69a   :  { %13860 = vmatpush3.bf16.msra.mxu1 %v14816_v37  ;;  %v14847_v37 = vld [vmem:[%s18345_s5 + $0x2d0] sm:$0xff]  }
 0x69b   :  { %13861 = vmatprep.subr.bf16.mxu1 %v14955_v45 }
 0x69e   :  { %13862 = vmatpush3.bf16.msra.mxu1 %v14817_v42  ;;  %v14849_v42 = vld [vmem:[%s18345_s5 + $0x2e0] sm:$0xff]  }
 0x69f   :  { %13863 = vmatprep.subr.bf16.mxu1 %v14955_v45 }
 0x6a0   :  { %v8715_v3 = vpop.f32.mrb[128].mxu1 }
 0x6a1   :  { %v13731_v40 = vpop.f32.mrb[129].mxu1 }
 0x6a2   :  { %13864 = vmatpush3.bf16.msra.mxu1 %v14818_v28  ;;  %v8718_v1 = vpop.f32.mrb[130].mxu1  ;;  %v14850_v28 = vld [vmem:[%s18345_s5 + $0x2e8] sm:$0xff]  }
 0x6a3   :  { %v13732_v34 = vpop.f32.mrb[131].mxu1  ;;  %13865 = vmatprep.subr.bf16.mxu1 %v14955_v45 }
 0x6a4   :  { %v14851_v34 = vld [vmem:[%s18345_s5 + $0x2f0] sm:$0xff]  }
 0x6a6   :  { %13866 = vmatpush3.bf16.msra.mxu1 %v14819_v51 }
 0x6a7   :  { %13867 = vmatprep.subr.bf16.mxu1 %v14955_v45 }
 0x6aa   :  { %13868 = vmatpush3.bf16.msra.mxu1 %v14820_v58  ;;  %v14852_v58 = vld [vmem:[%s18345_s5 + $0x2f8] sm:$0xff]  }
 0x6ab   :  { %13873 = vmatprep.subr.bf16.mxu1 %v14955_v45 }
 0x6ad   :  { %13870 = vmatmul.mubr.bf16.vlgmr.msra.gmra.mrb[156].mxu1 %v9403_v32  ;;  %v14855_v32 = vld [vmem:[%s18345_s5 + $0x310] sm:$0xff]  }
 0x6ae   :  { %13874 = vmatpush3.bf16.msra.mxu1 %v14821_v54  ;;  %13889 = vmatprep.mubr.msk.bf16.mxu1 %vm14956_vm13, %v14955_v45  ;;  %v14854_v54 = vld [vmem:[%s18345_s5 + $0x308] sm:$0xff]  }
 0x6af   :  { %13875 = vmatprep.subr.bf16.mxu1 %v14955_v45 }
 0x6b2   :  { %13876 = vmatpush3.bf16.msra.mxu1 %v14822_v35  ;;  %v14857_v35 = vld [vmem:[%s18345_s5 + $0x320] sm:$0xff]  }
 0x6b3   :  { %13877 = vmatprep.subr.bf16.mxu1 %v14955_v45 }
 0x6b6   :  { %13878 = vmatpush3.bf16.msra.mxu1 %v14823_v20  ;;  %v14858_v20 = vld [vmem:[%s18345_s5 + $0x328] sm:$0xff]  }
 0x6b7   :  { %13879 = vmatprep.subr.bf16.mxu1 %v14955_v45 }
 0x6ba   :  { %13880 = vmatpush3.bf16.msra.mxu1 %v14824_v15 }
 0x6bb   :  { %13881 = vmatprep.subr.bf16.mxu1 %v14955_v45 }
 0x6be   :  { %13882 = vmatpush3.bf16.msra.mxu1 %v14825_v5 }
 0x6bf   :  { %13883 = vmatprep.subr.bf16.mxu1 %v14955_v45 }
 0x6c0   :  { %v8807_v29 = vpop.f32.mrb[132].mxu1 }
 0x6c1   :  { %v8808_v13 = vadd.f32 %v8807_v29, %v8715_v3  ;;  %v13751_v14 = vpop.f32.mrb[133].mxu1 }
 0x6c2   :  { %v8810_v7 = vpop.f32.mrb[134].mxu1  ;;  %13884 = vmatpush3.bf16.msra.mxu1 %v14826_v4 }
 0x6c3   :  { %v13752_v44 = vpop.f32.mrb[135].mxu1  ;;  %13885 = vmatprep.subr.bf16.mxu1 %v14955_v45  ;;  %v14860_v7 = vld [vmem:[%s18345_s5 + $0x338] sm:$0xff]  }
 0x6c4   :  { %v9988_v44 = vpack.c.b16 %v17782_v19, %v17782_v19  ;;  %v14864_v19 = vld [vmem:[%s18345_s5 + $0x358] sm:$0xff]  }
 0x6c6   :  { %13886 = vmatpush3.bf16.msra.mxu1 %v14827_v31  ;;  %v14861_v31 = vld [vmem:[%s18345_s5 + $0x340] sm:$0xff]  }
 0x6c7   :  { %13887 = vmatprep.subr.bf16.mxu1 %v14955_v45 }
 0x6ca   :  { %13888 = vmatpush3.bf16.msra.mxu1 %v14828_v26  ;;  %v14862_v26 = vld [vmem:[%s18345_s5 + $0x348] sm:$0xff]  }
 0x6cb   :  { %13893 = vmatprep.subr.bf16.mxu1 %v14955_v45 }
 0x6cd   :  { %13890 = vmatmul.mubr.bf16.vlgmr.msra.gmra.mrb[160].mxu1 %v9529_v57  ;;  %v14865_v57 = vld [vmem:[%s18345_s5 + $0x360] sm:$0xff]  }
 0x6ce   :  { %13894 = vmatpush3.bf16.msra.mxu1 %v14829_v55  ;;  %13909 = vmatprep.mubr.msk.bf16.mxu1 %vm14956_vm13, %v14955_v45  ;;  %v14863_v55 = vld [vmem:[%s18345_s5 + $0x350] sm:$0xff]  }
 0x6cf   :  { %13895 = vmatprep.subr.bf16.mxu1 %v14955_v45 }
 0x6d2   :  { %13896 = vmatpush3.bf16.msra.mxu1 %v14830_v24  ;;  %v14866_v24 = vld [vmem:[%s18345_s5 + $0x368] sm:$0xff]  }
 0x6d3   :  { %13897 = vmatprep.subr.bf16.mxu1 %v14955_v45 }
 0x6d6   :  { %13898 = vmatpush3.bf16.msra.mxu1 %v14831_v0 }
 0x6d7   :  { %13899 = vmatprep.subr.bf16.mxu1 %v14955_v45 }
 0x6da   :  { %13900 = vmatpush3.bf16.msra.mxu1 %v14832_v12 }
 0x6db   :  { %13901 = vmatprep.subr.bf16.mxu1 %v14955_v45 }
 0x6de   :  { %13902 = vmatpush3.bf16.msra.mxu1 %v14833_v59 }
 0x6df   :  { %13903 = vmatprep.subr.bf16.mxu1 %v14955_v45 }
 0x6e0   :  { %v8917_v8 = vpop.f32.mrb[136].mxu1 }
 0x6e1   :  { %v8923_v49 = vadd.f32 %v8917_v8, %v8808_v13  ;;  %v13771_v33 = vpop.f32.mrb[137].mxu1  ;;  %v14859_v13 = vld [vmem:[%s18345_s5 + $0x330] sm:$0xff]  }
 0x6e2   :  { %v8920_v10 = vpop.f32.mrb[138].mxu1  ;;  %13904 = vmatpush3.bf16.msra.mxu1 %v14834_v39  ;;  %v14867_v8 = vld [vmem:[%s18345_s5 + $0x370] sm:$0xff]   ;;  %v14868_v33 = vld [vmem:[%s18345_s5 + $0x378] sm:$0xff]  }
 0x6e3   :  { %v13772_v30 = vpop.f32.mrb[139].mxu1  ;;  %13905 = vmatprep.subr.bf16.mxu1 %v14955_v45  ;;  %v14869_v10 = vld [vmem:[%s18345_s5 + $0x380] sm:$0xff]  }
 0x6e4   :  { %v14870_v30 = vld [vmem:[%s18345_s5 + $0x388] sm:$0xff]  }
 0x6e6   :  { %13906 = vmatpush3.bf16.msra.mxu1 %v14835_v47  ;;  %v10099_v47 = vpack.c.b16 %v17785_v23, %v17785_v23  ;;  %v14872_v23 = vld [vmem:[%s18345_s5 + $0x398] sm:$0xff]  }
 0x6e7   :  { %13907 = vmatprep.subr.bf16.mxu1 %v14955_v45 }
 0x6ea   :  { %13908 = vmatpush3.bf16.msra.mxu1 %v14836_v22  ;;  %v14871_v22 = vld [vmem:[%s18345_s5 + $0x390] sm:$0xff]  }
 0x6eb   :  { %13913 = vmatprep.subr.bf16.mxu1 %v14955_v45 }
 0x6ed   :  { %13910 = vmatmul.mubr.bf16.vlgmr.msra.gmra.mrb[164].mxu1 %v9640_v61  ;;  %v14874_v61 = vld [vmem:[%s18345_s5 + $0x3a8] sm:$0xff]  }
 0x6ee   :  { %13914 = vmatpush3.bf16.msra.mxu1 %v14837_v6  ;;  %13929 = vmatprep.mubr.msk.bf16.mxu1 %vm14956_vm13, %v14955_v45  ;;  %v14873_v6 = vld [vmem:[%s18345_s5 + $0x3a0] sm:$0xff]  }
 0x6ef   :  { %13915 = vmatprep.subr.bf16.mxu1 %v14955_v45 }
 0x6f2   :  { %13916 = vmatpush3.bf16.msra.mxu1 %v14838_v53 }
 0x6f3   :  { %13917 = vmatprep.subr.bf16.mxu1 %v14955_v45 }
 0x6f6   :  { %13918 = vmatpush3.bf16.msra.mxu1 %v14839_v60 }
 0x6f7   :  { %13919 = vmatprep.subr.bf16.mxu1 %v14955_v45 }
 0x6fa   :  { %13920 = vmatpush3.bf16.msra.mxu1 %v14840_v11 }
 0x6fb   :  { %13921 = vmatprep.subr.bf16.mxu1 %v14955_v45 }
 0x6fe   :  { %13922 = vmatpush3.bf16.msra.mxu1 %v14841_v50 }
 0x6ff   :  { %13923 = vmatprep.subr.bf16.mxu1 %v14955_v45 }
 0x700   :  { %v9028_v17 = vpop.f32.mrb[140].mxu1 }
 0x701   :  { %v9034_v63 = vadd.f32 %v9028_v17, %v8923_v49  ;;  %v13791_v16 = vpop.f32.mrb[141].mxu1 }
 0x702   :  { %v9031_v9 = vpop.f32.mrb[142].mxu1  ;;  %13924 = vmatpush3.bf16.msra.mxu1 %v14842_v43  ;;  %v14875_v43 = vld [vmem:[%s18345_s5 + $0x3b0] sm:$0xff]   ;;  %v14877_v16 = vld [vmem:[%s18345_s5 + $0x3c0] sm:$0xff]  }
 0x703   :  { %v13792_v27 = vpop.f32.mrb[143].mxu1  ;;  %13925 = vmatprep.subr.bf16.mxu1 %v14955_v45  ;;  %v10210_v9 = vpack.c.b16 %v17788_v2, %v17788_v2  ;;  %v14880_v2 = vld [vmem:[%s18345_s5 + $0x3d8] sm:$0xff]  }
 0x704   :  { %v14879_v27 = vld [vmem:[%s18345_s5 + $0x3d0] sm:$0xff]  }
 0x706   :  { %13926 = vmatpush3.bf16.msra.mxu1 %v14843_v18  ;;  %v14878_v18 = vld [vmem:[%s18345_s5 + $0x3c8] sm:$0xff]  }
 0x707   :  { %13927 = vmatprep.subr.bf16.mxu1 %v14955_v45 }
 0x70a   :  { %13928 = vmatpush3.bf16.msra.mxu1 %v14844_v25  ;;  %v14881_v25 = vld [vmem:[%s18345_s5 + $0x3e0] sm:$0xff]  }
 0x70b   :  { %13933 = vmatprep.subr.bf16.mxu1 %v14955_v45 }
 0x70d   :  { %13930 = vmatmul.mubr.bf16.vlgmr.msra.gmra.mrb[168].mxu1 %v9751_v21 }
 0x70e   :  { %13934 = vmatpush3.bf16.msra.mxu1 %v14845_v41  ;;  %13949 = vmatprep.mubr.msk.bf16.mxu1 %vm14956_vm13, %v14955_v45  ;;  %v14882_v41 = vld [vmem:[%s18345_s5 + $0x3e8] sm:$0xff]  }
 0x70f   :  { %13935 = vmatprep.subr.bf16.mxu1 %v14955_v45 }
 0x712   :  { %13936 = vmatpush3.bf16.msra.mxu1 %v14846_v36 }
 0x713   :  { %13937 = vmatprep.subr.bf16.mxu1 %v14955_v45 }
 0x716   :  { %13938 = vmatpush3.bf16.msra.mxu1 %v14847_v37 }
 0x717   :  { %13939 = vmatprep.subr.bf16.mxu1 %v14955_v45 }
 0x71a   :  { %13940 = vmatpush3.bf16.msra.mxu1 %v14848_v56 }
 0x71b   :  { %13941 = vmatprep.subr.bf16.mxu1 %v14955_v45 }
 0x71e   :  { %13942 = vmatpush3.bf16.msra.mxu1 %v14849_v42  ;;  %v14883_v42 = vld [vmem:[%s18345_s5 + $0x3f0] sm:$0xff]  }
 0x71f   :  { %13943 = vmatprep.subr.bf16.mxu1 %v14955_v45 }
 0x720   :  { %v9154_v3 = vpop.f32.mrb[144].mxu1 }
 0x721   :  { %v9160_v40 = vadd.f32 %v9154_v3, %v9034_v63  ;;  %v13811_v1 = vpop.f32.mrb[145].mxu1  ;;  %v14876_v63 = vld [vmem:[%s18345_s5 + $0x3b8] sm:$0xff]  }
 0x722   :  { %v9157_v51 = vpop.f32.mrb[146].mxu1  ;;  %13944 = vmatpush3.bf16.msra.mxu1 %v14850_v28  ;;  %v14884_v3 = vld [vmem:[%s18345_s5 + $0x3f8] sm:$0xff]  }
 0x723   :  { %v13812_v48 = vpop.f32.mrb[147].mxu1  ;;  %13945 = vmatprep.subr.bf16.mxu1 %v14955_v45 }
 0x726   :  { %13946 = vmatpush3.bf16.msra.mxu1 %v14851_v34 }
 0x727   :  { %13947 = vmatprep.subr.bf16.mxu1 %v14955_v45 }
 0x72a   :  { %13948 = vmatpush3.bf16.msra.mxu1 %v14852_v58 }
 0x72b   :  { %13953 = vmatprep.subr.bf16.mxu1 %v14955_v45 }
 0x72d   :  { %13950 = vmatmul.mubr.bf16.vlgmr.msra.gmra.mrb[172].mxu1 %v9862_v52 }
 0x72e   :  { %13954 = vmatpush3.bf16.msra.mxu1 %v14853_v38  ;;  %13969 = vmatprep.mubr.msk.bf16.mxu1 %vm14956_vm13, %v14955_v45 }
 0x72f   :  { %13955 = vmatprep.subr.bf16.mxu1 %v14955_v45 }
 0x732   :  { %13956 = vmatpush3.bf16.msra.mxu1 %v14854_v54 }
 0x733   :  { %13957 = vmatprep.subr.bf16.mxu1 %v14955_v45 }
 0x736   :  { %13958 = vmatpush3.bf16.msra.mxu1 %v14855_v32 }
 0x737   :  { %13959 = vmatprep.subr.bf16.mxu1 %v14955_v45 }
 0x73a   :  { %13960 = vmatpush3.bf16.msra.mxu1 %v14856_v62 }
 0x73b   :  { %13961 = vmatprep.subr.bf16.mxu1 %v14955_v45 }
 0x73e   :  { %13962 = vmatpush3.bf16.msra.mxu1 %v14857_v35  ;;  %v14886_v35 = vld [vmem:[%s18347_s7 + $0x8] sm:$0xff]  }
 0x73f   :  { %13963 = vmatprep.subr.bf16.mxu1 %v14955_v45 }
 0x740   :  { %v9265_v15 = vpop.f32.mrb[148].mxu1 }
 0x741   :  { %v9271_v5 = vadd.f32 %v9265_v15, %v9160_v40  ;;  %v13831_v4 = vpop.f32.mrb[149].mxu1  ;;  %v10321_v40 = vpack.c.b16 %v17791_v46, %v17791_v46  ;;  %v14885_v46 = vld [vmem:[%s18347_s7] sm:$0xff]   ;;  %v14888_v15 = vld [vmem:[%s18347_s7 + $0x18] sm:$0xff]  }
 0x742   :  { %v9268_v29 = vpop.f32.mrb[150].mxu1  ;;  %13964 = vmatpush3.bf16.msra.mxu1 %v14858_v20  ;;  %v14887_v20 = vld [vmem:[%s18347_s7 + $0x10] sm:$0xff]   ;;  %v14890_v4 = vld [vmem:[%s18347_s7 + $0x28] sm:$0xff]  }
 0x743   :  { %v13832_v14 = vpop.f32.mrb[151].mxu1  ;;  %13965 = vmatprep.subr.bf16.mxu1 %v14955_v45 }
 0x746   :  { %13966 = vmatpush3.bf16.msra.mxu1 %v14859_v13 }
 0x747   :  { %13967 = vmatprep.subr.bf16.mxu1 %v14955_v45 }
 0x74a   :  { %13968 = vmatpush3.bf16.msra.mxu1 %v14860_v7 }
 0x74b   :  { %13973 = vmatprep.subr.bf16.mxu1 %v14955_v45 }
 0x74d   :  { %13970 = vmatmul.mubr.bf16.vlgmr.msra.gmra.mrb[176].mxu1 %v9988_v44  ;;  %v14891_v44 = vld [vmem:[%s18347_s7 + $0x30] sm:$0xff]  }
 0x74e   :  { %13974 = vmatpush3.bf16.msra.mxu1 %v14861_v31  ;;  %13989 = vmatprep.mubr.msk.bf16.mxu1 %vm14956_vm13, %v14955_v45 }
 0x74f   :  { %13975 = vmatprep.subr.bf16.mxu1 %v14955_v45 }
 0x752   :  { %13976 = vmatpush3.bf16.msra.mxu1 %v14862_v26  ;;  %v14892_v26 = vld [vmem:[%s18347_s7 + $0x38] sm:$0xff]  }
 0x753   :  { %13977 = vmatprep.subr.bf16.mxu1 %v14955_v45 }
 0x756   :  { %13978 = vmatpush3.bf16.msra.mxu1 %v14863_v55 }
 0x757   :  { %13979 = vmatprep.subr.bf16.mxu1 %v14955_v45 }
 0x75a   :  { %13980 = vmatpush3.bf16.msra.mxu1 %v14864_v19 }
 0x75b   :  { %13981 = vmatprep.subr.bf16.mxu1 %v14955_v45 }
 0x75e   :  { %13982 = vmatpush3.bf16.msra.mxu1 %v14865_v57 }
 0x75f   :  { %13983 = vmatprep.subr.bf16.mxu1 %v14955_v45 }
 0x760   :  { %v9376_v0 = vpop.f32.mrb[152].mxu1 }
 0x761   :  { %v9382_v12 = vadd.f32 %v9376_v0, %v9271_v5  ;;  %v13851_v59 = vpop.f32.mrb[153].mxu1  ;;  %v14889_v5 = vld [vmem:[%s18347_s7 + $0x20] sm:$0xff]  }
 0x762   :  { %v9379_v39 = vpop.f32.mrb[154].mxu1  ;;  %13984 = vmatpush3.bf16.msra.mxu1 %v14866_v24 }
 0x763   :  { %v13852_v49 = vpop.f32.mrb[155].mxu1  ;;  %13985 = vmatprep.subr.bf16.mxu1 %v14955_v45 }
 0x766   :  { %13986 = vmatpush3.bf16.msra.mxu1 %v14867_v8 }
 0x767   :  { %13987 = vmatprep.subr.bf16.mxu1 %v14955_v45 }
 0x76a   :  { %13988 = vmatpush3.bf16.msra.mxu1 %v14868_v33 }
 0x76b   :  { %13993 = vmatprep.subr.bf16.mxu1 %v14955_v45 }
 0x76d   :  { %13990 = vmatmul.mubr.bf16.vlgmr.msra.gmra.mrb[180].mxu1 %v10099_v47 }
 0x76e   :  { %13994 = vmatpush3.bf16.msra.mxu1 %v14869_v10  ;;  %14009 = vmatprep.mubr.msk.bf16.mxu1 %vm14956_vm13, %v14955_v45 }
 0x76f   :  { %13995 = vmatprep.subr.bf16.mxu1 %v14955_v45 }
 0x772   :  { %13996 = vmatpush3.bf16.msra.mxu1 %v14870_v30 }
 0x773   :  { %13997 = vmatprep.subr.bf16.mxu1 %v14955_v45 }
 0x776   :  { %13998 = vmatpush3.bf16.msra.mxu1 %v14871_v22 }
 0x777   :  { %13999 = vmatprep.subr.bf16.mxu1 %v14955_v45 }
 0x77a   :  { %14000 = vmatpush3.bf16.msra.mxu1 %v14872_v23  ;;  %v12092_v23 = vld [vmem:[%s18346_s6] ss:$0 sm:$0xff] }
 0x77b   :  { %14001 = vmatprep.subr.bf16.mxu1 %v14955_v45 }
 0x77e   :  { %14002 = vmatpush3.bf16.msra.mxu1 %v14873_v6 }
 0x77f   :  { %14003 = vmatprep.subr.bf16.mxu1 %v14955_v45 }
 0x780   :  { %v9487_v53 = vpop.f32.mrb[156].mxu1 }
 0x781   :  { %v9493_v60 = vadd.f32 %v9487_v53, %v9382_v12  ;;  %v13871_v11 = vpop.f32.mrb[157].mxu1 }
 0x782   :  { %v9490_v50 = vpop.f32.mrb[158].mxu1  ;;  %14004 = vmatpush3.bf16.msra.mxu1 %v14874_v61 }
 0x783   :  { %v13872_v17 = vpop.f32.mrb[159].mxu1  ;;  %14005 = vmatprep.subr.bf16.mxu1 %v14955_v45 }
 0x784   :  { %v14893_v17 = vld [vmem:[%s18349_s9] sm:$0xff]  }
 0x786   :  { %14006 = vmatpush3.bf16.msra.mxu1 %v14875_v43 }
 0x787   :  { %14007 = vmatprep.subr.bf16.mxu1 %v14955_v45 }
 0x78a   :  { %14008 = vmatpush3.bf16.msra.mxu1 %v14876_v63 }
 0x78b   :  { %14013 = vmatprep.subr.bf16.mxu1 %v14955_v45 }
 0x78d   :  { %14010 = vmatmul.mubr.bf16.vlgmr.msra.gmra.mrb[184].mxu1 %v10210_v9  ;;  %v14895_v9 = vld [vmem:[%s18349_s9 + $0x10] sm:$0xff]  }
 0x78e   :  { %14014 = vmatpush3.bf16.msra.mxu1 %v14877_v16  ;;  %14029 = vmatprep.mubr.msk.bf16.mxu1 %vm14956_vm13, %v14955_v45  ;;  %v14894_v16 = vld [vmem:[%s18349_s9 + $0x8] sm:$0xff]  }
 0x78f   :  { %14015 = vmatprep.subr.bf16.mxu1 %v14955_v45 }
 0x792   :  { %14016 = vmatpush3.bf16.msra.mxu1 %v14878_v18  ;;  %v14896_v18 = vld [vmem:[%s18349_s9 + $0x18] sm:$0xff]  }
 0x793   :  { %14017 = vmatprep.subr.bf16.mxu1 %v14955_v45 }
 0x796   :  { %14018 = vmatpush3.bf16.msra.mxu1 %v14879_v27  ;;  %v14897_v27 = vld [vmem:[%s18349_s9 + $0x20] sm:$0xff]  }
 0x797   :  { %14019 = vmatprep.subr.bf16.mxu1 %v14955_v45 }
 0x79a   :  { %14020 = vmatpush3.bf16.msra.mxu1 %v14880_v2  ;;  %v14898_v2 = vld [vmem:[%s18349_s9 + $0x28] sm:$0xff]  }
 0x79b   :  { %14021 = vmatprep.subr.bf16.mxu1 %v14955_v45 }
 0x79e   :  { %14022 = vmatpush3.bf16.msra.mxu1 %v14881_v25  ;;  %v14899_v25 = vld [vmem:[%s18349_s9 + $0x30] sm:$0xff]  }
 0x79f   :  { %14023 = vmatprep.subr.bf16.mxu1 %v14955_v45 }
 0x7a0   :  { %v9613_v21 = vpop.f32.mrb[160].mxu1 }
 0x7a1   :  { %v9619_v36 = vadd.f32 %v9613_v21, %v9493_v60  ;;  %v13891_v37 = vpop.f32.mrb[161].mxu1  ;;  %v12093_v21 = vld [vmem:[%s18348_s8] ss:$0 sm:$0xff] }
 0x7a2   :  { %v9616_v56 = vpop.f32.mrb[162].mxu1  ;;  %14024 = vmatpush3.bf16.msra.mxu1 %v14882_v41  ;;  %v14900_v41 = vld [vmem:[%s18349_s9 + $0x38] sm:$0xff]   ;;  %s14957_s9 = smov [#allocation3]  }
 0x7a3   :  { %v13892_v28 = vpop.f32.mrb[163].mxu1  ;;  %14025 = vmatprep.subr.bf16.mxu1 %v14955_v45  ;;  %s10652_s23 = sshll.u32 %s14957_s9, 4  ;;  %s10653_s23 = int_to_ptr.vmem [resolvable:$true] %s10652_s23 }
 0x7a4   :  { %s14930_s8 = scalar_lea.vmem %s10653_s23, 32  ;;  %p14935_p1 = scmp.lt.s32.totalorder %s10653_s23, %s10653_s23 }
 0x7a5   :  { %p14931_p0 = scmp.ne.s32.totalorder %s10653_s23, %s14930_s8  ;;  %p14936_p2 = scmp.lt.s32.totalorder %s14930_s8, %s14930_s8 }
 0x7a6   :  { %14026 = vmatpush3.bf16.msra.mxu1 %v14883_v42 }
 0x7a7   :  { %14027 = vmatprep.subr.bf16.mxu1 %v14955_v45  ;;  %p14937_p3 = por %p14936_p2, %p14935_p1 }
 0x7a9   :  { %p14938_p4 = pnand %p14937_p3, %p14931_p0 }
 0x7aa   :  { %14028 = vmatpush3.bf16.msra.mxu1 %v14884_v3 }
 0x7ab   :  { %14033 = vmatprep.subr.bf16.mxu1 %v14955_v45 }
 0x7ad   :  { %14030 = vmatmul.mubr.bf16.vlgmr.msra.gmra.mrb[188].mxu1 %v10321_v40 }
 0x7ae   :  { %14049 = vmatprep.mubr.msk.bf16.mxu1 %vm14956_vm13, %v14955_v45  ;;  %14034 = vmatpush3.bf16.msra.mxu1 %v14885_v46 }
 0x7af   :  { %14035 = vmatprep.subr.bf16.mxu1 %v14955_v45 }
 0x7b2   :  { %14036 = vmatpush3.bf16.msra.mxu1 %v14886_v35 }
 0x7b3   :  { %14037 = vmatprep.subr.bf16.mxu1 %v14955_v45 }
 0x7b6   :  { %14038 = vmatpush3.bf16.msra.mxu1 %v14887_v20 }
 0x7b7   :  { %14039 = vmatprep.subr.bf16.mxu1 %v14955_v45 }
 0x7ba   :  { %14040 = vmatpush3.bf16.msra.mxu1 %v14888_v15 }
 0x7bb   :  { %14041 = vmatprep.subr.bf16.mxu1 %v14955_v45 }
 0x7be   :  { %14042 = vmatpush3.bf16.msra.mxu1 %v14889_v5 }
 0x7bf   :  { %14043 = vmatprep.subr.bf16.mxu1 %v14955_v45 }
 0x7c0   :  { %v9724_v1 = vpop.f32.mrb[164].mxu1 }
 0x7c1   :  { %v9730_v51 = vadd.f32 %v9724_v1, %v9619_v36  ;;  %v13911_v34 = vpop.f32.mrb[165].mxu1  ;;  %v12102_v1 = vld [vmem:[%s18350_s10] ss:$0 sm:$0xff] }
 0x7c2   :  { %v9727_v48 = vpop.f32.mrb[166].mxu1  ;;  %14044 = vmatpush3.bf16.msra.mxu1 %v14890_v4 }
 0x7c3   :  { %v13912_v58 = vpop.f32.mrb[167].mxu1  ;;  %14045 = vmatprep.subr.bf16.mxu1 %v14955_v45 }
 0x7c6   :  { %14046 = vmatpush3.bf16.msra.mxu1 %v14891_v44 }
 0x7c7   :  { %14047 = vmatprep.subr.bf16.mxu1 %v14955_v45 }
 0x7ca   :  { %14048 = vmatpush3.bf16.msra.mxu1 %v14892_v26 }
 0x7cb   :  { %14053 = vmatprep.subr.bf16.mxu1 %v14955_v45 }
 0x7e0   :  { %v9835_v38 = vpop.f32.mrb[168].mxu1 }
 0x7e1   :  { %v9841_v52 = vadd.f32 %v9835_v38, %v9730_v51  ;;  %v13931_v54 = vpop.f32.mrb[169].mxu1 }
 0x7e2   :  { %v9838_v32 = vpop.f32.mrb[170].mxu1 }
 0x7e3   :  { %v13932_v62 = vpop.f32.mrb[171].mxu1 }
 0x800   :  { %v9946_v29 = vpop.f32.mrb[172].mxu1 }
 0x801   :  { %v9952_v13 = vadd.f32 %v9946_v29, %v9841_v52  ;;  %v13951_v14 = vpop.f32.mrb[173].mxu1 }
 0x802   :  { %v9949_v7 = vpop.f32.mrb[174].mxu1 }
 0x803   :  { %v13952_v31 = vpop.f32.mrb[175].mxu1 }
 0x820   :  { %v10072_v55 = vpop.f32.mrb[176].mxu1 }
 0x821   :  { %v10078_v19 = vadd.f32 %v10072_v55, %v9952_v13  ;;  %v13971_v57 = vpop.f32.mrb[177].mxu1 }
 0x822   :  { %v10075_v24 = vpop.f32.mrb[178].mxu1 }
 0x823   :  { %v13972_v0 = vpop.f32.mrb[179].mxu1 }
 0x840   :  { %v10183_v12 = vpop.f32.mrb[180].mxu1 }
 0x841   :  { %v10189_v59 = vadd.f32 %v10183_v12, %v10078_v19  ;;  %v13991_v39 = vpop.f32.mrb[181].mxu1 }
 0x842   :  { %v10186_v8 = vpop.f32.mrb[182].mxu1 }
 0x843   :  { %v13992_v49 = vpop.f32.mrb[183].mxu1 }
 0x860   :  { %v10294_v33 = vpop.f32.mrb[184].mxu1 }
 0x861   :  { %v10300_v10 = vadd.f32 %v10294_v33, %v10189_v59  ;;  %v14011_v47 = vpop.f32.mrb[185].mxu1 }
 0x862   :  { %v10297_v30 = vpop.f32.mrb[186].mxu1 }
 0x863   :  { %v14012_v22 = vpop.f32.mrb[187].mxu1 }
 0x880   :  { %v10405_v6 = vpop.f32.mrb[188].mxu1 }
 0x881   :  { %v10411_v61 = vadd.f32 %v10405_v6, %v10300_v10  ;;  %v14031_v53 = vpop.f32.mrb[189].mxu1 }
 0x882   :  { %v10408_v60 = vpop.f32.mrb[190].mxu1 }
 0x883   :  { %v10418_v11 = vadd.f32 %v12092_v23, %v10411_v61  ;;  %v14032_v50 = vpop.f32.mrb[191].mxu1 }
 0x885   :  { %v10419_v43 = vmax.f32 %v10418_v11, 0.0 }
 0x887   :  { %v10420_v63 = vpack.c.bf16 %v10419_v43, %v10419_v43 }
 0x889   :  { %14050 = vmatmul.mubr.bf16.vlgmr.msra.gmra.mrb[192].mxu1 %v10420_v63 }
 0x88a   :  { %14054 = vmatpush3.bf16.msra.mxu1 %v14893_v17  ;;  %14069 = vmatprep.mubr.msk.bf16.mxu1 %vm14956_vm13, %v14955_v45 }
 0x88b   :  { %14055 = vmatprep.subr.bf16.mxu1 %v14955_v45 }
 0x88e   :  { %14056 = vmatpush3.bf16.msra.mxu1 %v14894_v16 }
 0x88f   :  { %14057 = vmatprep.subr.bf16.mxu1 %v14955_v45 }
 0x892   :  { %14058 = vmatpush3.bf16.msra.mxu1 %v14895_v9 }
 0x893   :  { %14059 = vmatprep.subr.bf16.mxu1 %v14955_v45 }
 0x896   :  { %14060 = vmatpush3.bf16.msra.mxu1 %v14896_v18 }
 0x897   :  { %14061 = vmatprep.subr.bf16.mxu1 %v14955_v45 }
 0x89a   :  { %14062 = vmatpush3.bf16.msra.mxu1 %v14897_v27 }
 0x89b   :  { %14063 = vmatprep.subr.bf16.mxu1 %v14955_v45 }
 0x89e   :  { %14064 = vmatpush3.bf16.msra.mxu1 %v14898_v2 }
 0x89f   :  { %14065 = vmatprep.subr.bf16.mxu1 %v14955_v45 }
 0x8a2   :  { %14066 = vmatpush3.bf16.msra.mxu1 %v14899_v25 }
 0x8a3   :  { %14067 = vmatprep.subr.bf16.mxu1 %v14955_v45 }
 0x8a6   :  { %14068 = vmatpush3.bf16.msra.mxu1 %v14900_v41 }
 0x95c   :  { %v10526_v36 = vpop.f32.mrb[192].mxu1 }
 0x95d   :  { %v10527_v37 = vadd.f32 %v12093_v21, %v10526_v36  ;;  %v14051_v56 = vpop.f32.mrb[193].mxu1 }
 0x95e   :  { %v10529_v42 = vpop.f32.mrb[194].mxu1 }
 0x95f   :  { %v10532_v28 = vmax.f32 %v10527_v37, 0.0  ;;  %v14052_v3 = vpop.f32.mrb[195].mxu1 }
 0x961   :  { %v10533_v40 = vpack.c.bf16 %v10532_v28, %v10532_v28 }
 0x963   :  { %14070 = vmatmul.mubr.bf16.vlgmr.msra.gmra.mrb[196].mxu1 %v10533_v40 }
 0xa36   :  { %v10639_v45 = vpop.f32.mrb[196].mxu1 }
 0xa37   :  { %v10640_v51 = vadd.f32 %v12102_v1, %v10639_v45  ;;  %v14071_v34 = vpop.f32.mrb[197].mxu1 }
 0xa38   :  { %v10642_v48 = vpop.f32.mrb[198].mxu1 }
 0xa39   :  { %10645 = vst [vmem:[#allocation3] sm:$0x3] %v10640_v51  ;;  %v14072_v58 = vpop.f32.mrb[199].mxu1 }
 0xa3a   :  { %14941 = shalt.err (!%p14938_p4)
}
 0xa3b   :  { %s14942_s10 = scalar_lea.hbm %s18351_s11, 32 }
 0xa3c   :  { %p14943_p5 = scmp.ne.s32.totalorder %s18351_s11, %s14942_s10  ;;  %p14946_p6 = scmp.lt.u32.totalorder %s14942_s10, %s18351_s11 }
 0xa3e   :  { %p14948_p7 = pnand %p14946_p6, %p14943_p5 }
 0xa40   :  { %14951 = shalt.err (!%p14948_p7)
}
 0xa41   :  { %10655 = dma.vmem_to_hbm [thread:$0]  %s10653_s23, 32, %s18351_s11, [#allocation4]  }
 0xa42   :  { %14952 = dma.done.wait [#allocation4], 32  }
 0xa43   :  { %14953 = vsyncadd [#allocation4], 4294967264 }
 0xa44   :  { %10659 = vsyncpa [#allocation4], 1 }

</bundles_post_ra>
